<compile_context>
chip_gen: v7x
topology: tpu7x:2x2x1
jax: 0.10.0
libtpu: 0.0.40
codegen_flags: <defaults>
</compile_context>

<pallas_src>
import functools
import math

import jax
import jax.numpy as jnp
import numpy as np
from jax.experimental import pallas as pl
from jax.experimental.pallas import tpu as pltpu

EPS = 1e-5


# --------------------------------------------------------------------------------------
# In-kernel math helpers
# --------------------------------------------------------------------------------------
def _erf(x):
    # Abramowitz & Stegun 7.1.26 rational approximation (|err| < 1.5e-7); exp + arithmetic
    # only, matches torch.nn.GELU()'s exact (erf) formulation within test tolerance.
    a1, a2, a3, a4, a5 = 0.254829592, -0.284496736, 1.421413741, -1.453152027, 1.061405429
    p = 0.3275911
    sgn = jnp.where(x >= 0, 1.0, -1.0).astype(x.dtype)
    ax = jnp.abs(x)
    t = pl.reciprocal(1.0 + p * ax, approx=True)          # EUP slot, VALU stays free
    poly = ((((a5 * t + a4) * t + a3) * t + a2) * t + a1) * t
    return sgn * (1.0 - poly * jnp.exp(-ax * ax))


def _gelu(x):
    return 0.5 * x * (1.0 + _erf(x * 0.7071067811865476))


# --------------------------------------------------------------------------------------
# The single fused kernel (one batch element per grid step)
# --------------------------------------------------------------------------------------
def _fused_kernel(
    # per-batch inputs (wrapper-side im2col views of the raw signal)
    xr1c_ref, xr2c_ref,
    # packed constants (three lane-widths)
    w256_ref, w128_ref, w64_ref,
    # output (t_cat, 128) lane-dense, channels in lanes 0..63
    o_ref,
    # VMEM scratch for activations re-read through shifted / strided windows
    s_p1, s_a2, s_c3in, s_b1, s_q1, s_b2, s_q2,
    *, dims, off,
):
    (p1a, l1b, p1b, l1c, l2a, p2a, l2b, p2b, l2c, t_cat) = dims

    def mm(a, b):
        return jnp.dot(a, b, preferred_element_type=jnp.float32)

    def w128(name, rows):
        return w128_ref[pl.ds(off[name], rows), :]

    def w64(name, rows):
        return w64_ref[pl.ds(off[name], rows), :]

    def bias(name, width):
        return w256_ref[pl.ds(off[name], 1), pl.ds(0, width)]

    # ---------------- cnn1 branch ----------------
    # conv1 (k=20,s=5) + BN + GELU with MaxPool(4,4) fused: ONE (p1a,40)x(40,256) matmul
    # over the 4 packed output phases, then an elementwise max over the 64-lane slices.
    y = _gelu(mm(xr1c_ref[...], w256_ref[pl.ds(off["c1"], 40), :]) + bias("bc1", 256))
    s_p1[...] = jnp.maximum(jnp.maximum(y[:, 0:64], y[:, 64:128]),
                            jnp.maximum(y[:, 128:192], y[:, 192:256]))      # (p1a, 64)

    # conv2 (k=4,s=1) + BN + GELU: 4 taps lane-concatenated -> ONE K=256 matmul.
    op = jnp.concatenate([s_p1[pl.ds(kk, l1b), :] for kk in range(4)], axis=1)
    s_a2[...] = _gelu(mm(op, w128("c2", 256)) + bias("bc2", 128))           # (l1b, 128)

    # MaxPool(4,4): stride-4 VMEM reads + elementwise max (no selection matmuls).
    pool2 = s_a2[pl.ds(0, p1b, stride=4), :]
    for p in range(1, 4):
        pool2 = jnp.maximum(pool2, s_a2[pl.ds(p, p1b, stride=4), :])
    # conv3 has padding=1: park pool2 in a scratch with one zero row on each side.
    s_c3in[pl.ds(0, 1), :] = jnp.zeros((1, 128), jnp.float32)
    s_c3in[pl.ds(p1b + 1, 1), :] = jnp.zeros((1, 128), jnp.float32)
    s_c3in[pl.ds(1, p1b), :] = pool2

    # conv3 (k=4,s=2,pad=1) + BN + GELU: stride-2 windows lane-concatenated -> ONE K=512.
    op = jnp.concatenate([s_c3in[pl.ds(kk, l1c, stride=2), :] for kk in range(4)], axis=1)
    out1 = _gelu(mm(op, w128("c3", 512)) + bias("bc3", 128))                # (l1c, 128)

    # ---------------- cnn2 branch ----------------
    # conv1 (k=200,s=50) + BN + GELU: ONE matmul on the wrapper-side im2col (l2a, 200).
    s_b1[...] = _gelu(mm(xr2c_ref[...], w64("d1", 200)) + bias("bd1", 64))  # (l2a, 64)

    # MaxPool(4,1): max over 4 shifted VMEM windows.
    q = s_b1[pl.ds(0, p2a), :]
    for kk in range(1, 4):
        q = jnp.maximum(q, s_b1[pl.ds(kk, p2a), :])
    s_q1[...] = q                                                           # (p2a, 64)

    # conv2 (k=8,s=2) + BN + GELU: 8 stride-2 windows lane-concatenated -> ONE K=512 matmul.
    op = jnp.concatenate([s_q1[pl.ds(kk, l2b, stride=2), :] for kk in range(8)], axis=1)
    s_b2[...] = _gelu(mm(op, w128("d2", 512)) + bias("bd2", 128))           # (l2b, 128)

    # MaxPool(4,1)
    q = s_b2[pl.ds(0, p2b), :]
    for kk in range(1, 4):
        q = jnp.maximum(q, s_b2[pl.ds(kk, p2b), :])
    s_q2[...] = q                                                           # (p2b, 128)

    # conv3 (k=4,s=1) + BN + GELU: ONE K=512 matmul.
    op = jnp.concatenate([s_q2[pl.ds(kk, l2c), :] for kk in range(4)], axis=1)
    out2 = _gelu(mm(op, w128("d3", 512)) + bias("bd3", 128))                # (l2c, 128)

    # ------------- SE residual blocks on the concatenated (t_cat, 128) feature map -------
    h = jnp.concatenate([out1, out2], axis=0)                               # (t_cat, 128)
    inv_t = 1.0 / float(t_cat)

    def se_block(hin, c1, c1b, c2, c2b, w1, w2, res):
        o = jnp.maximum(mm(hin, c1) + c1b, 0.0)                 # conv1 + BN + ReLU
        o = mm(o, c2) + c2b                                     # conv2 + BN
        yv = jnp.sum(o, axis=0, keepdims=True) * inv_t          # AdaptiveAvgPool1d(1)
        hid = jnp.maximum(jnp.sum(yv * w1, axis=1, keepdims=True), 0.0)     # fc1 + ReLU
        gate = jax.nn.sigmoid(jnp.sum(hid * w2, axis=0, keepdims=True))     # fc2 + sigmoid
        return jnp.maximum(o * gate + res, 0.0)                 # SE scale + residual + ReLU

    res1 = mm(h, w64("e1ds", 128)) + bias("be1ds", 64)          # downsample residual path
    h1 = se_block(h, w64("e1c1", 128), bias("be1c1", 64),
                  w64("e1c2", 64), bias("be1c2", 64),
                  w64("e1w1", 4), w64("e1w2", 4), res1)
    h2 = se_block(h1, w64("e2c1", 64), bias("be2c1", 64),
                  w64("e2c2", 64), bias("be2c2", 64),
                  w64("e2w1", 4), w64("e2w2", 4), h1)

    # Lane-dense 128-wide store (upper 64 lanes zero); wrapper slices + transposes.
    o_ref[...] = jnp.concatenate([h2, jnp.zeros_like(h2)], axis=1)


# --------------------------------------------------------------------------------------
# Wrapper glue: BN folding, weight packing, im2col, pallas_call
# --------------------------------------------------------------------------------------
def _bn_fold(bias, bn):
    gamma, beta, mean, var = bn
    scale = gamma / jnp.sqrt(var + EPS)
    shift = beta + (bias - mean) * scale
    return scale, shift                       # (c,), (c,)


def _taps_concat(w, scale):
    # PyTorch Conv1d weight (Cout, Cin, K) -> (K*Cin, Cout) tap-major rows, BN scale folded.
    cout, cin, k = w.shape
    return jnp.transpose(w, (2, 1, 0)).reshape(k * cin, cout) * scale


def _conv1_phase_pack(w, scale):
    # Conv1d(1,64,20,stride=5) on 40-sample windows x[20j:20j+40]; pool phase p occupies
    # input offsets 5p..5p+20 and output lanes 64p..64p+64.
    w20 = jnp.transpose(w[:, 0, :]) * scale               # (20, 64), BN scale folded
    W = jnp.zeros((40, 256), jnp.float32)
    for p in range(4):
        W = W.at[5 * p:5 * p + 20, 64 * p:64 * p + 64].set(w20)
    return W


def _brow(v, width=256):
    # One bias vector as a zero-padded (1, width) row for the packed bias buffer.
    return jnp.pad(v, (0, width - v.shape[0]))[None, :]


def _pack(parts):
    # Pack named 2-D arrays row-wise; each part padded to a multiple of 8 rows so every
    # in-kernel static slice starts on a sublane-tile boundary.  Returns (buffer, offsets).
    offs, chunks, row = {}, [], 0
    for name, a in parts.items():
        offs[name] = row
        r = a.shape[0]
        pad = (-r) % 8
        if pad:
            a = jnp.concatenate([a, jnp.zeros((pad, a.shape[1]), a.dtype)], axis=0)
        chunks.append(a)
        row += r + pad
    return jnp.concatenate(chunks, axis=0), offs


def spatial_mapping_forward(x_ncw, params):
    """x_ncw: (B, 1, L) NCW like PyTorch  ->  (B, 64, T) NCW like PyTorch."""
    x = x_ncw[:, 0, :].astype(jnp.float32)                 # (B, L)
    B, L = x.shape
    assert L % 100 == 0 and L >= 1300, "L must be a multiple of 100 and >= 1300"

    # static layer sizes
    l1a = (L - 20) // 5 + 1            # cnn1 conv1
    p1a = (l1a - 4) // 4 + 1           # cnn1 pool1 (k=4, s=4)
    l1b = p1a - 3                      # cnn1 conv2 (k=4, s=1)
    p1b = (l1b - 4) // 4 + 1           # cnn1 pool2 (k=4, s=4)
    l1c = (p1b + 2 - 4) // 2 + 1       # cnn1 conv3 (k=4, s=2, pad=1)
    l2a = (L - 200) // 50 + 1          # cnn2 conv1
    p2a = l2a - 3                      # cnn2 pool1 (k=4, s=1)
    l2b = (p2a - 8) // 2 + 1           # cnn2 conv2 (k=8, s=2)
    p2b = l2b - 3                      # cnn2 pool2 (k=4, s=1)
    l2c = p2b - 3                      # cnn2 conv3 (k=4, s=1)
    t_cat = l1c + l2c
    assert p1a + 1 <= L // 20 and l2a + 3 <= L // 50

    # Wrapper-side im2col (tiny, <50 KiB HBM) so each conv1 is ONE well-shaped matmul.
    xr = x.reshape(B, L // 20, 20)
    xr1c = jnp.concatenate([xr[:, :p1a, :], xr[:, 1:p1a + 1, :]], axis=2)        # (B,p1a,40)
    xs = x.reshape(B, L // 50, 50)
    xr2c = jnp.concatenate([xs[:, kk:kk + l2a, :] for kk in range(4)], axis=2)   # (B,l2a,200)

    pc1, pc2, pb1, pb2 = params["cnn1"], params["cnn2"], params["block1"], params["block2"]

    # ---- cnn1 operands (BN scale folded into weights, shift into per-channel bias) ----
    s, sh_c1 = _bn_fold(pc1["b1"], pc1["bn1"])
    W1p = _conv1_phase_pack(pc1["w1"], s)                  # (40, 256)
    s, sh_c2 = _bn_fold(pc1["b2"], pc1["bn2"])
    Wc2 = _taps_concat(pc1["w2"], s)                       # (256, 128)
    s, sh_c3 = _bn_fold(pc1["b3"], pc1["bn3"])
    Wc3 = _taps_concat(pc1["w3"], s)                       # (512, 128)

    # ---- cnn2 operands ----
    s, sh_d1 = _bn_fold(pc2["b1"], pc2["bn1"])
    Wd1 = jnp.transpose(pc2["w1"][:, 0, :]) * s            # (200, 64)
    s, sh_d2 = _bn_fold(pc2["b2"], pc2["bn2"])
    Wd2 = _taps_concat(pc2["w2"], s)                       # (512, 128)
    s, sh_d3 = _bn_fold(pc2["b3"], pc2["bn3"])
    Wd3 = _taps_concat(pc2["w3"], s)                       # (512, 128)

    # ---- SE blocks (1x1 convs -> matmuls, BN folded) ----
    def block_ops(p, has_ds):
        s1, b1_ = _bn_fold(p["c1_b"], p["bn1"])
        s2, b2_ = _bn_fold(p["c2_b"], p["bn2"])
        ops = dict(c1=jnp.transpose(p["c1_w"][:, :, 0]) * s1, c1b=b1_,
                   c2=jnp.transpose(p["c2_w"][:, :, 0]) * s2, c2b=b2_,
                   w1=p["se_w1"], w2=p["se_w2t"])
        if has_ds:
            sd, dsb = _bn_fold(jnp.zeros((p["ds_w"].shape[0],), jnp.float32), p["ds_bn"])
            ops["ds"] = jnp.transpose(p["ds_w"][:, :, 0]) * sd
            ops["dsb"] = dsb
        return ops

    b1 = block_ops(pb1, True)
    b2 = block_ops(pb2, False)

    # ---- pack all constants into 3 buffers (one per lane width) ----
    w128_buf, off128 = _pack({"c2": Wc2, "c3": Wc3, "d2": Wd2, "d3": Wd3})
    w64_buf, off64 = _pack({"d1": Wd1,
                            "e1c1": b1["c1"], "e1c2": b1["c2"], "e1ds": b1["ds"],
                            "e1w1": b1["w1"], "e1w2": b1["w2"],
                            "e2c1": b2["c1"], "e2c2": b2["c2"],
                            "e2w1": b2["w1"], "e2w2": b2["w2"]})
    w256_buf, off256 = _pack({"c1": W1p,
                              "bc1": _brow(jnp.tile(sh_c1, 4)),
                              "bc2": _brow(sh_c2), "bc3": _brow(sh_c3),
                              "bd1": _brow(sh_d1), "bd2": _brow(sh_d2), "bd3": _brow(sh_d3),
                              "be1c1": _brow(b1["c1b"]), "be1c2": _brow(b1["c2b"]),
                              "be1ds": _brow(b1["dsb"]),
                              "be2c1": _brow(b2["c1b"]), "be2c2": _brow(b2["c2b"])})
    off = {**off128, **off64, **off256}

    dims = (p1a, l1b, p1b, l1c, l2a, p2a, l2b, p2b, l2c, t_cat)
    kern = functools.partial(_fused_kernel, dims=dims, off=off)

    out = pl.pallas_call(
        kern,
        out_shape=jax.ShapeDtypeStruct((B, t_cat, 128), jnp.float32),
        grid=(B,),
        in_specs=[
            pl.BlockSpec((None, p1a, 40), lambda b: (b, 0, 0)),
            pl.BlockSpec((None, l2a, 200), lambda b: (b, 0, 0)),
            pl.BlockSpec(w256_buf.shape, lambda b: (0, 0)),
            pl.BlockSpec(w128_buf.shape, lambda b: (0, 0)),
            pl.BlockSpec(w64_buf.shape, lambda b: (0, 0)),
        ],
        out_specs=pl.BlockSpec((None, t_cat, 128), lambda b: (b, 0, 0)),
        scratch_shapes=[
            pltpu.VMEM((p1a, 64), jnp.float32),        # cnn1 pooled conv1
            pltpu.VMEM((l1b, 128), jnp.float32),       # cnn1 conv2 activation
            pltpu.VMEM((p1b + 2, 128), jnp.float32),   # cnn1 pool2, zero-padded for conv3
            pltpu.VMEM((l2a, 64), jnp.float32),        # cnn2 conv1 activation
            pltpu.VMEM((p2a, 64), jnp.float32),        # cnn2 pool1
            pltpu.VMEM((l2b, 128), jnp.float32),       # cnn2 conv2 activation
            pltpu.VMEM((p2b, 128), jnp.float32),       # cnn2 pool2
        ],
        compiler_params=pltpu.CompilerParams(
            dimension_semantics=("parallel",),
            vmem_limit_bytes=16 * 1024 * 1024,
        ),
    )(xr1c, xr2c, w256_buf, w128_buf, w64_buf)

    return jnp.transpose(out[:, :, :64], (0, 2, 1))        # -> (B, 64, T) NCW


# --------------------------------------------------------------------------------------
# Deterministic synthetic parameters (torch-layout tensors)
# --------------------------------------------------------------------------------------
def init_params(key):
    keys = iter(jax.random.split(key, 96))

    def conv(cout, cin, k, bias=True):
        w = jax.random.normal(next(keys), (cout, cin, k), jnp.float32) / math.sqrt(cin * k)
        b = (0.05 * jax.random.normal(next(keys), (cout,), jnp.float32)
             if bias else jnp.zeros((cout,), jnp.float32))
        return w, b

    def bn(c):
        gamma = 1.0 + 0.1 * jax.random.normal(next(keys), (c,), jnp.float32)
        beta = 0.1 * jax.random.normal(next(keys), (c,), jnp.float32)
        mean = 0.1 * jax.random.normal(next(keys), (c,), jnp.float32)
        var = 1.0 + 0.5 * jax.random.uniform(next(keys), (c,), jnp.float32)
        return gamma, beta, mean, var

    def lin(cout, cin):
        return jax.random.normal(next(keys), (cout, cin), jnp.float32) / math.sqrt(cin)

    def branch(k1, k2):
        w1, b1 = conv(64, 1, k1)
        w2, b2 = conv(128, 64, k2)
        w3, b3 = conv(128, 128, 4)
        return dict(w1=w1, b1=b1, bn1=bn(64), w2=w2, b2=b2, bn2=bn(128),
                    w3=w3, b3=b3, bn3=bn(128))

    def se_block(cin, c, downsample):
        p = {}
        p["c1_w"], p["c1_b"] = conv(c, cin, 1)
        p["bn1"] = bn(c)
        p["c2_w"], p["c2_b"] = conv(c, c, 1)
        p["bn2"] = bn(c)
        p["se_w1"] = lin(c // 16, c)          # fc1.weight : (C/16, C)
        p["se_w2t"] = lin(c, c // 16).T       # fc2.weight.T : (C/16, C)
        if downsample:
            p["ds_w"], _ = conv(c, cin, 1, bias=False)
            p["ds_bn"] = bn(c)
        return p

    return dict(cnn1=branch(20, 4), cnn2=branch(200, 8),
                block1=se_block(128, 64, True), block2=se_block(64, 64, False))


# --------------------------------------------------------------------------------------
# Pure-JAX (XLA) reference, mirroring the PyTorch graph in NCW layout
# --------------------------------------------------------------------------------------
CFG1 = ((20, 5), (4, 4), (4, 1), (4, 4), (4, 2, 1))
CFG2 = ((200, 50), (4, 1), (8, 2), (4, 1), (4, 1, 0))


def ref_forward(x, params):
    P = jax.lax.Precision.HIGHEST

    def conv1d(h, w, b, stride, padding=0):
        out = jax.lax.conv_general_dilated(h, w, (stride,), [(padding, padding)],
                                           dimension_numbers=("NCH", "OIH", "NCH"), precision=P)
        return out + b[None, :, None]

    def bn(h, stats):
        gamma, beta, mean, var = stats
        return (h - mean[None, :, None]) * (gamma / jnp.sqrt(var + EPS))[None, :, None] + beta[None, :, None]

    def gelu(h):
        return 0.5 * h * (1.0 + jax.scipy.special.erf(h / 1.4142135623730951))

    def maxpool(h, k, s):
        return jax.lax.reduce_window(h, -jnp.inf, jax.lax.max, (1, 1, k), (1, 1, s), "VALID")

    def branch(h, p, cfg):
        (k1, s1), (pk1, ps1), (k2, s2), (pk2, ps2), (k3, s3, pad3) = cfg
        h = gelu(bn(conv1d(h, p["w1"], p["b1"], s1), p["bn1"]))
        h = maxpool(h, pk1, ps1)
        h = gelu(bn(conv1d(h, p["w2"], p["b2"], s2), p["bn2"]))
        h = maxpool(h, pk2, ps2)
        h = gelu(bn(conv1d(h, p["w3"], p["b3"], s3, pad3), p["bn3"]))
        return h

    def se_block(h, p):
        out = jnp.maximum(bn(conv1d(h, p["c1_w"], p["c1_b"], 1), p["bn1"]), 0.0)
        out = bn(conv1d(out, p["c2_w"], p["c2_b"], 1), p["bn2"])
        y = jnp.mean(out, axis=2)
        hm = jnp.maximum(jnp.einsum("bc,rc->br", y, p["se_w1"], precision=P), 0.0)
        s = jax.nn.sigmoid(jnp.einsum("br,rc->bc", hm, p["se_w2t"], precision=P))
        out = out * s[:, :, None]
        if "ds_w" in p:
            zb = jnp.zeros((p["ds_w"].shape[0],), jnp.float32)
            resid = bn(conv1d(h, p["ds_w"], zb, 1), p["ds_bn"])
        else:
            resid = h
        return jnp.maximum(out + resid, 0.0)

    x1 = branch(x, params["cnn1"], CFG1)
    x2 = branch(x, params["cnn2"], CFG2)
    xc = jnp.concatenate([x1, x2], axis=2)
    y = se_block(xc, params["block1"])
    y = se_block(y, params["block2"])
    return y


if __name__ == "__main__":
    key = jax.random.PRNGKey(0)
    pkey, xkey = jax.random.split(key)
    params = init_params(pkey)

    # Raw 1-D signal, NCW like PyTorch.  3000 is the canonical input length for this model
    # (cnn2's kernel-200/stride-50 conv needs L >= 1300 for valid lengths).
    B, L = 2, 3000
    x = jax.random.normal(xkey, (B, 1, L), jnp.float32)

    out = jax.block_until_ready(jax.jit(spatial_mapping_forward)(x, params))
    ref = jax.block_until_ready(ref_forward(x, params))

    assert out.shape == ref.shape == (B, 64, 36), out.shape
    assert bool(jnp.all(jnp.isfinite(out)))
    np.testing.assert_allclose(np.asarray(out), np.asarray(ref), atol=1e-2, rtol=1e-2)
    print("KERNEL_OK")
</pallas_src>

<mosaic_0001>
module attributes {stable_mosaic.version = 11 : i64} {
  func.func @_fused_kernel(%arg0: i32, %arg1: memref<1x149x40xf32, #tpu.memory_space<vmem>>, %arg2: memref<1x57x200xf32, #tpu.memory_space<vmem>>, %arg3: memref<128x256xf32, #tpu.memory_space<vmem>>, %arg4: memref<1792x128xf32, #tpu.memory_space<vmem>>, %arg5: memref<680x64xf32, #tpu.memory_space<vmem>>, %arg6: memref<1x36x128xf32, #tpu.memory_space<vmem>>, %arg7: memref<149x64xf32, #tpu.memory_space<vmem>>, %arg8: memref<146x128xf32, #tpu.memory_space<vmem>>, %arg9: memref<38x128xf32, #tpu.memory_space<vmem>>, %arg10: memref<57x64xf32, #tpu.memory_space<vmem>>, %arg11: memref<54x64xf32, #tpu.memory_space<vmem>>, %arg12: memref<24x128xf32, #tpu.memory_space<vmem>>, %arg13: memref<21x128xf32, #tpu.memory_space<vmem>>) attributes {dimension_semantics = [#tpu.dimension_semantics<parallel>], iteration_bounds = array<i64: 2>, scalar_prefetch = 0 : i64, scratch_operands = 7 : i64, tpu.core_type = #tpu.core_type<tc>, window_params = [{transform_indices = @transform_0, window_bounds = array<i64: 1, 149, 40>}, {transform_indices = @transform_1, window_bounds = array<i64: 1, 57, 200>}, {pipeline_mode = #tpu.pipeline_mode<synchronous>, transform_indices = @transform_2, window_bounds = array<i64: 128, 256>}, {pipeline_mode = #tpu.pipeline_mode<synchronous>, transform_indices = @transform_3, window_bounds = array<i64: 1792, 128>}, {pipeline_mode = #tpu.pipeline_mode<synchronous>, transform_indices = @transform_4, window_bounds = array<i64: 680, 64>}, {transform_indices = @transform_5, window_bounds = array<i64: 1, 36, 128>}]} {
    %c0 = arith.constant 0 : index
    %c0_0 = arith.constant 0 : index
    %c0_1 = arith.constant 0 : index
    %0 = vector.load %arg1[%c0, %c0_0, %c0_1] : memref<1x149x40xf32, #tpu.memory_space<vmem>>, vector<1x149x40xf32>
    %1 = vector.shape_cast %0 : vector<1x149x40xf32> to vector<149x40xf32>
    %c0_2 = arith.constant 0 : index
    %c0_3 = arith.constant 0 : index
    %2 = vector.load %arg3[%c0_2, %c0_3] : memref<128x256xf32, #tpu.memory_space<vmem>>, vector<40x256xf32>
    %cst = arith.constant dense<0.000000e+00> : vector<149x256xf32>
    %3 = tpu.matmul %1, %2, %cst {dimension_numbers = #tpu.dot_dimension_numbers<[1], [0], [0], [1], [0, 0, 1, 1], [], []>} : vector<149x40xf32>, vector<40x256xf32>, vector<149x256xf32> -> vector<149x256xf32>
    %c40 = arith.constant 40 : index
    %c0_4 = arith.constant 0 : index
    %4 = vector.load %arg3[%c40, %c0_4] : memref<128x256xf32, #tpu.memory_space<vmem>>, vector<1x256xf32>
    %5 = vector.broadcast %4 : vector<1x256xf32> to vector<149x256xf32>
    %6 = arith.addf %3, %5 : vector<149x256xf32>
    %cst_5 = arith.constant 5.000000e-01 : f32
    %7 = vector.broadcast %cst_5 : f32 to vector<149x256xf32>
    %8 = arith.mulf %7, %6 : vector<149x256xf32>
    %cst_6 = arith.constant 0.707106769 : f32
    %9 = vector.broadcast %cst_6 : f32 to vector<149x256xf32>
    %10 = arith.mulf %6, %9 : vector<149x256xf32>
    %cst_7 = arith.constant 0.000000e+00 : f32
    %11 = vector.broadcast %cst_7 : f32 to vector<149x256xf32>
    %12 = arith.cmpf oge, %10, %11 : vector<149x256xf32>
    %cst_8 = arith.constant 1.000000e+00 : f32
    %cst_9 = arith.constant -1.000000e+00 : f32
    %13 = vector.broadcast %cst_8 : f32 to vector<149x256xf32>
    %14 = vector.broadcast %cst_9 : f32 to vector<149x256xf32>
    %15 = arith.select %12, %13, %14 : vector<149x256xi1>, vector<149x256xf32>
    %16 = math.absf %10 : vector<149x256xf32>
    %cst_10 = arith.constant 0.327591091 : f32
    %17 = vector.broadcast %cst_10 : f32 to vector<149x256xf32>
    %18 = arith.mulf %17, %16 : vector<149x256xf32>
    %cst_11 = arith.constant 1.000000e+00 : f32
    %19 = vector.broadcast %cst_11 : f32 to vector<149x256xf32>
    %20 = arith.addf %19, %18 : vector<149x256xf32>
    %21 = tpu.reciprocal %20 {approx = true} : vector<149x256xf32> -> vector<149x256xf32>
    %cst_12 = arith.constant 1.06140542 : f32
    %22 = vector.broadcast %cst_12 : f32 to vector<149x256xf32>
    %23 = arith.mulf %22, %21 : vector<149x256xf32>
    %cst_13 = arith.constant -1.45315206 : f32
    %24 = vector.broadcast %cst_13 : f32 to vector<149x256xf32>
    %25 = arith.addf %23, %24 : vector<149x256xf32>
    %26 = arith.mulf %25, %21 : vector<149x256xf32>
    %cst_14 = arith.constant 1.42141378 : f32
    %27 = vector.broadcast %cst_14 : f32 to vector<149x256xf32>
    %28 = arith.addf %26, %27 : vector<149x256xf32>
    %29 = arith.mulf %28, %21 : vector<149x256xf32>
    %cst_15 = arith.constant -0.284496725 : f32
    %30 = vector.broadcast %cst_15 : f32 to vector<149x256xf32>
    %31 = arith.addf %29, %30 : vector<149x256xf32>
    %32 = arith.mulf %31, %21 : vector<149x256xf32>
    %cst_16 = arith.constant 0.254829586 : f32
    %33 = vector.broadcast %cst_16 : f32 to vector<149x256xf32>
    %34 = arith.addf %32, %33 : vector<149x256xf32>
    %35 = arith.mulf %34, %21 : vector<149x256xf32>
    %cst_17 = arith.constant 0.000000e+00 : f32
    %36 = vector.broadcast %cst_17 : f32 to vector<149x256xf32>
    %37 = arith.subf %36, %16 : vector<149x256xf32>
    %38 = arith.mulf %37, %16 : vector<149x256xf32>
    %39 = math.exp %38 : vector<149x256xf32>
    %40 = arith.mulf %35, %39 : vector<149x256xf32>
    %cst_18 = arith.constant 1.000000e+00 : f32
    %41 = vector.broadcast %cst_18 : f32 to vector<149x256xf32>
    %42 = arith.subf %41, %40 : vector<149x256xf32>
    %43 = arith.mulf %15, %42 : vector<149x256xf32>
    %cst_19 = arith.constant 1.000000e+00 : f32
    %44 = vector.broadcast %cst_19 : f32 to vector<149x256xf32>
    %45 = arith.addf %44, %43 : vector<149x256xf32>
    %46 = arith.mulf %8, %45 : vector<149x256xf32>
    %47 = vector.extract_strided_slice %46 {offsets = [0, 0], sizes = [149, 64], strides = [1, 1]} : vector<149x256xf32> to vector<149x64xf32>
    %48 = vector.extract_strided_slice %46 {offsets = [0, 64], sizes = [149, 64], strides = [1, 1]} : vector<149x256xf32> to vector<149x64xf32>
    %49 = arith.maximumf %47, %48 : vector<149x64xf32>
    %50 = vector.extract_strided_slice %46 {offsets = [0, 128], sizes = [149, 64], strides = [1, 1]} : vector<149x256xf32> to vector<149x64xf32>
    %51 = vector.extract_strided_slice %46 {offsets = [0, 192], sizes = [149, 64], strides = [1, 1]} : vector<149x256xf32> to vector<149x64xf32>
    %52 = arith.maximumf %50, %51 : vector<149x64xf32>
    %53 = arith.maximumf %49, %52 : vector<149x64xf32>
    %c0_20 = arith.constant 0 : index
    %c0_21 = arith.constant 0 : index
    %54 = vector.load %arg7[%c0_20, %c0_21] : memref<149x64xf32, #tpu.memory_space<vmem>>, vector<149x64xf32>
    tpu.vector_store %arg7[%c0_20, %c0_21], %53 {strides = array<i32>} : memref<149x64xf32, #tpu.memory_space<vmem>>, vector<149x64xf32>,
    %c0_22 = arith.constant 0 : index
    %c0_23 = arith.constant 0 : index
    %55 = vector.load %arg7[%c0_22, %c0_23] : memref<149x64xf32, #tpu.memory_space<vmem>>, vector<146x64xf32>
    %c1 = arith.constant 1 : index
    %c0_24 = arith.constant 0 : index
    %56 = vector.load %arg7[%c1, %c0_24] : memref<149x64xf32, #tpu.memory_space<vmem>>, vector<146x64xf32>
    %c2 = arith.constant 2 : index
    %c0_25 = arith.constant 0 : index
    %57 = vector.load %arg7[%c2, %c0_25] : memref<149x64xf32, #tpu.memory_space<vmem>>, vector<146x64xf32>
    %c3 = arith.constant 3 : index
    %c0_26 = arith.constant 0 : index
    %58 = vector.load %arg7[%c3, %c0_26] : memref<149x64xf32, #tpu.memory_space<vmem>>, vector<146x64xf32>
    %59 = tpu.concatenate %55, %56, %57, %58 in 1 : vector<146x64xf32>, vector<146x64xf32>, vector<146x64xf32>, vector<146x64xf32> -> vector<146x256xf32>
    %c0_27 = arith.constant 0 : index
    %c0_28 = arith.constant 0 : index
    %60 = vector.load %arg4[%c0_27, %c0_28] : memref<1792x128xf32, #tpu.memory_space<vmem>>, vector<256x128xf32>
    %cst_29 = arith.constant dense<0.000000e+00> : vector<146x128xf32>
    %61 = tpu.matmul %59, %60, %cst_29 {dimension_numbers = #tpu.dot_dimension_numbers<[1], [0], [0], [1], [0, 0, 1, 1], [], []>} : vector<146x256xf32>, vector<256x128xf32>, vector<146x128xf32> -> vector<146x128xf32>
    %c48 = arith.constant 48 : index
    %c0_30 = arith.constant 0 : index
    %62 = vector.load %arg3[%c48, %c0_30] : memref<128x256xf32, #tpu.memory_space<vmem>>, vector<1x128xf32>
    %63 = vector.broadcast %62 : vector<1x128xf32> to vector<146x128xf32>
    %64 = arith.addf %61, %63 : vector<146x128xf32>
    %cst_31 = arith.constant 5.000000e-01 : f32
    %65 = vector.broadcast %cst_31 : f32 to vector<146x128xf32>
    %66 = arith.mulf %65, %64 : vector<146x128xf32>
    %cst_32 = arith.constant 0.707106769 : f32
    %67 = vector.broadcast %cst_32 : f32 to vector<146x128xf32>
    %68 = arith.mulf %64, %67 : vector<146x128xf32>
    %cst_33 = arith.constant 0.000000e+00 : f32
    %69 = vector.broadcast %cst_33 : f32 to vector<146x128xf32>
    %70 = arith.cmpf oge, %68, %69 : vector<146x128xf32>
    %cst_34 = arith.constant 1.000000e+00 : f32
    %cst_35 = arith.constant -1.000000e+00 : f32
    %71 = vector.broadcast %cst_34 : f32 to vector<146x128xf32>
    %72 = vector.broadcast %cst_35 : f32 to vector<146x128xf32>
    %73 = arith.select %70, %71, %72 : vector<146x128xi1>, vector<146x128xf32>
    %74 = math.absf %68 : vector<146x128xf32>
    %cst_36 = arith.constant 0.327591091 : f32
    %75 = vector.broadcast %cst_36 : f32 to vector<146x128xf32>
    %76 = arith.mulf %75, %74 : vector<146x128xf32>
    %cst_37 = arith.constant 1.000000e+00 : f32
    %77 = vector.broadcast %cst_37 : f32 to vector<146x128xf32>
    %78 = arith.addf %77, %76 : vector<146x128xf32>
    %79 = tpu.reciprocal %78 {approx = true} : vector<146x128xf32> -> vector<146x128xf32>
    %cst_38 = arith.constant 1.06140542 : f32
    %80 = vector.broadcast %cst_38 : f32 to vector<146x128xf32>
    %81 = arith.mulf %80, %79 : vector<146x128xf32>
    %cst_39 = arith.constant -1.45315206 : f32
    %82 = vector.broadcast %cst_39 : f32 to vector<146x128xf32>
    %83 = arith.addf %81, %82 : vector<146x128xf32>
    %84 = arith.mulf %83, %79 : vector<146x128xf32>
    %cst_40 = arith.constant 1.42141378 : f32
    %85 = vector.broadcast %cst_40 : f32 to vector<146x128xf32>
    %86 = arith.addf %84, %85 : vector<146x128xf32>
    %87 = arith.mulf %86, %79 : vector<146x128xf32>
    %cst_41 = arith.constant -0.284496725 : f32
    %88 = vector.broadcast %cst_41 : f32 to vector<146x128xf32>
    %89 = arith.addf %87, %88 : vector<146x128xf32>
    %90 = arith.mulf %89, %79 : vector<146x128xf32>
    %cst_42 = arith.constant 0.254829586 : f32
    %91 = vector.broadcast %cst_42 : f32 to vector<146x128xf32>
    %92 = arith.addf %90, %91 : vector<146x128xf32>
    %93 = arith.mulf %92, %79 : vector<146x128xf32>
    %cst_43 = arith.constant 0.000000e+00 : f32
    %94 = vector.broadcast %cst_43 : f32 to vector<146x128xf32>
    %95 = arith.subf %94, %74 : vector<146x128xf32>
    %96 = arith.mulf %95, %74 : vector<146x128xf32>
    %97 = math.exp %96 : vector<146x128xf32>
    %98 = arith.mulf %93, %97 : vector<146x128xf32>
    %cst_44 = arith.constant 1.000000e+00 : f32
    %99 = vector.broadcast %cst_44 : f32 to vector<146x128xf32>
    %100 = arith.subf %99, %98 : vector<146x128xf32>
    %101 = arith.mulf %73, %100 : vector<146x128xf32>
    %cst_45 = arith.constant 1.000000e+00 : f32
    %102 = vector.broadcast %cst_45 : f32 to vector<146x128xf32>
    %103 = arith.addf %102, %101 : vector<146x128xf32>
    %104 = arith.mulf %66, %103 : vector<146x128xf32>
    %c0_46 = arith.constant 0 : index
    %c0_47 = arith.constant 0 : index
    %105 = vector.load %arg8[%c0_46, %c0_47] : memref<146x128xf32, #tpu.memory_space<vmem>>, vector<146x128xf32>
    tpu.vector_store %arg8[%c0_46, %c0_47], %104 {strides = array<i32>} : memref<146x128xf32, #tpu.memory_space<vmem>>, vector<146x128xf32>,
    %c0_48 = arith.constant 0 : index
    %c0_49 = arith.constant 0 : index
    %106 = tpu.strided_load %arg8[%c0_48, %c0_49] {strides = array<i32: 4, 1>} : memref<146x128xf32, #tpu.memory_space<vmem>>, vector<36x128xf32>
    %c1_50 = arith.constant 1 : index
    %c0_51 = arith.constant 0 : index
    %107 = tpu.strided_load %arg8[%c1_50, %c0_51] {strides = array<i32: 4, 1>} : memref<146x128xf32, #tpu.memory_space<vmem>>, vector<36x128xf32>
    %108 = arith.maximumf %106, %107 : vector<36x128xf32>
    %c2_52 = arith.constant 2 : index
    %c0_53 = arith.constant 0 : index
    %109 = tpu.strided_load %arg8[%c2_52, %c0_53] {strides = array<i32: 4, 1>} : memref<146x128xf32, #tpu.memory_space<vmem>>, vector<36x128xf32>
    %110 = arith.maximumf %108, %109 : vector<36x128xf32>
    %c3_54 = arith.constant 3 : index
    %c0_55 = arith.constant 0 : index
    %111 = tpu.strided_load %arg8[%c3_54, %c0_55] {strides = array<i32: 4, 1>} : memref<146x128xf32, #tpu.memory_space<vmem>>, vector<36x128xf32>
    %112 = arith.maximumf %110, %111 : vector<36x128xf32>
    %cst_56 = arith.constant 0.000000e+00 : f32
    %113 = vector.broadcast %cst_56 : f32 to vector<1x128xf32>
    %c0_57 = arith.constant 0 : index
    %c0_58 = arith.constant 0 : index
    %114 = vector.load %arg9[%c0_57, %c0_58] : memref<38x128xf32, #tpu.memory_space<vmem>>, vector<1x128xf32>
    tpu.vector_store %arg9[%c0_57, %c0_58], %113 {strides = array<i32>} : memref<38x128xf32, #tpu.memory_space<vmem>>, vector<1x128xf32>,
    %cst_59 = arith.constant 0.000000e+00 : f32
    %115 = vector.broadcast %cst_59 : f32 to vector<1x128xf32>
    %c37 = arith.constant 37 : index
    %c0_60 = arith.constant 0 : index
    %116 = vector.load %arg9[%c37, %c0_60] : memref<38x128xf32, #tpu.memory_space<vmem>>, vector<1x128xf32>
    tpu.vector_store %arg9[%c37, %c0_60], %115 {strides = array<i32>} : memref<38x128xf32, #tpu.memory_space<vmem>>, vector<1x128xf32>,
    %c1_61 = arith.constant 1 : index
    %c0_62 = arith.constant 0 : index
    %117 = vector.load %arg9[%c1_61, %c0_62] : memref<38x128xf32, #tpu.memory_space<vmem>>, vector<36x128xf32>
    tpu.vector_store %arg9[%c1_61, %c0_62], %112 {strides = array<i32>} : memref<38x128xf32, #tpu.memory_space<vmem>>, vector<36x128xf32>,
    %c0_63 = arith.constant 0 : index
    %c0_64 = arith.constant 0 : index
    %118 = tpu.strided_load %arg9[%c0_63, %c0_64] {strides = array<i32: 2, 1>} : memref<38x128xf32, #tpu.memory_space<vmem>>, vector<18x128xf32>
    %c1_65 = arith.constant 1 : index
    %c0_66 = arith.constant 0 : index
    %119 = tpu.strided_load %arg9[%c1_65, %c0_66] {strides = array<i32: 2, 1>} : memref<38x128xf32, #tpu.memory_space<vmem>>, vector<18x128xf32>
    %c2_67 = arith.constant 2 : index
    %c0_68 = arith.constant 0 : index
    %120 = tpu.strided_load %arg9[%c2_67, %c0_68] {strides = array<i32: 2, 1>} : memref<38x128xf32, #tpu.memory_space<vmem>>, vector<18x128xf32>
    %c3_69 = arith.constant 3 : index
    %c0_70 = arith.constant 0 : index
    %121 = tpu.strided_load %arg9[%c3_69, %c0_70] {strides = array<i32: 2, 1>} : memref<38x128xf32, #tpu.memory_space<vmem>>, vector<18x128xf32>
    %122 = tpu.concatenate %118, %119, %120, %121 in 1 : vector<18x128xf32>, vector<18x128xf32>, vector<18x128xf32>, vector<18x128xf32> -> vector<18x512xf32>
    %c256 = arith.constant 256 : index
    %c0_71 = arith.constant 0 : index
    %123 = vector.load %arg4[%c256, %c0_71] : memref<1792x128xf32, #tpu.memory_space<vmem>>, vector<512x128xf32>
    %cst_72 = arith.constant dense<0.000000e+00> : vector<18x128xf32>
    %124 = tpu.matmul %122, %123, %cst_72 {dimension_numbers = #tpu.dot_dimension_numbers<[1], [0], [0], [1], [0, 0, 1, 1], [], []>} : vector<18x512xf32>, vector<512x128xf32>, vector<18x128xf32> -> vector<18x128xf32>
    %c56 = arith.constant 56 : index
    %c0_73 = arith.constant 0 : index
    %125 = vector.load %arg3[%c56, %c0_73] : memref<128x256xf32, #tpu.memory_space<vmem>>, vector<1x128xf32>
    %126 = vector.broadcast %125 : vector<1x128xf32> to vector<18x128xf32>
    %127 = arith.addf %124, %126 : vector<18x128xf32>
    %cst_74 = arith.constant 5.000000e-01 : f32
    %128 = vector.broadcast %cst_74 : f32 to vector<18x128xf32>
    %129 = arith.mulf %128, %127 : vector<18x128xf32>
    %cst_75 = arith.constant 0.707106769 : f32
    %130 = vector.broadcast %cst_75 : f32 to vector<18x128xf32>
    %131 = arith.mulf %127, %130 : vector<18x128xf32>
    %cst_76 = arith.constant 0.000000e+00 : f32
    %132 = vector.broadcast %cst_76 : f32 to vector<18x128xf32>
    %133 = arith.cmpf oge, %131, %132 : vector<18x128xf32>
    %cst_77 = arith.constant 1.000000e+00 : f32
    %cst_78 = arith.constant -1.000000e+00 : f32
    %134 = vector.broadcast %cst_77 : f32 to vector<18x128xf32>
    %135 = vector.broadcast %cst_78 : f32 to vector<18x128xf32>
    %136 = arith.select %133, %134, %135 : vector<18x128xi1>, vector<18x128xf32>
    %137 = math.absf %131 : vector<18x128xf32>
    %cst_79 = arith.constant 0.327591091 : f32
    %138 = vector.broadcast %cst_79 : f32 to vector<18x128xf32>
    %139 = arith.mulf %138, %137 : vector<18x128xf32>
    %cst_80 = arith.constant 1.000000e+00 : f32
    %140 = vector.broadcast %cst_80 : f32 to vector<18x128xf32>
    %141 = arith.addf %140, %139 : vector<18x128xf32>
    %142 = tpu.reciprocal %141 {approx = true} : vector<18x128xf32> -> vector<18x128xf32>
    %cst_81 = arith.constant 1.06140542 : f32
    %143 = vector.broadcast %cst_81 : f32 to vector<18x128xf32>
    %144 = arith.mulf %143, %142 : vector<18x128xf32>
    %cst_82 = arith.constant -1.45315206 : f32
    %145 = vector.broadcast %cst_82 : f32 to vector<18x128xf32>
    %146 = arith.addf %144, %145 : vector<18x128xf32>
    %147 = arith.mulf %146, %142 : vector<18x128xf32>
    %cst_83 = arith.constant 1.42141378 : f32
    %148 = vector.broadcast %cst_83 : f32 to vector<18x128xf32>
    %149 = arith.addf %147, %148 : vector<18x128xf32>
    %150 = arith.mulf %149, %142 : vector<18x128xf32>
    %cst_84 = arith.constant -0.284496725 : f32
    %151 = vector.broadcast %cst_84 : f32 to vector<18x128xf32>
    %152 = arith.addf %150, %151 : vector<18x128xf32>
    %153 = arith.mulf %152, %142 : vector<18x128xf32>
    %cst_85 = arith.constant 0.254829586 : f32
    %154 = vector.broadcast %cst_85 : f32 to vector<18x128xf32>
    %155 = arith.addf %153, %154 : vector<18x128xf32>
    %156 = arith.mulf %155, %142 : vector<18x128xf32>
    %cst_86 = arith.constant 0.000000e+00 : f32
    %157 = vector.broadcast %cst_86 : f32 to vector<18x128xf32>
    %158 = arith.subf %157, %137 : vector<18x128xf32>
    %159 = arith.mulf %158, %137 : vector<18x128xf32>
    %160 = math.exp %159 : vector<18x128xf32>
    %161 = arith.mulf %156, %160 : vector<18x128xf32>
    %cst_87 = arith.constant 1.000000e+00 : f32
    %162 = vector.broadcast %cst_87 : f32 to vector<18x128xf32>
    %163 = arith.subf %162, %161 : vector<18x128xf32>
    %164 = arith.mulf %136, %163 : vector<18x128xf32>
    %cst_88 = arith.constant 1.000000e+00 : f32
    %165 = vector.broadcast %cst_88 : f32 to vector<18x128xf32>
    %166 = arith.addf %165, %164 : vector<18x128xf32>
    %167 = arith.mulf %129, %166 : vector<18x128xf32>
    %c0_89 = arith.constant 0 : index
    %c0_90 = arith.constant 0 : index
    %c0_91 = arith.constant 0 : index
    %168 = vector.load %arg2[%c0_89, %c0_90, %c0_91] : memref<1x57x200xf32, #tpu.memory_space<vmem>>, vector<1x57x200xf32>
    %169 = vector.shape_cast %168 : vector<1x57x200xf32> to vector<57x200xf32>
    %c0_92 = arith.constant 0 : index
    %c0_93 = arith.constant 0 : index
    %170 = vector.load %arg5[%c0_92, %c0_93] : memref<680x64xf32, #tpu.memory_space<vmem>>, vector<200x64xf32>
    %cst_94 = arith.constant dense<0.000000e+00> : vector<57x64xf32>
    %171 = tpu.matmul %169, %170, %cst_94 {dimension_numbers = #tpu.dot_dimension_numbers<[1], [0], [0], [1], [0, 0, 1, 1], [], []>} : vector<57x200xf32>, vector<200x64xf32>, vector<57x64xf32> -> vector<57x64xf32>
    %c64 = arith.constant 64 : index
    %c0_95 = arith.constant 0 : index
    %172 = vector.load %arg3[%c64, %c0_95] : memref<128x256xf32, #tpu.memory_space<vmem>>, vector<1x64xf32>
    %173 = vector.broadcast %172 : vector<1x64xf32> to vector<57x64xf32>
    %174 = arith.addf %171, %173 : vector<57x64xf32>
    %cst_96 = arith.constant 5.000000e-01 : f32
    %175 = vector.broadcast %cst_96 : f32 to vector<57x64xf32>
    %176 = arith.mulf %175, %174 : vector<57x64xf32>
    %cst_97 = arith.constant 0.707106769 : f32
    %177 = vector.broadcast %cst_97 : f32 to vector<57x64xf32>
    %178 = arith.mulf %174, %177 : vector<57x64xf32>
    %cst_98 = arith.constant 0.000000e+00 : f32
    %179 = vector.broadcast %cst_98 : f32 to vector<57x64xf32>
    %180 = arith.cmpf oge, %178, %179 : vector<57x64xf32>
    %cst_99 = arith.constant 1.000000e+00 : f32
    %cst_100 = arith.constant -1.000000e+00 : f32
    %181 = vector.broadcast %cst_99 : f32 to vector<57x64xf32>
    %182 = vector.broadcast %cst_100 : f32 to vector<57x64xf32>
    %183 = arith.select %180, %181, %182 : vector<57x64xi1>, vector<57x64xf32>
    %184 = math.absf %178 : vector<57x64xf32>
    %cst_101 = arith.constant 0.327591091 : f32
    %185 = vector.broadcast %cst_101 : f32 to vector<57x64xf32>
    %186 = arith.mulf %185, %184 : vector<57x64xf32>
    %cst_102 = arith.constant 1.000000e+00 : f32
    %187 = vector.broadcast %cst_102 : f32 to vector<57x64xf32>
    %188 = arith.addf %187, %186 : vector<57x64xf32>
    %189 = tpu.reciprocal %188 {approx = true} : vector<57x64xf32> -> vector<57x64xf32>
    %cst_103 = arith.constant 1.06140542 : f32
    %190 = vector.broadcast %cst_103 : f32 to vector<57x64xf32>
    %191 = arith.mulf %190, %189 : vector<57x64xf32>
    %cst_104 = arith.constant -1.45315206 : f32
    %192 = vector.broadcast %cst_104 : f32 to vector<57x64xf32>
    %193 = arith.addf %191, %192 : vector<57x64xf32>
    %194 = arith.mulf %193, %189 : vector<57x64xf32>
    %cst_105 = arith.constant 1.42141378 : f32
    %195 = vector.broadcast %cst_105 : f32 to vector<57x64xf32>
    %196 = arith.addf %194, %195 : vector<57x64xf32>
    %197 = arith.mulf %196, %189 : vector<57x64xf32>
    %cst_106 = arith.constant -0.284496725 : f32
    %198 = vector.broadcast %cst_106 : f32 to vector<57x64xf32>
    %199 = arith.addf %197, %198 : vector<57x64xf32>
    %200 = arith.mulf %199, %189 : vector<57x64xf32>
    %cst_107 = arith.constant 0.254829586 : f32
    %201 = vector.broadcast %cst_107 : f32 to vector<57x64xf32>
    %202 = arith.addf %200, %201 : vector<57x64xf32>
    %203 = arith.mulf %202, %189 : vector<57x64xf32>
    %cst_108 = arith.constant 0.000000e+00 : f32
    %204 = vector.broadcast %cst_108 : f32 to vector<57x64xf32>
    %205 = arith.subf %204, %184 : vector<57x64xf32>
    %206 = arith.mulf %205, %184 : vector<57x64xf32>
    %207 = math.exp %206 : vector<57x64xf32>
    %208 = arith.mulf %203, %207 : vector<57x64xf32>
    %cst_109 = arith.constant 1.000000e+00 : f32
    %209 = vector.broadcast %cst_109 : f32 to vector<57x64xf32>
    %210 = arith.subf %209, %208 : vector<57x64xf32>
    %211 = arith.mulf %183, %210 : vector<57x64xf32>
    %cst_110 = arith.constant 1.000000e+00 : f32
    %212 = vector.broadcast %cst_110 : f32 to vector<57x64xf32>
    %213 = arith.addf %212, %211 : vector<57x64xf32>
    %214 = arith.mulf %176, %213 : vector<57x64xf32>
    %c0_111 = arith.constant 0 : index
    %c0_112 = arith.constant 0 : index
    %215 = vector.load %arg10[%c0_111, %c0_112] : memref<57x64xf32, #tpu.memory_space<vmem>>, vector<57x64xf32>
    tpu.vector_store %arg10[%c0_111, %c0_112], %214 {strides = array<i32>} : memref<57x64xf32, #tpu.memory_space<vmem>>, vector<57x64xf32>,
    %c0_113 = arith.constant 0 : index
    %c0_114 = arith.constant 0 : index
    %216 = vector.load %arg10[%c0_113, %c0_114] : memref<57x64xf32, #tpu.memory_space<vmem>>, vector<54x64xf32>
    %c1_115 = arith.constant 1 : index
    %c0_116 = arith.constant 0 : index
    %217 = vector.load %arg10[%c1_115, %c0_116] : memref<57x64xf32, #tpu.memory_space<vmem>>, vector<54x64xf32>
    %218 = arith.maximumf %216, %217 : vector<54x64xf32>
    %c2_117 = arith.constant 2 : index
    %c0_118 = arith.constant 0 : index
    %219 = vector.load %arg10[%c2_117, %c0_118] : memref<57x64xf32, #tpu.memory_space<vmem>>, vector<54x64xf32>
    %220 = arith.maximumf %218, %219 : vector<54x64xf32>
    %c3_119 = arith.constant 3 : index
    %c0_120 = arith.constant 0 : index
    %221 = vector.load %arg10[%c3_119, %c0_120] : memref<57x64xf32, #tpu.memory_space<vmem>>, vector<54x64xf32>
    %222 = arith.maximumf %220, %221 : vector<54x64xf32>
    %c0_121 = arith.constant 0 : index
    %c0_122 = arith.constant 0 : index
    %223 = vector.load %arg11[%c0_121, %c0_122] : memref<54x64xf32, #tpu.memory_space<vmem>>, vector<54x64xf32>
    tpu.vector_store %arg11[%c0_121, %c0_122], %222 {strides = array<i32>} : memref<54x64xf32, #tpu.memory_space<vmem>>, vector<54x64xf32>,
    %c0_123 = arith.constant 0 : index
    %c0_124 = arith.constant 0 : index
    %224 = tpu.strided_load %arg11[%c0_123, %c0_124] {strides = array<i32: 2, 1>} : memref<54x64xf32, #tpu.memory_space<vmem>>, vector<24x64xf32>
    %c1_125 = arith.constant 1 : index
    %c0_126 = arith.constant 0 : index
    %225 = tpu.strided_load %arg11[%c1_125, %c0_126] {strides = array<i32: 2, 1>} : memref<54x64xf32, #tpu.memory_space<vmem>>, vector<24x64xf32>
    %c2_127 = arith.constant 2 : index
    %c0_128 = arith.constant 0 : index
    %226 = tpu.strided_load %arg11[%c2_127, %c0_128] {strides = array<i32: 2, 1>} : memref<54x64xf32, #tpu.memory_space<vmem>>, vector<24x64xf32>
    %c3_129 = arith.constant 3 : index
    %c0_130 = arith.constant 0 : index
    %227 = tpu.strided_load %arg11[%c3_129, %c0_130] {strides = array<i32: 2, 1>} : memref<54x64xf32, #tpu.memory_space<vmem>>, vector<24x64xf32>
    %c4 = arith.constant 4 : index
    %c0_131 = arith.constant 0 : index
    %228 = tpu.strided_load %arg11[%c4, %c0_131] {strides = array<i32: 2, 1>} : memref<54x64xf32, #tpu.memory_space<vmem>>, vector<24x64xf32>
    %c5 = arith.constant 5 : index
    %c0_132 = arith.constant 0 : index
    %229 = tpu.strided_load %arg11[%c5, %c0_132] {strides = array<i32: 2, 1>} : memref<54x64xf32, #tpu.memory_space<vmem>>, vector<24x64xf32>
    %c6 = arith.constant 6 : index
    %c0_133 = arith.constant 0 : index
    %230 = tpu.strided_load %arg11[%c6, %c0_133] {strides = array<i32: 2, 1>} : memref<54x64xf32, #tpu.memory_space<vmem>>, vector<24x64xf32>
    %c7 = arith.constant 7 : index
    %c0_134 = arith.constant 0 : index
    %231 = tpu.strided_load %arg11[%c7, %c0_134] {strides = array<i32: 2, 1>} : memref<54x64xf32, #tpu.memory_space<vmem>>, vector<24x64xf32>
    %232 = tpu.concatenate %224, %225, %226, %227, %228, %229, %230, %231 in 1 : vector<24x64xf32>, vector<24x64xf32>, vector<24x64xf32>, vector<24x64xf32>, vector<24x64xf32>, vector<24x64xf32>, vector<24x64xf32>, vector<24x64xf32> -> vector<24x512xf32>
    %c768 = arith.constant 768 : index
    %c0_135 = arith.constant 0 : index
    %233 = vector.load %arg4[%c768, %c0_135] : memref<1792x128xf32, #tpu.memory_space<vmem>>, vector<512x128xf32>
    %cst_136 = arith.constant dense<0.000000e+00> : vector<24x128xf32>
    %234 = tpu.matmul %232, %233, %cst_136 {dimension_numbers = #tpu.dot_dimension_numbers<[1], [0], [0], [1], [0, 0, 1, 1], [], []>} : vector<24x512xf32>, vector<512x128xf32>, vector<24x128xf32> -> vector<24x128xf32>
    %c72 = arith.constant 72 : index
    %c0_137 = arith.constant 0 : index
    %235 = vector.load %arg3[%c72, %c0_137] : memref<128x256xf32, #tpu.memory_space<vmem>>, vector<1x128xf32>
    %236 = vector.broadcast %235 : vector<1x128xf32> to vector<24x128xf32>
    %237 = arith.addf %234, %236 : vector<24x128xf32>
    %cst_138 = arith.constant 5.000000e-01 : f32
    %238 = vector.broadcast %cst_138 : f32 to vector<24x128xf32>
    %239 = arith.mulf %238, %237 : vector<24x128xf32>
    %cst_139 = arith.constant 0.707106769 : f32
    %240 = vector.broadcast %cst_139 : f32 to vector<24x128xf32>
    %241 = arith.mulf %237, %240 : vector<24x128xf32>
    %cst_140 = arith.constant 0.000000e+00 : f32
    %242 = vector.broadcast %cst_140 : f32 to vector<24x128xf32>
    %243 = arith.cmpf oge, %241, %242 : vector<24x128xf32>
    %cst_141 = arith.constant 1.000000e+00 : f32
    %cst_142 = arith.constant -1.000000e+00 : f32
    %244 = vector.broadcast %cst_141 : f32 to vector<24x128xf32>
    %245 = vector.broadcast %cst_142 : f32 to vector<24x128xf32>
    %246 = arith.select %243, %244, %245 : vector<24x128xi1>, vector<24x128xf32>
    %247 = math.absf %241 : vector<24x128xf32>
    %cst_143 = arith.constant 0.327591091 : f32
    %248 = vector.broadcast %cst_143 : f32 to vector<24x128xf32>
    %249 = arith.mulf %248, %247 : vector<24x128xf32>
    %cst_144 = arith.constant 1.000000e+00 : f32
    %250 = vector.broadcast %cst_144 : f32 to vector<24x128xf32>
    %251 = arith.addf %250, %249 : vector<24x128xf32>
    %252 = tpu.reciprocal %251 {approx = true} : vector<24x128xf32> -> vector<24x128xf32>
    %cst_145 = arith.constant 1.06140542 : f32
    %253 = vector.broadcast %cst_145 : f32 to vector<24x128xf32>
    %254 = arith.mulf %253, %252 : vector<24x128xf32>
    %cst_146 = arith.constant -1.45315206 : f32
    %255 = vector.broadcast %cst_146 : f32 to vector<24x128xf32>
    %256 = arith.addf %254, %255 : vector<24x128xf32>
    %257 = arith.mulf %256, %252 : vector<24x128xf32>
    %cst_147 = arith.constant 1.42141378 : f32
    %258 = vector.broadcast %cst_147 : f32 to vector<24x128xf32>
    %259 = arith.addf %257, %258 : vector<24x128xf32>
    %260 = arith.mulf %259, %252 : vector<24x128xf32>
    %cst_148 = arith.constant -0.284496725 : f32
    %261 = vector.broadcast %cst_148 : f32 to vector<24x128xf32>
    %262 = arith.addf %260, %261 : vector<24x128xf32>
    %263 = arith.mulf %262, %252 : vector<24x128xf32>
    %cst_149 = arith.constant 0.254829586 : f32
    %264 = vector.broadcast %cst_149 : f32 to vector<24x128xf32>
    %265 = arith.addf %263, %264 : vector<24x128xf32>
    %266 = arith.mulf %265, %252 : vector<24x128xf32>
    %cst_150 = arith.constant 0.000000e+00 : f32
    %267 = vector.broadcast %cst_150 : f32 to vector<24x128xf32>
    %268 = arith.subf %267, %247 : vector<24x128xf32>
    %269 = arith.mulf %268, %247 : vector<24x128xf32>
    %270 = math.exp %269 : vector<24x128xf32>
    %271 = arith.mulf %266, %270 : vector<24x128xf32>
    %cst_151 = arith.constant 1.000000e+00 : f32
    %272 = vector.broadcast %cst_151 : f32 to vector<24x128xf32>
    %273 = arith.subf %272, %271 : vector<24x128xf32>
    %274 = arith.mulf %246, %273 : vector<24x128xf32>
    %cst_152 = arith.constant 1.000000e+00 : f32
    %275 = vector.broadcast %cst_152 : f32 to vector<24x128xf32>
    %276 = arith.addf %275, %274 : vector<24x128xf32>
    %277 = arith.mulf %239, %276 : vector<24x128xf32>
    %c0_153 = arith.constant 0 : index
    %c0_154 = arith.constant 0 : index
    %278 = vector.load %arg12[%c0_153, %c0_154] : memref<24x128xf32, #tpu.memory_space<vmem>>, vector<24x128xf32>
    tpu.vector_store %arg12[%c0_153, %c0_154], %277 {strides = array<i32>} : memref<24x128xf32, #tpu.memory_space<vmem>>, vector<24x128xf32>,
    %c0_155 = arith.constant 0 : index
    %c0_156 = arith.constant 0 : index
    %279 = vector.load %arg12[%c0_155, %c0_156] : memref<24x128xf32, #tpu.memory_space<vmem>>, vector<21x128xf32>
    %c1_157 = arith.constant 1 : index
    %c0_158 = arith.constant 0 : index
    %280 = vector.load %arg12[%c1_157, %c0_158] : memref<24x128xf32, #tpu.memory_space<vmem>>, vector<21x128xf32>
    %281 = arith.maximumf %279, %280 : vector<21x128xf32>
    %c2_159 = arith.constant 2 : index
    %c0_160 = arith.constant 0 : index
    %282 = vector.load %arg12[%c2_159, %c0_160] : memref<24x128xf32, #tpu.memory_space<vmem>>, vector<21x128xf32>
    %283 = arith.maximumf %281, %282 : vector<21x128xf32>
    %c3_161 = arith.constant 3 : index
    %c0_162 = arith.constant 0 : index
    %284 = vector.load %arg12[%c3_161, %c0_162] : memref<24x128xf32, #tpu.memory_space<vmem>>, vector<21x128xf32>
    %285 = arith.maximumf %283, %284 : vector<21x128xf32>
    %c0_163 = arith.constant 0 : index
    %c0_164 = arith.constant 0 : index
    %286 = vector.load %arg13[%c0_163, %c0_164] : memref<21x128xf32, #tpu.memory_space<vmem>>, vector<21x128xf32>
    tpu.vector_store %arg13[%c0_163, %c0_164], %285 {strides = array<i32>} : memref<21x128xf32, #tpu.memory_space<vmem>>, vector<21x128xf32>,
    %c0_165 = arith.constant 0 : index
    %c0_166 = arith.constant 0 : index
    %287 = vector.load %arg13[%c0_165, %c0_166] : memref<21x128xf32, #tpu.memory_space<vmem>>, vector<18x128xf32>
    %c1_167 = arith.constant 1 : index
    %c0_168 = arith.constant 0 : index
    %288 = vector.load %arg13[%c1_167, %c0_168] : memref<21x128xf32, #tpu.memory_space<vmem>>, vector<18x128xf32>
    %c2_169 = arith.constant 2 : index
    %c0_170 = arith.constant 0 : index
    %289 = vector.load %arg13[%c2_169, %c0_170] : memref<21x128xf32, #tpu.memory_space<vmem>>, vector<18x128xf32>
    %c3_171 = arith.constant 3 : index
    %c0_172 = arith.constant 0 : index
    %290 = vector.load %arg13[%c3_171, %c0_172] : memref<21x128xf32, #tpu.memory_space<vmem>>, vector<18x128xf32>
    %291 = tpu.concatenate %287, %288, %289, %290 in 1 : vector<18x128xf32>, vector<18x128xf32>, vector<18x128xf32>, vector<18x128xf32> -> vector<18x512xf32>
    %c1280 = arith.constant 1280 : index
    %c0_173 = arith.constant 0 : index
    %292 = vector.load %arg4[%c1280, %c0_173] : memref<1792x128xf32, #tpu.memory_space<vmem>>, vector<512x128xf32>
    %cst_174 = arith.constant dense<0.000000e+00> : vector<18x128xf32>
    %293 = tpu.matmul %291, %292, %cst_174 {dimension_numbers = #tpu.dot_dimension_numbers<[1], [0], [0], [1], [0, 0, 1, 1], [], []>} : vector<18x512xf32>, vector<512x128xf32>, vector<18x128xf32> -> vector<18x128xf32>
    %c80 = arith.constant 80 : index
    %c0_175 = arith.constant 0 : index
    %294 = vector.load %arg3[%c80, %c0_175] : memref<128x256xf32, #tpu.memory_space<vmem>>, vector<1x128xf32>
    %295 = vector.broadcast %294 : vector<1x128xf32> to vector<18x128xf32>
    %296 = arith.addf %293, %295 : vector<18x128xf32>
    %cst_176 = arith.constant 5.000000e-01 : f32
    %297 = vector.broadcast %cst_176 : f32 to vector<18x128xf32>
    %298 = arith.mulf %297, %296 : vector<18x128xf32>
    %cst_177 = arith.constant 0.707106769 : f32
    %299 = vector.broadcast %cst_177 : f32 to vector<18x128xf32>
    %300 = arith.mulf %296, %299 : vector<18x128xf32>
    %cst_178 = arith.constant 0.000000e+00 : f32
    %301 = vector.broadcast %cst_178 : f32 to vector<18x128xf32>
    %302 = arith.cmpf oge, %300, %301 : vector<18x128xf32>
    %cst_179 = arith.constant 1.000000e+00 : f32
    %cst_180 = arith.constant -1.000000e+00 : f32
    %303 = vector.broadcast %cst_179 : f32 to vector<18x128xf32>
    %304 = vector.broadcast %cst_180 : f32 to vector<18x128xf32>
    %305 = arith.select %302, %303, %304 : vector<18x128xi1>, vector<18x128xf32>
    %306 = math.absf %300 : vector<18x128xf32>
    %cst_181 = arith.constant 0.327591091 : f32
    %307 = vector.broadcast %cst_181 : f32 to vector<18x128xf32>
    %308 = arith.mulf %307, %306 : vector<18x128xf32>
    %cst_182 = arith.constant 1.000000e+00 : f32
    %309 = vector.broadcast %cst_182 : f32 to vector<18x128xf32>
    %310 = arith.addf %309, %308 : vector<18x128xf32>
    %311 = tpu.reciprocal %310 {approx = true} : vector<18x128xf32> -> vector<18x128xf32>
    %cst_183 = arith.constant 1.06140542 : f32
    %312 = vector.broadcast %cst_183 : f32 to vector<18x128xf32>
    %313 = arith.mulf %312, %311 : vector<18x128xf32>
    %cst_184 = arith.constant -1.45315206 : f32
    %314 = vector.broadcast %cst_184 : f32 to vector<18x128xf32>
    %315 = arith.addf %313, %314 : vector<18x128xf32>
    %316 = arith.mulf %315, %311 : vector<18x128xf32>
    %cst_185 = arith.constant 1.42141378 : f32
    %317 = vector.broadcast %cst_185 : f32 to vector<18x128xf32>
    %318 = arith.addf %316, %317 : vector<18x128xf32>
    %319 = arith.mulf %318, %311 : vector<18x128xf32>
    %cst_186 = arith.constant -0.284496725 : f32
    %320 = vector.broadcast %cst_186 : f32 to vector<18x128xf32>
    %321 = arith.addf %319, %320 : vector<18x128xf32>
    %322 = arith.mulf %321, %311 : vector<18x128xf32>
    %cst_187 = arith.constant 0.254829586 : f32
    %323 = vector.broadcast %cst_187 : f32 to vector<18x128xf32>
    %324 = arith.addf %322, %323 : vector<18x128xf32>
    %325 = arith.mulf %324, %311 : vector<18x128xf32>
    %cst_188 = arith.constant 0.000000e+00 : f32
    %326 = vector.broadcast %cst_188 : f32 to vector<18x128xf32>
    %327 = arith.subf %326, %306 : vector<18x128xf32>
    %328 = arith.mulf %327, %306 : vector<18x128xf32>
    %329 = math.exp %328 : vector<18x128xf32>
    %330 = arith.mulf %325, %329 : vector<18x128xf32>
    %cst_189 = arith.constant 1.000000e+00 : f32
    %331 = vector.broadcast %cst_189 : f32 to vector<18x128xf32>
    %332 = arith.subf %331, %330 : vector<18x128xf32>
    %333 = arith.mulf %305, %332 : vector<18x128xf32>
    %cst_190 = arith.constant 1.000000e+00 : f32
    %334 = vector.broadcast %cst_190 : f32 to vector<18x128xf32>
    %335 = arith.addf %334, %333 : vector<18x128xf32>
    %336 = arith.mulf %298, %335 : vector<18x128xf32>
    %337 = tpu.concatenate %167, %336 in 0 : vector<18x128xf32>, vector<18x128xf32> -> vector<36x128xf32>
    %c392 = arith.constant 392 : index
    %c0_191 = arith.constant 0 : index
    %338 = vector.load %arg5[%c392, %c0_191] : memref<680x64xf32, #tpu.memory_space<vmem>>, vector<128x64xf32>
    %cst_192 = arith.constant dense<0.000000e+00> : vector<36x64xf32>
    %339 = tpu.matmul %337, %338, %cst_192 {dimension_numbers = #tpu.dot_dimension_numbers<[1], [0], [0], [1], [0, 0, 1, 1], [], []>} : vector<36x128xf32>, vector<128x64xf32>, vector<36x64xf32> -> vector<36x64xf32>
    %c104 = arith.constant 104 : index
    %c0_193 = arith.constant 0 : index
    %340 = vector.load %arg3[%c104, %c0_193] : memref<128x256xf32, #tpu.memory_space<vmem>>, vector<1x64xf32>
    %341 = vector.broadcast %340 : vector<1x64xf32> to vector<36x64xf32>
    %342 = arith.addf %339, %341 : vector<36x64xf32>
    %c200 = arith.constant 200 : index
    %c0_194 = arith.constant 0 : index
    %343 = vector.load %arg5[%c200, %c0_194] : memref<680x64xf32, #tpu.memory_space<vmem>>, vector<128x64xf32>
    %c88 = arith.constant 88 : index
    %c0_195 = arith.constant 0 : index
    %344 = vector.load %arg3[%c88, %c0_195] : memref<128x256xf32, #tpu.memory_space<vmem>>, vector<1x64xf32>
    %c328 = arith.constant 328 : index
    %c0_196 = arith.constant 0 : index
    %345 = vector.load %arg5[%c328, %c0_196] : memref<680x64xf32, #tpu.memory_space<vmem>>, vector<64x64xf32>
    %c96 = arith.constant 96 : index
    %c0_197 = arith.constant 0 : index
    %346 = vector.load %arg3[%c96, %c0_197] : memref<128x256xf32, #tpu.memory_space<vmem>>, vector<1x64xf32>
    %c520 = arith.constant 520 : index
    %c0_198 = arith.constant 0 : index
    %347 = vector.load %arg5[%c520, %c0_198] : memref<680x64xf32, #tpu.memory_space<vmem>>, vector<4x64xf32>
    %c528 = arith.constant 528 : index
    %c0_199 = arith.constant 0 : index
    %348 = vector.load %arg5[%c528, %c0_199] : memref<680x64xf32, #tpu.memory_space<vmem>>, vector<4x64xf32>
    %cst_200 = arith.constant dense<0.000000e+00> : vector<36x64xf32>
    %349 = tpu.matmul %337, %343, %cst_200 {dimension_numbers = #tpu.dot_dimension_numbers<[1], [0], [0], [1], [0, 0, 1, 1], [], []>} : vector<36x128xf32>, vector<128x64xf32>, vector<36x64xf32> -> vector<36x64xf32>
    %350 = vector.broadcast %344 : vector<1x64xf32> to vector<36x64xf32>
    %351 = arith.addf %349, %350 : vector<36x64xf32>
    %cst_201 = arith.constant 0.000000e+00 : f32
    %352 = vector.broadcast %cst_201 : f32 to vector<36x64xf32>
    %353 = arith.maximumf %351, %352 : vector<36x64xf32>
    %cst_202 = arith.constant dense<0.000000e+00> : vector<36x64xf32>
    %354 = tpu.matmul %353, %345, %cst_202 {dimension_numbers = #tpu.dot_dimension_numbers<[1], [0], [0], [1], [0, 0, 1, 1], [], []>} : vector<36x64xf32>, vector<64x64xf32>, vector<36x64xf32> -> vector<36x64xf32>
    %355 = vector.broadcast %346 : vector<1x64xf32> to vector<36x64xf32>
    %356 = arith.addf %354, %355 : vector<36x64xf32>
    %cst_203 = arith.constant dense<0.000000e+00> : vector<64xf32>
    %357 = vector.multi_reduction <add>, %356, %cst_203 [0] : vector<36x64xf32> to vector<64xf32>
    %358 = vector.shape_cast %357 : vector<64xf32> to vector<1x64xf32>
    %cst_204 = arith.constant 0.027777778 : f32
    %359 = vector.broadcast %cst_204 : f32 to vector<1x64xf32>
    %360 = arith.mulf %358, %359 : vector<1x64xf32>
    %361 = vector.broadcast %360 : vector<1x64xf32> to vector<4x64xf32>
    %362 = arith.mulf %361, %347 : vector<4x64xf32>
    %cst_205 = arith.constant dense<0.000000e+00> : vector<4xf32>
    %363 = vector.multi_reduction <add>, %362, %cst_205 [1] : vector<4x64xf32> to vector<4xf32>
    %364 = vector.shape_cast %363 : vector<4xf32> to vector<4x1xf32>
    %cst_206 = arith.constant 0.000000e+00 : f32
    %365 = vector.broadcast %cst_206 : f32 to vector<4x1xf32>
    %366 = arith.maximumf %364, %365 : vector<4x1xf32>
    %367 = vector.broadcast %366 : vector<4x1xf32> to vector<4x64xf32>
    %368 = arith.mulf %367, %348 : vector<4x64xf32>
    %cst_207 = arith.constant dense<0.000000e+00> : vector<64xf32>
    %369 = vector.multi_reduction <add>, %368, %cst_207 [0] : vector<4x64xf32> to vector<64xf32>
    %370 = vector.shape_cast %369 : vector<64xf32> to vector<1x64xf32>
    %371 = arith.negf %370 : vector<1x64xf32>
    %372 = math.exp %371 : vector<1x64xf32>
    %cst_208 = arith.constant 1.000000e+00 : f32
    %373 = vector.broadcast %cst_208 : f32 to vector<1x64xf32>
    %374 = arith.addf %373, %372 : vector<1x64xf32>
    %375 = arith.divf %373, %374 : vector<1x64xf32>
    %376 = vector.broadcast %375 : vector<1x64xf32> to vector<36x64xf32>
    %377 = arith.mulf %356, %376 : vector<36x64xf32>
    %378 = arith.addf %377, %342 : vector<36x64xf32>
    %cst_209 = arith.constant 0.000000e+00 : f32
    %379 = vector.broadcast %cst_209 : f32 to vector<36x64xf32>
    %380 = arith.maximumf %378, %379 : vector<36x64xf32>
    %c536 = arith.constant 536 : index
    %c0_210 = arith.constant 0 : index
    %381 = vector.load %arg5[%c536, %c0_210] : memref<680x64xf32, #tpu.memory_space<vmem>>, vector<64x64xf32>
    %c112 = arith.constant 112 : index
    %c0_211 = arith.constant 0 : index
    %382 = vector.load %arg3[%c112, %c0_211] : memref<128x256xf32, #tpu.memory_space<vmem>>, vector<1x64xf32>
    %c600 = arith.constant 600 : index
    %c0_212 = arith.constant 0 : index
    %383 = vector.load %arg5[%c600, %c0_212] : memref<680x64xf32, #tpu.memory_space<vmem>>, vector<64x64xf32>
    %c120 = arith.constant 120 : index
    %c0_213 = arith.constant 0 : index
    %384 = vector.load %arg3[%c120, %c0_213] : memref<128x256xf32, #tpu.memory_space<vmem>>, vector<1x64xf32>
    %c664 = arith.constant 664 : index
    %c0_214 = arith.constant 0 : index
    %385 = vector.load %arg5[%c664, %c0_214] : memref<680x64xf32, #tpu.memory_space<vmem>>, vector<4x64xf32>
    %c672 = arith.constant 672 : index
    %c0_215 = arith.constant 0 : index
    %386 = vector.load %arg5[%c672, %c0_215] : memref<680x64xf32, #tpu.memory_space<vmem>>, vector<4x64xf32>
    %cst_216 = arith.constant dense<0.000000e+00> : vector<36x64xf32>
    %387 = tpu.matmul %380, %381, %cst_216 {dimension_numbers = #tpu.dot_dimension_numbers<[1], [0], [0], [1], [0, 0, 1, 1], [], []>} : vector<36x64xf32>, vector<64x64xf32>, vector<36x64xf32> -> vector<36x64xf32>
    %388 = vector.broadcast %382 : vector<1x64xf32> to vector<36x64xf32>
    %389 = arith.addf %387, %388 : vector<36x64xf32>
    %cst_217 = arith.constant 0.000000e+00 : f32
    %390 = vector.broadcast %cst_217 : f32 to vector<36x64xf32>
    %391 = arith.maximumf %389, %390 : vector<36x64xf32>
    %cst_218 = arith.constant dense<0.000000e+00> : vector<36x64xf32>
    %392 = tpu.matmul %391, %383, %cst_218 {dimension_numbers = #tpu.dot_dimension_numbers<[1], [0], [0], [1], [0, 0, 1, 1], [], []>} : vector<36x64xf32>, vector<64x64xf32>, vector<36x64xf32> -> vector<36x64xf32>
    %393 = vector.broadcast %384 : vector<1x64xf32> to vector<36x64xf32>
    %394 = arith.addf %392, %393 : vector<36x64xf32>
    %cst_219 = arith.constant dense<0.000000e+00> : vector<64xf32>
    %395 = vector.multi_reduction <add>, %394, %cst_219 [0] : vector<36x64xf32> to vector<64xf32>
    %396 = vector.shape_cast %395 : vector<64xf32> to vector<1x64xf32>
    %cst_220 = arith.constant 0.027777778 : f32
    %397 = vector.broadcast %cst_220 : f32 to vector<1x64xf32>
    %398 = arith.mulf %396, %397 : vector<1x64xf32>
    %399 = vector.broadcast %398 : vector<1x64xf32> to vector<4x64xf32>
    %400 = arith.mulf %399, %385 : vector<4x64xf32>
    %cst_221 = arith.constant dense<0.000000e+00> : vector<4xf32>
    %401 = vector.multi_reduction <add>, %400, %cst_221 [1] : vector<4x64xf32> to vector<4xf32>
    %402 = vector.shape_cast %401 : vector<4xf32> to vector<4x1xf32>
    %cst_222 = arith.constant 0.000000e+00 : f32
    %403 = vector.broadcast %cst_222 : f32 to vector<4x1xf32>
    %404 = arith.maximumf %402, %403 : vector<4x1xf32>
    %405 = vector.broadcast %404 : vector<4x1xf32> to vector<4x64xf32>
    %406 = arith.mulf %405, %386 : vector<4x64xf32>
    %cst_223 = arith.constant dense<0.000000e+00> : vector<64xf32>
    %407 = vector.multi_reduction <add>, %406, %cst_223 [0] : vector<4x64xf32> to vector<64xf32>
    %408 = vector.shape_cast %407 : vector<64xf32> to vector<1x64xf32>
    %409 = arith.negf %408 : vector<1x64xf32>
    %410 = math.exp %409 : vector<1x64xf32>
    %cst_224 = arith.constant 1.000000e+00 : f32
    %411 = vector.broadcast %cst_224 : f32 to vector<1x64xf32>
    %412 = arith.addf %411, %410 : vector<1x64xf32>
    %413 = arith.divf %411, %412 : vector<1x64xf32>
    %414 = vector.broadcast %413 : vector<1x64xf32> to vector<36x64xf32>
    %415 = arith.mulf %394, %414 : vector<36x64xf32>
    %416 = arith.addf %415, %380 : vector<36x64xf32>
    %cst_225 = arith.constant 0.000000e+00 : f32
    %417 = vector.broadcast %cst_225 : f32 to vector<36x64xf32>
    %418 = arith.maximumf %416, %417 : vector<36x64xf32>
    %cst_226 = arith.constant 0.000000e+00 : f32
    %419 = vector.broadcast %cst_226 : f32 to vector<36x64xf32>
    %420 = tpu.concatenate %418, %419 in 1 : vector<36x64xf32>, vector<36x64xf32> -> vector<36x128xf32>
    %c0_227 = arith.constant 0 : index
    %c0_228 = arith.constant 0 : index
    %c0_229 = arith.constant 0 : index
    %421 = vector.load %arg6[%c0_227, %c0_228, %c0_229] : memref<1x36x128xf32, #tpu.memory_space<vmem>>, vector<1x36x128xf32>
    %422 = vector.shape_cast %421 : vector<1x36x128xf32> to vector<36x128xf32>
    %423 = vector.shape_cast %420 : vector<36x128xf32> to vector<1x36x128xf32>
    tpu.vector_store %arg6[%c0_227, %c0_228, %c0_229], %423 {strides = array<i32>} : memref<1x36x128xf32, #tpu.memory_space<vmem>>, vector<1x36x128xf32>,
    return
  }
  func.func @transform_0(%arg0: i32) -> (i32, i32, i32) {
    %c0_i32 = arith.constant 0 : i32
    %c0_i32_0 = arith.constant 0 : i32
    %c0_i32_1 = arith.constant 0 : i32
    return %arg0, %c0_i32, %c0_i32_0 : i32, i32, i32
  }
  func.func @transform_1(%arg0: i32) -> (i32, i32, i32) {
    %c0_i32 = arith.constant 0 : i32
    %c0_i32_0 = arith.constant 0 : i32
    %c0_i32_1 = arith.constant 0 : i32
    return %arg0, %c0_i32, %c0_i32_0 : i32, i32, i32
  }
  func.func @transform_2(%arg0: i32) -> (i32, i32) {
    %c0_i32 = arith.constant 0 : i32
    %c0_i32_0 = arith.constant 0 : i32
    %c0_i32_1 = arith.constant 0 : i32
    return %c0_i32, %c0_i32_0 : i32, i32
  }
  func.func @transform_3(%arg0: i32) -> (i32, i32) {
    %c0_i32 = arith.constant 0 : i32
    %c0_i32_0 = arith.constant 0 : i32
    %c0_i32_1 = arith.constant 0 : i32
    return %c0_i32, %c0_i32_0 : i32, i32
  }
  func.func @transform_4(%arg0: i32) -> (i32, i32) {
    %c0_i32 = arith.constant 0 : i32
    %c0_i32_0 = arith.constant 0 : i32
    %c0_i32_1 = arith.constant 0 : i32
    return %c0_i32, %c0_i32_0 : i32, i32
  }
  func.func @transform_5(%arg0: i32) -> (i32, i32, i32) {
    %c0_i32 = arith.constant 0 : i32
    %c0_i32_0 = arith.constant 0 : i32
    %c0_i32_1 = arith.constant 0 : i32
    return %arg0, %c0_i32, %c0_i32_0 : i32, i32, i32
  }
}

</mosaic_0001>

<bundles_post_ra>
// kernel: squeeze.9
= control target key start
LH: loop header
LB: loop body
LE: loop exit
PB: predicated region body
PF: predicated region fallthrough
CT: control target
= control target key end

     0   :  { %s1604_s16 = smov 3  ;;  %vm149_vm0 = vcmask 1043458   ;;  %vm154_vm1 = vcmask 1045508   ;;  %vm159_vm2 = vcmask 1047558   ;;  %s1606_s17 = smov 3  ;;  %vm121_vm3 = vcmask 162816   ;;  %s2492_s0 = inlined_call_operand.vmem [shape: f32[2,3000], index: 0, kind: input, shape index: {}]   ;;  %s2493_s1 = inlined_call_operand.vmem [shape: f32[2,150,20], index: 1, kind: output, shape index: {}]  }
   0x1   :  { %v1327_v0 = vld [vmem:[%s2492_s0 + $0x2c] sm:$0x3]  ;;  %v1330_v1 = vld [vmem:[%s2492_s0 + $0x26] sm:$0x3]  ;;  %v1335_v2 = vld [vmem:[%s2492_s0 + $0x1c] sm:$0x3] }
   0x2   :  { %13 = vst [vmem:[#allocation0 + $0xb0] sm:$0x3] %v1327_v0  ;;  %28 = vst [vmem:[#allocation0 + $0x98] sm:$0x3] %v1330_v1  ;;  %v1340_v3 = vld [vmem:[%s2492_s0 + $0x12] sm:$0x3] }
   0x3   :  { %v1345_v4 = vld [vmem:[%s2492_s0 + $0x8] sm:$0x3]  ;;  %53 = vst [vmem:[#allocation0 + $0x70] sm:$0x3] %v1335_v2  ;;  %78 = vst [vmem:[#allocation0 + $0x48] sm:$0x3] %v1340_v3 }
   0x4   :  { %103 = vst [vmem:[#allocation0 + $0x20] sm:$0x3] %v1345_v4  ;;  %s1608_s18 = smov 12  ;;  %v1328_v5 = vld [vmem:[%s2492_s0 + $0x2a] sm:$0x3]  ;;  %s1616_s23 = smov 48 }
   0x5   :  { %v1333_v6 = vld [vmem:[%s2492_s0 + $0x20] sm:$0x3]  ;;  %s194_s24 = smov 192  ;;  %18 = vst [vmem:[#allocation0 + $0xa8] sm:$0x3] %v1328_v5  ;;  %s1639_s10 = smov 3 }
   0x6   :  { %43 = vst [vmem:[#allocation0 + $0x80] sm:$0x3] %v1333_v6  ;;  %v1338_v7 = vld [vmem:[%s2492_s0 + $0x16] sm:$0x3]  ;;  %v1343_v8 = vld [vmem:[%s2492_s0 + $0xc] sm:$0x3] }
   0x7   :  { %68 = vst [vmem:[#allocation0 + $0x58] sm:$0x3] %v1338_v7  ;;  %93 = vst [vmem:[#allocation0 + $0x30] sm:$0x3] %v1343_v8  ;;  %v1348_v9 = vld [vmem:[%s2492_s0 + $0x2] sm:$0x3] }
   0x8   :  { %v1326_v10 = vld [vmem:[%s2492_s0 + $0x2e] sm:$0x3]  ;;  %117 = vst [vmem:[#allocation0 + $0x8] sm:$0x3] %v1348_v9  ;;  %v1331_v11 = vld [vmem:[%s2492_s0 + $0x24] sm:$0x3] }
   0x9   :  { %8 = vst [vmem:[#allocation0 + $0xb8] sm:$0x3] %v1326_v10  ;;  %v1336_v12 = vld [vmem:[%s2492_s0 + $0x1a] sm:$0x3]  ;;  %v1341_v13 = vld [vmem:[%s2492_s0 + $0x10] sm:$0x3] }
   0xa   :  { %33 = vst [vmem:[#allocation0 + $0x90] sm:$0x3] %v1331_v11  ;;  %58 = vst [vmem:[#allocation0 + $0x68] sm:$0x3] %v1336_v12  ;;  %v1346_v14 = vld [vmem:[%s2492_s0 + $0x6] sm:$0x3] }
   0xb   :  { %83 = vst [vmem:[#allocation0 + $0x40] sm:$0x3] %v1341_v13  ;;  %v1332_v15 = vld [vmem:[%s2492_s0 + $0x22] sm:$0x3]  ;;  %v174_v16 = vld [vmem:[#allocation0 + $0xb1] ss:$-1 sm:%s1604_s16]  }
   0xc   :  { %v195_v17 = vld [vmem:[#allocation0 + $0x9f] ss:$-1 sm:%s194_s24]   ;;  %108 = vst [vmem:[#allocation0 + $0x18] sm:$0x3] %v1346_v14  ;;  %s1648_s15 = smov 3  ;;  %s1650_s16 = smov 12 }
   0xd   :  { %38 = vst [vmem:[#allocation0 + $0x88] sm:$0x3] %v1332_v15  ;;  %s1548_s19 = smov 124   ;;  %v182_v18 = vld [vmem:[#allocation0 + $0x21] ss:$-1 sm:%s1606_s17]   ;;  %s250_s24 = smov 48 }
   0xe   :  { %175 = vrot.lane.b32.xlu0 %v174_v16, %s1548_s19  ;;  %v185_v19 = vld [vmem:[#allocation0 + $0x4b] ss:$-1 sm:%s1608_s18]   ;;  %v190_v20 = vld [vmem:[#allocation0 + $0x75] ss:$-1 sm:%s1616_s23]   ;;  %v1337_v22 = vld [vmem:[%s2492_s0 + $0x18] sm:$0x3] }
   0xf   :  { %v187_v21 = vsel %vm149_vm0, %v185_v19, %v182_v18  ;;  %v1342_v23 = vld [vmem:[%s2492_s0 + $0xe] sm:$0x3]  ;;  %v1347_v24 = vld [vmem:[%s2492_s0 + $0x4] sm:$0x3]  ;;  %v235_v26 = vld [vmem:[#allocation0 + $0xa8] sm:$0x3]  }
  0x10   :  { %v192_v25 = vsel %vm154_vm1, %v190_v20, %v187_v21  ;;  %v220_v27 = vld [vmem:[#allocation0 + $0x7a] sm:$0xc0]   ;;  %s255_s25 = smov 192  ;;  %63 = vst [vmem:[#allocation0 + $0x60] sm:$0x3] %v1337_v22  ;;  %s1668_s26 = smov 3 }
  0x11   :  { %88 = vst [vmem:[#allocation0 + $0x38] sm:$0x3] %v1342_v23  ;;  %113 = vst [vmem:[#allocation0 + $0x10] sm:$0x3] %v1347_v24  ;;  %v197_v28 = vsel %vm159_vm2, %v195_v17, %v192_v25  ;;  %v212_v29 = vld [vmem:[#allocation0 + $0x2e] sm:$0xc]  }
  0x12   :  { %v216_v30 = vld [vmem:[#allocation0 + $0x54] sm:$0x30]   ;;  %s1670_s27 = smov 12  ;;  %s1549_s28 = smov 120   ;;  %v210_v31 = vld [vmem:[#allocation0 + $0x8] sm:$0x3]  }
  0x13   :  { %198 = vrot.lane.b32.xlu1 %v197_v28, %s1549_s28  ;;  %s1550_s29 = smov 116   ;;  %s1672_s30 = smov 48  ;;  %v1334_v32 = vld [vmem:[%s2492_s0 + $0x1e] sm:$0x3]  ;;  %v214_v33 = vsel %vm149_vm0, %v212_v29, %v210_v31  ;;  %v272_v34 = vld [vmem:[#allocation0 + $0xb9] ss:$-1 sm:%s1639_s10]  }
  0x14   :  { %236 = vrot.lane.b32.xlu0 %v235_v26, %s1550_s29  ;;  %s157_s2 = smov 192  ;;  %v246_v35 = vld [vmem:[#allocation0 + $0x43] ss:$-1 sm:%s1650_s16]   ;;  %v251_v36 = vld [vmem:[#allocation0 + $0x6d] ss:$-1 sm:%s250_s24]   ;;  %v218_v37 = vsel %vm154_vm1, %v216_v30, %v214_v33  ;;  %s310_s11 = smov 3 }
  0x15   :  { %48 = vst [vmem:[#allocation0 + $0x78] sm:$0x3] %v1334_v32  ;;  %v243_v38 = vld [vmem:[#allocation0 + $0x19] ss:$-1 sm:%s1648_s15]   ;;  %v222_v41 = vsel %vm159_vm2, %v220_v27, %v218_v37  ;;  %v1344_v43 = vld [vmem:[%s2492_s0 + $0xa] sm:$0x3] }
  0x16   :  { %v256_v39 = vld [vmem:[#allocation0 + $0x97] ss:$-1 sm:%s255_s25]   ;;  %v248_v42 = vsel %vm149_vm0, %v246_v35, %v243_v38  ;;  %v118_v44 = vld [vmem:[%s2492_s0] sm:$0x3]  ;;  %s1551_s12 = smov 112   ;;  %s318_s15 = smov 48 }
  0x17   :  { %v1339_v40 = vld [vmem:[%s2492_s0 + $0x14] sm:$0x3]  ;;  %223 = vrot.lane.b32.xlu1 %v222_v41, %s1550_s29  ;;  %v253_v45 = vsel %vm154_vm1, %v251_v36, %v248_v42  ;;  %v158_v46 = vld [vmem:[#allocation0 + $0x8f] ss:$-1 sm:%s157_s2]   ;;  %98 = vst [vmem:[#allocation0 + $0x28] sm:$0x3] %v1344_v43 }
  0x18   :  { %73 = vst [vmem:[#allocation0 + $0x50] sm:$0x3] %v1339_v40  ;;  %273 = vrot.lane.b32.xlu0 %v272_v34, %s1551_s12  ;;  %119 = vst [vmem:[#allocation0] sm:$0x3] %v118_v44  ;;  %v1329_v47 = vld [vmem:[%s2492_s0 + $0x28] sm:$0x3]  ;;  %v258_v48 = vsel %vm159_vm2, %v256_v39, %v253_v45 }
  0x19   :  { %s313_s0 = smov 12  ;;  %v145_v49 = vld [vmem:[#allocation0 + $0x11] ss:$-1 sm:%s1668_s26]   ;;  %v148_v50 = vld [vmem:[#allocation0 + $0x3b] ss:$-1 sm:%s1670_s27]   ;;  %s347_s16 = smov 3 }
  0x1a   :  { %v153_v51 = vld [vmem:[#allocation0 + $0x65] ss:$-1 sm:%s1672_s30]   ;;  %23 = vst [vmem:[#allocation0 + $0xa0] sm:$0x3] %v1329_v47  ;;  %v150_v52 = vsel %vm149_vm0, %v148_v50, %v145_v49  ;;  %v311_v54 = vld [vmem:[#allocation0 + $0x11] ss:$-1 sm:%s310_s11]  }
  0x1b   :  { %v155_v53 = vsel %vm154_vm1, %v153_v51, %v150_v52  ;;  %v314_v55 = vld [vmem:[#allocation0 + $0x3b] ss:$-1 sm:%s313_s0]   ;;  %259 = vrot.lane.b32.xlu1 %v258_v48, %s1551_s12  ;;  %v319_v57 = vld [vmem:[#allocation0 + $0x65] ss:$-1 sm:%s318_s15]   ;;  %s350_s17 = smov 12  ;;  %s339_s18 = smov 3 }
  0x1c   :  { %v160_v56 = vsel %vm159_vm2, %v158_v46, %v155_v53  ;;  %v288_v58 = vld [vmem:[#allocation0 + $0x72] sm:$0xc0]   ;;  %v348_v59 = vld [vmem:[#allocation0 + $0x21] ss:$-1 sm:%s347_s16]   ;;  %v316_v61 = vsel %vm149_vm0, %v314_v55, %v311_v54  ;;  %v351_v62 = vld [vmem:[#allocation0 + $0x4b] ss:$-1 sm:%s350_s17]  }
  0x1d   :  { %161 = vrot.lane.b32.xlu0 %v160_v56, %s1548_s19  ;;  %s323_s19 = smov 192  ;;  %s355_s20 = smov 48  ;;  %v321_v6 = vsel %vm154_vm1, %v319_v57, %v316_v61  ;;  %v340_v7 = vld [vmem:[#allocation0 + $0xb1] ss:$-1 sm:%s339_s18]   ;;  %v353_v10 = vsel %vm149_vm0, %v351_v62, %v348_v59  ;;  %v459_v37 = vld [vmem:[#allocation0 + $0x72] sm:$0xc0]  }
  0x1e   :  { %v124_v63 = vld [vmem:[#allocation0 + $0x28] sm:$0x3]   ;;  %s360_s23 = smov 192  ;;  %s1552_s24 = smov 108   ;;  %v356_v8 = vld [vmem:[#allocation0 + $0x75] ss:$-1 sm:%s355_s20]  }
  0x1f   :  { %v284_v60 = vld [vmem:[#allocation0 + $0x4c] sm:$0x30]   ;;  %v278_v0 = vld [vmem:[#allocation0] sm:$0x3]   ;;  %v280_v1 = vld [vmem:[#allocation0 + $0x26] sm:$0xc]   ;;  %v358_v21 = vsel %vm154_vm1, %v356_v8, %v353_v10 }
  0x20   :  { %1349 = vst.msk [vmem:[%s2493_s1 + $0x20] ss:$152 sm:$0x3] %vm121_vm3, %v124_v63   ;;  %v282_v2 = vsel %vm149_vm0, %v280_v1, %v278_v0  ;;  %v324_v4 = vld [vmem:[#allocation0 + $0x8f] ss:$-1 sm:%s323_s19]   ;;  %s376_s25 = smov 3 }
  0x21   :  { %v303_v3 = vld [vmem:[#allocation0 + $0xa0] sm:$0x3]   ;;  %v286_v5 = vsel %vm154_vm1, %v284_v60, %v282_v2  ;;  %s379_s26 = smov 12  ;;  %v377_v11 = vld [vmem:[#allocation0 + $0x9] ss:$-1 sm:%s376_s25]   ;;  %s384_s27 = smov 48  ;;  %v326_v17 = vsel %vm159_vm2, %v324_v4, %v321_v6 }
  0x22   :  { %304 = vrot.lane.b32.xlu0 %v303_v3, %s1552_s24  ;;  %v290_v9 = vsel %vm159_vm2, %v288_v58, %v286_v5  ;;  %v380_v12 = vld [vmem:[#allocation0 + $0x33] ss:$-1 sm:%s379_s26]   ;;  %s389_s28 = smov 192  ;;  %v385_v14 = vld [vmem:[#allocation0 + $0x5d] ss:$-1 sm:%s384_s27]   ;;  %s413_s29 = smov 3 }
  0x23   :  { %291 = vrot.lane.b32.xlu1 %v290_v9, %s1552_s24  ;;  %v382_v13 = vsel %vm149_vm0, %v380_v12, %v377_v11  ;;  %v390_v15 = vld [vmem:[#allocation0 + $0x87] ss:$-1 sm:%s389_s28]   ;;  %v361_v18 = vld [vmem:[#allocation0 + $0x9f] ss:$-1 sm:%s360_s23]   ;;  %s416_s30 = smov 12  ;;  %s1553_s2 = smov 104  }
  0x24   :  { %v449_v16 = vld [vmem:[#allocation0] sm:$0x3]   ;;  %v387_v19 = vsel %vm154_vm1, %v385_v14, %v382_v13  ;;  %v451_v20 = vld [vmem:[#allocation0 + $0x26] sm:$0xc]   ;;  %v414_v22 = vld [vmem:[#allocation0 + $0x19] ss:$-1 sm:%s413_s29]   ;;  %v363_v29 = vsel %vm159_vm2, %v361_v18, %v358_v21 }
  0x25   :  { %v417_v23 = vld [vmem:[#allocation0 + $0x43] ss:$-1 sm:%s416_s30]   ;;  %s421_s3 = smov 48  ;;  %s426_s4 = smov 192  ;;  %v392_v24 = vsel %vm159_vm2, %v390_v15, %v387_v19  ;;  %v453_v30 = vsel %vm149_vm0, %v451_v20, %v449_v16  ;;  %v455_v31 = vld [vmem:[#allocation0 + $0x4c] sm:$0x30]  }
  0x26   :  { %341 = vrot.lane.b32.xlu0 %v340_v7, %s1553_s2  ;;  %v419_v25 = vsel %vm149_vm0, %v417_v23, %v414_v22  ;;  %v422_v26 = vld [vmem:[#allocation0 + $0x6d] ss:$-1 sm:%s421_s3]   ;;  %s405_s5 = smov 3  ;;  %v427_v28 = vld [vmem:[#allocation0 + $0x97] ss:$-1 sm:%s426_s4]   ;;  %s481_s6 = smov 3  ;;  %v457_v36 = vsel %vm154_vm1, %v455_v31, %v453_v30 }
  0x27   :  { %327 = vrot.lane.b32.xlu1 %v326_v17, %s1553_s2  ;;  %v424_v27 = vsel %vm154_vm1, %v422_v26, %v419_v25  ;;  %s1723_s7 = smov 3  ;;  %v139_v32 = vld [vmem:[#allocation0 + $0xa0] sm:$0x3]   ;;  %s1554_s8 = smov 96   ;;  %v482_v33 = vld [vmem:[#allocation0 + $0x11] ss:$-1 sm:%s481_s6]   ;;  %v461_v43 = vsel %vm159_vm2, %v459_v37, %v457_v36 }
  0x28   :  { %1352 = vst.msk [vmem:[%s2493_s1 + $0x80] ss:$152 sm:$0x3] %vm121_vm3, %v139_v32   ;;  %s484_s11 = smov 12  ;;  %s489_s12 = smov 48  ;;  %v429_v34 = vsel %vm159_vm2, %v427_v28, %v424_v27  ;;  %vm1071_vm4 = vcmask 916480  }
  0x29   :  { %v485_v35 = vld [vmem:[#allocation0 + $0x3b] ss:$-1 sm:%s484_s11]   ;;  %s494_s13 = smov 192  ;;  %s1555_s14 = smov 100   ;;  %v406_v38 = vld [vmem:[#allocation0 + $0xa9] ss:$-1 sm:%s405_s5]  }
  0x2a   :  { %393 = vrot.lane.b32.xlu0 %v392_v24, %s1554_s8  ;;  %s518_s0 = smov 3  ;;  %v487_v39 = vsel %vm149_vm0, %v485_v35, %v482_v33  ;;  %v490_v40 = vld [vmem:[#allocation0 + $0x65] ss:$-1 sm:%s489_s12]   ;;  %s1733_s15 = smov 3  ;;  %v495_v45 = vld [vmem:[#allocation0 + $0x8f] ss:$-1 sm:%s494_s13]  }
  0x2b   :  { %364 = vrot.lane.b32.xlu1 %v363_v29, %s1555_s14  ;;  %s521_s16 = smov 12  ;;  %s1556_s19 = smov 92   ;;  %v519_v41 = vld [vmem:[#allocation0 + $0x21] ss:$-1 sm:%s518_s0]   ;;  %v492_v44 = vsel %vm154_vm1, %v490_v40, %v487_v39  ;;  %v443_v46 = vld [vmem:[#allocation0 + $0xb9] ss:$-1 sm:%s1723_s7]  }
  0x2c   :  { %v522_v42 = vld [vmem:[#allocation0 + $0x4b] ss:$-1 sm:%s521_s16]   ;;  %s526_s17 = smov 48  ;;  %s531_s18 = smov 192  ;;  %v474_v50 = vld [vmem:[#allocation0 + $0xa0] sm:$0x3]   ;;  %v497_v51 = vsel %vm159_vm2, %v495_v45, %v492_v44 }
  0x2d   :  { %s547_s20 = smov 3  ;;  %s550_s21 = smov 12  ;;  %v524_v47 = vsel %vm149_vm0, %v522_v42, %v519_v41  ;;  %v527_v48 = vld [vmem:[#allocation0 + $0x75] ss:$-1 sm:%s526_s17]   ;;  %v532_v49 = vld [vmem:[#allocation0 + $0x9f] ss:$-1 sm:%s531_s18]  }
  0x2e   :  { %430 = vrot.lane.b32.xlu0 %v429_v34, %s1556_s19  ;;  %s1737_s22 = smov 48  ;;  %s1741_s23 = smov 192  ;;  %v548_v52 = vld [vmem:[#allocation0 + $0x9] ss:$-1 sm:%s547_s20]   ;;  %v551_v53 = vld [vmem:[#allocation0 + $0x33] ss:$-1 sm:%s550_s21]   ;;  %v529_v54 = vsel %vm154_vm1, %v527_v48, %v524_v47 }
  0x2f   :  { %407 = vrot.lane.b32.xlu1 %v406_v38, %s1554_s8  ;;  %s1557_s24 = smov 88   ;;  %s1036_s25 = smov 3  ;;  %v1181_v59 = vld [vmem:[#allocation0 + $0x8] sm:$0x3]   ;;  %v1183_v60 = vld [vmem:[#allocation0 + $0x2e] sm:$0xc]   ;;  %v534_v0 = vsel %vm159_vm2, %v532_v49, %v529_v54  ;;  %v553_v1 = vsel %vm149_vm0, %v551_v53, %v548_v52 }
  0x30   :  { %s1039_s26 = smov 12  ;;  %s1745_s27 = smov 3  ;;  %v1037_v55 = vld [vmem:[#allocation0 + $0x9] ss:$-1 sm:%s1036_s25]   ;;  %v1167_v61 = vld [vmem:[#allocation0] sm:$0x3]   ;;  %v1185_v19 = vsel %vm149_vm0, %v1183_v60, %v1181_v59 }
  0x31   :  { %s1044_s28 = smov 48  ;;  %v1040_v56 = vld [vmem:[#allocation0 + $0x33] ss:$-1 sm:%s1039_s26]   ;;  %s1054_s29 = smov 3  ;;  %v1169_v62 = vld [vmem:[#allocation0 + $0x26] sm:$0xc]  }
  0x32   :  { %462 = vrot.lane.b32.xlu0 %v461_v43, %s1557_s24  ;;  %s1057_s30 = smov 12  ;;  %s1748_s2 = smov 192  ;;  %v1055_v57 = vld [vmem:[#allocation0 + $0x11] ss:$-1 sm:%s1054_s29]   ;;  %v556_v2 = vld [vmem:[#allocation0 + $0x5d] ss:$-1 sm:%s1737_s22]   ;;  %v1042_v4 = vsel %vm149_vm0, %v1040_v56, %v1037_v55  ;;  %v1171_v18 = vsel %vm149_vm0, %v1169_v62, %v1167_v61 }
  0x33   :  { %444 = vrot.lane.b32.xlu1 %v443_v46, %s1556_s19  ;;  %v1058_v58 = vld [vmem:[#allocation0 + $0x3b] ss:$-1 sm:%s1057_s30]   ;;  %s1062_s3 = smov 48  ;;  %s1558_s4 = smov 84   ;;  %v511_v63 = vld [vmem:[#allocation0 + $0xb1] ss:$-1 sm:%s1733_s15]   ;;  %v558_v15 = vsel %vm154_vm1, %v556_v2, %v553_v1 }
  0x34   :  { %s1067_s5 = smov 192  ;;  %s1094_s6 = smov 3  ;;  %v561_v3 = vld [vmem:[#allocation0 + $0x87] ss:$-1 sm:%s1741_s23]   ;;  %v1045_v5 = vld [vmem:[#allocation0 + $0x5d] ss:$-1 sm:%s1044_s28]   ;;  %v1060_v6 = vsel %vm149_vm0, %v1058_v58, %v1055_v57 }
  0x35   :  { %s1097_s7 = smov 3  ;;  %s1110_s8 = smov 3  ;;  %v1063_v7 = vld [vmem:[#allocation0 + $0x65] ss:$-1 sm:%s1062_s3]   ;;  %v1173_v8 = vld [vmem:[#allocation0 + $0x4c] sm:$0x30]   ;;  %v1047_v20 = vsel %vm154_vm1, %v1045_v5, %v1042_v4  ;;  %v563_v30 = vsel %vm159_vm2, %v561_v3, %v558_v15 }
  0x36   :  { %498 = vrot.lane.b32.xlu0 %v497_v51, %s1558_s4  ;;  %s1113_s9 = smov 12  ;;  %s1118_s10 = smov 48  ;;  %v1187_v9 = vld [vmem:[#allocation0 + $0x54] sm:$0x30]   ;;  %v577_v10 = vld [vmem:[#allocation0 + $0xa9] ss:$-1 sm:%s1745_s27]   ;;  %v1065_v21 = vsel %vm154_vm1, %v1063_v7, %v1060_v6  ;;  %v1175_v33 = vsel %vm154_vm1, %v1173_v8, %v1171_v18 }
  0x37   :  { %475 = vrot.lane.b32.xlu1 %v474_v50, %s1557_s24  ;;  %v1050_v11 = vld [vmem:[#allocation0 + $0x87] ss:$-1 sm:%s1748_s2]   ;;  %v1068_v12 = vld [vmem:[#allocation0 + $0x8f] ss:$-1 sm:%s1067_s5]   ;;  %v1111_v13 = vld [vmem:[#allocation0 + $0x19] ss:$-1 sm:%s1110_s8]   ;;  %v1189_v34 = vsel %vm154_vm1, %v1187_v9, %v1185_v19 }
  0x38   :  { %v1114_v14 = vld [vmem:[#allocation0 + $0x43] ss:$-1 sm:%s1113_s9]   ;;  %s1123_s11 = smov 192  ;;  %s1128_s12 = smov 3  ;;  %v1098_v22 = vld [vmem:[#allocation0 + $0xb1] ss:$-1 sm:%s1097_s7]   ;;  %v1052_v35 = vsel %vm159_vm2, %v1050_v11, %v1047_v20  ;;  %v1070_v36 = vsel %vm159_vm2, %v1068_v12, %v1065_v21 }
  0x39   :  { %s1559_s13 = smov 80   ;;  %v1095_v16 = vld [vmem:[#allocation0 + $0xa9] ss:$-1 sm:%s1094_s6]   ;;  %v1129_v17 = vld [vmem:[#allocation0 + $0x21] ss:$-1 sm:%s1128_s12]   ;;  %s1131_s14 = smov 12  ;;  %v1116_v25 = vsel %vm149_vm0, %v1114_v14, %v1111_v13  ;;  %v1072_v48 = vsel %vm1071_vm4, %v1070_v36, %v1052_v35 }
  0x3a   :  { %535 = vrot.lane.b32.xlu0 %v534_v0, %s1559_s13  ;;  %s1136_s0 = smov 48  ;;  %v1132_v23 = vld [vmem:[#allocation0 + $0x4b] ss:$-1 sm:%s1131_s14]   ;;  %s1141_s15 = smov 192  ;;  %v1177_v24 = vld [vmem:[#allocation0 + $0x72] sm:$0xc0]   ;;  %v1100_v37 = vsel %vm1071_vm4, %v1098_v22, %v1095_v16 }
  0x3b   :  { %512 = vrot.lane.b32.xlu1 %v511_v63, %s1558_s4  ;;  %v1119_v26 = vld [vmem:[#allocation0 + $0x6d] ss:$-1 sm:%s1118_s10]   ;;  %v1134_v27 = vsel %vm149_vm0, %v1132_v23, %v1129_v17  ;;  %v1137_v28 = vld [vmem:[#allocation0 + $0x75] ss:$-1 sm:%s1136_s0]   ;;  %v1191_v29 = vld [vmem:[#allocation0 + $0x7a] sm:$0xc0]   ;;  %v1179_v44 = vsel %vm159_vm2, %v1177_v24, %v1175_v33 }
  0x3c   :  { %v1124_v31 = vld [vmem:[#allocation0 + $0x97] ss:$-1 sm:%s1123_s11]   ;;  %v1142_v32 = vld [vmem:[#allocation0 + $0x9f] ss:$-1 sm:%s1141_s15]   ;;  %s1231_s16 = smov 3  ;;  %s1234_s19 = smov 12  ;;  %v1121_v40 = vsel %vm154_vm1, %v1119_v26, %v1116_v25  ;;  %v1139_v41 = vsel %vm154_vm1, %v1137_v28, %v1134_v27  ;;  %v1193_v45 = vsel %vm159_vm2, %v1191_v29, %v1189_v34 }
  0x3d   :  { %s1560_s17 = smov 76   ;;  %v1232_v38 = vld [vmem:[#allocation0 + $0x11] ss:$-1 sm:%s1231_s16]   ;;  %v1235_v39 = vld [vmem:[#allocation0 + $0x3b] ss:$-1 sm:%s1234_s19]   ;;  %s1239_s18 = smov 48  ;;  %v1126_v54 = vsel %vm159_vm2, %v1124_v31, %v1121_v40  ;;  %v1144_v55 = vsel %vm159_vm2, %v1142_v32, %v1139_v41 }
  0x3e   :  { %578 = vrot.lane.b32.xlu0 %v577_v10, %s1560_s17  ;;  %s1244_s20 = smov 192  ;;  %vm1194_vm5 = vcmask 982016   ;;  %v1237_v42 = vsel %vm149_vm0, %v1235_v39, %v1232_v38  ;;  %v1240_v43 = vld [vmem:[#allocation0 + $0x65] ss:$-1 sm:%s1239_s18]   ;;  %s1249_s21 = smov 3  ;;  %vm1145_vm6 = vcmask 949248  }
  0x3f   :  { %s1252_s22 = smov 12  ;;  %564 = vrot.lane.b32.xlu1 %v563_v30, %s1560_s17  ;;  %v1250_v46 = vld [vmem:[#allocation0 + $0x19] ss:$-1 sm:%s1249_s21]   ;;  %s1257_s23 = smov 48  ;;  %v1242_v49 = vsel %vm154_vm1, %v1240_v43, %v1237_v42  ;;  %v1245_v50 = vld [vmem:[#allocation0 + $0x8f] ss:$-1 sm:%s1244_s20]   ;;  %v1195_v58 = vsel %vm1194_vm5, %v1193_v45, %v1179_v44  ;;  %v1146_v62 = vsel %vm1145_vm6, %v1144_v55, %v1126_v54 }
  0x40   :  { %v1253_v47 = vld [vmem:[#allocation0 + $0x43] ss:$-1 sm:%s1252_s22]   ;;  %s1262_s24 = smov 192  ;;  %v1258_v52 = vld [vmem:[#allocation0 + $0x6d] ss:$-1 sm:%s1257_s23]   ;;  %s1561_s25 = smov 16   ;;  %v1247_v60 = vsel %vm159_vm2, %v1245_v50, %v1242_v49 }
  0x41   :  { %v1255_v51 = vsel %vm149_vm0, %v1253_v47, %v1250_v46  ;;  %v1263_v53 = vld [vmem:[#allocation0 + $0x97] ss:$-1 sm:%s1262_s24]   ;;  %v134_v59 = vld [vmem:[#allocation0 + $0x78] sm:$0x3]   ;;  %vm1266_vm7 = vcmask 1014784   ;;  %s584_s30 = smov 3 }
  0x42   :  { %1101 = vrot.lane.b32.xlu0 %v1100_v37, %s1561_s25  ;;  %v1260_v56 = vsel %vm154_vm1, %v1258_v52, %v1255_v51  ;;  %v129_v57 = vld [vmem:[#allocation0 + $0x50] sm:$0x3]   ;;  %1351 = vst.msk [vmem:[%s2493_s1 + $0x60] ss:$152 sm:$0x3] %vm121_vm3, %v134_v59   ;;  %s587_s2 = smov 12 }
  0x43   :  { %1350 = vst.msk [vmem:[%s2493_s1 + $0x40] ss:$152 sm:$0x3] %vm121_vm3, %v129_v57   ;;  %1073 = vrot.lane.b32.xlu1 %v1072_v48, %s1561_s25  ;;  %v1265_v61 = vsel %vm159_vm2, %v1263_v53, %v1260_v56  ;;  %v1217_v63 = vld [vmem:[#allocation0 + $0xa0] sm:$0x3]   ;;  %s1562_s3 = smov 8  }
  0x44   :  { %v1219_v0 = vld [vmem:[#allocation0 + $0xa8] sm:$0x3]   ;;  %v585_v1 = vld [vmem:[#allocation0 + $0x19] ss:$-1 sm:%s584_s30]   ;;  %v588_v2 = vld [vmem:[#allocation0 + $0x43] ss:$-1 sm:%s587_s2]   ;;  %v1267_v3 = vsel %vm1266_vm7, %v1265_v61, %v1247_v60 }
  0x45   :  { %s592_s4 = smov 48  ;;  %s597_s5 = smov 192  ;;  %v590_v4 = vsel %vm149_vm0, %v588_v2, %v585_v1  ;;  %v612_v6 = vld [vmem:[#allocation0] sm:$0x3]   ;;  %v614_v7 = vld [vmem:[#allocation0 + $0x26] sm:$0xc]   ;;  %v1221_v10 = vsel %vm1194_vm5, %v1219_v0, %v1217_v63 }
  0x46   :  { %1196 = vrot.lane.b32.xlu0 %v1195_v58, %s1562_s3  ;;  %s1289_s6 = smov 3  ;;  %s1292_s7 = smov 3  ;;  %v593_v5 = vld [vmem:[#allocation0 + $0x6d] ss:$-1 sm:%s592_s4]   ;;  %v598_v9 = vld [vmem:[#allocation0 + $0x97] ss:$-1 sm:%s597_s5]   ;;  %v616_v13 = vsel %vm149_vm0, %v614_v7, %v612_v6 }
  0x47   :  { %s1563_s8 = smov 12   ;;  %v595_v8 = vsel %vm154_vm1, %v593_v5, %v590_v4  ;;  %s644_s9 = smov 3  ;;  %v1290_v11 = vld [vmem:[#allocation0 + $0xb1] ss:$-1 sm:%s1289_s6]   ;;  %v1293_v12 = vld [vmem:[#allocation0 + $0xb9] ss:$-1 sm:%s1292_s7]  }
  0x48   :  { %1147 = vrot.lane.b32.xlu1 %v1146_v62, %s1563_s8  ;;  %s647_s10 = smov 12  ;;  %s1564_s11 = smov 4   ;;  %v618_v14 = vld [vmem:[#allocation0 + $0x4c] sm:$0x30]   ;;  %v600_v15 = vsel %vm159_vm2, %v598_v9, %v595_v8  ;;  %v1295_v18 = vsel %vm1266_vm7, %v1293_v12, %v1290_v11  ;;  %v622_v19 = vld [vmem:[#allocation0 + $0x72] sm:$0xc0]  }
  0x49   :  { %s652_s12 = smov 48  ;;  %v645_v16 = vld [vmem:[#allocation0 + $0x11] ss:$-1 sm:%s644_s9]   ;;  %v648_v17 = vld [vmem:[#allocation0 + $0x3b] ss:$-1 sm:%s647_s10]   ;;  %s657_s13 = smov 192  ;;  %v620_v20 = vsel %vm154_vm1, %v618_v14, %v616_v13 }
  0x4a   :  { %1268 = vrot.lane.b32.xlu0 %v1267_v3, %s1564_s11  ;;  %s681_s14 = smov 3  ;;  %s684_s0 = smov 12  ;;  %v653_v21 = vld [vmem:[#allocation0 + $0x65] ss:$-1 sm:%s652_s12]   ;;  %v650_v23 = vsel %vm149_vm0, %v648_v17, %v645_v16  ;;  %v658_v26 = vld [vmem:[#allocation0 + $0x8f] ss:$-1 sm:%s657_s13]   ;;  %v624_v29 = vsel %vm159_vm2, %v622_v19, %v620_v20 }
  0x4b   :  { %s1565_s15 = smov 72   ;;  %v637_v22 = vld [vmem:[#allocation0 + $0xa0] sm:$0x3]   ;;  %s710_s16 = smov 3  ;;  %v685_v28 = vld [vmem:[#allocation0 + $0x4b] ss:$-1 sm:%s684_s0]   ;;  %v655_v33 = vsel %vm154_vm1, %v653_v21, %v650_v23 }
  0x4c   :  { %1222 = vrot.lane.b32.xlu1 %v1221_v10, %s1562_s3  ;;  %s713_s19 = smov 12  ;;  %s689_s17 = smov 48  ;;  %v711_v24 = vld [vmem:[#allocation0 + $0x9] ss:$-1 sm:%s710_s16]   ;;  %v682_v27 = vld [vmem:[#allocation0 + $0x21] ss:$-1 sm:%s681_s14]   ;;  %v660_v41 = vsel %vm159_vm2, %v658_v26, %v655_v33 }
  0x4d   :  { %v714_v25 = vld [vmem:[#allocation0 + $0x33] ss:$-1 sm:%s713_s19]   ;;  %s718_s18 = smov 48  ;;  %s673_s20 = smov 3  ;;  %v120_v32 = vld [vmem:[#allocation0] sm:$0x3]   ;;  %v687_v36 = vsel %vm149_vm0, %v685_v28, %v682_v27 }
  0x4e   :  { %601 = vrot.lane.b32.xlu0 %v600_v15, %s1565_s15  ;;  %s747_s21 = smov 3  ;;  %v716_v30 = vsel %vm149_vm0, %v714_v25, %v711_v24  ;;  %v719_v31 = vld [vmem:[#allocation0 + $0x5d] ss:$-1 sm:%s718_s18]   ;;  %s723_s22 = smov 192  ;;  %v690_v37 = vld [vmem:[#allocation0 + $0x75] ss:$-1 sm:%s689_s17]  }
  0x4f   :  { %s750_s23 = smov 12  ;;  %s1566_s24 = smov 68   ;;  %v748_v34 = vld [vmem:[#allocation0 + $0x19] ss:$-1 sm:%s747_s21]   ;;  %v674_v38 = vld [vmem:[#allocation0 + $0xb1] ss:$-1 sm:%s673_s20]   ;;  %v721_v39 = vsel %vm154_vm1, %v719_v31, %v716_v30  ;;  %v692_v44 = vsel %vm154_vm1, %v690_v37, %v687_v36 }
  0x50   :  { %1296 = vrot.lane.b32.xlu1 %v1295_v18, %s1564_s11  ;;  %v751_v35 = vld [vmem:[#allocation0 + $0x43] ss:$-1 sm:%s750_s23]   ;;  %s755_s25 = smov 48  ;;  %122 = vst.msk [vmem:[%s2493_s1] ss:$152 sm:$0x3] %vm121_vm3, %v120_v32  }
  0x51   :  { %s694_s28 = smov 192  ;;  %v724_v40 = vld [vmem:[#allocation0 + $0x87] ss:$-1 sm:%s723_s22]   ;;  %v753_v42 = vsel %vm149_vm0, %v751_v35, %v748_v34  ;;  %s760_s29 = smov 192  ;;  %v777_v48 = vld [vmem:[#allocation0 + $0x26] sm:$0xc]  }
  0x52   :  { %638 = vrot.lane.b32.xlu0 %v637_v22, %s1566_s24  ;;  %v756_v43 = vld [vmem:[#allocation0 + $0x6d] ss:$-1 sm:%s755_s25]   ;;  %v695_v45 = vld [vmem:[#allocation0 + $0x9f] ss:$-1 sm:%s694_s28]   ;;  %s1567_s30 = smov 64   ;;  %v726_v46 = vsel %vm159_vm2, %v724_v40, %v721_v39  ;;  %s807_s2 = smov 3 }
  0x53   :  { %v775_v47 = vld [vmem:[#allocation0] sm:$0x3]   ;;  %v758_v49 = vsel %vm154_vm1, %v756_v43, %v753_v42  ;;  %v761_v50 = vld [vmem:[#allocation0 + $0x97] ss:$-1 sm:%s760_s29]   ;;  %v697_v51 = vsel %vm159_vm2, %v695_v45, %v692_v44  ;;  %s810_s3 = smov 12  ;;  %s739_s4 = smov 3 }
  0x54   :  { %625 = vrot.lane.b32.xlu1 %v624_v29, %s1566_s24  ;;  %s1568_s5 = smov 56   ;;  %v779_v52 = vsel %vm149_vm0, %v777_v48, %v775_v47  ;;  %v781_v53 = vld [vmem:[#allocation0 + $0x4c] sm:$0x30]   ;;  %v763_v54 = vsel %vm159_vm2, %v761_v50, %v758_v49  ;;  %s873_s6 = smov 3  ;;  %v811_v56 = vld [vmem:[#allocation0 + $0x3b] ss:$-1 sm:%s810_s3]  }
  0x55   :  { %s876_s7 = smov 12  ;;  %s1569_s8 = smov 60   ;;  %v808_v55 = vld [vmem:[#allocation0 + $0x11] ss:$-1 sm:%s807_s2]   ;;  %v740_v57 = vld [vmem:[#allocation0 + $0xa9] ss:$-1 sm:%s739_s4]   ;;  %v783_v59 = vsel %vm154_vm1, %v781_v53, %v779_v52 }
  0x56   :  { %675 = vrot.lane.b32.xlu0 %v674_v38, %s1567_s30  ;;  %s815_s9 = smov 48  ;;  %v785_v58 = vld [vmem:[#allocation0 + $0x72] sm:$0xc0]   ;;  %s844_s10 = smov 3  ;;  %v874_v60 = vld [vmem:[#allocation0 + $0x9] ss:$-1 sm:%s873_s6]   ;;  %v813_v62 = vsel %vm149_vm0, %v811_v56, %v808_v55 }
  0x57   :  { %s847_s11 = smov 12  ;;  %s1570_s12 = smov 52   ;;  %v877_v61 = vld [vmem:[#allocation0 + $0x33] ss:$-1 sm:%s876_s7]   ;;  %v816_v63 = vld [vmem:[#allocation0 + $0x65] ss:$-1 sm:%s815_s9]   ;;  %v787_v3 = vsel %vm159_vm2, %v785_v58, %v783_v59 }
  0x58   :  { %661 = vrot.lane.b32.xlu1 %v660_v41, %s1567_s30  ;;  %s820_s13 = smov 192  ;;  %s881_s14 = smov 48  ;;  %v800_v0 = vld [vmem:[#allocation0 + $0xa0] sm:$0x3]   ;;  %v848_v2 = vld [vmem:[#allocation0 + $0x4b] ss:$-1 sm:%s847_s11]   ;;  %v879_v5 = vsel %vm149_vm0, %v877_v61, %v874_v60  ;;  %v818_v7 = vsel %vm154_vm1, %v816_v63, %v813_v62 }
  0x59   :  { %s910_s0 = smov 3  ;;  %s913_s15 = smov 12  ;;  %v845_v1 = vld [vmem:[#allocation0 + $0x21] ss:$-1 sm:%s844_s10]   ;;  %v821_v4 = vld [vmem:[#allocation0 + $0x8f] ss:$-1 sm:%s820_s13]  }
  0x5a   :  { %727 = vrot.lane.b32.xlu0 %v726_v46, %s1568_s5  ;;  %s852_s16 = smov 48  ;;  %s836_s19 = smov 3  ;;  %v882_v6 = vld [vmem:[#allocation0 + $0x5d] ss:$-1 sm:%s881_s14]   ;;  %v850_v10 = vsel %vm149_vm0, %v848_v2, %v845_v1  ;;  %v823_v15 = vsel %vm159_vm2, %v821_v4, %v818_v7  ;;  %v938_v21 = vld [vmem:[#allocation0] sm:$0x3]  }
  0x5b   :  { %s886_s17 = smov 192  ;;  %s1571_s18 = smov 48   ;;  %v911_v8 = vld [vmem:[#allocation0 + $0x19] ss:$-1 sm:%s910_s0]   ;;  %v914_v9 = vld [vmem:[#allocation0 + $0x43] ss:$-1 sm:%s913_s15]   ;;  %v884_v13 = vsel %vm154_vm1, %v882_v6, %v879_v5 }
  0x5c   :  { %698 = vrot.lane.b32.xlu1 %v697_v51, %s1569_s8  ;;  %s918_s20 = smov 48  ;;  %v853_v11 = vld [vmem:[#allocation0 + $0x75] ss:$-1 sm:%s852_s16]   ;;  %s857_s21 = smov 192  ;;  %v887_v14 = vld [vmem:[#allocation0 + $0x87] ss:$-1 sm:%s886_s17]   ;;  %v916_v16 = vsel %vm149_vm0, %v914_v9, %v911_v8 }
  0x5d   :  { %v837_v12 = vld [vmem:[#allocation0 + $0xb1] ss:$-1 sm:%s836_s19]   ;;  %s923_s22 = smov 192  ;;  %v855_v18 = vsel %vm154_vm1, %v853_v11, %v850_v10  ;;  %v858_v19 = vld [vmem:[#allocation0 + $0x9f] ss:$-1 sm:%s857_s21]   ;;  %s1572_s23 = smov 44   ;;  %v889_v20 = vsel %vm159_vm2, %v887_v14, %v884_v13 }
  0x5e   :  { %764 = vrot.lane.b32.xlu0 %v763_v54, %s1570_s12  ;;  %v919_v17 = vld [vmem:[#allocation0 + $0x6d] ss:$-1 sm:%s918_s20]   ;;  %v924_v24 = vld [vmem:[#allocation0 + $0x97] ss:$-1 sm:%s923_s22]   ;;  %v860_v25 = vsel %vm159_vm2, %v858_v19, %v855_v18  ;;  %s970_s24 = smov 3  ;;  %s973_s25 = smov 12 }
  0x5f   :  { %v940_v22 = vld [vmem:[#allocation0 + $0x26] sm:$0xc]   ;;  %v921_v23 = vsel %vm154_vm1, %v919_v17, %v916_v16  ;;  %s902_s26 = smov 3  ;;  %s1573_s27 = smov 36   ;;  %v944_v27 = vld [vmem:[#allocation0 + $0x4c] sm:$0x30]  }
  0x60   :  { %741 = vrot.lane.b32.xlu1 %v740_v57, %s1568_s5  ;;  %v942_v26 = vsel %vm149_vm0, %v940_v22, %v938_v21  ;;  %v926_v28 = vsel %vm159_vm2, %v924_v24, %v921_v23  ;;  %s1574_s28 = smov 40   ;;  %v971_v29 = vld [vmem:[#allocation0 + $0x11] ss:$-1 sm:%s970_s24]   ;;  %v974_v30 = vld [vmem:[#allocation0 + $0x3b] ss:$-1 sm:%s973_s25]   ;;  %s978_s29 = smov 48 }
  0x61   :  { %v903_v31 = vld [vmem:[#allocation0 + $0xa9] ss:$-1 sm:%s902_s26]   ;;  %s1007_s30 = smov 3  ;;  %s1010_s2 = smov 12  ;;  %v946_v32 = vsel %vm154_vm1, %v944_v27, %v942_v26  ;;  %v948_v33 = vld [vmem:[#allocation0 + $0x72] sm:$0xc0]   ;;  %v976_v34 = vsel %vm149_vm0, %v974_v30, %v971_v29 }
  0x62   :  { %801 = vrot.lane.b32.xlu0 %v800_v0, %s1571_s18  ;;  %s1575_s3 = smov 32   ;;  %v979_v35 = vld [vmem:[#allocation0 + $0x65] ss:$-1 sm:%s978_s29]   ;;  %s983_s4 = smov 192  ;;  %v950_v39 = vsel %vm159_vm2, %v948_v33, %v946_v32  ;;  %vm1075_vm8 = vcmask 130048   ;;  %vm1084_vm9 = vcmask 162944  }
  0x63   :  { %v963_v36 = vld [vmem:[#allocation0 + $0xa0] sm:$0x3]   ;;  %v1011_v38 = vld [vmem:[#allocation0 + $0x4b] ss:$-1 sm:%s1010_s2]   ;;  %s1015_s5 = smov 48  ;;  %s999_s6 = smov 3  ;;  %v981_v40 = vsel %vm154_vm1, %v979_v35, %v976_v34 }
  0x64   :  { %788 = vrot.lane.b32.xlu1 %v787_v3, %s1571_s18  ;;  %v1008_v37 = vld [vmem:[#allocation0 + $0x21] ss:$-1 sm:%s1007_s30]   ;;  %v984_v41 = vld [vmem:[#allocation0 + $0x8f] ss:$-1 sm:%s983_s4]   ;;  %s1576_s7 = smov 28   ;;  %s1020_s8 = smov 192 }
  0x65   :  { %v1013_v42 = vsel %vm149_vm0, %v1011_v38, %v1008_v37  ;;  %v1016_v43 = vld [vmem:[#allocation0 + $0x75] ss:$-1 sm:%s1015_s5]   ;;  %v986_v45 = vsel %vm159_vm2, %v984_v41, %v981_v40  ;;  %v1021_v47 = vld [vmem:[#allocation0 + $0x9f] ss:$-1 sm:%s1020_s8]   ;;  %s1577_s9 = smov 24   ;;  %s1578_s10 = smov 20  }
  0x66   :  { %838 = vrot.lane.b32.xlu0 %v837_v12, %s1572_s23  ;;  %v1000_v44 = vld [vmem:[#allocation0 + $0xb1] ss:$-1 sm:%s999_s6]   ;;  %v1018_v46 = vsel %vm154_vm1, %v1016_v43, %v1013_v42  ;;  %vm1198_vm10 = vcmask 64512   ;;  %vm1207_vm11 = vcmask 162880   ;;  %vm1149_vm12 = vcmask 97280  }
  0x67   :  { %v1023_v48 = vsel %vm159_vm2, %v1021_v47, %v1018_v46  ;;  %vm1158_vm13 = vcmask 162912   ;;  %vm1270_vm14 = vcmask 31744   ;;  %vm1279_vm15 = vcmask 162848  }
  0x68   :  { %824 = vrot.lane.b32.xlu1 %v823_v15, %s1572_s23 }
  0x6a   :  { %890 = vrot.lane.b32.xlu0 %v889_v20, %s1573_s27 }
  0x6c   :  { %861 = vrot.lane.b32.xlu1 %v860_v25, %s1574_s28 }
  0x6e   :  { %927 = vrot.lane.b32.xlu0 %v926_v28, %s1575_s3 }
  0x70   :  { %904 = vrot.lane.b32.xlu1 %v903_v31, %s1573_s27 }
  0x72   :  { %964 = vrot.lane.b32.xlu0 %v963_v36, %s1576_s7 }
  0x74   :  { %951 = vrot.lane.b32.xlu1 %v950_v39, %s1576_s7 }
  0x76   :  { %1001 = vrot.lane.b32.xlu0 %v1000_v44, %s1577_s9 }
  0x78   :  { %987 = vrot.lane.b32.xlu1 %v986_v45, %s1577_s9 }
  0x7c   :  { %1024 = vrot.lane.b32.xlu1 %v1023_v48, %s1578_s10 }
  0x80   :  { %v176_v49 = vpop.permute.xlu0 %175  }
  0x81   :  { %1357 = vst.msk [vmem:[%s2493_s1 + $0x125] ss:$-152 sm:$0x3] %vm121_vm3, %v176_v49  }
  0x85   :  { %v199_v50 = vpop.permute.xlu1 %198  }
  0x86   :  { %v237_v51 = vpop.permute.xlu0 %236   ;;  %1358 = vst.msk [vmem:[%s2493_s1 + $0xb2] ss:$-152 sm:$0x3] %vm121_vm3, %v199_v50   ;;  %1359 = vst.msk [vmem:[%s2493_s1 + $0x202] ss:$-152 sm:$0xc] %vm121_vm3, %v199_v50  }
  0x87   :  { %1360 = vst.msk [vmem:[%s2493_s1 + $0x352] ss:$-152 sm:$0x30] %vm121_vm3, %v199_v50   ;;  %1361 = vst.msk [vmem:[%s2493_s1 + $0x4a2] ss:$-152 sm:$0xc0] %vm121_vm3, %v199_v50  }
  0x88   :  { %1366 = vst.msk [vmem:[%s2493_s1 + $0x87] ss:$152 sm:$0x3] %vm121_vm3, %v237_v51  }
  0x89   :  { %v224_v52 = vpop.permute.xlu1 %223  }
  0x8a   :  { %v274_v53 = vpop.permute.xlu0 %273   ;;  %1362 = vst.msk [vmem:[%s2493_s1 + $0x7] ss:$152 sm:$0x3] %vm121_vm3, %v224_v52   ;;  %1363 = vst.msk [vmem:[%s2493_s1 - $0x109] ss:$152 sm:$0xc] %vm121_vm3, %v224_v52  }
  0x8b   :  { %1364 = vst.msk [vmem:[%s2493_s1 - $0x219] ss:$152 sm:$0x30] %vm121_vm3, %v224_v52   ;;  %1365 = vst.msk [vmem:[%s2493_s1 - $0x329] ss:$152 sm:$0xc0] %vm121_vm3, %v224_v52  }
  0x8c   :  { %1371 = vst.msk [vmem:[%s2493_s1 + $0x12c] ss:$-152 sm:$0x3] %vm121_vm3, %v274_v53  }
  0x8d   :  { %v260_v54 = vpop.permute.xlu1 %259  }
  0x8e   :  { %1367 = vst.msk [vmem:[%s2493_s1 + $0xac] ss:$-152 sm:$0x3] %vm121_vm3, %v260_v54   ;;  %1368 = vst.msk [vmem:[%s2493_s1 + $0x1fc] ss:$-152 sm:$0xc] %vm121_vm3, %v260_v54  }
  0x8f   :  { %1369 = vst.msk [vmem:[%s2493_s1 + $0x34c] ss:$-152 sm:$0x30] %vm121_vm3, %v260_v54   ;;  %1370 = vst.msk [vmem:[%s2493_s1 + $0x49c] ss:$-152 sm:$0xc0] %vm121_vm3, %v260_v54   ;;  %v162_v55 = vpop.permute.xlu0 %161  }
  0x90   :  { %1353 = vst.msk [vmem:[%s2493_s1 + $0xa5] ss:$-152 sm:$0x3] %vm121_vm3, %v162_v55   ;;  %1354 = vst.msk [vmem:[%s2493_s1 + $0x1f5] ss:$-152 sm:$0xc] %vm121_vm3, %v162_v55  }
  0x91   :  { %1355 = vst.msk [vmem:[%s2493_s1 + $0x345] ss:$-152 sm:$0x30] %vm121_vm3, %v162_v55   ;;  %1356 = vst.msk [vmem:[%s2493_s1 + $0x495] ss:$-152 sm:$0xc0] %vm121_vm3, %v162_v55  }
  0x94   :  { %v305_v56 = vpop.permute.xlu0 %304  }
  0x95   :  { %1376 = vst.msk [vmem:[%s2493_s1 + $0x81] ss:$152 sm:$0x3] %vm121_vm3, %v305_v56   ;;  %v292_v57 = vpop.permute.xlu1 %291  }
  0x96   :  { %1372 = vst.msk [vmem:[%s2493_s1 + $0x1] ss:$152 sm:$0x3] %vm121_vm3, %v292_v57   ;;  %1373 = vst.msk [vmem:[%s2493_s1 - $0x10f] ss:$152 sm:$0xc] %vm121_vm3, %v292_v57  }
  0x97   :  { %1374 = vst.msk [vmem:[%s2493_s1 - $0x21f] ss:$152 sm:$0x30] %vm121_vm3, %v292_v57   ;;  %1375 = vst.msk [vmem:[%s2493_s1 - $0x32f] ss:$152 sm:$0xc0] %vm121_vm3, %v292_v57  }
  0x98   :  { %v342_v58 = vpop.permute.xlu0 %341  }
  0x99   :  { %1381 = vst.msk [vmem:[%s2493_s1 + $0x126] ss:$-152 sm:$0x3] %vm121_vm3, %v342_v58   ;;  %v328_v59 = vpop.permute.xlu1 %327  }
  0x9a   :  { %1377 = vst.msk [vmem:[%s2493_s1 + $0xa6] ss:$-152 sm:$0x3] %vm121_vm3, %v328_v59   ;;  %1378 = vst.msk [vmem:[%s2493_s1 + $0x1f6] ss:$-152 sm:$0xc] %vm121_vm3, %v328_v59  }
  0x9b   :  { %1379 = vst.msk [vmem:[%s2493_s1 + $0x346] ss:$-152 sm:$0x30] %vm121_vm3, %v328_v59   ;;  %1380 = vst.msk [vmem:[%s2493_s1 + $0x496] ss:$-152 sm:$0xc0] %vm121_vm3, %v328_v59  }
  0x9c   :  { %v394_v60 = vpop.permute.xlu0 %393  }
  0x9d   :  { %1386 = vst.msk [vmem:[%s2493_s1 + $0xa0] ss:$-152 sm:$0x3] %vm121_vm3, %v394_v60   ;;  %1387 = vst.msk [vmem:[%s2493_s1 + $0x1f0] ss:$-152 sm:$0xc] %vm121_vm3, %v394_v60   ;;  %v365_v61 = vpop.permute.xlu1 %364  }
  0x9e   :  { %1388 = vst.msk [vmem:[%s2493_s1 + $0x340] ss:$-152 sm:$0x30] %vm121_vm3, %v394_v60   ;;  %1389 = vst.msk [vmem:[%s2493_s1 + $0x490] ss:$-152 sm:$0xc0] %vm121_vm3, %v394_v60  }
  0x9f   :  { %1382 = vst.msk [vmem:[%s2493_s1 + $0xb3] ss:$-152 sm:$0x3] %vm121_vm3, %v365_v61   ;;  %1383 = vst.msk [vmem:[%s2493_s1 + $0x203] ss:$-152 sm:$0xc] %vm121_vm3, %v365_v61  }
  0xa0   :  { %1384 = vst.msk [vmem:[%s2493_s1 + $0x353] ss:$-152 sm:$0x30] %vm121_vm3, %v365_v61   ;;  %1385 = vst.msk [vmem:[%s2493_s1 + $0x4a3] ss:$-152 sm:$0xc0] %vm121_vm3, %v365_v61   ;;  %v431_v62 = vpop.permute.xlu0 %430  }
  0xa1   :  { %1391 = vst.msk [vmem:[%s2493_s1 + $0xad] ss:$-152 sm:$0x3] %vm121_vm3, %v431_v62   ;;  %1392 = vst.msk [vmem:[%s2493_s1 + $0x1fd] ss:$-152 sm:$0xc] %vm121_vm3, %v431_v62   ;;  %v408_v63 = vpop.permute.xlu1 %407  }
  0xa2   :  { %1393 = vst.msk [vmem:[%s2493_s1 + $0x34d] ss:$-152 sm:$0x30] %vm121_vm3, %v431_v62   ;;  %1394 = vst.msk [vmem:[%s2493_s1 + $0x49d] ss:$-152 sm:$0xc0] %vm121_vm3, %v431_v62  }
  0xa3   :  { %1390 = vst.msk [vmem:[%s2493_s1 + $0x120] ss:$-152 sm:$0x3] %vm121_vm3, %v408_v63  }
  0xa4   :  { %v463_v0 = vpop.permute.xlu0 %462  }
  0xa5   :  { %1396 = vst.msk [vmem:[%s2493_s1 + $0x2] ss:$152 sm:$0x3] %vm121_vm3, %v463_v0   ;;  %1397 = vst.msk [vmem:[%s2493_s1 - $0x10e] ss:$152 sm:$0xc] %vm121_vm3, %v463_v0   ;;  %v445_v1 = vpop.permute.xlu1 %444  }
  0xa6   :  { %1398 = vst.msk [vmem:[%s2493_s1 - $0x21e] ss:$152 sm:$0x30] %vm121_vm3, %v463_v0   ;;  %1399 = vst.msk [vmem:[%s2493_s1 - $0x32e] ss:$152 sm:$0xc0] %vm121_vm3, %v463_v0  }
  0xa7   :  { %1395 = vst.msk [vmem:[%s2493_s1 + $0x12d] ss:$-152 sm:$0x3] %vm121_vm3, %v445_v1  }
  0xa8   :  { %v499_v2 = vpop.permute.xlu0 %498  }
  0xa9   :  { %1401 = vst.msk [vmem:[%s2493_s1 + $0xa7] ss:$-152 sm:$0x3] %vm121_vm3, %v499_v2   ;;  %1402 = vst.msk [vmem:[%s2493_s1 + $0x1f7] ss:$-152 sm:$0xc] %vm121_vm3, %v499_v2   ;;  %v476_v3 = vpop.permute.xlu1 %475  }
  0xaa   :  { %1403 = vst.msk [vmem:[%s2493_s1 + $0x347] ss:$-152 sm:$0x30] %vm121_vm3, %v499_v2   ;;  %1404 = vst.msk [vmem:[%s2493_s1 + $0x497] ss:$-152 sm:$0xc0] %vm121_vm3, %v499_v2  }
  0xab   :  { %1400 = vst.msk [vmem:[%s2493_s1 + $0x82] ss:$152 sm:$0x3] %vm121_vm3, %v476_v3  }
  0xac   :  { %v536_v4 = vpop.permute.xlu0 %535  }
  0xad   :  { %1406 = vst.msk [vmem:[%s2493_s1 + $0xb4] ss:$-152 sm:$0x3] %vm121_vm3, %v536_v4   ;;  %1407 = vst.msk [vmem:[%s2493_s1 + $0x204] ss:$-152 sm:$0xc] %vm121_vm3, %v536_v4   ;;  %v513_v5 = vpop.permute.xlu1 %512  }
  0xae   :  { %1408 = vst.msk [vmem:[%s2493_s1 + $0x354] ss:$-152 sm:$0x30] %vm121_vm3, %v536_v4   ;;  %1409 = vst.msk [vmem:[%s2493_s1 + $0x4a4] ss:$-152 sm:$0xc0] %vm121_vm3, %v536_v4  }
  0xaf   :  { %1405 = vst.msk [vmem:[%s2493_s1 + $0x127] ss:$-152 sm:$0x3] %vm121_vm3, %v513_v5  }
  0xb0   :  { %v579_v6 = vpop.permute.xlu0 %578  }
  0xb1   :  { %1414 = vst.msk [vmem:[%s2493_s1 + $0x121] ss:$-152 sm:$0x3] %vm121_vm3, %v579_v6   ;;  %v565_v7 = vpop.permute.xlu1 %564  }
  0xb2   :  { %1410 = vst.msk [vmem:[%s2493_s1 + $0xa1] ss:$-152 sm:$0x3] %vm121_vm3, %v565_v7   ;;  %1411 = vst.msk [vmem:[%s2493_s1 + $0x1f1] ss:$-152 sm:$0xc] %vm121_vm3, %v565_v7  }
  0xb3   :  { %1412 = vst.msk [vmem:[%s2493_s1 + $0x341] ss:$-152 sm:$0x30] %vm121_vm3, %v565_v7   ;;  %1413 = vst.msk [vmem:[%s2493_s1 + $0x491] ss:$-152 sm:$0xc0] %vm121_vm3, %v565_v7  }
  0xb4   :  { %v1102_v8 = vpop.permute.xlu0 %1101  }
  0xb5   :  { %1487 = vst.msk [vmem:[%s2493_s1 + $0x124] ss:$-152 sm:$0x3] %vm1075_vm8, %v1102_v8   ;;  %v1074_v9 = vpop.permute.xlu1 %1073  }
  0xb6   :  { %1488 = vst.msk [vmem:[%s2493_s1 + $0x124] ss:$-152 sm:$0x3] %vm1084_vm9, %v1102_v8  }
  0xb7   :  { %1479 = vst.msk [vmem:[%s2493_s1 + $0xa4] ss:$-152 sm:$0x3] %vm1075_vm8, %v1074_v9   ;;  %1480 = vst.msk [vmem:[%s2493_s1 + $0x1f4] ss:$-152 sm:$0xc] %vm1075_vm8, %v1074_v9  }
  0xb8   :  { %1481 = vst.msk [vmem:[%s2493_s1 + $0x344] ss:$-152 sm:$0x30] %vm1075_vm8, %v1074_v9   ;;  %1482 = vst.msk [vmem:[%s2493_s1 + $0x494] ss:$-152 sm:$0xc0] %vm1075_vm8, %v1074_v9   ;;  %v1197_v10 = vpop.permute.xlu0 %1196  }
  0xb9   :  { %1483 = vst.msk [vmem:[%s2493_s1 + $0xa4] ss:$-152 sm:$0x3] %vm1084_vm9, %v1074_v9   ;;  %1484 = vst.msk [vmem:[%s2493_s1 + $0x1f4] ss:$-152 sm:$0xc] %vm1084_vm9, %v1074_v9  }
  0xba   :  { %1485 = vst.msk [vmem:[%s2493_s1 + $0x344] ss:$-152 sm:$0x30] %vm1084_vm9, %v1074_v9   ;;  %1486 = vst.msk [vmem:[%s2493_s1 + $0x494] ss:$-152 sm:$0xc0] %vm1084_vm9, %v1074_v9   ;;  %v1148_v11 = vpop.permute.xlu1 %1147  }
  0xbb   :  { %1497 = vst.msk [vmem:[%s2493_s1 + $0x6] ss:$152 sm:$0x3] %vm1198_vm10, %v1197_v10   ;;  %1498 = vst.msk [vmem:[%s2493_s1 - $0x10a] ss:$152 sm:$0xc] %vm1198_vm10, %v1197_v10  }
  0xbc   :  { %1499 = vst.msk [vmem:[%s2493_s1 - $0x21a] ss:$152 sm:$0x30] %vm1198_vm10, %v1197_v10   ;;  %1500 = vst.msk [vmem:[%s2493_s1 - $0x32a] ss:$152 sm:$0xc0] %vm1198_vm10, %v1197_v10   ;;  %v1269_v12 = vpop.permute.xlu0 %1268  }
  0xbd   :  { %1501 = vst.msk [vmem:[%s2493_s1 + $0x6] ss:$152 sm:$0x3] %vm1207_vm11, %v1197_v10   ;;  %1502 = vst.msk [vmem:[%s2493_s1 - $0x10a] ss:$152 sm:$0xc] %vm1207_vm11, %v1197_v10  }
  0xbe   :  { %1503 = vst.msk [vmem:[%s2493_s1 - $0x21a] ss:$152 sm:$0x30] %vm1207_vm11, %v1197_v10   ;;  %1504 = vst.msk [vmem:[%s2493_s1 - $0x32a] ss:$152 sm:$0xc0] %vm1207_vm11, %v1197_v10   ;;  %v1223_v13 = vpop.permute.xlu1 %1222  }
  0xbf   :  { %1489 = vst.msk [vmem:[%s2493_s1 + $0xb1] ss:$-152 sm:$0x3] %vm1149_vm12, %v1148_v11   ;;  %1490 = vst.msk [vmem:[%s2493_s1 + $0x201] ss:$-152 sm:$0xc] %vm1149_vm12, %v1148_v11  }
  0xc0   :  { %1491 = vst.msk [vmem:[%s2493_s1 + $0x351] ss:$-152 sm:$0x30] %vm1149_vm12, %v1148_v11   ;;  %1492 = vst.msk [vmem:[%s2493_s1 + $0x4a1] ss:$-152 sm:$0xc0] %vm1149_vm12, %v1148_v11   ;;  %v602_v14 = vpop.permute.xlu0 %601  }
  0xc1   :  { %1493 = vst.msk [vmem:[%s2493_s1 + $0xb1] ss:$-152 sm:$0x3] %vm1158_vm13, %v1148_v11   ;;  %1494 = vst.msk [vmem:[%s2493_s1 + $0x201] ss:$-152 sm:$0xc] %vm1158_vm13, %v1148_v11  }
  0xc2   :  { %1495 = vst.msk [vmem:[%s2493_s1 + $0x351] ss:$-152 sm:$0x30] %vm1158_vm13, %v1148_v11   ;;  %1496 = vst.msk [vmem:[%s2493_s1 + $0x4a1] ss:$-152 sm:$0xc0] %vm1158_vm13, %v1148_v11   ;;  %v1297_v15 = vpop.permute.xlu1 %1296  }
  0xc3   :  { %1507 = vst.msk [vmem:[%s2493_s1 + $0xab] ss:$-152 sm:$0x3] %vm1270_vm14, %v1269_v12   ;;  %1508 = vst.msk [vmem:[%s2493_s1 + $0x1fb] ss:$-152 sm:$0xc] %vm1270_vm14, %v1269_v12  }
  0xc4   :  { %1509 = vst.msk [vmem:[%s2493_s1 + $0x34b] ss:$-152 sm:$0x30] %vm1270_vm14, %v1269_v12   ;;  %1510 = vst.msk [vmem:[%s2493_s1 + $0x49b] ss:$-152 sm:$0xc0] %vm1270_vm14, %v1269_v12   ;;  %v639_v16 = vpop.permute.xlu0 %638  }
  0xc5   :  { %1511 = vst.msk [vmem:[%s2493_s1 + $0xab] ss:$-152 sm:$0x3] %vm1279_vm15, %v1269_v12   ;;  %1512 = vst.msk [vmem:[%s2493_s1 + $0x1fb] ss:$-152 sm:$0xc] %vm1279_vm15, %v1269_v12  }
  0xc6   :  { %1513 = vst.msk [vmem:[%s2493_s1 + $0x34b] ss:$-152 sm:$0x30] %vm1279_vm15, %v1269_v12   ;;  %1514 = vst.msk [vmem:[%s2493_s1 + $0x49b] ss:$-152 sm:$0xc0] %vm1279_vm15, %v1269_v12   ;;  %v626_v17 = vpop.permute.xlu1 %625  }
  0xc7   :  { %1505 = vst.msk [vmem:[%s2493_s1 + $0x86] ss:$152 sm:$0x3] %vm1198_vm10, %v1223_v13  }
  0xc8   :  { %1506 = vst.msk [vmem:[%s2493_s1 + $0x86] ss:$152 sm:$0x3] %vm1207_vm11, %v1223_v13   ;;  %v676_v18 = vpop.permute.xlu0 %675  }
  0xc9   :  { %1415 = vst.msk [vmem:[%s2493_s1 + $0xae] ss:$-152 sm:$0x3] %vm121_vm3, %v602_v14   ;;  %1416 = vst.msk [vmem:[%s2493_s1 + $0x1fe] ss:$-152 sm:$0xc] %vm121_vm3, %v602_v14  }
  0xca   :  { %1417 = vst.msk [vmem:[%s2493_s1 + $0x34e] ss:$-152 sm:$0x30] %vm121_vm3, %v602_v14   ;;  %1418 = vst.msk [vmem:[%s2493_s1 + $0x49e] ss:$-152 sm:$0xc0] %vm121_vm3, %v602_v14   ;;  %v662_v19 = vpop.permute.xlu1 %661  }
  0xcb   :  { %1515 = vst.msk [vmem:[%s2493_s1 + $0x12b] ss:$-152 sm:$0x3] %vm1270_vm14, %v1297_v15  }
  0xcc   :  { %1516 = vst.msk [vmem:[%s2493_s1 + $0x12b] ss:$-152 sm:$0x3] %vm1279_vm15, %v1297_v15   ;;  %v728_v20 = vpop.permute.xlu0 %727  }
  0xcd   :  { %1423 = vst.msk [vmem:[%s2493_s1 + $0x83] ss:$152 sm:$0x3] %vm121_vm3, %v639_v16   ;;  %1419 = vst.msk [vmem:[%s2493_s1 + $0x3] ss:$152 sm:$0x3] %vm121_vm3, %v626_v17  }
  0xce   :  { %1420 = vst.msk [vmem:[%s2493_s1 - $0x10d] ss:$152 sm:$0xc] %vm121_vm3, %v626_v17   ;;  %1421 = vst.msk [vmem:[%s2493_s1 - $0x21d] ss:$152 sm:$0x30] %vm121_vm3, %v626_v17   ;;  %v699_v21 = vpop.permute.xlu1 %698  }
  0xcf   :  { %1422 = vst.msk [vmem:[%s2493_s1 - $0x32d] ss:$152 sm:$0xc0] %vm121_vm3, %v626_v17   ;;  %1428 = vst.msk [vmem:[%s2493_s1 + $0x128] ss:$-152 sm:$0x3] %vm121_vm3, %v676_v18  }
  0xd0   :  { %1424 = vst.msk [vmem:[%s2493_s1 + $0xa8] ss:$-152 sm:$0x3] %vm121_vm3, %v662_v19   ;;  %1425 = vst.msk [vmem:[%s2493_s1 + $0x1f8] ss:$-152 sm:$0xc] %vm121_vm3, %v662_v19   ;;  %v765_v22 = vpop.permute.xlu0 %764  }
  0xd1   :  { %1426 = vst.msk [vmem:[%s2493_s1 + $0x348] ss:$-152 sm:$0x30] %vm121_vm3, %v662_v19   ;;  %1427 = vst.msk [vmem:[%s2493_s1 + $0x498] ss:$-152 sm:$0xc0] %vm121_vm3, %v662_v19  }
  0xd2   :  { %1433 = vst.msk [vmem:[%s2493_s1 + $0xa2] ss:$-152 sm:$0x3] %vm121_vm3, %v728_v20   ;;  %1434 = vst.msk [vmem:[%s2493_s1 + $0x1f2] ss:$-152 sm:$0xc] %vm121_vm3, %v728_v20   ;;  %v742_v23 = vpop.permute.xlu1 %741  }
  0xd3   :  { %1435 = vst.msk [vmem:[%s2493_s1 + $0x342] ss:$-152 sm:$0x30] %vm121_vm3, %v728_v20   ;;  %1436 = vst.msk [vmem:[%s2493_s1 + $0x492] ss:$-152 sm:$0xc0] %vm121_vm3, %v728_v20  }
  0xd4   :  { %1429 = vst.msk [vmem:[%s2493_s1 + $0xb5] ss:$-152 sm:$0x3] %vm121_vm3, %v699_v21   ;;  %1430 = vst.msk [vmem:[%s2493_s1 + $0x205] ss:$-152 sm:$0xc] %vm121_vm3, %v699_v21   ;;  %v802_v24 = vpop.permute.xlu0 %801  }
  0xd5   :  { %1431 = vst.msk [vmem:[%s2493_s1 + $0x355] ss:$-152 sm:$0x30] %vm121_vm3, %v699_v21   ;;  %1432 = vst.msk [vmem:[%s2493_s1 + $0x4a5] ss:$-152 sm:$0xc0] %vm121_vm3, %v699_v21  }
  0xd6   :  { %1438 = vst.msk [vmem:[%s2493_s1 + $0xaf] ss:$-152 sm:$0x3] %vm121_vm3, %v765_v22   ;;  %1439 = vst.msk [vmem:[%s2493_s1 + $0x1ff] ss:$-152 sm:$0xc] %vm121_vm3, %v765_v22   ;;  %v789_v25 = vpop.permute.xlu1 %788  }
  0xd7   :  { %1440 = vst.msk [vmem:[%s2493_s1 + $0x34f] ss:$-152 sm:$0x30] %vm121_vm3, %v765_v22   ;;  %1441 = vst.msk [vmem:[%s2493_s1 + $0x49f] ss:$-152 sm:$0xc0] %vm121_vm3, %v765_v22  }
  0xd8   :  { %1437 = vst.msk [vmem:[%s2493_s1 + $0x122] ss:$-152 sm:$0x3] %vm121_vm3, %v742_v23   ;;  %1446 = vst.msk [vmem:[%s2493_s1 + $0x84] ss:$152 sm:$0x3] %vm121_vm3, %v802_v24   ;;  %v839_v26 = vpop.permute.xlu0 %838  }
  0xd9   :  { %1442 = vst.msk [vmem:[%s2493_s1 + $0x4] ss:$152 sm:$0x3] %vm121_vm3, %v789_v25   ;;  %1443 = vst.msk [vmem:[%s2493_s1 - $0x10c] ss:$152 sm:$0xc] %vm121_vm3, %v789_v25  }
  0xda   :  { %1444 = vst.msk [vmem:[%s2493_s1 - $0x21c] ss:$152 sm:$0x30] %vm121_vm3, %v789_v25   ;;  %1445 = vst.msk [vmem:[%s2493_s1 - $0x32c] ss:$152 sm:$0xc0] %vm121_vm3, %v789_v25   ;;  %v825_v27 = vpop.permute.xlu1 %824  }
  0xdb   :  { %1451 = vst.msk [vmem:[%s2493_s1 + $0x129] ss:$-152 sm:$0x3] %vm121_vm3, %v839_v26   ;;  %1447 = vst.msk [vmem:[%s2493_s1 + $0xa9] ss:$-152 sm:$0x3] %vm121_vm3, %v825_v27  }
  0xdc   :  { %1448 = vst.msk [vmem:[%s2493_s1 + $0x1f9] ss:$-152 sm:$0xc] %vm121_vm3, %v825_v27   ;;  %1449 = vst.msk [vmem:[%s2493_s1 + $0x349] ss:$-152 sm:$0x30] %vm121_vm3, %v825_v27   ;;  %v891_v28 = vpop.permute.xlu0 %890  }
  0xdd   :  { %1450 = vst.msk [vmem:[%s2493_s1 + $0x499] ss:$-152 sm:$0xc0] %vm121_vm3, %v825_v27   ;;  %1456 = vst.msk [vmem:[%s2493_s1 + $0xa3] ss:$-152 sm:$0x3] %vm121_vm3, %v891_v28  }
  0xde   :  { %1457 = vst.msk [vmem:[%s2493_s1 + $0x1f3] ss:$-152 sm:$0xc] %vm121_vm3, %v891_v28   ;;  %1458 = vst.msk [vmem:[%s2493_s1 + $0x343] ss:$-152 sm:$0x30] %vm121_vm3, %v891_v28   ;;  %v862_v29 = vpop.permute.xlu1 %861  }
  0xdf   :  { %1459 = vst.msk [vmem:[%s2493_s1 + $0x493] ss:$-152 sm:$0xc0] %vm121_vm3, %v891_v28   ;;  %1452 = vst.msk [vmem:[%s2493_s1 + $0xb6] ss:$-152 sm:$0x3] %vm121_vm3, %v862_v29  }
  0xe0   :  { %1453 = vst.msk [vmem:[%s2493_s1 + $0x206] ss:$-152 sm:$0xc] %vm121_vm3, %v862_v29   ;;  %1454 = vst.msk [vmem:[%s2493_s1 + $0x356] ss:$-152 sm:$0x30] %vm121_vm3, %v862_v29   ;;  %v928_v30 = vpop.permute.xlu0 %927  }
  0xe1   :  { %1455 = vst.msk [vmem:[%s2493_s1 + $0x4a6] ss:$-152 sm:$0xc0] %vm121_vm3, %v862_v29   ;;  %1461 = vst.msk [vmem:[%s2493_s1 + $0xb0] ss:$-152 sm:$0x3] %vm121_vm3, %v928_v30  }
  0xe2   :  { %1462 = vst.msk [vmem:[%s2493_s1 + $0x200] ss:$-152 sm:$0xc] %vm121_vm3, %v928_v30   ;;  %1463 = vst.msk [vmem:[%s2493_s1 + $0x350] ss:$-152 sm:$0x30] %vm121_vm3, %v928_v30   ;;  %v905_v31 = vpop.permute.xlu1 %904  }
  0xe3   :  { %1464 = vst.msk [vmem:[%s2493_s1 + $0x4a0] ss:$-152 sm:$0xc0] %vm121_vm3, %v928_v30   ;;  %1460 = vst.msk [vmem:[%s2493_s1 + $0x123] ss:$-152 sm:$0x3] %vm121_vm3, %v905_v31  }
  0xe4   :  { %v965_v32 = vpop.permute.xlu0 %964  }
  0xe5   :  { %1469 = vst.msk [vmem:[%s2493_s1 + $0x85] ss:$152 sm:$0x3] %vm121_vm3, %v965_v32  }
  0xe6   :  { %v952_v33 = vpop.permute.xlu1 %951  }
  0xe7   :  { %1465 = vst.msk [vmem:[%s2493_s1 + $0x5] ss:$152 sm:$0x3] %vm121_vm3, %v952_v33   ;;  %1466 = vst.msk [vmem:[%s2493_s1 - $0x10b] ss:$152 sm:$0xc] %vm121_vm3, %v952_v33  }
  0xe8   :  { %1467 = vst.msk [vmem:[%s2493_s1 - $0x21b] ss:$152 sm:$0x30] %vm121_vm3, %v952_v33   ;;  %1468 = vst.msk [vmem:[%s2493_s1 - $0x32b] ss:$152 sm:$0xc0] %vm121_vm3, %v952_v33   ;;  %v1002_v34 = vpop.permute.xlu0 %1001  }
  0xe9   :  { %1474 = vst.msk [vmem:[%s2493_s1 + $0x12a] ss:$-152 sm:$0x3] %vm121_vm3, %v1002_v34  }
  0xea   :  { %v988_v35 = vpop.permute.xlu1 %987  }
  0xeb   :  { %1470 = vst.msk [vmem:[%s2493_s1 + $0xaa] ss:$-152 sm:$0x3] %vm121_vm3, %v988_v35   ;;  %1471 = vst.msk [vmem:[%s2493_s1 + $0x1fa] ss:$-152 sm:$0xc] %vm121_vm3, %v988_v35  }
  0xec   :  { %1472 = vst.msk [vmem:[%s2493_s1 + $0x34a] ss:$-152 sm:$0x30] %vm121_vm3, %v988_v35   ;;  %1473 = vst.msk [vmem:[%s2493_s1 + $0x49a] ss:$-152 sm:$0xc0] %vm121_vm3, %v988_v35  }
  0xee   :  { %v1025_v36 = vpop.permute.xlu1 %1024  }
  0xef   :  { %1475 = vst.msk [vmem:[%s2493_s1 + $0xb7] ss:$-152 sm:$0x3] %vm121_vm3, %v1025_v36   ;;  %1476 = vst.msk [vmem:[%s2493_s1 + $0x207] ss:$-152 sm:$0xc] %vm121_vm3, %v1025_v36  }
  0xf0   :  { %1477 = vst.msk [vmem:[%s2493_s1 + $0x357] ss:$-152 sm:$0x30] %vm121_vm3, %v1025_v36   ;;  %1478 = vst.msk [vmem:[%s2493_s1 + $0x4a7] ss:$-152 sm:$0xc0] %vm121_vm3, %v1025_v36  }

// kernel: squeeze.10
= control target key start
LH: loop header
LB: loop body
LE: loop exit
PB: predicated region body
PF: predicated region fallthrough
CT: control target
= control target key end

     0   :  { %s1130_s11 = smov 126   ;;  %s1131_s12 = smov 122   ;;  %vm121_vm0 = vcmask 408576   ;;  %vm452_vm1 = vcmask 654336   ;;  %vm470_vm2 = vcmask 670720   ;;  %vm488_vm3 = vcmask 687104   ;;  %s1843_s0 = inlined_call_operand.vmem [shape: f32[2,3000], index: 0, kind: input, shape index: {}]   ;;  %s1844_s1 = inlined_call_operand.vmem [shape: f32[2,60,50], index: 1, kind: output, shape index: {}]  }
   0x1   :  { %v890_v0 = vld [vmem:[%s1843_s0 + $0x20] sm:$0x3]  ;;  %v883_v1 = vld [vmem:[%s1843_s0 + $0x2e] sm:$0x3]  ;;  %v892_v3 = vld [vmem:[%s1843_s0 + $0x1c] sm:$0x3] }
   0x2   :  { %43 = vst [vmem:[#allocation0 + $0x80] sm:$0x3] %v890_v0  ;;  %8 = vst [vmem:[#allocation0 + $0xb8] sm:$0x3] %v883_v1  ;;  %v899_v2 = vld [vmem:[%s1843_s0 + $0xe] sm:$0x3] }
   0x3   :  { %88 = vst [vmem:[#allocation0 + $0x38] sm:$0x3] %v899_v2  ;;  %53 = vst [vmem:[#allocation0 + $0x70] sm:$0x3] %v892_v3  ;;  %v901_v4 = vld [vmem:[%s1843_s0 + $0xa] sm:$0x3] }
   0x4   :  { %v885_v5 = vld [vmem:[%s1843_s0 + $0x2a] sm:$0x3]  ;;  %98 = vst [vmem:[#allocation0 + $0x28] sm:$0x3] %v901_v4  ;;  %v894_v6 = vld [vmem:[%s1843_s0 + $0x18] sm:$0x3] }
   0x5   :  { %18 = vst [vmem:[#allocation0 + $0xa8] sm:$0x3] %v885_v5  ;;  %v903_v7 = vld [vmem:[%s1843_s0 + $0x6] sm:$0x3]  ;;  %63 = vst [vmem:[#allocation0 + $0x60] sm:$0x3] %v894_v6 }
   0x6   :  { %108 = vst [vmem:[#allocation0 + $0x18] sm:$0x3] %v903_v7  ;;  %v887_v8 = vld [vmem:[%s1843_s0 + $0x26] sm:$0x3]  ;;  %v896_v9 = vld [vmem:[%s1843_s0 + $0x14] sm:$0x3] }
   0x7   :  { %28 = vst [vmem:[#allocation0 + $0x98] sm:$0x3] %v887_v8  ;;  %73 = vst [vmem:[#allocation0 + $0x50] sm:$0x3] %v896_v9  ;;  %v905_v10 = vld [vmem:[%s1843_s0 + $0x2] sm:$0x3] }
   0x8   :  { %v889_v11 = vld [vmem:[%s1843_s0 + $0x22] sm:$0x3]  ;;  %117 = vst [vmem:[#allocation0 + $0x8] sm:$0x3] %v905_v10  ;;  %v898_v12 = vld [vmem:[%s1843_s0 + $0x10] sm:$0x3] }
   0x9   :  { %38 = vst [vmem:[#allocation0 + $0x88] sm:$0x3] %v889_v11  ;;  %v891_v13 = vld [vmem:[%s1843_s0 + $0x1e] sm:$0x3]  ;;  %83 = vst [vmem:[#allocation0 + $0x40] sm:$0x3] %v898_v12 }
   0xa   :  { %48 = vst [vmem:[#allocation0 + $0x78] sm:$0x3] %v891_v13  ;;  %v900_v14 = vld [vmem:[%s1843_s0 + $0xc] sm:$0x3]  ;;  %v126_v16 = vld [vmem:[#allocation0 + $0x80] sm:$0x3]  }
   0xb   :  { %v884_v15 = vld [vmem:[%s1843_s0 + $0x2c] sm:$0x3]  ;;  %v144_v17 = vld [vmem:[#allocation0 + $0xb8] sm:$0x3]   ;;  %93 = vst [vmem:[#allocation0 + $0x30] sm:$0x3] %v900_v14  ;;  %127 = vrot.lane.b32.xlu0 %v126_v16, %s1130_s11 }
   0xc   :  { %13 = vst [vmem:[#allocation0 + $0xb0] sm:$0x3] %v884_v15  ;;  %v893_v18 = vld [vmem:[%s1843_s0 + $0x1a] sm:$0x3]  ;;  %145 = vrot.lane.b32.xlu1 %v144_v17, %s1131_s12  ;;  %v135_v19 = vld [vmem:[#allocation0 + $0x38] sm:$0x3]  }
   0xd   :  { %58 = vst [vmem:[#allocation0 + $0x68] sm:$0x3] %v893_v18  ;;  %v153_v20 = vld [vmem:[#allocation0 + $0x70] sm:$0x3]   ;;  %v902_v21 = vld [vmem:[%s1843_s0 + $0x8] sm:$0x3] }
   0xe   :  { %103 = vst [vmem:[#allocation0 + $0x20] sm:$0x3] %v902_v21  ;;  %v886_v22 = vld [vmem:[%s1843_s0 + $0x28] sm:$0x3]  ;;  %s1132_s17 = smov 124   ;;  %s1133_s18 = smov 120  }
   0xf   :  { %23 = vst [vmem:[#allocation0 + $0xa0] sm:$0x3] %v886_v22  ;;  %136 = vrot.lane.b32.xlu0 %v135_v19, %s1132_s17  ;;  %v895_v23 = vld [vmem:[%s1843_s0 + $0x16] sm:$0x3]  ;;  %v162_v24 = vld [vmem:[#allocation0 + $0x28] sm:$0x3]  }
  0x10   :  { %154 = vrot.lane.b32.xlu1 %v153_v20, %s1133_s18  ;;  %v171_v25 = vld [vmem:[#allocation0 + $0xa8] sm:$0x3]   ;;  %68 = vst [vmem:[#allocation0 + $0x58] sm:$0x3] %v895_v23  ;;  %v904_v26 = vld [vmem:[%s1843_s0 + $0x4] sm:$0x3] }
  0x11   :  { %113 = vst [vmem:[#allocation0 + $0x10] sm:$0x3] %v904_v26  ;;  %v888_v27 = vld [vmem:[%s1843_s0 + $0x24] sm:$0x3]  ;;  %v897_v28 = vld [vmem:[%s1843_s0 + $0x12] sm:$0x3] }
  0x12   :  { %s1134_s27 = smov 118   ;;  %s1135_s28 = smov 116   ;;  %33 = vst [vmem:[#allocation0 + $0x90] sm:$0x3] %v888_v27  ;;  %78 = vst [vmem:[#allocation0 + $0x48] sm:$0x3] %v897_v28 }
  0x13   :  { %163 = vrot.lane.b32.xlu0 %v162_v24, %s1134_s27  ;;  %v118_v29 = vld [vmem:[%s1843_s0] sm:$0x3]  ;;  %v189_v31 = vld [vmem:[#allocation0 + $0x18] sm:$0x3]   ;;  %s1136_s0 = smov 114   ;;  %s1137_s2 = smov 112  }
  0x14   :  { %172 = vrot.lane.b32.xlu1 %v171_v25, %s1135_s28  ;;  %v180_v30 = vld [vmem:[#allocation0 + $0x60] sm:$0x3]   ;;  %119 = vst [vmem:[#allocation0] sm:$0x3] %v118_v29  ;;  %v198_v32 = vld [vmem:[#allocation0 + $0x98] sm:$0x3]  }
  0x15   :  { %v207_v33 = vld [vmem:[#allocation0 + $0x50] sm:$0x3]   ;;  %s1138_s3 = smov 110   ;;  %s1139_s4 = smov 108   ;;  %v216_v35 = vld [vmem:[#allocation0 + $0x8] sm:$0x3]  }
  0x16   :  { %v225_v36 = vld [vmem:[#allocation0 + $0x88] sm:$0x3]   ;;  %s1140_s9 = smov 106   ;;  %s1141_s10 = smov 104   ;;  %v234_v37 = vld [vmem:[#allocation0 + $0x40] sm:$0x3]  }
  0x17   :  { %181 = vrot.lane.b32.xlu0 %v180_v30, %s1136_s0  ;;  %v243_v38 = vld [vmem:[#allocation0 + $0x78] sm:$0x3]   ;;  %s1142_s11 = smov 102   ;;  %s1143_s12 = smov 98   ;;  %v252_v39 = vld [vmem:[#allocation0 + $0x30] sm:$0x3]  }
  0x18   :  { %190 = vrot.lane.b32.xlu1 %v189_v31, %s1137_s2  ;;  %v261_v40 = vld [vmem:[#allocation0 + $0xb0] sm:$0x3]   ;;  %s1144_s13 = smov 96   ;;  %s1145_s14 = smov 94   ;;  %v270_v41 = vld [vmem:[#allocation0 + $0x68] sm:$0x3]  }
  0x19   :  { %v279_v42 = vld [vmem:[#allocation0 + $0x20] sm:$0x3]   ;;  %s1146_s15 = smov 92   ;;  %s1147_s16 = smov 90   ;;  %v297_v44 = vld [vmem:[#allocation0 + $0x58] sm:$0x3]  }
  0x1a   :  { %v288_v43 = vld [vmem:[#allocation0 + $0xa0] sm:$0x3]   ;;  %s1148_s17 = smov 88   ;;  %s1149_s18 = smov 86   ;;  %v306_v45 = vld [vmem:[#allocation0 + $0x10] sm:$0x3]  }
  0x1b   :  { %199 = vrot.lane.b32.xlu0 %v198_v32, %s1138_s3  ;;  %v120_v34 = vld [vmem:[#allocation0] sm:$0x3]   ;;  %v315_v46 = vld [vmem:[#allocation0 + $0x90] sm:$0x3]   ;;  %s1150_s19 = smov 84   ;;  %s1151_s20 = smov 82  }
  0x1c   :  { %208 = vrot.lane.b32.xlu1 %v207_v33, %s1139_s4  ;;  %122 = vst.msk [vmem:[%s1844_s1] sm:$0x1] %vm121_vm0, %v120_v34   ;;  %906 = vst.msk [vmem:[%s1844_s1 + $0x3f] sm:$0x2] %vm121_vm0, %v120_v34   ;;  %v324_v47 = vld [vmem:[#allocation0 + $0x48] sm:$0x3]  }
  0x1d   :  { %v332_v48 = vld [vmem:[#allocation0] sm:$0x3]   ;;  %s1152_s21 = smov 80   ;;  %s1153_s22 = smov 78   ;;  %v350_v50 = vld [vmem:[#allocation0 + $0x38] sm:$0x3]  }
  0x1e   :  { %v341_v49 = vld [vmem:[#allocation0 + $0x80] sm:$0x3]   ;;  %s1154_s23 = smov 76   ;;  %s1155_s24 = smov 74   ;;  %v359_v51 = vld [vmem:[#allocation0 + $0x70] sm:$0x3]  }
  0x1f   :  { %217 = vrot.lane.b32.xlu0 %v216_v35, %s1140_s9  ;;  %v368_v52 = vld [vmem:[#allocation0 + $0x28] sm:$0x3]   ;;  %s1156_s25 = smov 70   ;;  %s1157_s26 = smov 68   ;;  %v386_v54 = vld [vmem:[#allocation0 + $0x60] sm:$0x3]  }
  0x20   :  { %226 = vrot.lane.b32.xlu1 %v225_v36, %s1141_s10  ;;  %v377_v53 = vld [vmem:[#allocation0 + $0xa8] sm:$0x3]   ;;  %v449_v55 = vld [vmem:[#allocation0 + $0x78] sm:$0x3]   ;;  %v451_v56 = vld [vmem:[#allocation0 + $0x80] sm:$0x3]  }
  0x21   :  { %v467_v57 = vld [vmem:[#allocation0 + $0x30] sm:$0x3]   ;;  %v469_v58 = vld [vmem:[#allocation0 + $0x38] sm:$0x3]   ;;  %s1158_s27 = smov 66   ;;  %s1159_s28 = smov 64   ;;  %v453_v59 = vsel %vm452_vm1, %v451_v56, %v449_v55 }
  0x22   :  { %v471_v60 = vsel %vm470_vm2, %v469_v58, %v467_v57  ;;  %v485_v61 = vld [vmem:[#allocation0 + $0xb0] sm:$0x3]   ;;  %v487_v62 = vld [vmem:[#allocation0 + $0xb8] sm:$0x3]   ;;  %v503_v63 = vld [vmem:[#allocation0 + $0x68] sm:$0x3]  }
  0x23   :  { %235 = vrot.lane.b32.xlu0 %v234_v37, %s1142_s11  ;;  %v505_v0 = vld [vmem:[#allocation0 + $0x70] sm:$0x3]   ;;  %vm506_vm4 = vcmask 703488   ;;  %s1160_s29 = smov 48   ;;  %s1161_s30 = smov 46   ;;  %v489_v1 = vsel %vm488_vm3, %v487_v62, %v485_v61  ;;  %vm524_vm5 = vcmask 719872  }
  0x24   :  { %244 = vrot.lane.b32.xlu1 %v243_v38, %s1143_s12  ;;  %v507_v2 = vsel %vm506_vm4, %v505_v0, %v503_v63  ;;  %v521_v3 = vld [vmem:[#allocation0 + $0x20] sm:$0x3]   ;;  %v523_v4 = vld [vmem:[#allocation0 + $0x28] sm:$0x3]   ;;  %vm542_vm6 = vcmask 736256   ;;  %s1162_s0 = smov 44  }
  0x25   :  { %v539_v5 = vld [vmem:[#allocation0 + $0xa0] sm:$0x3]   ;;  %v541_v6 = vld [vmem:[#allocation0 + $0xa8] sm:$0x3]   ;;  %s1163_s2 = smov 42   ;;  %v525_v7 = vsel %vm524_vm5, %v523_v4, %v521_v3  ;;  %vm560_vm7 = vcmask 752640  }
  0x26   :  { %v543_v8 = vsel %vm542_vm6, %v541_v6, %v539_v5  ;;  %v557_v9 = vld [vmem:[#allocation0 + $0x58] sm:$0x3]   ;;  %v559_v10 = vld [vmem:[#allocation0 + $0x60] sm:$0x3]   ;;  %v575_v11 = vld [vmem:[#allocation0 + $0x10] sm:$0x3]  }
  0x27   :  { %253 = vrot.lane.b32.xlu0 %v252_v39, %s1144_s13  ;;  %v577_v12 = vld [vmem:[#allocation0 + $0x18] sm:$0x3]   ;;  %vm578_vm8 = vcmask 769024   ;;  %s1164_s3 = smov 40   ;;  %s1165_s4 = smov 38   ;;  %v561_v13 = vsel %vm560_vm7, %v559_v10, %v557_v9  ;;  %vm596_vm9 = vcmask 785408  }
  0x28   :  { %262 = vrot.lane.b32.xlu1 %v261_v40, %s1145_s14  ;;  %v579_v14 = vsel %vm578_vm8, %v577_v12, %v575_v11  ;;  %v593_v15 = vld [vmem:[#allocation0 + $0x90] sm:$0x3]   ;;  %v595_v16 = vld [vmem:[#allocation0 + $0x98] sm:$0x3]   ;;  %v611_v17 = vld [vmem:[#allocation0 + $0x48] sm:$0x3]  }
  0x29   :  { %v613_v18 = vld [vmem:[#allocation0 + $0x50] sm:$0x3]   ;;  %vm614_vm10 = vcmask 801792   ;;  %s1166_s5 = smov 36   ;;  %s1167_s6 = smov 34   ;;  %v597_v19 = vsel %vm596_vm9, %v595_v16, %v593_v15  ;;  %vm631_vm11 = vcmask 818176  }
  0x2a   :  { %v615_v20 = vsel %vm614_vm10, %v613_v18, %v611_v17  ;;  %v628_v21 = vld [vmem:[#allocation0] sm:$0x3]   ;;  %v630_v22 = vld [vmem:[#allocation0 + $0x8] sm:$0x3]   ;;  %vm649_vm12 = vcmask 834560   ;;  %s1168_s7 = smov 32  }
  0x2b   :  { %271 = vrot.lane.b32.xlu0 %v270_v41, %s1146_s15  ;;  %v646_v23 = vld [vmem:[#allocation0 + $0x80] sm:$0x3]   ;;  %v648_v24 = vld [vmem:[#allocation0 + $0x88] sm:$0x3]   ;;  %s1169_s8 = smov 30   ;;  %v632_v25 = vsel %vm631_vm11, %v630_v22, %v628_v21  ;;  %vm667_vm13 = vcmask 850944  }
  0x2c   :  { %280 = vrot.lane.b32.xlu1 %v279_v42, %s1147_s16  ;;  %v650_v26 = vsel %vm649_vm12, %v648_v24, %v646_v23  ;;  %v664_v27 = vld [vmem:[#allocation0 + $0x38] sm:$0x3]   ;;  %v666_v28 = vld [vmem:[#allocation0 + $0x40] sm:$0x3]   ;;  %v682_v29 = vld [vmem:[#allocation0 + $0x70] sm:$0x3]  }
  0x2d   :  { %v684_v30 = vld [vmem:[#allocation0 + $0x78] sm:$0x3]   ;;  %vm685_vm14 = vcmask 883712   ;;  %s1170_s9 = smov 28   ;;  %s1171_s10 = smov 26   ;;  %v668_v31 = vsel %vm667_vm13, %v666_v28, %v664_v27  ;;  %vm703_vm15 = vcmask 900096  }
  0x2e   :  { %v686_v32 = vsel %vm685_vm14, %v684_v30, %v682_v29  ;;  %v700_v33 = vld [vmem:[#allocation0 + $0x28] sm:$0x3]   ;;  %v702_v34 = vld [vmem:[#allocation0 + $0x30] sm:$0x3]   ;;  %vm721_vm1 = vcmask 916480   ;;  %s1172_s11 = smov 24  }
  0x2f   :  { %289 = vrot.lane.b32.xlu0 %v288_v43, %s1148_s17  ;;  %v718_v35 = vld [vmem:[#allocation0 + $0xa8] sm:$0x3]   ;;  %v720_v36 = vld [vmem:[#allocation0 + $0xb0] sm:$0x3]   ;;  %s1173_s12 = smov 20   ;;  %v704_v37 = vsel %vm703_vm15, %v702_v34, %v700_v33  ;;  %vm739_vm2 = vcmask 932864  }
  0x30   :  { %298 = vrot.lane.b32.xlu1 %v297_v44, %s1149_s18  ;;  %v722_v38 = vsel %vm721_vm1, %v720_v36, %v718_v35  ;;  %v736_v39 = vld [vmem:[#allocation0 + $0x60] sm:$0x3]   ;;  %v738_v40 = vld [vmem:[#allocation0 + $0x68] sm:$0x3]   ;;  %v754_v41 = vld [vmem:[#allocation0 + $0x18] sm:$0x3]  }
  0x31   :  { %v756_v42 = vld [vmem:[#allocation0 + $0x20] sm:$0x3]   ;;  %vm757_vm3 = vcmask 949248   ;;  %s1174_s13 = smov 18   ;;  %s1175_s14 = smov 16   ;;  %v740_v43 = vsel %vm739_vm2, %v738_v40, %v736_v39  ;;  %vm775_vm4 = vcmask 965632  }
  0x32   :  { %v758_v44 = vsel %vm757_vm3, %v756_v42, %v754_v41  ;;  %vm793_vm5 = vcmask 982016   ;;  %s1176_s15 = smov 14   ;;  %s1177_s16 = smov 12   ;;  %vm811_vm6 = vcmask 998400   ;;  %vm829_vm7 = vcmask 1014784  }
  0x33   :  { %307 = vrot.lane.b32.xlu0 %v306_v45, %s1150_s19  ;;  %v772_v45 = vld [vmem:[#allocation0 + $0x98] sm:$0x3]   ;;  %s1178_s17 = smov 10   ;;  %s1179_s18 = smov 8   ;;  %v844_v57 = vld [vmem:[#allocation0 + $0x40] sm:$0x3]  }
  0x34   :  { %316 = vrot.lane.b32.xlu1 %v315_v46, %s1151_s20  ;;  %v774_v46 = vld [vmem:[#allocation0 + $0xa0] sm:$0x3]   ;;  %v846_v58 = vld [vmem:[#allocation0 + $0x48] sm:$0x3]   ;;  %vm847_vm8 = vcmask 1031168   ;;  %s1180_s19 = smov 6  }
  0x35   :  { %s1181_s20 = smov 4   ;;  %v404_v61 = vld [vmem:[#allocation0 + $0x98] sm:$0x3]   ;;  %v413_v62 = vld [vmem:[#allocation0 + $0x50] sm:$0x3]   ;;  %vm456_vm9 = vcmask 392192  }
  0x36   :  { %v422_v63 = vld [vmem:[#allocation0 + $0x8] sm:$0x3]   ;;  %vm474_vm10 = vcmask 375808   ;;  %vm461_vm11 = vcmask 408960   ;;  %vm479_vm12 = vcmask 408944   ;;  %vm492_vm13 = vcmask 359424  }
  0x37   :  { %325 = vrot.lane.b32.xlu0 %v324_v47, %s1152_s21  ;;  %v790_v47 = vld [vmem:[#allocation0 + $0x50] sm:$0x3]   ;;  %s1182_s21 = smov 2   ;;  %v431_v0 = vld [vmem:[#allocation0 + $0x88] sm:$0x3]   ;;  %vm510_vm14 = vcmask 343040  }
  0x38   :  { %333 = vrot.lane.b32.xlu1 %v332_v48, %s1153_s22  ;;  %v792_v48 = vld [vmem:[#allocation0 + $0x58] sm:$0x3]   ;;  %s1183_s22 = smov 62   ;;  %vm497_vm15 = vcmask 408928   ;;  %vm515_vm1 = vcmask 408912   ;;  %vm528_vm2 = vcmask 326656  }
  0x39   :  { %vm546_vm3 = vcmask 310272  }
  0x3b   :  { %342 = vrot.lane.b32.xlu0 %v341_v49, %s1154_s23  ;;  %v776_v49 = vsel %vm775_vm4, %v774_v46, %v772_v45  ;;  %s1184_s23 = smov 60   ;;  %vm533_vm4 = vcmask 408896  }
  0x3c   :  { %351 = vrot.lane.b32.xlu1 %v350_v50, %s1155_s24  ;;  %v794_v50 = vsel %vm793_vm5, %v792_v48, %v790_v47  ;;  %s1185_s24 = smov 58   ;;  %vm551_vm5 = vcmask 408880  }
  0x3f   :  { %360 = vrot.lane.b32.xlu0 %v359_v51, %s1156_s25  ;;  %v808_v51 = vld [vmem:[#allocation0 + $0x8] sm:$0x3]   ;;  %s1186_s25 = smov 56  }
  0x40   :  { %369 = vrot.lane.b32.xlu1 %v368_v52, %s1157_s26  ;;  %v810_v52 = vld [vmem:[#allocation0 + $0x10] sm:$0x3]   ;;  %s1187_s26 = smov 54  }
  0x41   :  { %v812_v55 = vsel %vm811_vm6, %v810_v52, %v808_v51  ;;  %vm564_vm6 = vcmask 293888  }
  0x43   :  { %378 = vrot.lane.b32.xlu0 %v377_v53, %s1158_s27  ;;  %v826_v53 = vld [vmem:[#allocation0 + $0x88] sm:$0x3]  }
  0x44   :  { %387 = vrot.lane.b32.xlu1 %v386_v54, %s1159_s28  ;;  %v828_v54 = vld [vmem:[#allocation0 + $0x90] sm:$0x3]  }
  0x45   :  { %v830_v56 = vsel %vm829_vm7, %v828_v54, %v826_v53  ;;  %vm582_vm7 = vcmask 277504  }
  0x47   :  { %454 = vrot.lane.b32.xlu0 %v453_v59, %s1160_s29  ;;  %v848_v59 = vsel %vm847_vm8, %v846_v58, %v844_v57  ;;  %vm569_vm8 = vcmask 408864  }
  0x48   :  { %472 = vrot.lane.b32.xlu1 %v471_v60, %s1161_s30  ;;  %v395_v60 = vld [vmem:[#allocation0 + $0x18] sm:$0x3]  }
  0x4b   :  { %490 = vrot.lane.b32.xlu0 %v489_v1, %s1162_s0  ;;  %v440_v1 = vld [vmem:[#allocation0 + $0x40] sm:$0x3]  }
  0x4c   :  { %508 = vrot.lane.b32.xlu1 %v507_v2, %s1163_s2 }
  0x4f   :  { %526 = vrot.lane.b32.xlu0 %v525_v7, %s1164_s3 }
  0x50   :  { %544 = vrot.lane.b32.xlu1 %v543_v8, %s1165_s4 }
  0x53   :  { %562 = vrot.lane.b32.xlu0 %v561_v13, %s1166_s5  ;;  %s1188_s5 = smov 52  }
  0x54   :  { %580 = vrot.lane.b32.xlu1 %v579_v14, %s1167_s6 }
  0x57   :  { %598 = vrot.lane.b32.xlu0 %v597_v19, %s1168_s7 }
  0x58   :  { %616 = vrot.lane.b32.xlu1 %v615_v20, %s1169_s8 }
  0x5b   :  { %633 = vrot.lane.b32.xlu0 %v632_v25, %s1170_s9 }
  0x5c   :  { %651 = vrot.lane.b32.xlu1 %v650_v26, %s1171_s10 }
  0x5f   :  { %669 = vrot.lane.b32.xlu0 %v668_v31, %s1172_s11 }
  0x60   :  { %687 = vrot.lane.b32.xlu1 %v686_v32, %s1173_s12 }
  0x63   :  { %705 = vrot.lane.b32.xlu0 %v704_v37, %s1174_s13 }
  0x64   :  { %723 = vrot.lane.b32.xlu1 %v722_v38, %s1175_s14 }
  0x67   :  { %741 = vrot.lane.b32.xlu0 %v740_v43, %s1176_s15 }
  0x68   :  { %759 = vrot.lane.b32.xlu1 %v758_v44, %s1177_s16 }
  0x6b   :  { %777 = vrot.lane.b32.xlu0 %v776_v49, %s1178_s17 }
  0x6c   :  { %795 = vrot.lane.b32.xlu1 %v794_v50, %s1179_s18 }
  0x6f   :  { %813 = vrot.lane.b32.xlu0 %v812_v55, %s1180_s19 }
  0x70   :  { %831 = vrot.lane.b32.xlu1 %v830_v56, %s1181_s20 }
  0x73   :  { %849 = vrot.lane.b32.xlu0 %v848_v59, %s1182_s21 }
  0x74   :  { %396 = vrot.lane.b32.xlu1 %v395_v60, %s1183_s22 }
  0x77   :  { %405 = vrot.lane.b32.xlu0 %v404_v61, %s1184_s23 }
  0x78   :  { %414 = vrot.lane.b32.xlu1 %v413_v62, %s1185_s24 }
  0x7b   :  { %423 = vrot.lane.b32.xlu0 %v422_v63, %s1186_s25 }
  0x7c   :  { %432 = vrot.lane.b32.xlu1 %v431_v0, %s1187_s26 }
  0x7d   :  { %v128_v2 = vpop.permute.xlu0 %127  }
  0x7e   :  { %v146_v3 = vpop.permute.xlu1 %145   ;;  %907 = vst.msk [vmem:[%s1844_s1 + $0x29] sm:$0x1] %vm121_vm0, %v128_v2   ;;  %908 = vst.msk [vmem:[%s1844_s1 + $0x68] sm:$0x2] %vm121_vm0, %v128_v2  }
  0x7f   :  { %911 = vst.msk [vmem:[%s1844_s1 + $0x3b] sm:$0x1] %vm121_vm0, %v146_v3   ;;  %912 = vst.msk [vmem:[%s1844_s1 + $0x7a] sm:$0x2] %vm121_vm0, %v146_v3   ;;  %441 = vrot.lane.b32.xlu0 %v440_v1, %s1188_s5 }
  0x81   :  { %v137_v4 = vpop.permute.xlu0 %136  }
  0x82   :  { %v155_v5 = vpop.permute.xlu1 %154   ;;  %909 = vst.msk [vmem:[%s1844_s1 + $0x12] sm:$0x1] %vm121_vm0, %v137_v4   ;;  %910 = vst.msk [vmem:[%s1844_s1 + $0x51] sm:$0x2] %vm121_vm0, %v137_v4  }
  0x83   :  { %913 = vst.msk [vmem:[%s1844_s1 + $0x24] sm:$0x1] %vm121_vm0, %v155_v5   ;;  %914 = vst.msk [vmem:[%s1844_s1 + $0x63] sm:$0x2] %vm121_vm0, %v155_v5  }
  0x85   :  { %v164_v6 = vpop.permute.xlu0 %163  }
  0x86   :  { %v173_v7 = vpop.permute.xlu1 %172   ;;  %915 = vst.msk [vmem:[%s1844_s1 + $0xd] sm:$0x1] %vm121_vm0, %v164_v6   ;;  %916 = vst.msk [vmem:[%s1844_s1 + $0x4c] sm:$0x2] %vm121_vm0, %v164_v6  }
  0x87   :  { %917 = vst.msk [vmem:[%s1844_s1 + $0x36] sm:$0x1] %vm121_vm0, %v173_v7   ;;  %918 = vst.msk [vmem:[%s1844_s1 + $0x75] sm:$0x2] %vm121_vm0, %v173_v7  }
  0x89   :  { %v182_v8 = vpop.permute.xlu0 %181  }
  0x8a   :  { %v191_v9 = vpop.permute.xlu1 %190   ;;  %919 = vst.msk [vmem:[%s1844_s1 + $0x1f] sm:$0x1] %vm121_vm0, %v182_v8   ;;  %920 = vst.msk [vmem:[%s1844_s1 + $0x5e] sm:$0x2] %vm121_vm0, %v182_v8  }
  0x8b   :  { %921 = vst.msk [vmem:[%s1844_s1 + $0x8] sm:$0x1] %vm121_vm0, %v191_v9   ;;  %922 = vst.msk [vmem:[%s1844_s1 + $0x47] sm:$0x2] %vm121_vm0, %v191_v9  }
  0x8d   :  { %v200_v10 = vpop.permute.xlu0 %199  }
  0x8e   :  { %v209_v11 = vpop.permute.xlu1 %208   ;;  %923 = vst.msk [vmem:[%s1844_s1 + $0x31] sm:$0x1] %vm121_vm0, %v200_v10   ;;  %924 = vst.msk [vmem:[%s1844_s1 + $0x70] sm:$0x2] %vm121_vm0, %v200_v10  }
  0x8f   :  { %925 = vst.msk [vmem:[%s1844_s1 + $0x1a] sm:$0x1] %vm121_vm0, %v209_v11   ;;  %926 = vst.msk [vmem:[%s1844_s1 + $0x59] sm:$0x2] %vm121_vm0, %v209_v11  }
  0x91   :  { %v218_v12 = vpop.permute.xlu0 %217  }
  0x92   :  { %v227_v13 = vpop.permute.xlu1 %226   ;;  %927 = vst.msk [vmem:[%s1844_s1 + $0x3] sm:$0x1] %vm121_vm0, %v218_v12   ;;  %928 = vst.msk [vmem:[%s1844_s1 + $0x42] sm:$0x2] %vm121_vm0, %v218_v12  }
  0x93   :  { %929 = vst.msk [vmem:[%s1844_s1 + $0x2c] sm:$0x1] %vm121_vm0, %v227_v13   ;;  %930 = vst.msk [vmem:[%s1844_s1 + $0x6b] sm:$0x2] %vm121_vm0, %v227_v13  }
  0x95   :  { %v236_v14 = vpop.permute.xlu0 %235  }
  0x96   :  { %v245_v15 = vpop.permute.xlu1 %244   ;;  %931 = vst.msk [vmem:[%s1844_s1 + $0x15] sm:$0x1] %vm121_vm0, %v236_v14   ;;  %932 = vst.msk [vmem:[%s1844_s1 + $0x54] sm:$0x2] %vm121_vm0, %v236_v14  }
  0x97   :  { %933 = vst.msk [vmem:[%s1844_s1 + $0x27] sm:$0x1] %vm121_vm0, %v245_v15   ;;  %934 = vst.msk [vmem:[%s1844_s1 + $0x66] sm:$0x2] %vm121_vm0, %v245_v15  }
  0x99   :  { %v254_v16 = vpop.permute.xlu0 %253  }
  0x9a   :  { %v263_v17 = vpop.permute.xlu1 %262   ;;  %935 = vst.msk [vmem:[%s1844_s1 + $0x10] sm:$0x1] %vm121_vm0, %v254_v16   ;;  %936 = vst.msk [vmem:[%s1844_s1 + $0x4f] sm:$0x2] %vm121_vm0, %v254_v16  }
  0x9b   :  { %937 = vst.msk [vmem:[%s1844_s1 + $0x39] sm:$0x1] %vm121_vm0, %v263_v17   ;;  %938 = vst.msk [vmem:[%s1844_s1 + $0x78] sm:$0x2] %vm121_vm0, %v263_v17  }
  0x9d   :  { %v272_v18 = vpop.permute.xlu0 %271  }
  0x9e   :  { %v281_v19 = vpop.permute.xlu1 %280   ;;  %939 = vst.msk [vmem:[%s1844_s1 + $0x22] sm:$0x1] %vm121_vm0, %v272_v18   ;;  %940 = vst.msk [vmem:[%s1844_s1 + $0x61] sm:$0x2] %vm121_vm0, %v272_v18  }
  0x9f   :  { %941 = vst.msk [vmem:[%s1844_s1 + $0xb] sm:$0x1] %vm121_vm0, %v281_v19   ;;  %942 = vst.msk [vmem:[%s1844_s1 + $0x4a] sm:$0x2] %vm121_vm0, %v281_v19  }
  0xa1   :  { %v290_v20 = vpop.permute.xlu0 %289  }
  0xa2   :  { %v299_v21 = vpop.permute.xlu1 %298   ;;  %943 = vst.msk [vmem:[%s1844_s1 + $0x34] sm:$0x1] %vm121_vm0, %v290_v20   ;;  %944 = vst.msk [vmem:[%s1844_s1 + $0x73] sm:$0x2] %vm121_vm0, %v290_v20  }
  0xa3   :  { %945 = vst.msk [vmem:[%s1844_s1 + $0x1d] sm:$0x1] %vm121_vm0, %v299_v21   ;;  %946 = vst.msk [vmem:[%s1844_s1 + $0x5c] sm:$0x2] %vm121_vm0, %v299_v21  }
  0xa5   :  { %v308_v22 = vpop.permute.xlu0 %307  }
  0xa6   :  { %v317_v23 = vpop.permute.xlu1 %316   ;;  %947 = vst.msk [vmem:[%s1844_s1 + $0x6] sm:$0x1] %vm121_vm0, %v308_v22   ;;  %948 = vst.msk [vmem:[%s1844_s1 + $0x45] sm:$0x2] %vm121_vm0, %v308_v22  }
  0xa7   :  { %949 = vst.msk [vmem:[%s1844_s1 + $0x2f] sm:$0x1] %vm121_vm0, %v317_v23   ;;  %950 = vst.msk [vmem:[%s1844_s1 + $0x6e] sm:$0x2] %vm121_vm0, %v317_v23  }
  0xa9   :  { %v326_v24 = vpop.permute.xlu0 %325  }
  0xaa   :  { %v334_v25 = vpop.permute.xlu1 %333   ;;  %951 = vst.msk [vmem:[%s1844_s1 + $0x18] sm:$0x1] %vm121_vm0, %v326_v24   ;;  %952 = vst.msk [vmem:[%s1844_s1 + $0x57] sm:$0x2] %vm121_vm0, %v326_v24  }
  0xab   :  { %953 = vst.msk [vmem:[%s1844_s1 + $0x1] sm:$0x1] %vm121_vm0, %v334_v25   ;;  %954 = vst.msk [vmem:[%s1844_s1 + $0x40] sm:$0x2] %vm121_vm0, %v334_v25  }
  0xad   :  { %v343_v26 = vpop.permute.xlu0 %342  }
  0xae   :  { %v352_v27 = vpop.permute.xlu1 %351   ;;  %955 = vst.msk [vmem:[%s1844_s1 + $0x2a] sm:$0x1] %vm121_vm0, %v343_v26   ;;  %956 = vst.msk [vmem:[%s1844_s1 + $0x69] sm:$0x2] %vm121_vm0, %v343_v26  }
  0xaf   :  { %957 = vst.msk [vmem:[%s1844_s1 + $0x13] sm:$0x1] %vm121_vm0, %v352_v27   ;;  %958 = vst.msk [vmem:[%s1844_s1 + $0x52] sm:$0x2] %vm121_vm0, %v352_v27  }
  0xb1   :  { %v361_v28 = vpop.permute.xlu0 %360  }
  0xb2   :  { %v370_v29 = vpop.permute.xlu1 %369   ;;  %959 = vst.msk [vmem:[%s1844_s1 + $0x25] sm:$0x1] %vm121_vm0, %v361_v28   ;;  %960 = vst.msk [vmem:[%s1844_s1 + $0x64] sm:$0x2] %vm121_vm0, %v361_v28  }
  0xb3   :  { %961 = vst.msk [vmem:[%s1844_s1 + $0xe] sm:$0x1] %vm121_vm0, %v370_v29   ;;  %962 = vst.msk [vmem:[%s1844_s1 + $0x4d] sm:$0x2] %vm121_vm0, %v370_v29  }
  0xb5   :  { %v379_v30 = vpop.permute.xlu0 %378  }
  0xb6   :  { %v388_v31 = vpop.permute.xlu1 %387   ;;  %963 = vst.msk [vmem:[%s1844_s1 + $0x37] sm:$0x1] %vm121_vm0, %v379_v30   ;;  %964 = vst.msk [vmem:[%s1844_s1 + $0x76] sm:$0x2] %vm121_vm0, %v379_v30  }
  0xb7   :  { %965 = vst.msk [vmem:[%s1844_s1 + $0x20] sm:$0x1] %vm121_vm0, %v388_v31   ;;  %966 = vst.msk [vmem:[%s1844_s1 + $0x5f] sm:$0x2] %vm121_vm0, %v388_v31  }
  0xb9   :  { %v455_v32 = vpop.permute.xlu0 %454  }
  0xba   :  { %v473_v33 = vpop.permute.xlu1 %472   ;;  %979 = vst.msk [vmem:[%s1844_s1 + $0x28] sm:$0x1] %vm456_vm9, %v455_v32   ;;  %980 = vst.msk [vmem:[%s1844_s1 + $0x67] sm:$0x2] %vm456_vm9, %v455_v32   ;;  %vm587_vm9 = vcmask 408848  }
  0xbb   :  { %983 = vst.msk [vmem:[%s1844_s1 + $0x11] sm:$0x1] %vm474_vm10, %v473_v33   ;;  %984 = vst.msk [vmem:[%s1844_s1 + $0x50] sm:$0x2] %vm474_vm10, %v473_v33   ;;  %vm600_vm10 = vcmask 261120  }
  0xbc   :  { %981 = vst.msk [vmem:[%s1844_s1 + $0x28] sm:$0x1] %vm461_vm11, %v455_v32   ;;  %982 = vst.msk [vmem:[%s1844_s1 + $0x67] sm:$0x2] %vm461_vm11, %v455_v32   ;;  %vm618_vm11 = vcmask 244736  }
  0xbd   :  { %985 = vst.msk [vmem:[%s1844_s1 + $0x11] sm:$0x1] %vm479_vm12, %v473_v33   ;;  %986 = vst.msk [vmem:[%s1844_s1 + $0x50] sm:$0x2] %vm479_vm12, %v473_v33   ;;  %v491_v34 = vpop.permute.xlu0 %490   ;;  %vm605_vm12 = vcmask 408832  }
  0xbe   :  { %v509_v35 = vpop.permute.xlu1 %508   ;;  %987 = vst.msk [vmem:[%s1844_s1 + $0x3a] sm:$0x1] %vm492_vm13, %v491_v34   ;;  %988 = vst.msk [vmem:[%s1844_s1 + $0x79] sm:$0x2] %vm492_vm13, %v491_v34   ;;  %vm623_vm13 = vcmask 408816  }
  0xbf   :  { %991 = vst.msk [vmem:[%s1844_s1 + $0x23] sm:$0x1] %vm510_vm14, %v509_v35   ;;  %992 = vst.msk [vmem:[%s1844_s1 + $0x62] sm:$0x2] %vm510_vm14, %v509_v35   ;;  %vm635_vm14 = vcmask 228352  }
  0xc0   :  { %989 = vst.msk [vmem:[%s1844_s1 + $0x3a] sm:$0x1] %vm497_vm15, %v491_v34   ;;  %990 = vst.msk [vmem:[%s1844_s1 + $0x79] sm:$0x2] %vm497_vm15, %v491_v34   ;;  %vm653_vm15 = vcmask 211968  }
  0xc1   :  { %993 = vst.msk [vmem:[%s1844_s1 + $0x23] sm:$0x1] %vm515_vm1, %v509_v35   ;;  %994 = vst.msk [vmem:[%s1844_s1 + $0x62] sm:$0x2] %vm515_vm1, %v509_v35   ;;  %v527_v36 = vpop.permute.xlu0 %526   ;;  %vm640_vm1 = vcmask 408800  }
  0xc2   :  { %v545_v37 = vpop.permute.xlu1 %544   ;;  %995 = vst.msk [vmem:[%s1844_s1 + $0xc] sm:$0x1] %vm528_vm2, %v527_v36   ;;  %996 = vst.msk [vmem:[%s1844_s1 + $0x4b] sm:$0x2] %vm528_vm2, %v527_v36   ;;  %vm658_vm2 = vcmask 408784  }
  0xc3   :  { %999 = vst.msk [vmem:[%s1844_s1 + $0x35] sm:$0x1] %vm546_vm3, %v545_v37   ;;  %1000 = vst.msk [vmem:[%s1844_s1 + $0x74] sm:$0x2] %vm546_vm3, %v545_v37   ;;  %vm671_vm3 = vcmask 195584  }
  0xc4   :  { %997 = vst.msk [vmem:[%s1844_s1 + $0xc] sm:$0x1] %vm533_vm4, %v527_v36   ;;  %998 = vst.msk [vmem:[%s1844_s1 + $0x4b] sm:$0x2] %vm533_vm4, %v527_v36   ;;  %vm689_vm4 = vcmask 162816  }
  0xc5   :  { %1001 = vst.msk [vmem:[%s1844_s1 + $0x35] sm:$0x1] %vm551_vm5, %v545_v37   ;;  %1002 = vst.msk [vmem:[%s1844_s1 + $0x74] sm:$0x2] %vm551_vm5, %v545_v37   ;;  %v563_v38 = vpop.permute.xlu0 %562   ;;  %vm676_vm5 = vcmask 408768  }
  0xc6   :  { %v581_v39 = vpop.permute.xlu1 %580   ;;  %1003 = vst.msk [vmem:[%s1844_s1 + $0x1e] sm:$0x1] %vm564_vm6, %v563_v38   ;;  %1004 = vst.msk [vmem:[%s1844_s1 + $0x5d] sm:$0x2] %vm564_vm6, %v563_v38   ;;  %vm694_vm6 = vcmask 408736  }
  0xc7   :  { %1007 = vst.msk [vmem:[%s1844_s1 + $0x7] sm:$0x1] %vm582_vm7, %v581_v39   ;;  %1008 = vst.msk [vmem:[%s1844_s1 + $0x46] sm:$0x2] %vm582_vm7, %v581_v39   ;;  %vm707_vm7 = vcmask 146432  }
  0xc8   :  { %1005 = vst.msk [vmem:[%s1844_s1 + $0x1e] sm:$0x1] %vm569_vm8, %v563_v38   ;;  %1006 = vst.msk [vmem:[%s1844_s1 + $0x5d] sm:$0x2] %vm569_vm8, %v563_v38   ;;  %vm725_vm8 = vcmask 130048  }
  0xc9   :  { %1009 = vst.msk [vmem:[%s1844_s1 + $0x7] sm:$0x1] %vm587_vm9, %v581_v39   ;;  %1010 = vst.msk [vmem:[%s1844_s1 + $0x46] sm:$0x2] %vm587_vm9, %v581_v39   ;;  %v599_v40 = vpop.permute.xlu0 %598   ;;  %vm712_vm9 = vcmask 408720  }
  0xca   :  { %v617_v41 = vpop.permute.xlu1 %616   ;;  %1011 = vst.msk [vmem:[%s1844_s1 + $0x30] sm:$0x1] %vm600_vm10, %v599_v40   ;;  %1012 = vst.msk [vmem:[%s1844_s1 + $0x6f] sm:$0x2] %vm600_vm10, %v599_v40   ;;  %vm730_vm10 = vcmask 408704  }
  0xcb   :  { %1015 = vst.msk [vmem:[%s1844_s1 + $0x19] sm:$0x1] %vm618_vm11, %v617_v41   ;;  %1016 = vst.msk [vmem:[%s1844_s1 + $0x58] sm:$0x2] %vm618_vm11, %v617_v41   ;;  %vm743_vm11 = vcmask 113664  }
  0xcc   :  { %1013 = vst.msk [vmem:[%s1844_s1 + $0x30] sm:$0x1] %vm605_vm12, %v599_v40   ;;  %1014 = vst.msk [vmem:[%s1844_s1 + $0x6f] sm:$0x2] %vm605_vm12, %v599_v40   ;;  %vm761_vm12 = vcmask 97280  }
  0xcd   :  { %1017 = vst.msk [vmem:[%s1844_s1 + $0x19] sm:$0x1] %vm623_vm13, %v617_v41   ;;  %1018 = vst.msk [vmem:[%s1844_s1 + $0x58] sm:$0x2] %vm623_vm13, %v617_v41   ;;  %v634_v42 = vpop.permute.xlu0 %633   ;;  %vm748_vm13 = vcmask 408688  }
  0xce   :  { %v652_v43 = vpop.permute.xlu1 %651   ;;  %1019 = vst.msk [vmem:[%s1844_s1 + $0x2] sm:$0x1] %vm635_vm14, %v634_v42   ;;  %1020 = vst.msk [vmem:[%s1844_s1 + $0x41] sm:$0x2] %vm635_vm14, %v634_v42   ;;  %vm766_vm14 = vcmask 408672  }
  0xcf   :  { %1023 = vst.msk [vmem:[%s1844_s1 + $0x2b] sm:$0x1] %vm653_vm15, %v652_v43   ;;  %1024 = vst.msk [vmem:[%s1844_s1 + $0x6a] sm:$0x2] %vm653_vm15, %v652_v43   ;;  %vm779_vm15 = vcmask 80896  }
  0xd0   :  { %1021 = vst.msk [vmem:[%s1844_s1 + $0x2] sm:$0x1] %vm640_vm1, %v634_v42   ;;  %1022 = vst.msk [vmem:[%s1844_s1 + $0x41] sm:$0x2] %vm640_vm1, %v634_v42   ;;  %vm797_vm1 = vcmask 64512  }
  0xd1   :  { %1025 = vst.msk [vmem:[%s1844_s1 + $0x2b] sm:$0x1] %vm658_vm2, %v652_v43   ;;  %1026 = vst.msk [vmem:[%s1844_s1 + $0x6a] sm:$0x2] %vm658_vm2, %v652_v43   ;;  %v670_v44 = vpop.permute.xlu0 %669   ;;  %vm784_vm2 = vcmask 408656  }
  0xd2   :  { %v688_v45 = vpop.permute.xlu1 %687   ;;  %1027 = vst.msk [vmem:[%s1844_s1 + $0x14] sm:$0x1] %vm671_vm3, %v670_v44   ;;  %1028 = vst.msk [vmem:[%s1844_s1 + $0x53] sm:$0x2] %vm671_vm3, %v670_v44   ;;  %vm802_vm3 = vcmask 408640  }
  0xd3   :  { %1031 = vst.msk [vmem:[%s1844_s1 + $0x26] sm:$0x1] %vm689_vm4, %v688_v45   ;;  %1032 = vst.msk [vmem:[%s1844_s1 + $0x65] sm:$0x2] %vm689_vm4, %v688_v45   ;;  %vm815_vm4 = vcmask 48128  }
  0xd4   :  { %1029 = vst.msk [vmem:[%s1844_s1 + $0x14] sm:$0x1] %vm676_vm5, %v670_v44   ;;  %1030 = vst.msk [vmem:[%s1844_s1 + $0x53] sm:$0x2] %vm676_vm5, %v670_v44   ;;  %vm833_vm5 = vcmask 31744  }
  0xd5   :  { %1033 = vst.msk [vmem:[%s1844_s1 + $0x26] sm:$0x1] %vm694_vm6, %v688_v45   ;;  %1034 = vst.msk [vmem:[%s1844_s1 + $0x65] sm:$0x2] %vm694_vm6, %v688_v45   ;;  %v706_v46 = vpop.permute.xlu0 %705   ;;  %vm820_vm6 = vcmask 408624  }
  0xd6   :  { %v724_v47 = vpop.permute.xlu1 %723   ;;  %1035 = vst.msk [vmem:[%s1844_s1 + $0xf] sm:$0x1] %vm707_vm7, %v706_v46   ;;  %1036 = vst.msk [vmem:[%s1844_s1 + $0x4e] sm:$0x2] %vm707_vm7, %v706_v46   ;;  %vm838_vm7 = vcmask 408608  }
  0xd7   :  { %1039 = vst.msk [vmem:[%s1844_s1 + $0x38] sm:$0x1] %vm725_vm8, %v724_v47   ;;  %1040 = vst.msk [vmem:[%s1844_s1 + $0x77] sm:$0x2] %vm725_vm8, %v724_v47   ;;  %vm851_vm8 = vcmask 15360  }
  0xd8   :  { %1037 = vst.msk [vmem:[%s1844_s1 + $0xf] sm:$0x1] %vm712_vm9, %v706_v46   ;;  %1038 = vst.msk [vmem:[%s1844_s1 + $0x4e] sm:$0x2] %vm712_vm9, %v706_v46   ;;  %vm856_vm9 = vcmask 408592  }
  0xd9   :  { %1041 = vst.msk [vmem:[%s1844_s1 + $0x38] sm:$0x1] %vm730_vm10, %v724_v47   ;;  %1042 = vst.msk [vmem:[%s1844_s1 + $0x77] sm:$0x2] %vm730_vm10, %v724_v47   ;;  %v742_v48 = vpop.permute.xlu0 %741  }
  0xda   :  { %v760_v49 = vpop.permute.xlu1 %759   ;;  %1043 = vst.msk [vmem:[%s1844_s1 + $0x21] sm:$0x1] %vm743_vm11, %v742_v48   ;;  %1044 = vst.msk [vmem:[%s1844_s1 + $0x60] sm:$0x2] %vm743_vm11, %v742_v48  }
  0xdb   :  { %1047 = vst.msk [vmem:[%s1844_s1 + $0xa] sm:$0x1] %vm761_vm12, %v760_v49   ;;  %1048 = vst.msk [vmem:[%s1844_s1 + $0x49] sm:$0x2] %vm761_vm12, %v760_v49  }
  0xdc   :  { %1045 = vst.msk [vmem:[%s1844_s1 + $0x21] sm:$0x1] %vm748_vm13, %v742_v48   ;;  %1046 = vst.msk [vmem:[%s1844_s1 + $0x60] sm:$0x2] %vm748_vm13, %v742_v48  }
  0xdd   :  { %1049 = vst.msk [vmem:[%s1844_s1 + $0xa] sm:$0x1] %vm766_vm14, %v760_v49   ;;  %1050 = vst.msk [vmem:[%s1844_s1 + $0x49] sm:$0x2] %vm766_vm14, %v760_v49   ;;  %v778_v50 = vpop.permute.xlu0 %777  }
  0xde   :  { %v796_v51 = vpop.permute.xlu1 %795   ;;  %1051 = vst.msk [vmem:[%s1844_s1 + $0x33] sm:$0x1] %vm779_vm15, %v778_v50   ;;  %1052 = vst.msk [vmem:[%s1844_s1 + $0x72] sm:$0x2] %vm779_vm15, %v778_v50  }
  0xdf   :  { %1055 = vst.msk [vmem:[%s1844_s1 + $0x1c] sm:$0x1] %vm797_vm1, %v796_v51   ;;  %1056 = vst.msk [vmem:[%s1844_s1 + $0x5b] sm:$0x2] %vm797_vm1, %v796_v51  }
  0xe0   :  { %1053 = vst.msk [vmem:[%s1844_s1 + $0x33] sm:$0x1] %vm784_vm2, %v778_v50   ;;  %1054 = vst.msk [vmem:[%s1844_s1 + $0x72] sm:$0x2] %vm784_vm2, %v778_v50  }
  0xe1   :  { %1057 = vst.msk [vmem:[%s1844_s1 + $0x1c] sm:$0x1] %vm802_vm3, %v796_v51   ;;  %1058 = vst.msk [vmem:[%s1844_s1 + $0x5b] sm:$0x2] %vm802_vm3, %v796_v51   ;;  %v814_v52 = vpop.permute.xlu0 %813  }
  0xe2   :  { %v832_v53 = vpop.permute.xlu1 %831   ;;  %1059 = vst.msk [vmem:[%s1844_s1 + $0x5] sm:$0x1] %vm815_vm4, %v814_v52   ;;  %1060 = vst.msk [vmem:[%s1844_s1 + $0x44] sm:$0x2] %vm815_vm4, %v814_v52  }
  0xe3   :  { %1063 = vst.msk [vmem:[%s1844_s1 + $0x2e] sm:$0x1] %vm833_vm5, %v832_v53   ;;  %1064 = vst.msk [vmem:[%s1844_s1 + $0x6d] sm:$0x2] %vm833_vm5, %v832_v53  }
  0xe4   :  { %1061 = vst.msk [vmem:[%s1844_s1 + $0x5] sm:$0x1] %vm820_vm6, %v814_v52   ;;  %1062 = vst.msk [vmem:[%s1844_s1 + $0x44] sm:$0x2] %vm820_vm6, %v814_v52  }
  0xe5   :  { %1065 = vst.msk [vmem:[%s1844_s1 + $0x2e] sm:$0x1] %vm838_vm7, %v832_v53   ;;  %1066 = vst.msk [vmem:[%s1844_s1 + $0x6d] sm:$0x2] %vm838_vm7, %v832_v53   ;;  %v850_v54 = vpop.permute.xlu0 %849  }
  0xe6   :  { %v397_v55 = vpop.permute.xlu1 %396   ;;  %1067 = vst.msk [vmem:[%s1844_s1 + $0x17] sm:$0x1] %vm851_vm8, %v850_v54   ;;  %1068 = vst.msk [vmem:[%s1844_s1 + $0x56] sm:$0x2] %vm851_vm8, %v850_v54  }
  0xe7   :  { %967 = vst.msk [vmem:[%s1844_s1 + $0x9] sm:$0x1] %vm121_vm0, %v397_v55   ;;  %968 = vst.msk [vmem:[%s1844_s1 + $0x48] sm:$0x2] %vm121_vm0, %v397_v55  }
  0xe8   :  { %1069 = vst.msk [vmem:[%s1844_s1 + $0x17] sm:$0x1] %vm856_vm9, %v850_v54   ;;  %1070 = vst.msk [vmem:[%s1844_s1 + $0x56] sm:$0x2] %vm856_vm9, %v850_v54  }
  0xe9   :  { %v406_v56 = vpop.permute.xlu0 %405  }
  0xea   :  { %v415_v57 = vpop.permute.xlu1 %414   ;;  %969 = vst.msk [vmem:[%s1844_s1 + $0x32] sm:$0x1] %vm121_vm0, %v406_v56   ;;  %970 = vst.msk [vmem:[%s1844_s1 + $0x71] sm:$0x2] %vm121_vm0, %v406_v56  }
  0xeb   :  { %971 = vst.msk [vmem:[%s1844_s1 + $0x1b] sm:$0x1] %vm121_vm0, %v415_v57   ;;  %972 = vst.msk [vmem:[%s1844_s1 + $0x5a] sm:$0x2] %vm121_vm0, %v415_v57  }
  0xed   :  { %v424_v58 = vpop.permute.xlu0 %423  }
  0xee   :  { %v433_v59 = vpop.permute.xlu1 %432   ;;  %973 = vst.msk [vmem:[%s1844_s1 + $0x4] sm:$0x1] %vm121_vm0, %v424_v58   ;;  %974 = vst.msk [vmem:[%s1844_s1 + $0x43] sm:$0x2] %vm121_vm0, %v424_v58  }
  0xef   :  { %975 = vst.msk [vmem:[%s1844_s1 + $0x2d] sm:$0x1] %vm121_vm0, %v433_v59   ;;  %976 = vst.msk [vmem:[%s1844_s1 + $0x6c] sm:$0x2] %vm121_vm0, %v433_v59  }
  0xf1   :  { %v442_v60 = vpop.permute.xlu0 %441  }
  0xf2   :  { %977 = vst.msk [vmem:[%s1844_s1 + $0x16] sm:$0x1] %vm121_vm0, %v442_v60   ;;  %978 = vst.msk [vmem:[%s1844_s1 + $0x55] sm:$0x2] %vm121_vm0, %v442_v60  }

// kernel: tile.8
= control target key start
LH: loop header
LB: loop body
LE: loop exit
PB: predicated region body
PF: predicated region fallthrough
CT: control target
= control target key end

     0   :  { %s22_s0 = inlined_call_operand.vmem [shape: f32[64], index: 0, kind: input, shape index: {}]   ;;  %s23_s1 = inlined_call_operand.vmem [shape: f32[4,64], index: 1, kind: output, shape index: {}]  }
   0x1   :  { %v4_v0 = vld [vmem:[%s22_s0] ss:$0 sm:$0xff] }
   0x2   :  { %5 = vst [vmem:[%s23_s1] sm:$0xf] %v4_v0 }

// kernel: spatial_mapping_forward.1
= control target key start
LH: loop header
LB: loop body
LE: loop exit
PB: predicated region body
PF: predicated region fallthrough
CT: control target
= control target key end

     0   :  { %s6487_s18 = smov 0   ;;  %s9974_s0 = inlined_call_operand.vmem [shape: f32[2,149,40], index: 0, kind: input, shape index: {}]   ;;  %s9975_s1 = inlined_call_operand.vmem [shape: f32[2,57,200], index: 1, kind: input, shape index: {}]   ;;  %s9976_s2 = inlined_call_operand.vmem [shape: f32[128,256], index: 2, kind: input, shape index: {}]   ;;  %s9977_s3 = inlined_call_operand.vmem [shape: f32[1792,128], index: 3, kind: input, shape index: {}]   ;;  %s9978_s4 = inlined_call_operand.vmem [shape: f32[680,64], index: 4, kind: input, shape index: {}]   ;;  %s9979_s5 = inlined_call_operand.vmem [shape: f32[2,36,128], index: 5, kind: output, shape index: {}]  }
   0x1 LB: > { %s5060_s19 = sadd.s32 4294967295, %s6450_s18   ;;  %p5064_p0 = scmp.ge.s32.totalorder %s6450_s18, 1  ;;  %s6450_s18 = sphi %s6487_s18, %s15_s18  }
   0x2   : > { %p197_p1 = scmp.lt.s32.totalorder %s6450_s18, 3 }
   0x4   : > { %p198_p2 = pnand %p5064_p0, %p197_p1 }
   0x6   : > { %201 = sbr.rel (%p198_p2) target bundleno = 3096 (0xc18), region = 40 }
   0xd   : > { %v265_v0 = vld [vmem:[%s9976_s2 + $0x8] sm:$0xff]  ;;  %v267_v1 = vld [vmem:[%s9976_s2 + $0x18] sm:$0xff]  ;;  %v264_v2 = vld [vmem:[%s9976_s2] sm:$0xff]  ;;  %p230_p3 = scmp.lt.s32.totalorder %s5060_s19, 1  ;;  %v9980_v7 = vmov 0.0   ;;  %vm287_vm0 = vcmask 326656   ;;  %v277_v34 = vlaneseq }
   0xe   : > { %v5631_v3 = vpack.c.bf16 %v267_v1, %v265_v0  ;;  %v266_v4 = vld [vmem:[%s9976_s2 + $0x10] sm:$0xff]  ;;  %v269_v5 = vld [vmem:[%s9976_s2 + $0x28] sm:$0xff]  ;;  %v271_v6 = vld [vmem:[%s9976_s2 + $0x38] sm:$0xff]  ;;  %409 = vmatprep.mubr.f32.mxu0 %v9980_v7  ;;  %2768 = vst [vmem:[#allocation4] sm:$0x1] %v9980_v7  ;;  %s6454_s23 = smov 64  }
   0xf   : > { %2769 = vst [vmem:[#allocation4 + $0x25] sm:$0x1] %v9980_v7  ;;  %v5633_v8 = vpack.c.bf16 %v266_v4, %v264_v2  ;;  %v5635_v9 = vpack.c.bf16 %v271_v6, %v269_v5  ;;  %v268_v10 = vld [vmem:[%s9976_s2 + $0x20] sm:$0xff]  ;;  %v270_v11 = vld [vmem:[%s9976_s2 + $0x30] sm:$0xff]  ;;  %s10243_s19 = smov (!%p230_p3, %s5060_s19), 1  ;;  %v273_v13 = vld [vmem:[%s9976_s2 + $0x48] sm:$0xff] }
  0x10   : > { %5632 = vmatprep.subr.bf16.mxu0 %v5631_v3  ;;  %v5637_v12 = vpack.c.bf16 %v270_v11, %v268_v10  ;;  %s5999_s11 = smul.u32 152, %s10243_s19  ;;  %v272_v14 = vld [vmem:[%s9976_s2 + $0x40] sm:$0xff]  ;;  %v278_v35 = vshrl.u32 %v277_v34, 7  ;;  %v5069_v37 = vld [vmem:[%s9976_s2 + $0x50] ss:$8 sm:$0x3] }
  0x11   : > { %5634 = vmatpush1.bf16.msra.mxu0 %v5633_v8  ;;  %v9982_v11 = vmov -1.0   ;;  %s5116_s28 = sshll.u32 %s10243_s19, 7  ;;  %s6000_s15 = smul.u32 40, %s10243_s19 }
  0x12   : > { %5636 = vmatprep.subr.bf16.mxu0 %v5635_v9  ;;  %s6531_s16 = scalar_lea.vmem %s9974_s0, %s5999_s11  ;;  %v279_v36 = vsub.s32 0, %v278_v35  ;;  %v283_v38 = vsub.s32 1, %v278_v35  ;;  %s7924_s6 = scalar_lea.vmem %s9975_s1, %s5116_s28 }
  0x13   : > { %v245_v15 = vld [vmem:[%s6531_s16] sm:$0xff]  ;;  %v246_v16 = vld [vmem:[%s6531_s16 + $0x8] sm:$0xff]  ;;  %v247_v17 = vld [vmem:[%s6531_s16 + $0x10] sm:$0xff]  ;;  %s244_s17 = scalar_lea.vmem %s9979_s5, %s6000_s15 }
  0x14   : > { %v248_v18 = vld [vmem:[%s6531_s16 + $0x18] sm:$0xff]  ;;  %v249_v19 = vld [vmem:[%s6531_s16 + $0x20] sm:$0xff]  ;;  %v250_v20 = vld [vmem:[%s6531_s16 + $0x28] sm:$0xff]  ;;  %v6595_v39 = vrot.slane %v5069_v37, %v279_v36  ;;  %v6597_v40 = vrot.slane %v5069_v37, %v283_v38 }
  0x15   : > { %5638 = vmatpush1.bf16.msra.mxu0 %v5637_v12  ;;  %v251_v21 = vld [vmem:[%s6531_s16 + $0x30] sm:$0xff]  ;;  %v252_v22 = vld [vmem:[%s6531_s16 + $0x38] sm:$0xff]  ;;  %v253_v23 = vld [vmem:[%s6531_s16 + $0x40] sm:$0xff] }
  0x16   : > { %353 = vmatprep.subr.mxu0 %v273_v13  ;;  %v254_v24 = vld [vmem:[%s6531_s16 + $0x48] sm:$0xff]  ;;  %v255_v25 = vld [vmem:[%s6531_s16 + $0x50] sm:$0xff]  ;;  %v256_v26 = vld [vmem:[%s6531_s16 + $0x58] sm:$0xff] }
  0x17   : > { %v257_v27 = vld [vmem:[%s6531_s16 + $0x60] sm:$0xff]  ;;  %v258_v28 = vld [vmem:[%s6531_s16 + $0x68] sm:$0xff]  ;;  %v259_v29 = vld [vmem:[%s6531_s16 + $0x70] sm:$0xff] }
  0x18   : > { %v260_v30 = vld [vmem:[%s6531_s16 + $0x78] sm:$0xff]  ;;  %v261_v31 = vld [vmem:[%s6531_s16 + $0x80] sm:$0xff]  ;;  %v262_v32 = vld [vmem:[%s6531_s16 + $0x88] sm:$0xff] }
  0x19   : > { %354 = vmatpush1.msra.mxu0 %v272_v14  ;;  %v263_v33 = vld [vmem:[%s6531_s16 + $0x90] sm:$0x1f] }
  0x1a   : > { %5070 = vmatmul.mubr.msk.f32.vlgmr.msra.gmra.mrb[0].mxu0 %vm287_vm0, %v245_v15 }
  0x1b   : > { %415 = vmatprep.mubr.f32.mxu0 %v9980_v7 }
  0x1e   : > { %5071 = vmatmul.mubr.msk.f32.gmra.mrb[2].mxu0 %vm287_vm0, %v246_v16 }
  0x1f   : > { %421 = vmatprep.mubr.f32.mxu0 %v9980_v7 }
  0x22   : > { %5072 = vmatmul.mubr.msk.f32.gmra.mrb[4].mxu0 %vm287_vm0, %v247_v17 }
  0x23   : > { %427 = vmatprep.mubr.f32.mxu0 %v9980_v7 }
  0x26   : > { %5073 = vmatmul.mubr.msk.f32.gmra.mrb[6].mxu0 %vm287_vm0, %v248_v18 }
  0x27   : > { %433 = vmatprep.mubr.f32.mxu0 %v9980_v7 }
  0x2a   : > { %5074 = vmatmul.mubr.msk.f32.gmra.mrb[8].mxu0 %vm287_vm0, %v249_v19 }
  0x2b   : > { %439 = vmatprep.mubr.f32.mxu0 %v9980_v7 }
  0x2e   : > { %5075 = vmatmul.mubr.msk.f32.gmra.mrb[10].mxu0 %vm287_vm0, %v250_v20 }
  0x2f   : > { %445 = vmatprep.mubr.f32.mxu0 %v9980_v7 }
  0x32   : > { %5076 = vmatmul.mubr.msk.f32.gmra.mrb[12].mxu0 %vm287_vm0, %v251_v21 }
  0x33   : > { %451 = vmatprep.mubr.f32.mxu0 %v9980_v7 }
  0x36   : > { %5077 = vmatmul.mubr.msk.f32.gmra.mrb[14].mxu0 %vm287_vm0, %v252_v22 }
  0x37   : > { %457 = vmatprep.mubr.f32.mxu0 %v9980_v7 }
  0x3a   : > { %5078 = vmatmul.mubr.msk.f32.gmra.mrb[16].mxu0 %vm287_vm0, %v253_v23 }
  0x3b   : > { %463 = vmatprep.mubr.f32.mxu0 %v9980_v7 }
  0x3e   : > { %5079 = vmatmul.mubr.msk.f32.gmra.mrb[18].mxu0 %vm287_vm0, %v254_v24 }
  0x3f   : > { %469 = vmatprep.mubr.f32.mxu0 %v9980_v7 }
  0x42   : > { %5080 = vmatmul.mubr.msk.f32.gmra.mrb[20].mxu0 %vm287_vm0, %v255_v25 }
  0x43   : > { %475 = vmatprep.mubr.f32.mxu0 %v9980_v7 }
  0x46   : > { %5081 = vmatmul.mubr.msk.f32.gmra.mrb[22].mxu0 %vm287_vm0, %v256_v26 }
  0x47   : > { %481 = vmatprep.mubr.f32.mxu0 %v9980_v7 }
  0x4a   : > { %5082 = vmatmul.mubr.msk.f32.gmra.mrb[24].mxu0 %vm287_vm0, %v257_v27 }
  0x4b   : > { %487 = vmatprep.mubr.f32.mxu0 %v9980_v7 }
  0x4e   : > { %5083 = vmatmul.mubr.msk.f32.gmra.mrb[26].mxu0 %vm287_vm0, %v258_v28 }
  0x4f   : > { %493 = vmatprep.mubr.f32.mxu0 %v9980_v7 }
  0x52   : > { %5084 = vmatmul.mubr.msk.f32.gmra.mrb[28].mxu0 %vm287_vm0, %v259_v29 }
  0x53   : > { %499 = vmatprep.mubr.f32.mxu0 %v9980_v7 }
  0x56   : > { %5085 = vmatmul.mubr.msk.f32.gmra.mrb[30].mxu0 %vm287_vm0, %v260_v30 }
  0x57   : > { %505 = vmatprep.mubr.f32.mxu0 %v9980_v7 }
  0x5a   : > { %5086 = vmatmul.mubr.msk.f32.gmra.mrb[32].mxu0 %vm287_vm0, %v261_v31 }
  0x5b   : > { %511 = vmatprep.mubr.f32.mxu0 %v9980_v7 }
  0x5e   : > { %5087 = vmatmul.mubr.msk.f32.gmra.mrb[34].mxu0 %vm287_vm0, %v262_v32 }
  0x5f   : > { %517 = vmatprep.mubr.f32.mxu0 %v9980_v7 }
  0x62   : > { %5088 = vmatmul.mubr.msk.f32.gmra.mrb[36].mxu0 %vm287_vm0, %v263_v33 }
  0xed   : > { %v411_v41 = vpop.f32.mrb[0].mxu0 }
  0xee   : > { %v412_v42 = vadd.f32 %v411_v41, %v6595_v39  ;;  %v413_v43 = vpop.f32.mrb[1].mxu0 }
  0xef   : > { %v414_v44 = vadd.f32 %v413_v43, %v6597_v40 }
  0xf0   : > { %v562_v45 = vmul.f32 0.70710677, %v412_v42  ;;  %v6606_v1 = vmul.f32 0.5, %v412_v42 }
  0xf1   : > { %v6601_v46 = vmul.f32 0.70710677, %v414_v44  ;;  %v417_v47 = vpop.f32.mrb[2].mxu0  ;;  %v6608_v3 = vmul.f32 0.5, %v414_v44 }
  0xf2   : > { %v676_v48 = vand.u32 2147483647, %v562_v45  ;;  %v418_v49 = vadd.f32 %v417_v47, %v6595_v39  ;;  %v419_v50 = vpop.f32.mrb[3].mxu0  ;;  %vm600_vm1 = vcmp.ge.f32.partialorder %v562_v45, 0.0 }
  0xf3   : > { %v677_v51 = vand.u32 2147483647, %v6601_v46  ;;  %v420_v52 = vadd.f32 %v419_v50, %v6597_v40  ;;  %v6614_v12 = vsel %vm600_vm1, 1.0, %v9982_v11 }
  0xf4   : > { %v1170_v53 = vsub.f32 0.0, %v676_v48  ;;  %v564_v54 = vmul.f32 0.70710677, %v418_v49  ;;  %v714_v55 = vmul.f32 0.3275911, %v676_v48  ;;  %v6610_v8 = vmul.f32 0.5, %v418_v49 }
  0xf5   : > { %v1171_v56 = vsub.f32 0.0, %v677_v51  ;;  %v565_v57 = vmul.f32 0.70710677, %v420_v52  ;;  %v715_v58 = vmul.f32 0.3275911, %v677_v51  ;;  %v423_v60 = vpop.f32.mrb[4].mxu0 }
  0xf6   : > { %v678_v59 = vand.u32 2147483647, %v564_v54  ;;  %v1208_v61 = vmul.f32 %v1170_v53, %v676_v48  ;;  %v425_v62 = vpop.f32.mrb[5].mxu0  ;;  %v752_v2 = vadd.f32 1.0, %v714_v55  ;;  %v424_v9 = vadd.f32 %v423_v60, %v6595_v39 }
  0xf7   : > { %v1209_v63 = vmul.f32 %v1171_v56, %v677_v51  ;;  %v679_v4 = vand.u32 2147483647, %v565_v57  ;;  %v753_v6 = vadd.f32 1.0, %v715_v58  ;;  %vm602_vm2 = vcmp.ge.f32.partialorder %v564_v54, 0.0 }
  0xf8   : > { %v1172_v0 = vsub.f32 0.0, %v678_v59  ;;  %v1246_v13 = vmul.f32 1.442695, %v1208_v61  ;;  %v716_v14 = vmul.f32 0.3275911, %v678_v59  ;;  %v426_v15 = vadd.f32 %v425_v62, %v6597_v40 }
  0xf9   : > { %v429_v5 = vpop.f32.mrb[6].mxu0  ;;  %v1248_v16 = vmul.f32 1.442695, %v1209_v63  ;;  %vm603_vm3 = vcmp.ge.f32.partialorder %v565_v57, 0.0  ;;  %v566_v18 = vmul.f32 0.70710677, %v424_v9  ;;  %6139 = vrcp.f32 %v752_v2 }
  0xfa   : > { %v431_v10 = vpop.f32.mrb[7].mxu0  ;;  %v1210_v17 = vmul.f32 %v1172_v0, %v678_v59  ;;  %v717_v19 = vmul.f32 0.3275911, %v679_v4  ;;  %v1173_v20 = vsub.f32 0.0, %v679_v4  ;;  %v567_v21 = vmul.f32 0.70710677, %v426_v15 }
  0xfb   : > { %6141 = vrcp.f32 %v753_v6  ;;  %v6617_v23 = vmul.f32 0.5, %v420_v52  ;;  %v680_v24 = vand.u32 2147483647, %v566_v18  ;;  %v430_v25 = vadd.f32 %v429_v5, %v6595_v39 }
  0xfc   : > { %6143 = vpow2.f32 %v1246_v13  ;;  %v6622_v27 = vsel %vm602_vm2, 1.0, %v9982_v11  ;;  %v754_v28 = vadd.f32 1.0, %v716_v14  ;;  %v6625_v29 = vsel %vm603_vm3, 1.0, %v9982_v11 }
  0xfd   : > { %v435_v22 = vpop.f32.mrb[8].mxu0  ;;  %6145 = vpow2.f32 %v1248_v16  ;;  %v1250_v30 = vmul.f32 1.442695, %v1210_v17  ;;  %v1174_v31 = vsub.f32 0.0, %v680_v24  ;;  %v681_v32 = vand.u32 2147483647, %v567_v21 }
  0xfe   : > { %v437_v26 = vpop.f32.mrb[9].mxu0  ;;  %v755_v33 = vadd.f32 1.0, %v717_v19  ;;  %v1211_v34 = vmul.f32 %v1173_v20, %v679_v4  ;;  %v568_v35 = vmul.f32 0.70710677, %v430_v25  ;;  %v432_v36 = vadd.f32 %v431_v10, %v6597_v40 }
  0xff   : > { %v6628_v38 = vmul.f32 0.5, %v424_v9  ;;  %vm604_vm4 = vcmp.ge.f32.partialorder %v566_v18, 0.0  ;;  %vm605_vm5 = vcmp.ge.f32.partialorder %v567_v21, 0.0  ;;  %v1175_v41 = vsub.f32 0.0, %v681_v32 }
 0x100   : > { %6147 = vrcp.f32 %v754_v28  ;;  %v718_v43 = vmul.f32 0.3275911, %v680_v24  ;;  %v682_v44 = vand.u32 2147483647, %v568_v35  ;;  %v569_v45 = vmul.f32 0.70710677, %v432_v36 }
 0x101   : > { %v441_v37 = vpop.f32.mrb[10].mxu0  ;;  %10015 = vst [vmem:[#allocation9_spill] sm:$0xff] %v6628_v38  ;;  %6149 = vpow2.f32 %v1250_v30  ;;  %v1212_v47 = vmul.f32 %v1174_v31, %v680_v24  ;;  %v6630_v48 = vmul.f32 0.5, %v426_v15  ;;  %v719_v49 = vmul.f32 0.3275911, %v681_v32 }
 0x102   : > { %v443_v42 = vpop.f32.mrb[11].mxu0  ;;  %6151 = vrcp.f32 %v755_v33  ;;  %v1252_v50 = vmul.f32 1.442695, %v1211_v34  ;;  %v1213_v51 = vmul.f32 %v1175_v41, %v681_v32  ;;  %v1176_v52 = vsub.f32 0.0, %v682_v44 }
 0x103   : > { %10016 = vst [vmem:[#allocation10_spill] sm:$0xff] %v6630_v48  ;;  %v6636_v54 = vsel %vm604_vm4, 1.0, %v9982_v11  ;;  %v6640_v55 = vsel %vm605_vm5, 1.0, %v9982_v11  ;;  %v6642_v56 = vmul.f32 0.5, %v430_v25  ;;  %v683_v57 = vand.u32 2147483647, %v569_v45  ;;  %v6646_v59 = vpop.eup %6139 }
 0x104   : > { %10017 = vst [vmem:[#allocation11_spill] sm:$0xff] %v6640_v55  ;;  %v756_v60 = vadd.f32 1.0, %v718_v43  ;;  %vm606_vm6 = vcmp.ge.f32.partialorder %v568_v35, 0.0  ;;  %v720_v61 = vmul.f32 0.3275911, %v682_v44  ;;  %v436_v62 = vadd.f32 %v435_v22, %v6595_v39 }
 0x105   : > { %v6632_v53 = vpop.f32.mrb[12].mxu0  ;;  %10018 = vst [vmem:[#allocation12_spill] sm:$0xff] %v6642_v56  ;;  %v6649_v63 = vpop.eup %6141  ;;  %v1254_v0 = vmul.f32 1.442695, %v1212_v47  ;;  %v757_v2 = vadd.f32 1.0, %v719_v49  ;;  %v1177_v4 = vsub.f32 0.0, %v683_v57  ;;  %v438_v5 = vadd.f32 %v437_v26, %v6597_v40 }
 0x106   : > { %v6644_v58 = vpop.f32.mrb[13].mxu0  ;;  %v6652_v6 = vpop.eup %6143  ;;  %v1256_v9 = vmul.f32 1.442695, %v1213_v51  ;;  %v1214_v10 = vmul.f32 %v1176_v52, %v682_v44  ;;  %vm607_vm7 = vcmp.ge.f32.partialorder %v569_v45, 0.0  ;;  %v570_v13 = vmul.f32 0.70710677, %v436_v62 }
 0x107   : > { %v6656_v15 = vpop.eup %6145  ;;  %6153 = vpow2.f32 %v1252_v50  ;;  %v6658_v16 = vmul.f32 0.5, %v432_v36  ;;  %v721_v17 = vmul.f32 0.3275911, %v683_v57  ;;  %v571_v18 = vmul.f32 0.70710677, %v438_v5 }
 0x108   : > { %6155 = vrcp.f32 %v756_v60  ;;  %v758_v20 = vadd.f32 1.0, %v720_v61  ;;  %v684_v21 = vand.u32 2147483647, %v570_v13  ;;  %v442_v22 = vadd.f32 %v441_v37, %v6595_v39 }
 0x109   : > { %v6654_v14 = vpop.f32.mrb[14].mxu0  ;;  %10019 = vst [vmem:[#allocation13_spill] sm:$0xff] %v6658_v16  ;;  %6157 = vpow2.f32 %v1254_v0  ;;  %v6665_v24 = vsel %vm606_vm6, 1.0, %v9982_v11  ;;  %v6668_v25 = vsel %vm607_vm7, 1.0, %v9982_v11  ;;  %v1215_v26 = vmul.f32 %v1177_v4, %v683_v57 }
 0x10a   : > { %v6660_v19 = vpop.f32.mrb[15].mxu0  ;;  %10020 = vst [vmem:[#allocation14_spill] sm:$0xff] %v6665_v24  ;;  %10021 = vst [vmem:[#allocation15_spill] sm:$0xff] %v6668_v25  ;;  %v6670_v28 = vpop.eup %6147  ;;  %6159 = vrcp.f32 %v757_v2  ;;  %v1258_v30 = vmul.f32 1.442695, %v1214_v10  ;;  %v1178_v31 = vsub.f32 0.0, %v684_v21  ;;  %v444_v37 = vadd.f32 %v443_v42, %v6597_v40 }
 0x10b   : > { %v685_v32 = vand.u32 2147483647, %v571_v18  ;;  %v6672_v33 = vpop.eup %6149  ;;  %6161 = vpow2.f32 %v1256_v9  ;;  %v759_v34 = vadd.f32 1.0, %v721_v17  ;;  %v572_v36 = vmul.f32 0.70710677, %v442_v22 }
 0x10c   : > { %v6677_v41 = vpop.eup %6151  ;;  %6163 = vrcp.f32 %v758_v20  ;;  %vm608_vm8 = vcmp.ge.f32.partialorder %v570_v13, 0.0  ;;  %v722_v43 = vmul.f32 0.3275911, %v684_v21  ;;  %v1260_v47 = vmul.f32 1.442695, %v1215_v26 }
 0x10d   : > { %v6675_v35 = vpop.f32.mrb[16].mxu0  ;;  %v1179_v44 = vsub.f32 0.0, %v685_v32  ;;  %v1216_v49 = vmul.f32 %v1178_v31, %v684_v21  ;;  %v686_v50 = vand.u32 2147483647, %v572_v36  ;;  %v6681_v51 = vmul.f32 0.70710677, %v444_v37 }
 0x10e   : > { %v6679_v45 = vpop.f32.mrb[17].mxu0  ;;  %6165 = vpow2.f32 %v1258_v30  ;;  %v6683_v52 = vmul.f32 0.5, %v436_v62  ;;  %vm609_vm9 = vcmp.ge.f32.partialorder %v571_v18, 0.0  ;;  %v723_v42 = vmul.f32 0.3275911, %v685_v32 }
 0x10f   : > { %6167 = vrcp.f32 %v759_v34  ;;  %v6687_v60 = vmul.f32 0.5, %v438_v5  ;;  %v1217_v61 = vmul.f32 %v1179_v44, %v685_v32  ;;  %v1180_v0 = vsub.f32 0.0, %v686_v50 }
 0x110   : > { %10022 = vst [vmem:[#allocation16_spill] sm:$0xff] %v6683_v52  ;;  %v6693_v4 = vsel %vm608_vm8, 1.0, %v9982_v11  ;;  %v760_v9 = vadd.f32 1.0, %v722_v43  ;;  %v724_v10 = vmul.f32 0.3275911, %v686_v50  ;;  %6169 = vpow2.f32 %v1260_v47 }
 0x111   : > { %v6685_v57 = vpop.f32.mrb[18].mxu0  ;;  %10023 = vst [vmem:[#allocation17_spill] sm:$0xff] %v6687_v60  ;;  %10024 = vst [vmem:[#allocation18_spill] sm:$0xff] %v6693_v4  ;;  %v687_v62 = vand.u32 2147483647, %v6681_v51  ;;  %v6696_v17 = vpop.eup %6153  ;;  %v6699_v20 = vsel %vm609_vm9, 1.0, %v9982_v11  ;;  %v448_v5 = vadd.f32 %v6632_v53, %v6595_v39  ;;  %v450_v31 = vadd.f32 %v6644_v58, %v6597_v40 }
 0x112   : > { %v6689_v2 = vpop.f32.mrb[19].mxu0  ;;  %v1262_v18 = vmul.f32 1.442695, %v1216_v49  ;;  %10025 = vst [vmem:[#allocation19_spill] sm:$0xff] %v6699_v20  ;;  %v6703_v21 = vpop.eup %6155  ;;  %v761_v26 = vadd.f32 1.0, %v723_v42  ;;  %v6705_v13 = vmul.f32 0.5, %v442_v22  ;;  %v1218_v44 = vmul.f32 %v1180_v0, %v686_v50 }
 0x113   : > { %v1181_v30 = vsub.f32 0.0, %v687_v62  ;;  %v6711_v34 = vpop.eup %6157  ;;  %v1264_v43 = vmul.f32 1.442695, %v1217_v61  ;;  %vm610_vm10 = vcmp.ge.f32.partialorder %v572_v36, 0.0  ;;  %v574_v47 = vmul.f32 0.70710677, %v448_v5 }
 0x114   : > { %10026 = vst [vmem:[#allocation20_spill] sm:$0xff] %v6705_v13  ;;  %v6715_v53 = vpop.eup %6159  ;;  %6171 = vrcp.f32 %v760_v9  ;;  %v762_v42 = vadd.f32 1.0, %v724_v10  ;;  %v725_v22 = vmul.f32 0.3275911, %v687_v62  ;;  %v575_v7 = vmul.f32 0.70710677, %v450_v31 }
 0x115   : > { %v6709_v32 = vpop.f32.mrb[20].mxu0  ;;  %v6717_v11 = vpop.eup %6161  ;;  %6173 = vpow2.f32 %v1262_v18  ;;  %v1219_v58 = vmul.f32 %v1181_v30, %v687_v62  ;;  %v688_v13 = vand.u32 2147483647, %v574_v47  ;;  %v454_v60 = vadd.f32 %v6654_v14, %v6595_v39 }
 0x116   : > { %v6713_v49 = vpop.f32.mrb[21].mxu0  ;;  %v6721_v61 = vpop.eup %6163  ;;  %6175 = vrcp.f32 %v761_v26  ;;  %v10027_v50 = vmov -1.0   ;;  %v6727_v20 = vmul.f32 0.5, %v444_v37  ;;  %vm611_vm11 = vcmp.ge.f32.partialorder %v6681_v51, 0.0 }
 0x117   : > { %v6725_v0 = vsel %vm610_vm10, 1.0, %v10027_v50  ;;  %6177 = vpow2.f32 %v1264_v43  ;;  %v1266_v10 = vmul.f32 1.442695, %v1218_v44  ;;  %v1182_v62 = vsub.f32 0.0, %v688_v13 }
 0x118   : > { %10028 = vst [vmem:[#allocation21_spill] sm:$0xff] %v6725_v0  ;;  %10029 = vst [vmem:[#allocation22_spill] sm:$0xff] %v6727_v20  ;;  %v689_v18 = vand.u32 2147483647, %v575_v7  ;;  %v6732_v30 = vpop.eup %6165  ;;  %6179 = vrcp.f32 %v762_v42  ;;  %v763_v14 = vadd.f32 1.0, %v725_v22  ;;  %v456_v36 = vadd.f32 %v6660_v19, %v6597_v40 }
 0x119   : > { %v6730_v9 = vpop.f32.mrb[22].mxu0  ;;  %10030 = vst [vmem:[#allocation23_spill] sm:$0xff] %v6732_v30  ;;  %v576_v52 = vmul.f32 0.70710677, %v454_v60  ;;  %v6738_v37 = vpop.eup %6167  ;;  %v1268_v20 = vmul.f32 1.442695, %v1219_v58  ;;  %v1220_v43 = vmul.f32 %v1182_v62, %v688_v13  ;;  %6181 = vpow2.f32 %v1266_v10 }
 0x11a   : > { %v6736_v26 = vpop.f32.mrb[23].mxu0  ;;  %vm612_vm12 = vcmp.ge.f32.partialorder %v574_v47, 0.0  ;;  %v726_v0 = vmul.f32 0.3275911, %v688_v13  ;;  %v1183_v4 = vsub.f32 0.0, %v689_v18  ;;  %vm613_vm13 = vcmp.ge.f32.partialorder %v575_v7, 0.0  ;;  %v6740_v56 = vpop.eup %6169 }
 0x11b   : > { %v690_v44 = vand.u32 2147483647, %v576_v52  ;;  %v577_v16 = vmul.f32 0.70710677, %v456_v36  ;;  %10031 = vst [vmem:[#allocation24_spill] sm:$0xff] %v6740_v56  ;;  %v6745_v42 = vsel %vm611_vm11, 1.0, %v10027_v50  ;;  %6183 = vrcp.f32 %v763_v14 }
 0x11c   : > { %10032 = vst [vmem:[#allocation25_spill] sm:$0xff] %v6745_v42  ;;  %v6747_v19 = vmul.f32 0.5, %v448_v5  ;;  %v727_v22 = vmul.f32 0.3275911, %v689_v18  ;;  %v6751_v58 = vmul.f32 0.5, %v450_v31  ;;  %v1221_v13 = vmul.f32 %v1183_v4, %v689_v18 }
 0x11d   : > { %v6749_v25 = vpop.f32.mrb[24].mxu0  ;;  %v1184_v62 = vsub.f32 0.0, %v690_v44  ;;  %v6757_v10 = vsel %vm612_vm12, 1.0, %v10027_v50  ;;  %v764_v56 = vadd.f32 1.0, %v726_v0  ;;  %v6761_v51 = vsel %vm613_vm13, 1.0, %v10027_v50 }
 0x11e   : > { %10033 = vst [vmem:[#allocation26_spill] sm:$0xff] %v6747_v19  ;;  %10034 = vst [vmem:[#allocation27_spill] sm:$0xff] %v6751_v58  ;;  %v6753_v24 = vpop.f32.mrb[25].mxu0  ;;  %v691_v5 = vand.u32 2147483647, %v577_v16  ;;  %v6763_v19 = vpop.eup %6171  ;;  %6185 = vpow2.f32 %v1268_v20  ;;  %v6765_v31 = vmul.f32 0.5, %v454_v60  ;;  %v460_v4 = vadd.f32 %v6675_v35, %v6595_v39 }
 0x11f   : > { %10035 = vst [vmem:[#allocation28_spill] sm:$0xff] %v6757_v10  ;;  %10036 = vst [vmem:[#allocation29_spill] sm:$0xff] %v6761_v51  ;;  %v1270_v14 = vmul.f32 1.442695, %v1220_v43  ;;  %v6771_v47 = vpop.eup %6173  ;;  %v765_v58 = vadd.f32 1.0, %v727_v22  ;;  %vm614_vm14 = vcmp.ge.f32.partialorder %v576_v52, 0.0  ;;  %v462_v7 = vadd.f32 %v6679_v45, %v6597_v40 }
 0x120   : > { %10037 = vst [vmem:[#allocation30_spill] sm:$0xff] %v6763_v19  ;;  %10038 = vst [vmem:[#allocation31_spill] sm:$0xff] %v6765_v31  ;;  %v728_v0 = vmul.f32 0.3275911, %v690_v44  ;;  %v6777_v10 = vpop.eup %6175  ;;  %v1272_v20 = vmul.f32 1.442695, %v1221_v13  ;;  %v1222_v60 = vmul.f32 %v1184_v62, %v690_v44  ;;  %6187 = vrcp.f32 %v764_v56 }
 0x121   : > { %v6769_v18 = vpop.f32.mrb[26].mxu0  ;;  %10039 = vst [vmem:[#allocation32_spill] sm:$0xff] %v6771_v47  ;;  %10040 = vst [vmem:[#allocation33_spill] sm:$0xff] %v6777_v10  ;;  %vm615_vm15 = vcmp.ge.f32.partialorder %v577_v16, 0.0  ;;  %v578_v43 = vmul.f32 0.70710677, %v460_v4  ;;  %v6779_v31 = vpop.eup %6177  ;;  %6189 = vpow2.f32 %v1270_v14  ;;  %v466_v48 = vadd.f32 %v6685_v57, %v6595_v39 }
 0x122   : > { %v6775_v51 = vpop.f32.mrb[27].mxu0  ;;  %10041 = vst [vmem:[#allocation34_spill] sm:$0xff] %v6779_v31  ;;  %v729_v35 = vmul.f32 0.3275911, %v691_v5  ;;  %v1185_v42 = vsub.f32 0.0, %v691_v5  ;;  %v6781_v22 = vpop.eup %6179  ;;  %v6783_v30 = vmul.f32 0.5, %v456_v36  ;;  %6191 = vrcp.f32 %v765_v58 }
 0x123   : > { %v579_v47 = vmul.f32 0.70710677, %v462_v7  ;;  %10042 = vst [vmem:[#allocation35_spill] sm:$0xff] %v6781_v22  ;;  %v692_v45 = vand.u32 2147483647, %v578_v43  ;;  %v6791_v44 = vsel %vm614_vm14, 1.0, %v10027_v50  ;;  %6193 = vpow2.f32 %v1272_v20  ;;  %v6799_v31 = vpop.eup %6181 }
 0x124   : > { %10043 = vst [vmem:[#allocation36_spill] sm:$0xff] %v6783_v30  ;;  %10044 = vst [vmem:[#allocation37_spill] sm:$0xff] %v6791_v44  ;;  %v766_v56 = vadd.f32 1.0, %v728_v0  ;;  %v6795_v13 = vsel %vm615_vm15, 1.0, %v10027_v50  ;;  %v1274_v36 = vmul.f32 1.442695, %v1222_v60  ;;  %v1223_v22 = vmul.f32 %v1185_v42, %v691_v5 }
 0x125   : > { %v6787_v10 = vpop.f32.mrb[28].mxu0  ;;  %10045 = vst [vmem:[#allocation38_spill] sm:$0xff] %v6795_v13  ;;  %v1186_v14 = vsub.f32 0.0, %v692_v45  ;;  %v693_v30 = vand.u32 2147483647, %v579_v47  ;;  %10046 = vst [vmem:[#allocation39_spill] sm:$0xff] %v6799_v31  ;;  %v468_v52 = vadd.f32 %v6689_v2, %v6597_v40  ;;  %v6803_v44 = vpop.eup %6183 }
 0x126   : > { %v6797_v62 = vpop.f32.mrb[29].mxu0  ;;  %v767_v57 = vadd.f32 1.0, %v729_v35  ;;  %v580_v58 = vmul.f32 0.70710677, %v466_v48  ;;  %10047 = vst [vmem:[#allocation40_spill] sm:$0xff] %v6803_v44  ;;  %v6805_v0 = vmul.f32 0.5, %v460_v4  ;;  %6195 = vrcp.f32 %v766_v56 }
 0x127   : > { %vm616_vm0 = vcmp.ge.f32.partialorder %v578_v43, 0.0  ;;  %vm617_vm1 = vcmp.ge.f32.partialorder %v579_v47, 0.0  ;;  %v1187_v16 = vsub.f32 0.0, %v693_v30  ;;  %v730_v20 = vmul.f32 0.3275911, %v692_v45 }
 0x128   : > { %10048 = vst [vmem:[#allocation41_spill] sm:$0xff] %v6805_v0  ;;  %v694_v60 = vand.u32 2147483647, %v580_v58  ;;  %v581_v55 = vmul.f32 0.70710677, %v468_v52  ;;  %v6809_v31 = vpop.eup %6185  ;;  %6197 = vpow2.f32 %v1274_v36  ;;  %v1224_v42 = vmul.f32 %v1186_v14, %v692_v45 }
 0x129   : > { %v6807_v13 = vpop.f32.mrb[30].mxu0  ;;  %10049 = vst [vmem:[#allocation42_spill] sm:$0xff] %v6809_v31  ;;  %v6811_v5 = vmul.f32 0.5, %v462_v7  ;;  %v731_v2 = vmul.f32 0.3275911, %v693_v30  ;;  %6199 = vrcp.f32 %v767_v57  ;;  %v1225_v0 = vmul.f32 %v1187_v16, %v693_v30 }
 0x12a   : > { %v6813_v35 = vpop.f32.mrb[31].mxu0  ;;  %v1276_v4 = vmul.f32 1.442695, %v1223_v22  ;;  %v1188_v44 = vsub.f32 0.0, %v694_v60  ;;  %v6817_v38 = vsel %vm616_vm0, 1.0, %v10027_v50  ;;  %v6821_v56 = vsel %vm617_vm1, 1.0, %v10027_v50  ;;  %v6827_v36 = vpop.eup %6187 }
 0x12b   : > { %10050 = vst [vmem:[#allocation43_spill] sm:$0xff] %v6811_v5  ;;  %10051 = vst [vmem:[#allocation44_spill] sm:$0xff] %v6817_v38  ;;  %v6823_v31 = vmul.f32 0.5, %v466_v48  ;;  %v695_v45 = vand.u32 2147483647, %v581_v55  ;;  %v768_v14 = vadd.f32 1.0, %v730_v20  ;;  %v472_v30 = vadd.f32 %v6709_v32, %v6595_v39  ;;  %v6833_v57 = vpop.eup %6189 }
 0x12c   : > { %10052 = vst [vmem:[#allocation45_spill] sm:$0xff] %v6821_v56  ;;  %10054 = vst [vmem:[#allocation47_spill] sm:$0xff] %v6827_v36  ;;  %vm618_vm2 = vcmp.ge.f32.partialorder %v580_v58, 0.0  ;;  %v732_v22 = vmul.f32 0.3275911, %v694_v60  ;;  %v769_v16 = vadd.f32 1.0, %v731_v2  ;;  %v474_v48 = vadd.f32 %v6713_v49, %v6597_v40 }
 0x12d   : > { %10053 = vst [vmem:[#allocation46_spill] sm:$0xff] %v6823_v31  ;;  %v6825_v7 = vpop.f32.mrb[32].mxu0  ;;  %10056 = vst [vmem:[#allocation49_spill] sm:$0xff] %v6833_v57  ;;  %v1278_v47 = vmul.f32 1.442695, %v1224_v42  ;;  %v1189_v5 = vsub.f32 0.0, %v695_v45  ;;  %v6837_v31 = vpop.eup %6191  ;;  %v1226_v38 = vmul.f32 %v1188_v44, %v694_v60  ;;  %6201 = vpow2.f32 %v1276_v4 }
 0x12e   : > { %v6831_v43 = vpop.f32.mrb[33].mxu0  ;;  %10057 = vst [vmem:[#allocation50_spill] sm:$0xff] %v6837_v31  ;;  %v1280_v56 = vmul.f32 1.442695, %v1225_v0  ;;  %vm619_vm3 = vcmp.ge.f32.partialorder %v581_v55, 0.0  ;;  %v6839_v36 = vpop.eup %6193  ;;  %v6841_v32 = vmul.f32 0.5, %v468_v52  ;;  %6203 = vrcp.f32 %v768_v14 }
 0x12f   : > { %10055 = vst [vmem:[#allocation48_spill] sm:$0xff] %v6831_v43  ;;  %v582_v20 = vmul.f32 0.70710677, %v472_v30  ;;  %10058 = vst [vmem:[#allocation51_spill] sm:$0xff] %v6839_v36  ;;  %v733_v19 = vmul.f32 0.3275911, %v695_v45  ;;  %v478_v49 = vadd.f32 %v6730_v9, %v6595_v39  ;;  %6205 = vpow2.f32 %v1278_v47 }
 0x130   : > { %10059 = vst [vmem:[#allocation52_spill] sm:$0xff] %v6841_v32  ;;  %v583_v43 = vmul.f32 0.70710677, %v474_v48  ;;  %v770_v42 = vadd.f32 1.0, %v732_v22  ;;  %v6851_v55 = vsel %vm618_vm2, 1.0, %v10027_v50  ;;  %v6854_v44 = vsel %vm619_vm3, 1.0, %v10027_v50  ;;  %v6856_v0 = vpop.eup %6195 }
 0x131   : > { %v6843_v57 = vpop.f32.mrb[34].mxu0  ;;  %v696_v2 = vand.u32 2147483647, %v582_v20  ;;  %10060 = vst [vmem:[#allocation53_spill] sm:$0xff] %v6851_v55  ;;  %10061 = vst [vmem:[#allocation54_spill] sm:$0xff] %v6854_v44  ;;  %v1227_v52 = vmul.f32 %v1189_v5, %v695_v45  ;;  %6207 = vrcp.f32 %v769_v16  ;;  %v771_v9 = vadd.f32 1.0, %v733_v19 }
 0x132   : > { %v6847_v31 = vpop.f32.mrb[35].mxu0  ;;  %10062 = vst [vmem:[#allocation55_spill] sm:$0xff] %v6856_v0  ;;  %v1282_v60 = vmul.f32 1.442695, %v1226_v38  ;;  %v697_v14 = vand.u32 2147483647, %v583_v43  ;;  %v6858_v22 = vpop.eup %6197  ;;  %6209 = vpow2.f32 %v1280_v56  ;;  %v480_v58 = vadd.f32 %v6736_v26, %v6597_v40 }
 0x133   : > { %v1190_v4 = vsub.f32 0.0, %v696_v2  ;;  %10063 = vst [vmem:[#allocation56_spill] sm:$0xff] %v6858_v22  ;;  %v584_v32 = vmul.f32 0.70710677, %v478_v49  ;;  %v6864_v55 = vpop.eup %6199  ;;  %6211 = vrcp.f32 %v770_v42  ;;  %vm620_vm4 = vcmp.ge.f32.partialorder %v582_v20, 0.0 }
 0x134   : > { %10065 = vst [vmem:[#allocation58_spill] sm:$0xff] %v6864_v55  ;;  %v734_v5 = vmul.f32 0.3275911, %v696_v2  ;;  %v1191_v45 = vsub.f32 0.0, %v697_v14  ;;  %v1284_v38 = vmul.f32 1.442695, %v1227_v52  ;;  %6213 = vpow2.f32 %v1282_v60 }
 0x135   : > { %v6862_v47 = vpop.f32.mrb[36].mxu0  ;;  %v1228_v44 = vmul.f32 %v1190_v4, %v696_v2  ;;  %v698_v36 = vand.u32 2147483647, %v584_v32  ;;  %v585_v22 = vmul.f32 0.70710677, %v480_v58  ;;  %v6868_v19 = vmul.f32 0.5, %v472_v30 }
 0x136   : > { %10064 = vst [vmem:[#allocation57_spill] sm:$0xff] %v6862_v47  ;;  %v6866_v16 = vpop.f32.mrb[37].mxu0  ;;  %vm621_vm5 = vcmp.ge.f32.partialorder %v583_v43, 0.0  ;;  %v735_v56 = vmul.f32 0.3275911, %v697_v14  ;;  %6215 = vrcp.f32 %v771_v9  ;;  %v6871_v26 = vsel %vm620_vm4, 1.0, %v10027_v50 }
 0x137   : > { %10066 = vst [vmem:[#allocation59_spill] sm:$0xff] %v6866_v16  ;;  %10067 = vst [vmem:[#allocation60_spill] sm:$0xff] %v6868_v19  ;;  %v6873_v55 = vmul.f32 0.5, %v474_v48  ;;  %v1192_v20 = vsub.f32 0.0, %v698_v36  ;;  %v772_v42 = vadd.f32 1.0, %v734_v5  ;;  %v1229_v0 = vmul.f32 %v1191_v45, %v697_v14  ;;  %v6875_v52 = vpop.eup %6201 }
 0x138   : > { %10068 = vst [vmem:[#allocation61_spill] sm:$0xff] %v6871_v26  ;;  %v736_v47 = vmul.f32 0.3275911, %v698_v36  ;;  %v699_v16 = vand.u32 2147483647, %v585_v22  ;;  %10070 = vst [vmem:[#allocation63_spill] sm:$0xff] %v6875_v52  ;;  %6217 = vpow2.f32 %v1284_v38  ;;  %v484_v43 = vadd.f32 %v6749_v25, %v6595_v39  ;;  %v6882_v60 = vpop.eup %6203 }
 0x139   : > { %10069 = vst [vmem:[#allocation62_spill] sm:$0xff] %v6873_v55  ;;  %v1286_v2 = vmul.f32 1.442695, %v1228_v44  ;;  %v6878_v30 = vsel %vm621_vm5, 1.0, %v10027_v50  ;;  %v773_v4 = vadd.f32 1.0, %v735_v56  ;;  %v6884_v48 = vmul.f32 0.5, %v478_v49  ;;  %v6888_v9 = vpop.eup %6205 }
 0x13a   : > { %10071 = vst [vmem:[#allocation64_spill] sm:$0xff] %v6878_v30  ;;  %vm622_vm6 = vcmp.ge.f32.partialorder %v584_v32, 0.0  ;;  %v486_v14 = vadd.f32 %v6753_v24, %v6597_v40  ;;  %10073 = vst [vmem:[#allocation66_spill] sm:$0xff] %v6888_v9  ;;  %v1230_v5 = vmul.f32 %v1192_v20, %v698_v36  ;;  %vm623_vm7 = vcmp.ge.f32.partialorder %v585_v22, 0.0 }
 0x13b   : > { %10072 = vst [vmem:[#allocation65_spill] sm:$0xff] %v6884_v48  ;;  %v1193_v44 = vsub.f32 0.0, %v699_v16  ;;  %v586_v45 = vmul.f32 0.70710677, %v484_v43  ;;  %v6890_v38 = vpop.eup %6207  ;;  %6219 = vrcp.f32 %v772_v42  ;;  %v1288_v55 = vmul.f32 1.442695, %v1229_v0 }
 0x13c   : > { %v774_v25 = vadd.f32 1.0, %v736_v47  ;;  %v587_v19 = vmul.f32 0.70710677, %v486_v14  ;;  %v6892_v30 = vpop.eup %6209  ;;  %vm601_vm8 = vcmp.ge.f32.partialorder %v6601_v46, 0.0  ;;  %6221 = vpow2.f32 %v1286_v2 }
 0x13d   : > { %10074 = vst [vmem:[#allocation67_spill] sm:$0xff] %v6892_v30  ;;  %v737_v49 = vmul.f32 0.3275911, %v699_v16  ;;  %v700_v56 = vand.u32 2147483647, %v586_v45  ;;  %v6896_v48 = vpop.eup %6211  ;;  %6223 = vrcp.f32 %v773_v4  ;;  %v6900_v36 = vsel %vm622_vm6, 1.0, %v10027_v50 }
 0x13e   : > { %v828_v24 = vmul.f32 1.0614054, %v6646_v59  ;;  %10075 = vst [vmem:[#allocation68_spill] sm:$0xff] %v6900_v36  ;;  %v6902_v20 = vmul.f32 0.5, %v480_v58  ;;  %v6906_v0 = vsel %vm623_vm7, 1.0, %v10027_v50  ;;  %v1231_v42 = vmul.f32 %v1193_v44, %v699_v16  ;;  %v6908_v30 = vpop.eup %6213 }
 0x13f   : > { %10077 = vst [vmem:[#allocation70_spill] sm:$0xff] %v6906_v0  ;;  %v1290_v47 = vmul.f32 1.442695, %v1230_v5  ;;  %v1194_v2 = vsub.f32 0.0, %v700_v56  ;;  %v701_v26 = vand.u32 2147483647, %v587_v19  ;;  %6225 = vpow2.f32 %v1288_v55 }
 0x140   : > { %10076 = vst [vmem:[#allocation69_spill] sm:$0xff] %v6902_v20  ;;  %10078 = vst [vmem:[#allocation71_spill] sm:$0xff] %v6908_v30  ;;  %v738_v9 = vmul.f32 0.3275911, %v700_v56  ;;  %v866_v52 = vadd.f32 -1.4531521, %v828_v24  ;;  %v6911_v32 = vpop.eup %6215  ;;  %6227 = vrcp.f32 %v774_v25  ;;  %v490_v16 = vadd.f32 %v6769_v18, %v6595_v39 }
 0x141   : > { %v829_v4 = vmul.f32 1.0614054, %v6649_v63  ;;  %v775_v58 = vadd.f32 1.0, %v737_v49  ;;  %v6913_v20 = vmul.f32 0.5, %v484_v43  ;;  %v1195_v22 = vsub.f32 0.0, %v701_v26 }
 0x142   : > { %v904_v0 = vmul.f32 %v6646_v59, %v866_v52  ;;  %v492_v55 = vadd.f32 %v6775_v51, %v6597_v40  ;;  %v6920_v44 = vpop.eup %6217  ;;  %6229 = vpow2.f32 %v1290_v47  ;;  %v1292_v24 = vmul.f32 1.442695, %v1231_v42 }
 0x143   : > { %10079 = vst [vmem:[#allocation72_spill] sm:$0xff] %v6913_v20  ;;  %v867_v5 = vadd.f32 -1.4531521, %v829_v4  ;;  %10080 = vst [vmem:[#allocation73_spill] sm:$0xff] %v6920_v44  ;;  %vm624_vm9 = vcmp.ge.f32.partialorder %v586_v45, 0.0  ;;  %v1232_v36 = vmul.f32 %v1194_v2, %v700_v56  ;;  %v776_v25 = vadd.f32 1.0, %v738_v9 }
 0x144   : > { %vm625_vm10 = vcmp.ge.f32.partialorder %v587_v19, 0.0  ;;  %v942_v43 = vadd.f32 1.4214138, %v904_v0  ;;  %6231 = vrcp.f32 %v775_v58  ;;  %v6923_v52 = vmul.f32 0.5, %v486_v14 }
 0x145   : > { %v905_v49 = vmul.f32 %v6649_v63, %v867_v5  ;;  %v739_v4 = vmul.f32 0.3275911, %v701_v26  ;;  %v588_v20 = vmul.f32 0.70710677, %v490_v16  ;;  %v6925_v18 = vpop.eup %6219  ;;  %v1233_v30 = vmul.f32 %v1195_v22, %v701_v26 }
 0x146   : > { %10081 = vst [vmem:[#allocation74_spill] sm:$0xff] %v6923_v52  ;;  %v980_v51 = vmul.f32 %v6646_v59, %v942_v43  ;;  %v6928_v47 = vmul.f32 0.70710677, %v492_v55  ;;  %v6930_v42 = vpop.eup %6221  ;;  %6233 = vpow2.f32 %v1292_v24  ;;  %v6934_v9 = vsel %vm624_vm9, 1.0, %v10027_v50 }
 0x147   : > { %v943_v44 = vadd.f32 1.4214138, %v905_v49  ;;  %10082 = vst [vmem:[#allocation75_spill] sm:$0xff] %v6934_v9  ;;  %v1294_v56 = vmul.f32 1.442695, %v1232_v36  ;;  %v6938_v14 = vsel %vm625_vm10, 1.0, %v10027_v50  ;;  %v6940_v0 = vpop.eup %6223  ;;  %6235 = vrcp.f32 %v776_v25 }
 0x148   : > { %10083 = vst [vmem:[#allocation76_spill] sm:$0xff] %v6938_v14  ;;  %v1018_v26 = vadd.f32 -0.28449672, %v980_v51  ;;  %v639_v2 = vsel %vm601_vm8, 1.0, %v10027_v50  ;;  %v777_v22 = vadd.f32 1.0, %v739_v4  ;;  %v6946_v5 = vmul.f32 0.5, %v490_v16 }
 0x149   : > { %v981_v58 = vmul.f32 %v6649_v63, %v943_v44  ;;  %v702_v45 = vand.u32 2147483647, %v588_v20  ;;  %v830_v36 = vmul.f32 1.0614054, %v6670_v28  ;;  %v6949_v24 = vpop.eup %6225  ;;  %v1296_v19 = vmul.f32 1.442695, %v1233_v30 }
 0x14a   : > { %10084 = vst [vmem:[#allocation77_spill] sm:$0xff] %v6946_v5  ;;  %10085 = vst [vmem:[#allocation78_spill] sm:$0xff] %v6949_v24  ;;  %v1056_v43 = vmul.f32 %v6646_v59, %v1018_v26  ;;  %v703_v25 = vand.u32 2147483647, %v6928_v47  ;;  %v6953_v51 = vpop.eup %6227  ;;  %6237 = vpow2.f32 %v1294_v56  ;;  %v6955_v46 = vmul.f32 0.5, %v492_v55 }
 0x14b   : > { %v1019_v49 = vadd.f32 -0.28449672, %v981_v58  ;;  %v868_v44 = vadd.f32 -1.4531521, %v830_v36  ;;  %v831_v16 = vmul.f32 1.0614054, %v6677_v41  ;;  %v6961_v30 = vadd.f32 %v6787_v10, %v6595_v39 }
 0x14c   : > { %10086 = vst [vmem:[#allocation79_spill] sm:$0xff] %v6955_v46  ;;  %v1094_v4 = vadd.f32 0.2548296, %v1056_v43  ;;  %vm626_vm11 = vcmp.ge.f32.partialorder %v588_v20, 0.0  ;;  %v6963_v26 = vpop.eup %6229  ;;  %6239 = vrcp.f32 %v777_v22  ;;  %v1196_v58 = vsub.f32 0.0, %v702_v45 }
 0x14d   : > { %v1057_v5 = vmul.f32 %v6649_v63, %v1019_v49  ;;  %10087 = vst [vmem:[#allocation80_spill] sm:$0xff] %v6963_v26  ;;  %v906_v52 = vmul.f32 %v6670_v28, %v868_v44  ;;  %v869_v56 = vadd.f32 -1.4531521, %v831_v16  ;;  %6241 = vpow2.f32 %v1296_v19 }
 0x14e   : > { %v1132_v55 = vmul.f32 %v6646_v59, %v1094_v4  ;;  %v1197_v46 = vsub.f32 0.0, %v703_v25  ;;  %v6967_v43 = vpop.eup %6231  ;;  %v6970_v20 = vsel %vm626_vm11, 1.0, %v10027_v50  ;;  %v740_v49 = vmul.f32 0.3275911, %v702_v45 }
 0x14f   : > { %v1095_v36 = vadd.f32 0.2548296, %v1057_v5  ;;  %10088 = vst [vmem:[#allocation81_spill] sm:$0xff] %v6970_v20  ;;  %v944_v10 = vadd.f32 1.4214138, %v906_v52  ;;  %v907_v14 = vmul.f32 %v6677_v41, %v869_v56  ;;  %v1234_v5 = vmul.f32 %v1196_v58, %v702_v45 }
 0x150   : > { %v1322_v22 = vmul.f32 %v6652_v6, %v1132_v55  ;;  %v741_v44 = vmul.f32 0.3275911, %v703_v25  ;;  %v6976_v19 = vmul.f32 0.70710677, %v6961_v30  ;;  %v6978_v59 = vpop.eup %6233  ;;  %v6983_v20 = vadd.f32 %v6797_v62, %v6597_v40 }
 0x151   : > { %v1133_v9 = vmul.f32 %v6649_v63, %v1095_v36  ;;  %10089 = vst [vmem:[#allocation82_spill] sm:$0xff] %v6978_v59  ;;  %v982_v16 = vmul.f32 %v6670_v28, %v944_v10  ;;  %v945_v4 = vadd.f32 1.4214138, %v907_v14  ;;  %v6985_v52 = vpop.eup %6235  ;;  %v1235_v63 = vmul.f32 %v1197_v46, %v703_v25 }
 0x152   : > { %v1360_v56 = vsub.f32 1.0, %v1322_v22  ;;  %v832_v55 = vmul.f32 1.0614054, %v6703_v21  ;;  %v778_v36 = vadd.f32 1.0, %v740_v49  ;;  %vm627_vm12 = vcmp.ge.f32.partialorder %v6928_v47, 0.0 }
 0x153   : > { %v1323_v6 = vmul.f32 %v6656_v15, %v1133_v9  ;;  %v1020_v59 = vadd.f32 -0.28449672, %v982_v16  ;;  %v983_v45 = vmul.f32 %v6677_v41, %v945_v4  ;;  %v779_v10 = vadd.f32 1.0, %v741_v44 }
 0x154   : > { %v1398_v14 = vmul.f32 %v1360_v56, %v6614_v12  ;;  %v704_v62 = vand.u32 2147483647, %v6976_v19  ;;  %v6993_v26 = vpop.eup %6237  ;;  %v1298_v22 = vmul.f32 1.442695, %v1234_v5  ;;  %v6997_v25 = vmul.f32 0.70710677, %v6983_v20 }
 0x155   : > { %v1361_v58 = vsub.f32 1.0, %v1323_v6  ;;  %v1058_v15 = vmul.f32 %v6670_v28, %v1020_v59  ;;  %v1021_v9 = vadd.f32 -0.28449672, %v983_v45  ;;  %v1300_v16 = vmul.f32 1.442695, %v1235_v63 }
 0x156   : > { %v1436_v46 = vadd.f32 1.0, %v1398_v14  ;;  %v870_v24 = vadd.f32 -1.4531521, %v832_v55  ;;  %v6999_v4 = vpop.eup %6239  ;;  %6243 = vrcp.f32 %v778_v36  ;;  %v7004_v12 = vsel %vm627_vm12, 1.0, %v10027_v50 }
 0x157   : > { %v1399_v49 = vmul.f32 %v1361_v58, %v639_v2  ;;  %v1096_v44 = vadd.f32 0.2548296, %v1058_v15  ;;  %v1059_v5 = vmul.f32 %v6677_v41, %v1021_v9  ;;  %v7007_v59 = vpop.eup %6241  ;;  %6245 = vrcp.f32 %v779_v10 }
 0x158   : > { %v7010_v56 = vmul.f32 %v1436_v46, %v6606_v1  ;;  %v1198_v2 = vsub.f32 0.0, %v704_v62  ;;  %6247 = vpow2.f32 %v1298_v22  ;;  %v705_v36 = vand.u32 2147483647, %v6997_v25 }
 0x159   : > { %v1437_v6 = vadd.f32 1.0, %v1399_v49  ;;  %v1134_v63 = vmul.f32 %v6670_v28, %v1096_v44  ;;  %v1097_v55 = vadd.f32 0.2548296, %v1059_v5  ;;  %6249 = vpow2.f32 %v1300_v16 }
 0x15a   : > { %10090 = vst [vmem:[#allocation83_spill] sm:$0xff] %v7010_v56  ;;  %1531 = vrot.lane.b32.xlu0 %v7010_v56, %s6454_s23  ;;  %v7020_v1 = vmul.f32 0.5, %v6961_v30  ;;  %v908_v45 = vmul.f32 %v6703_v21, %v870_v24  ;;  %vm628_vm13 = vcmp.ge.f32.partialorder %v6976_v19, 0.0  ;;  %v833_v58 = vmul.f32 1.0614054, %v6715_v53 }
 0x15b   : > { %v7017_v47 = vmul.f32 %v1437_v6, %v6608_v3  ;;  %v1324_v14 = vmul.f32 %v6672_v33, %v1134_v63  ;;  %v1135_v28 = vmul.f32 %v6677_v41, %v1097_v55  ;;  %v742_v10 = vmul.f32 0.3275911, %v704_v62 }
 0x15c   : > { %v1236_v3 = vmul.f32 %v1198_v2, %v704_v62  ;;  %v946_v22 = vadd.f32 1.4214138, %v908_v45  ;;  %v502_v30 = vadd.f32 %v6807_v13, %v6595_v39  ;;  %v743_v9 = vmul.f32 0.3275911, %v705_v36 }
 0x15d   : > { %10091 = vst [vmem:[#allocation84_spill] sm:$0xff] %v7017_v47  ;;  %1626 = vrot.lane.b32.xlu1 %v7017_v47, %s6454_s23  ;;  %v1362_v15 = vsub.f32 1.0, %v1324_v14  ;;  %v1325_v24 = vmul.f32 %v6696_v17, %v1135_v28  ;;  %v871_v33 = vadd.f32 -1.4531521, %v833_v58  ;;  %v1199_v46 = vsub.f32 0.0, %v705_v36 }
 0x15e   : > { %v984_v41 = vmul.f32 %v6703_v21, %v946_v22  ;;  %v7033_v49 = vmul.f32 0.70710677, %v502_v30  ;;  %v504_v16 = vadd.f32 %v6813_v35, %v6597_v40  ;;  %v7041_v13 = vsel %vm628_vm13, 1.0, %v10027_v50 }
 0x15f   : > { %v1400_v44 = vmul.f32 %v1362_v15, %v6622_v27  ;;  %v1363_v62 = vsub.f32 1.0, %v1325_v24  ;;  %v909_v17 = vmul.f32 %v6715_v53, %v871_v33  ;;  %v780_v5 = vadd.f32 1.0, %v742_v10 }
 0x160   : > { %v1302_v6 = vmul.f32 1.442695, %v1236_v3  ;;  %vm629_vm14 = vcmp.ge.f32.partialorder %v6997_v25, 0.0  ;;  %v1022_v2 = vadd.f32 -0.28449672, %v984_v41  ;;  %v7045_v63 = vpop.eup %6243  ;;  %v781_v19 = vadd.f32 1.0, %v743_v9 }
 0x161   : > { %v1438_v55 = vadd.f32 1.0, %v1400_v44  ;;  %v1401_v35 = vmul.f32 %v1363_v62, %v6625_v29  ;;  %v947_v45 = vadd.f32 1.4214138, %v909_v17  ;;  %v706_v27 = vand.u32 2147483647, %v7033_v49  ;;  %v7049_v14 = vpop.eup %6245 }
 0x162   : > { %v1237_v28 = vmul.f32 %v1199_v46, %v705_v36  ;;  %v1060_v58 = vmul.f32 %v6703_v21, %v1022_v2  ;;  %v7052_v22 = vmul.f32 0.70710677, %v504_v16  ;;  %v7054_v10 = vpop.eup %6247  ;;  %v834_v29 = vmul.f32 1.0614054, %v6721_v61 }
 0x163   : > { %v7057_v3 = vmul.f32 %v1438_v55, %v6610_v8  ;;  %v1439_v15 = vadd.f32 1.0, %v1401_v35  ;;  %v985_v24 = vmul.f32 %v6715_v53, %v947_v45  ;;  %v7061_v33 = vpop.eup %6249  ;;  %6251 = vrcp.f32 %v780_v5 }
 0x164   : > { %v7064_v9 = vmul.f32 0.5, %v6983_v20  ;;  %v7069_v36 = vsel %vm629_vm14, 1.0, %v10027_v50  ;;  %v1098_v46 = vadd.f32 0.2548296, %v1060_v58  ;;  %6253 = vpow2.f32 %v1302_v6 }
 0x165   : > { %10092 = vst [vmem:[#allocation85_spill] sm:$0xff] %v7057_v3  ;;  %1533 = vrot.lane.b32.xlu0 %v7057_v3, %s6454_s23  ;;  %v7074_v8 = vmul.f32 %v1439_v15, %v6617_v23  ;;  %v1023_v41 = vadd.f32 -0.28449672, %v985_v24  ;;  %v1200_v44 = vsub.f32 0.0, %v706_v27  ;;  %6255 = vrcp.f32 %v781_v19 }
 0x166   : > { %10093 = vst [vmem:[#allocation86_spill] sm:$0xff] %v7064_v9  ;;  %v1136_v62 = vmul.f32 %v6703_v21, %v1098_v46  ;;  %v707_v20 = vand.u32 2147483647, %v7052_v22  ;;  %v872_v17 = vadd.f32 -1.4531521, %v834_v29  ;;  %v7081_v2 = vmul.f32 0.5, %v502_v30 }
 0x167   : > { %10094 = vst [vmem:[#allocation87_spill] sm:$0xff] %v7074_v8  ;;  %1628 = vrot.lane.b32.xlu1 %v7074_v8, %s6454_s23  ;;  %v1304_v25 = vmul.f32 1.442695, %v1237_v28  ;;  %v1061_v5 = vmul.f32 %v6715_v53, %v1023_v41  ;;  %v835_v23 = vmul.f32 1.0614054, %v6738_v37  ;;  %v508_v21 = vadd.f32 %v6825_v7, %v6595_v39 }
 0x168   : > { %10095 = vst [vmem:[#allocation88_spill] sm:$0xff] %v7081_v2  ;;  %v1326_v6 = vmul.f32 %v6711_v34, %v1136_v62  ;;  %v744_v55 = vmul.f32 0.3275911, %v706_v27  ;;  %v910_v35 = vmul.f32 %v6721_v61, %v872_v17  ;;  %v1238_v19 = vmul.f32 %v1200_v44, %v706_v27 }
 0x169   : > { %v1099_v45 = vadd.f32 0.2548296, %v1061_v5  ;;  %v7088_v58 = vmul.f32 0.5, %v504_v16  ;;  %v873_v15 = vadd.f32 -1.4531521, %v835_v23  ;;  %v1201_v24 = vsub.f32 0.0, %v707_v20 }
 0x16a   : > { %v1364_v28 = vsub.f32 1.0, %v1326_v6  ;;  %v948_v29 = vadd.f32 1.4214138, %v910_v35  ;;  %v7090_v30 = vmul.f32 0.70710677, %v508_v21  ;;  %6257 = vpow2.f32 %v1304_v25 }
 0x16b   : > { %10096 = vst [vmem:[#allocation89_spill] sm:$0xff] %v7088_v58  ;;  %v1137_v46 = vmul.f32 %v6715_v53, %v1099_v45  ;;  %vm630_vm15 = vcmp.ge.f32.partialorder %v7033_v49, 0.0  ;;  %v911_v34 = vmul.f32 %v6738_v37, %v873_v15  ;;  %v782_v7 = vadd.f32 1.0, %v744_v55  ;;  %v10097_v45 = vld [vmem:[#allocation48_spill] sm:$0xff]  ;;  %v10116_v58 = vld [vmem:[#allocation35_spill] sm:$0xff] }
 0x16c   : > { %v1402_v41 = vmul.f32 %v1364_v28, %v6636_v54  ;;  %vm631_vm0 = vcmp.ge.f32.partialorder %v7052_v22, 0.0  ;;  %v986_v16 = vmul.f32 %v6721_v61, %v948_v29  ;;  %v1306_v44 = vmul.f32 1.442695, %v1238_v19  ;;  %v10099_v29 = vld [vmem:[#allocation9_spill] sm:$0xff]  ;;  %v10104_v22 = vld [vmem:[#allocation10_spill] sm:$0xff] }
 0x16d   : > { %v1327_v27 = vmul.f32 %v6717_v11, %v1137_v46  ;;  %v745_v62 = vmul.f32 0.3275911, %v707_v20  ;;  %v949_v17 = vadd.f32 1.4214138, %v911_v34  ;;  %v7099_v5 = vpop.eup %6251  ;;  %v1239_v53 = vmul.f32 %v1201_v24, %v707_v20  ;;  %v10098_v11 = vld [vmem:[#allocation30_spill] sm:$0xff]  ;;  %v10101_v34 = vld [vmem:[#allocation11_spill] sm:$0xff] }
 0x16e   : > { %v1440_v25 = vadd.f32 1.0, %v1402_v41  ;;  %v1024_v23 = vadd.f32 -0.28449672, %v986_v16  ;;  %v708_v6 = vand.u32 2147483647, %v7090_v30  ;;  %v7102_v35 = vpop.eup %6253  ;;  %v7107_v15 = vadd.f32 %v10097_v45, %v6597_v40 }
 0x16f   : > { %v1365_v54 = vsub.f32 1.0, %v1327_v27  ;;  %v987_v55 = vmul.f32 %v6738_v37, %v949_v17  ;;  %v836_v19 = vmul.f32 1.0614054, %v10098_v11  ;;  %v7110_v28 = vpop.eup %6255  ;;  %v7118_v20 = vsel %vm630_vm15, 1.0, %v10027_v50 }
 0x170   : > { %v7113_v46 = vmul.f32 %v1440_v25, %v10099_v29  ;;  %6259 = vrcp.f32 %v782_v7  ;;  %v1062_v24 = vmul.f32 %v6721_v61, %v1024_v23  ;;  %v783_v16 = vadd.f32 1.0, %v745_v62 }
 0x171   : > { %v1403_v41 = vmul.f32 %v1365_v54, %v10101_v34  ;;  %v1025_v27 = vadd.f32 -0.28449672, %v987_v55  ;;  %v7123_v17 = vmul.f32 0.70710677, %v7107_v15  ;;  %6261 = vpow2.f32 %v1306_v44 }
 0x172   : > { %10100 = vst [vmem:[#allocation48_spill] sm:$0xff] %v7113_v46  ;;  %1535 = vrot.lane.b32.xlu0 %v7113_v46, %s6454_s23  ;;  %v7130_v49 = vsel %vm631_vm0, 1.0, %v10027_v50  ;;  %v1100_v25 = vadd.f32 0.2548296, %v1062_v24  ;;  %v874_v7 = vadd.f32 -1.4531521, %v836_v19  ;;  %6263 = vrcp.f32 %v783_v16 }
 0x173   : > { %10102 = vst [vmem:[#allocation30_spill] sm:$0xff] %v7130_v49  ;;  %v1441_v45 = vadd.f32 1.0, %v1403_v41  ;;  %v1308_v23 = vmul.f32 1.442695, %v1239_v53  ;;  %v1063_v54 = vmul.f32 %v6738_v37, %v1025_v27  ;;  %v1202_v62 = vsub.f32 0.0, %v708_v6  ;;  %v10106_v53 = vld [vmem:[#allocation23_spill] sm:$0xff] }
 0x174   : > { %v1138_v55 = vmul.f32 %v6721_v61, %v1100_v25  ;;  %v7134_v29 = vmul.f32 0.5, %v508_v21  ;;  %v709_v34 = vand.u32 2147483647, %v7123_v17  ;;  %v912_v44 = vmul.f32 %v10098_v11, %v874_v7  ;;  %v7138_v46 = vpop.eup %6257  ;;  %v10107_v27 = vld [vmem:[#allocation33_spill] sm:$0xff] }
 0x175   : > { %v7141_v8 = vmul.f32 %v1441_v45, %v10104_v22  ;;  %v1101_v19 = vadd.f32 0.2548296, %v1063_v54  ;;  %vm632_vm1 = vcmp.ge.f32.partialorder %v7090_v30, 0.0  ;;  %v837_v61 = vmul.f32 1.0614054, %v10107_v27 }
 0x176   : > { %10103 = vst [vmem:[#allocation9_spill] sm:$0xff] %v7134_v29  ;;  %v1328_v24 = vmul.f32 %v10106_v53, %v1138_v55  ;;  %v950_v41 = vadd.f32 1.4214138, %v912_v44  ;;  %v7148_v21 = vadd.f32 %v6843_v57, %v6595_v39  ;;  %6265 = vpow2.f32 %v1308_v23  ;;  %v10109_v44 = vld [vmem:[#allocation24_spill] sm:$0xff] }
 0x177   : > { %10105 = vst [vmem:[#allocation11_spill] sm:$0xff] %v7141_v8  ;;  %1630 = vrot.lane.b32.xlu1 %v7141_v8, %s6454_s23  ;;  %v1139_v25 = vmul.f32 %v6738_v37, %v1101_v19  ;;  %v746_v7 = vmul.f32 0.3275911, %v708_v6  ;;  %v1240_v16 = vmul.f32 %v1202_v62, %v708_v6  ;;  %v1203_v54 = vsub.f32 0.0, %v709_v34  ;;  %v10111_v37 = vld [vmem:[#allocation14_spill] sm:$0xff] }
 0x178   : > { %10108 = vst [vmem:[#allocation10_spill] sm:$0xff] %v7148_v21  ;;  %v1366_v45 = vsub.f32 1.0, %v1328_v24  ;;  %v988_v22 = vmul.f32 %v10098_v11, %v950_v41  ;;  %v875_v55 = vadd.f32 -1.4531521, %v837_v61  ;;  %v747_v3 = vmul.f32 0.3275911, %v709_v34 }
 0x179   : > { %v1329_v53 = vmul.f32 %v10109_v44, %v1139_v25  ;;  %v7156_v47 = vmul.f32 0.70710677, %v7148_v21  ;;  %v7160_v57 = vadd.f32 %v6847_v31, %v6597_v40  ;;  %v7168_v6 = vsel %vm632_vm1, 1.0, %v10027_v50 }
 0x17a   : > { %v7162_v23 = vpop.eup %6259  ;;  %v1404_v19 = vmul.f32 %v1366_v45, %v10111_v37  ;;  %10112 = vst [vmem:[#allocation33_spill] sm:$0xff] %v7168_v6  ;;  %v1026_v62 = vadd.f32 -0.28449672, %v988_v22  ;;  %v913_v24 = vmul.f32 %v10107_v27, %v875_v55  ;;  %v784_v61 = vadd.f32 1.0, %v746_v7  ;;  %v10113_v37 = vld [vmem:[#allocation15_spill] sm:$0xff]  ;;  %v10114_v55 = vld [vmem:[#allocation12_spill] sm:$0xff] }
 0x17b   : > { %10110 = vst [vmem:[#allocation23_spill] sm:$0xff] %v7160_v57  ;;  %v1367_v41 = vsub.f32 1.0, %v1329_v53  ;;  %v1310_v25 = vmul.f32 1.442695, %v1240_v16  ;;  %v710_v44 = vand.u32 2147483647, %v7156_v47  ;;  %v7172_v21 = vpop.eup %6261  ;;  %v1241_v8 = vmul.f32 %v1203_v54, %v709_v34 }
 0x17c   : > { %v1442_v31 = vadd.f32 1.0, %v1404_v19  ;;  %v1064_v56 = vmul.f32 %v10098_v11, %v1026_v62  ;;  %v951_v45 = vadd.f32 1.4214138, %v913_v24  ;;  %vm633_vm2 = vcmp.ge.f32.partialorder %v7123_v17, 0.0  ;;  %v7185_v34 = vpop.eup %6263 }
 0x17d   : > { %v1405_v29 = vmul.f32 %v1367_v41, %v10113_v37  ;;  %v785_v30 = vadd.f32 1.0, %v747_v3  ;;  %v7178_v22 = vmul.f32 0.70710677, %v7160_v57  ;;  %v838_v19 = vmul.f32 1.0614054, %v10116_v58  ;;  %v10118_v37 = vld [vmem:[#allocation13_spill] sm:$0xff] }
 0x17e   : > { %v7181_v7 = vmul.f32 %v1442_v31, %v10114_v55  ;;  %v1102_v16 = vadd.f32 0.2548296, %v1064_v56  ;;  %v989_v53 = vmul.f32 %v10107_v27, %v951_v45  ;;  %6267 = vrcp.f32 %v784_v61  ;;  %v10121_v61 = vld [vmem:[#allocation32_spill] sm:$0xff] }
 0x17f   : > { %v1443_v54 = vadd.f32 1.0, %v1405_v29  ;;  %v7188_v62 = vmul.f32 0.5, %v7107_v15  ;;  %v1204_v24 = vsub.f32 0.0, %v710_v44  ;;  %v1312_v3 = vmul.f32 1.442695, %v1241_v8 }
 0x180   : > { %10115 = vst [vmem:[#allocation24_spill] sm:$0xff] %v7181_v7  ;;  %1537 = vrot.lane.b32.xlu0 %v7181_v7, %s6454_s23  ;;  %v1140_v41 = vmul.f32 %v10098_v11, %v1102_v16  ;;  %v1027_v31 = vadd.f32 -0.28449672, %v989_v53  ;;  %v711_v56 = vand.u32 2147483647, %v7178_v22  ;;  %v7194_v45 = vpop.eup %6265  ;;  %6269 = vpow2.f32 %v1310_v25  ;;  %v10123_v7 = vld [vmem:[#allocation57_spill] sm:$0xff] }
 0x181   : > { %10117 = vst [vmem:[#allocation14_spill] sm:$0xff] %v7188_v62  ;;  %v7197_v55 = vmul.f32 %v1443_v54, %v10118_v37  ;;  %v7202_v15 = vsel %vm633_vm2, 1.0, %v10027_v50  ;;  %v876_v29 = vadd.f32 -1.4531521, %v838_v19  ;;  %6271 = vrcp.f32 %v785_v30  ;;  %v10122_v37 = vld [vmem:[#allocation40_spill] sm:$0xff]  ;;  %v10125_v62 = vld [vmem:[#allocation59_spill] sm:$0xff] }
 0x182   : > { %10120 = vst [vmem:[#allocation12_spill] sm:$0xff] %v7202_v15  ;;  %v1330_v8 = vmul.f32 %v10121_v61, %v1140_v41  ;;  %v1065_v11 = vmul.f32 %v10107_v27, %v1027_v31  ;;  %v748_v16 = vmul.f32 0.3275911, %v710_v44  ;;  %v1242_v53 = vmul.f32 %v1204_v24, %v710_v44  ;;  %v10127_v44 = vld [vmem:[#allocation18_spill] sm:$0xff] }
 0x183   : > { %10119 = vst [vmem:[#allocation15_spill] sm:$0xff] %v7197_v55  ;;  %1632 = vrot.lane.b32.xlu1 %v7197_v55, %s6454_s23  ;;  %v914_v54 = vmul.f32 %v10116_v58, %v876_v29  ;;  %v839_v25 = vmul.f32 1.0614054, %v10122_v37  ;;  %v7212_v17 = vadd.f32 %v10123_v7, %v6595_v39  ;;  %6273 = vpow2.f32 %v1312_v3 }
 0x184   : > { %v1368_v19 = vsub.f32 1.0, %v1330_v8  ;;  %v1103_v30 = vadd.f32 0.2548296, %v1065_v11  ;;  %v1205_v57 = vsub.f32 0.0, %v711_v56  ;;  %v749_v41 = vmul.f32 0.3275911, %v711_v56 }
 0x185   : > { %10124 = vst [vmem:[#allocation35_spill] sm:$0xff] %v7212_v17  ;;  %v952_v61 = vadd.f32 1.4214138, %v914_v54  ;;  %v877_v31 = vadd.f32 -1.4531521, %v839_v25  ;;  %v7216_v15 = vadd.f32 %v10125_v62, %v6597_v40  ;;  %vm634_vm3 = vcmp.ge.f32.partialorder %v7156_v47, 0.0 }
 0x186   : > { %v1406_v24 = vmul.f32 %v1368_v19, %v10127_v44  ;;  %v1141_v29 = vmul.f32 %v10107_v27, %v1103_v30  ;;  %v786_v55 = vadd.f32 1.0, %v748_v16  ;;  %v1314_v39 = vmul.f32 1.442695, %v1242_v53  ;;  %v10129_v54 = vld [vmem:[#allocation34_spill] sm:$0xff]  ;;  %v10132_v30 = vld [vmem:[#allocation16_spill] sm:$0xff] }
 0x187   : > { %10126 = vst [vmem:[#allocation13_spill] sm:$0xff] %v7216_v15  ;;  %v990_v7 = vmul.f32 %v10116_v58, %v952_v61  ;;  %v915_v3 = vmul.f32 %v10122_v37, %v877_v31  ;;  %v7224_v8 = vmul.f32 0.70710677, %v7212_v17  ;;  %v1243_v40 = vmul.f32 %v1205_v57, %v711_v56 }
 0x188   : > { %v1444_v11 = vadd.f32 1.0, %v1406_v24  ;;  %v1331_v25 = vmul.f32 %v10129_v54, %v1141_v29  ;;  %v7228_v62 = vmul.f32 0.70710677, %v7216_v15  ;;  %v7230_v19 = vpop.eup %6267  ;;  %v7233_v47 = vsel %vm634_vm3, 1.0, %v10027_v50 }
 0x189   : > { %10128 = vst [vmem:[#allocation32_spill] sm:$0xff] %v7224_v8  ;;  %10131 = vst [vmem:[#allocation57_spill] sm:$0xff] %v7233_v47  ;;  %v787_v27 = vadd.f32 1.0, %v749_v41  ;;  %v1028_v16 = vadd.f32 -0.28449672, %v990_v7  ;;  %6275 = vrcp.f32 %v786_v55  ;;  %v10134_v41 = vld [vmem:[#allocation19_spill] sm:$0xff] }
 0x18a   : > { %10130 = vst [vmem:[#allocation40_spill] sm:$0xff] %v7228_v62  ;;  %v953_v53 = vadd.f32 1.4214138, %v915_v3  ;;  %v7236_v61 = vmul.f32 %v1444_v11, %v10132_v30  ;;  %v1369_v31 = vsub.f32 1.0, %v1331_v25  ;;  %v712_v44 = vand.u32 2147483647, %v7224_v8  ;;  %v7239_v24 = vpop.eup %6269 }
 0x18b   : > { %6277 = vpow2.f32 %v1314_v39  ;;  %v1066_v57 = vmul.f32 %v10116_v58, %v1028_v16  ;;  %v713_v29 = vand.u32 2147483647, %v7228_v62  ;;  %v7244_v54 = vpop.eup %6271  ;;  %v1316_v3 = vmul.f32 1.442695, %v1243_v40  ;;  %v10135_v47 = vld [vmem:[#allocation47_spill] sm:$0xff]  ;;  %v10136_v40 = vld [vmem:[#allocation17_spill] sm:$0xff] }
 0x18c   : > { %10133 = vst [vmem:[#allocation59_spill] sm:$0xff] %v7236_v61  ;;  %v991_v56 = vmul.f32 %v10122_v37, %v953_v53  ;;  %1539 = vrot.lane.b32.xlu0 %v7236_v61, %s6454_s23  ;;  %v1407_v7 = vmul.f32 %v1369_v31, %v10134_v41  ;;  %v750_v55 = vmul.f32 0.3275911, %v712_v44  ;;  %v1206_v11 = vsub.f32 0.0, %v712_v44 }
 0x18d   : > { %6279 = vrcp.f32 %v787_v27  ;;  %v1104_v25 = vadd.f32 0.2548296, %v1066_v57  ;;  %v751_v39 = vmul.f32 0.3275911, %v713_v29  ;;  %v7249_v15 = vpop.eup %6273  ;;  %v1207_v62 = vsub.f32 0.0, %v713_v29 }
 0x18e   : > { %v1029_v30 = vadd.f32 -0.28449672, %v991_v56  ;;  %v1445_v16 = vadd.f32 1.0, %v1407_v7  ;;  %v788_v53 = vadd.f32 1.0, %v750_v55  ;;  %v1244_v17 = vmul.f32 %v1206_v11, %v712_v44  ;;  %v10138_v56 = vld [vmem:[#allocation39_spill] sm:$0xff]  ;;  %v10140_v44 = vld [vmem:[#allocation50_spill] sm:$0xff] }
 0x18f   : > { %v1142_v8 = vmul.f32 %v10116_v58, %v1104_v25  ;;  %v789_v61 = vadd.f32 1.0, %v751_v39  ;;  %v840_v31 = vmul.f32 1.0614054, %v10135_v47  ;;  %6281 = vpow2.f32 %v1316_v3  ;;  %v10141_v11 = vld [vmem:[#allocation55_spill] sm:$0xff] }
 0x190   : > { %v1067_v50 = vmul.f32 %v10122_v37, %v1029_v30  ;;  %v7255_v41 = vmul.f32 %v1445_v16, %v10136_v40  ;;  %v1318_v27 = vmul.f32 1.442695, %v1244_v17  ;;  %v1245_v57 = vmul.f32 %v1207_v62, %v713_v29  ;;  %v10142_v62 = vld [vmem:[#allocation58_spill] sm:$0xff] }
 0x191   : > { %v1332_v2 = vmul.f32 %v10138_v56, %v1142_v8  ;;  %6283 = vrcp.f32 %v788_v53  ;;  %v878_v7 = vadd.f32 -1.4531521, %v840_v31  ;;  %v841_v55 = vmul.f32 1.0614054, %v10140_v44  ;;  %v10144_v53 = vld [vmem:[#allocation21_spill] sm:$0xff]  ;;  %v10145_v40 = vld [vmem:[#allocation42_spill] sm:$0xff] }
 0x192   : > { %10137 = vst [vmem:[#allocation18_spill] sm:$0xff] %v7255_v41  ;;  %v1105_v9 = vadd.f32 0.2548296, %v1067_v50  ;;  %1634 = vrot.lane.b32.xlu1 %v7255_v41, %s6454_s23  ;;  %6285 = vrcp.f32 %v789_v61  ;;  %v7260_v58 = vmul.f32 1.442695, %v1245_v57  ;;  %vm1721_vm4 = vcmask 523264  }
 0x193   : > { %v842_v25 = vmul.f32 1.0614054, %v10141_v11  ;;  %v1370_v30 = vsub.f32 1.0, %v1332_v2  ;;  %v916_v17 = vmul.f32 %v10135_v47, %v878_v7  ;;  %v843_v8 = vmul.f32 1.0614054, %v10142_v62  ;;  %v7267_v50 = vpop.eup %6275 }
 0x194   : > { %10139 = vst [vmem:[#allocation34_spill] sm:$0xff] %v7260_v58  ;;  %v1143_v3 = vmul.f32 %v10122_v37, %v1105_v9  ;;  %6287 = vpow2.f32 %v1318_v27  ;;  %v879_v29 = vadd.f32 -1.4531521, %v841_v55  ;;  %v844_v61 = vmul.f32 1.0614054, %v6882_v60 }
 0x195   : > { %v880_v39 = vadd.f32 -1.4531521, %v842_v25  ;;  %v7270_v16 = vpop.eup %6277  ;;  %v1408_v31 = vmul.f32 %v1370_v30, %v10144_v53  ;;  %v954_v2 = vadd.f32 1.4214138, %v916_v17  ;;  %v881_v56 = vadd.f32 -1.4531521, %v843_v8 }
 0x196   : > { %10143 = vst [vmem:[#allocation16_spill] sm:$0xff] %v7270_v16  ;;  %v1333_v57 = vmul.f32 %v10145_v40, %v1143_v3  ;;  %v917_v9 = vmul.f32 %v10140_v44, %v879_v29  ;;  %v882_v7 = vadd.f32 -1.4531521, %v844_v61  ;;  %v845_v41 = vmul.f32 1.0614054, %v6890_v38  ;;  %v10146_v8 = vld [vmem:[#allocation20_spill] sm:$0xff] }
 0x197   : > { %v918_v37 = vmul.f32 %v10141_v11, %v880_v39  ;;  %v7277_v27 = vpop.eup %6279  ;;  %v1446_v55 = vadd.f32 1.0, %v1408_v31  ;;  %v992_v58 = vmul.f32 %v10135_v47, %v954_v2  ;;  %v919_v16 = vmul.f32 %v10142_v62, %v881_v56  ;;  %v10148_v39 = vld [vmem:[#allocation25_spill] sm:$0xff] }
 0x198   : > { %v1371_v25 = vsub.f32 1.0, %v1333_v57  ;;  %v955_v30 = vadd.f32 1.4214138, %v917_v9  ;;  %v920_v3 = vmul.f32 %v6882_v60, %v882_v7  ;;  %v883_v17 = vadd.f32 -1.4531521, %v845_v41 }
 0x199   : > { %v956_v53 = vadd.f32 1.4214138, %v918_v37  ;;  %v7283_v29 = vmul.f32 %v1446_v55, %v10146_v8  ;;  %v1030_v40 = vadd.f32 -0.28449672, %v992_v58  ;;  %v957_v6 = vadd.f32 1.4214138, %v919_v16  ;;  %v7286_v49 = vpop.eup %6281 }
 0x19a   : > { %v1409_v61 = vmul.f32 %v1371_v25, %v10148_v39  ;;  %10149 = vst [vmem:[#allocation47_spill] sm:$0xff] %v7286_v49  ;;  %v993_v31 = vmul.f32 %v10140_v44, %v955_v30  ;;  %v958_v2 = vadd.f32 1.4214138, %v920_v3  ;;  %v921_v56 = vmul.f32 %v6890_v38, %v883_v17  ;;  %v10152_v3 = vld [vmem:[#allocation22_spill] sm:$0xff] }
 0x19b   : > { %10147 = vst [vmem:[#allocation19_spill] sm:$0xff] %v7283_v29  ;;  %v994_v57 = vmul.f32 %v10141_v11, %v956_v53  ;;  %v7291_v9 = vpop.eup %6283  ;;  %1541 = vrot.lane.b32.xlu0 %v7283_v29, %s6454_s23  ;;  %v1068_v37 = vmul.f32 %v10135_v47, %v1030_v40  ;;  %v995_v58 = vmul.f32 %v10142_v62, %v957_v6  ;;  %v846_v16 = vmul.f32 1.0614054, %v6896_v48 }
 0x19c   : > { %10150 = vst [vmem:[#allocation17_spill] sm:$0xff] %v7291_v9  ;;  %v1447_v41 = vadd.f32 1.0, %v1409_v61  ;;  %v7298_v7 = vpop.eup %6285  ;;  %v1031_v55 = vadd.f32 -0.28449672, %v993_v31  ;;  %v996_v30 = vmul.f32 %v6882_v60, %v958_v2  ;;  %v959_v53 = vadd.f32 1.4214138, %v921_v56 }
 0x19d   : > { %10151 = vst [vmem:[#allocation39_spill] sm:$0xff] %v7298_v7  ;;  %v1032_v25 = vadd.f32 -0.28449672, %v994_v57  ;;  %v1106_v8 = vadd.f32 0.2548296, %v1068_v37  ;;  %vm635_vm5 = vcmp.ge.f32.partialorder %v7178_v22, 0.0 }
 0x19e   : > { %v7302_v17 = vmul.f32 %v1447_v41, %v10152_v3  ;;  %v1033_v39 = vadd.f32 -0.28449672, %v995_v58  ;;  %v884_v29 = vadd.f32 -1.4531521, %v846_v16  ;;  %v7304_v61 = vpop.eup %6287  ;;  %v1069_v40 = vmul.f32 %v10140_v44, %v1031_v55  ;;  %v10155_v55 = vld [vmem:[#allocation49_spill] sm:$0xff] }
 0x19f   : > { %10154 = vst [vmem:[#allocation55_spill] sm:$0xff] %v7304_v61  ;;  %v1070_v6 = vmul.f32 %v10141_v11, %v1032_v25  ;;  %v1034_v49 = vadd.f32 -0.28449672, %v996_v30  ;;  %v997_v7 = vmul.f32 %v6890_v38, %v959_v53  ;;  %v1144_v31 = vmul.f32 %v10135_v47, %v1106_v8 }
 0x1a0   : > { %10153 = vst [vmem:[#allocation50_spill] sm:$0xff] %v7302_v17  ;;  %1636 = vrot.lane.b32.xlu1 %v7302_v17, %s6454_s23  ;;  %v1071_v57 = vmul.f32 %v10142_v62, %v1033_v39  ;;  %v922_v2 = vmul.f32 %v6896_v48, %v884_v29  ;;  %v847_v56 = vmul.f32 1.0614054, %v6911_v32  ;;  %v1107_v41 = vadd.f32 0.2548296, %v1069_v40 }
 0x1a1   : > { %v1108_v37 = vadd.f32 0.2548296, %v1070_v6  ;;  %v1072_v58 = vmul.f32 %v6882_v60, %v1034_v49  ;;  %v1035_v16 = vadd.f32 -0.28449672, %v997_v7  ;;  %v1334_v25 = vmul.f32 %v10155_v55, %v1144_v31  ;;  %v10156_v7 = vld [vmem:[#allocation51_spill] sm:$0xff]  ;;  %v10157_v31 = vld [vmem:[#allocation56_spill] sm:$0xff] }
 0x1a2   : > { %v1109_v30 = vadd.f32 0.2548296, %v1071_v57  ;;  %v960_v53 = vadd.f32 1.4214138, %v922_v2  ;;  %v885_v3 = vadd.f32 -1.4531521, %v847_v56  ;;  %v1145_v17 = vmul.f32 %v10140_v44, %v1107_v41 }
 0x1a3   : > { %v1146_v47 = vmul.f32 %v10141_v11, %v1108_v37  ;;  %v1110_v8 = vadd.f32 0.2548296, %v1072_v58  ;;  %v1073_v39 = vmul.f32 %v6890_v38, %v1035_v16  ;;  %v1372_v29 = vsub.f32 1.0, %v1334_v25  ;;  %v10158_v44 = vld [vmem:[#allocation28_spill] sm:$0xff]  ;;  %v10159_v11 = vld [vmem:[#allocation63_spill] sm:$0xff] }
 0x1a4   : > { %v1147_v61 = vmul.f32 %v10142_v62, %v1109_v30  ;;  %v998_v40 = vmul.f32 %v6896_v48, %v960_v53  ;;  %v923_v49 = vmul.f32 %v6911_v32, %v885_v3  ;;  %v1335_v6 = vmul.f32 %v10156_v7, %v1145_v17  ;;  %v10160_v62 = vld [vmem:[#allocation66_spill] sm:$0xff] }
 0x1a5   : > { %v1336_v57 = vmul.f32 %v10157_v31, %v1146_v47  ;;  %v1148_v2 = vmul.f32 %v6882_v60, %v1110_v8  ;;  %v1111_v56 = vadd.f32 0.2548296, %v1073_v39  ;;  %v1410_v41 = vmul.f32 %v1372_v29, %v10158_v44  ;;  %v10161_v60 = vld [vmem:[#allocation29_spill] sm:$0xff]  ;;  %v10165_v31 = vld [vmem:[#allocation38_spill] sm:$0xff] }
 0x1a6   : > { %v1337_v37 = vmul.f32 %v10159_v11, %v1147_v61  ;;  %v1036_v58 = vadd.f32 -0.28449672, %v998_v40  ;;  %v961_v16 = vadd.f32 1.4214138, %v923_v49  ;;  %v1373_v55 = vsub.f32 1.0, %v1335_v6  ;;  %v10162_v39 = vld [vmem:[#allocation37_spill] sm:$0xff] }
 0x1a7   : > { %v1374_v25 = vsub.f32 1.0, %v1336_v57  ;;  %v1338_v30 = vmul.f32 %v10160_v62, %v1148_v2  ;;  %v1149_v53 = vmul.f32 %v6890_v38, %v1111_v56  ;;  %v1448_v3 = vadd.f32 1.0, %v1410_v41  ;;  %v10163_v61 = vld [vmem:[#allocation67_spill] sm:$0xff]  ;;  %v10164_v49 = vld [vmem:[#allocation26_spill] sm:$0xff]  ;;  %v10166_v41 = vld [vmem:[#allocation44_spill] sm:$0xff] }
 0x1a8   : > { %v1375_v9 = vsub.f32 1.0, %v1337_v37  ;;  %v1074_v17 = vmul.f32 %v6896_v48, %v1036_v58  ;;  %v999_v47 = vmul.f32 %v6911_v32, %v961_v16  ;;  %v1411_v8 = vmul.f32 %v1373_v55, %v10161_v60  ;;  %v10167_v62 = vld [vmem:[#allocation27_spill] sm:$0xff]  ;;  %v10170_v60 = vld [vmem:[#allocation36_spill] sm:$0xff] }
 0x1a9   : > { %v1412_v29 = vmul.f32 %v1374_v25, %v10162_v39  ;;  %v1376_v7 = vsub.f32 1.0, %v1338_v30  ;;  %v1339_v40 = vmul.f32 %v10163_v61, %v1149_v53  ;;  %v7336_v6 = vmul.f32 %v1448_v3, %v10164_v49  ;;  %v10171_v39 = vld [vmem:[#allocation71_spill] sm:$0xff]  ;;  %v10172_v61 = vld [vmem:[#allocation41_spill] sm:$0xff] }
 0x1aa   : > { %v1413_v57 = vmul.f32 %v1375_v9, %v10165_v31  ;;  %v1112_v2 = vadd.f32 0.2548296, %v1074_v17  ;;  %v1037_v38 = vadd.f32 -0.28449672, %v999_v47  ;;  %v1449_v56 = vadd.f32 1.0, %v1411_v8  ;;  %v10168_v9 = vld [vmem:[#allocation31_spill] sm:$0xff] }
 0x1ab   : > { %v1450_v44 = vadd.f32 1.0, %v1412_v29  ;;  %v1414_v11 = vmul.f32 %v1376_v7, %v10166_v41  ;;  %v1377_v37 = vsub.f32 1.0, %v1339_v40  ;;  %1543 = vrot.lane.b32.xlu0 %v7336_v6, %s6454_s23  ;;  %v848_v25 = vmul.f32 1.0614054, %v6925_v18  ;;  %v10169_v17 = vld [vmem:[#allocation45_spill] sm:$0xff]  ;;  %v10173_v41 = vld [vmem:[#allocation43_spill] sm:$0xff] }
 0x1ac   : > { %v1451_v58 = vadd.f32 1.0, %v1413_v57  ;;  %v1150_v16 = vmul.f32 %v6896_v48, %v1112_v2  ;;  %v1075_v55 = vmul.f32 %v6911_v32, %v1037_v38  ;;  %v7346_v30 = vmul.f32 %v1449_v56, %v10167_v62  ;;  %v10175_v62 = vld [vmem:[#allocation73_spill] sm:$0xff] }
 0x1ad   : > { %v7349_v53 = vmul.f32 %v1450_v44, %v10168_v9  ;;  %v1452_v3 = vadd.f32 1.0, %v1414_v11  ;;  %v1415_v47 = vmul.f32 %v1377_v37, %v10169_v17  ;;  %v886_v48 = vadd.f32 -1.4531521, %v848_v25 }
 0x1ae   : > { %v7353_v8 = vmul.f32 %v1451_v58, %v10170_v60  ;;  %v1340_v29 = vmul.f32 %v10171_v39, %v1150_v16  ;;  %v1113_v7 = vadd.f32 0.2548296, %v1075_v55  ;;  %1638 = vrot.lane.b32.xlu1 %v7346_v30, %s6454_s23  ;;  %v849_v31 = vmul.f32 1.0614054, %v6940_v0  ;;  %v10174_v55 = vld [vmem:[#allocation53_spill] sm:$0xff] }
 0x1af   : > { %v7359_v40 = vmul.f32 %v1452_v3, %v10172_v61  ;;  %v1453_v49 = vadd.f32 1.0, %v1415_v47  ;;  %v850_v57 = vmul.f32 1.0614054, %v6953_v51  ;;  %1545 = vrot.lane.b32.xlu0 %v7349_v53, %s6454_s23  ;;  %v924_v56 = vmul.f32 %v6925_v18, %v886_v48 }
 0x1b0   : > { %v1378_v2 = vsub.f32 1.0, %v1340_v29  ;;  %v1151_v38 = vmul.f32 %v6911_v32, %v1113_v7  ;;  %v851_v44 = vmul.f32 1.0614054, %v6967_v43  ;;  %v887_v37 = vadd.f32 -1.4531521, %v849_v31 }
 0x1b1   : > { %v7369_v11 = vmul.f32 %v1453_v49, %v10173_v41  ;;  %v888_v58 = vadd.f32 -1.4531521, %v850_v57  ;;  %v852_v16 = vmul.f32 1.0614054, %v6985_v52  ;;  %v962_v3 = vadd.f32 1.4214138, %v924_v56 }
 0x1b2   : > { %v1416_v25 = vmul.f32 %v1378_v2, %v10174_v55  ;;  %v1341_v9 = vmul.f32 %v10175_v62, %v1151_v38  ;;  %v889_v17 = vadd.f32 -1.4531521, %v851_v44  ;;  %1640 = vrot.lane.b32.xlu1 %v7353_v8, %s6454_s23  ;;  %v925_v32 = vmul.f32 %v6940_v0, %v887_v37  ;;  %v10176_v38 = vld [vmem:[#allocation46_spill] sm:$0xff] }
 0x1b3   : > { %v926_v47 = vmul.f32 %v6953_v51, %v888_v58  ;;  %v890_v60 = vadd.f32 -1.4531521, %v852_v16  ;;  %v853_v39 = vmul.f32 1.0614054, %v6999_v4  ;;  %1547 = vrot.lane.b32.xlu0 %v7359_v40, %s6454_s23  ;;  %v1000_v48 = vmul.f32 %v6925_v18, %v962_v3  ;;  %v10177_v44 = vld [vmem:[#allocation54_spill] sm:$0xff] }
 0x1b4   : > { %v1454_v29 = vadd.f32 1.0, %v1416_v25  ;;  %v1379_v7 = vsub.f32 1.0, %v1341_v9  ;;  %v927_v61 = vmul.f32 %v6967_v43, %v889_v17  ;;  %v963_v49 = vadd.f32 1.4214138, %v925_v32 }
 0x1b5   : > { %v964_v31 = vadd.f32 1.4214138, %v926_v47  ;;  %v928_v57 = vmul.f32 %v6985_v52, %v890_v60  ;;  %v891_v2 = vadd.f32 -1.4531521, %v853_v39  ;;  %v1038_v37 = vadd.f32 -0.28449672, %v1000_v48 }
 0x1b6   : > { %v7385_v56 = vmul.f32 %v1454_v29, %v10176_v38  ;;  %v1417_v41 = vmul.f32 %v1379_v7, %v10177_v44  ;;  %v965_v58 = vadd.f32 1.4214138, %v927_v61  ;;  %1642 = vrot.lane.b32.xlu1 %v7369_v11, %s6454_s23  ;;  %v1001_v16 = vmul.f32 %v6940_v0, %v963_v49  ;;  %v10178_v7 = vld [vmem:[#allocation52_spill] sm:$0xff] }
 0x1b7   : > { %v1002_v55 = vmul.f32 %v6953_v51, %v964_v31  ;;  %v966_v25 = vadd.f32 1.4214138, %v928_v57  ;;  %v929_v62 = vmul.f32 %v6999_v4, %v891_v2  ;;  %v1076_v3 = vmul.f32 %v6925_v18, %v1038_v37 }
 0x1b8   : > { %1549 = vrot.lane.b32.xlu0 %v7385_v56, %s6454_s23  ;;  %v1455_v9 = vadd.f32 1.0, %v1417_v41  ;;  %v1003_v17 = vmul.f32 %v6967_v43, %v965_v58  ;;  %v854_v32 = vmul.f32 1.0614054, %v7045_v63  ;;  %v1039_v47 = vadd.f32 -0.28449672, %v1001_v16 }
 0x1b9   : > { %v1040_v60 = vadd.f32 -0.28449672, %v1002_v55  ;;  %v1004_v39 = vmul.f32 %v6985_v52, %v966_v25  ;;  %v967_v29 = vadd.f32 1.4214138, %v929_v62  ;;  %v1114_v61 = vadd.f32 0.2548296, %v1076_v3 }
 0x1ba   : > { %v7400_v48 = vmul.f32 %v1455_v9, %v10178_v7  ;;  %v1041_v49 = vadd.f32 -0.28449672, %v1003_v17  ;;  %v892_v31 = vadd.f32 -1.4531521, %v854_v32  ;;  %v1077_v57 = vmul.f32 %v6940_v0, %v1039_v47 }
 0x1bb   : > { %v1078_v2 = vmul.f32 %v6953_v51, %v1040_v60  ;;  %v1042_v38 = vadd.f32 -0.28449672, %v1004_v39  ;;  %v1005_v44 = vmul.f32 %v6999_v4, %v967_v29  ;;  %v1152_v41 = vmul.f32 %v6925_v18, %v1114_v61 }
 0x1bc   : > { %1644 = vrot.lane.b32.xlu1 %v7400_v48, %s6454_s23  ;;  %v1079_v37 = vmul.f32 %v6967_v43, %v1041_v49  ;;  %v930_v58 = vmul.f32 %v7045_v63, %v892_v31  ;;  %v855_v16 = vmul.f32 1.0614054, %v7049_v14  ;;  %v1115_v55 = vadd.f32 0.2548296, %v1077_v57  ;;  %v10179_v57 = vld [vmem:[#allocation78_spill] sm:$0xff] }
 0x1bd   : > { %v1116_v25 = vadd.f32 0.2548296, %v1078_v2  ;;  %v1080_v62 = vmul.f32 %v6985_v52, %v1042_v38  ;;  %v1043_v9 = vadd.f32 -0.28449672, %v1005_v44  ;;  %v1342_v3 = vmul.f32 %v6930_v42, %v1152_v41  ;;  %v10180_v42 = vld [vmem:[#allocation80_spill] sm:$0xff] }
 0x1be   : > { %v1117_v17 = vadd.f32 0.2548296, %v1079_v37  ;;  %v968_v32 = vadd.f32 1.4214138, %v930_v58  ;;  %v893_v47 = vadd.f32 -1.4531521, %v855_v16  ;;  %v1153_v60 = vmul.f32 %v6940_v0, %v1115_v55 }
 0x1bf   : > { %v1154_v18 = vmul.f32 %v6953_v51, %v1116_v25  ;;  %v1118_v39 = vadd.f32 0.2548296, %v1080_v62  ;;  %v1081_v29 = vmul.f32 %v6999_v4, %v1043_v9  ;;  %v1380_v7 = vsub.f32 1.0, %v1342_v3  ;;  %v10181_v0 = vld [vmem:[#allocation61_spill] sm:$0xff]  ;;  %v10182_v51 = vld [vmem:[#allocation82_spill] sm:$0xff] }
 0x1c0   : > { %v1155_v61 = vmul.f32 %v6967_v43, %v1117_v17  ;;  %v1006_v49 = vmul.f32 %v7045_v63, %v968_v32  ;;  %v931_v31 = vmul.f32 %v7049_v14, %v893_v47  ;;  %v1343_v2 = vmul.f32 %v10179_v57, %v1153_v60 }
 0x1c1   : > { %v1344_v38 = vmul.f32 %v10180_v42, %v1154_v18  ;;  %v1156_v44 = vmul.f32 %v6985_v52, %v1118_v39  ;;  %v1119_v41 = vadd.f32 0.2548296, %v1081_v29  ;;  %v1418_v37 = vmul.f32 %v1380_v7, %v10181_v0  ;;  %v10183_v52 = vld [vmem:[#allocation64_spill] sm:$0xff] }
 0x1c2   : > { %v1345_v58 = vmul.f32 %v10182_v51, %v1155_v61  ;;  %v1044_v16 = vadd.f32 -0.28449672, %v1006_v49  ;;  %v969_v55 = vadd.f32 1.4214138, %v931_v31  ;;  %v1381_v25 = vsub.f32 1.0, %v1343_v2  ;;  %v10184_v18 = vld [vmem:[#allocation68_spill] sm:$0xff] }
 0x1c3   : > { %v1382_v62 = vsub.f32 1.0, %v1344_v38  ;;  %v1346_v43 = vmul.f32 %v6993_v26, %v1156_v44  ;;  %v1157_v9 = vmul.f32 %v6999_v4, %v1119_v41  ;;  %v1456_v3 = vadd.f32 1.0, %v1418_v37  ;;  %v10185_v61 = vld [vmem:[#allocation60_spill] sm:$0xff]  ;;  %v10186_v31 = vld [vmem:[#allocation70_spill] sm:$0xff]  ;;  %v10187_v38 = vld [vmem:[#allocation75_spill] sm:$0xff] }
 0x1c4   : > { %v1383_v17 = vsub.f32 1.0, %v1345_v58  ;;  %v1082_v32 = vmul.f32 %v7045_v63, %v1044_v16  ;;  %v1007_v47 = vmul.f32 %v7049_v14, %v969_v55  ;;  %v1419_v60 = vmul.f32 %v1381_v25, %v10183_v52  ;;  %v10188_v58 = vld [vmem:[#allocation62_spill] sm:$0xff]  ;;  %v10189_v55 = vld [vmem:[#allocation65_spill] sm:$0xff]  ;;  %v10192_v52 = vld [vmem:[#allocation72_spill] sm:$0xff] }
 0x1c5   : > { %v1420_v39 = vmul.f32 %v1382_v62, %v10184_v18  ;;  %v1384_v29 = vsub.f32 1.0, %v1346_v43  ;;  %v1347_v7 = vmul.f32 %v7007_v59, %v1157_v9  ;;  %v7432_v49 = vmul.f32 %v1456_v3, %v10185_v61  ;;  %v10190_v43 = vld [vmem:[#allocation76_spill] sm:$0xff]  ;;  %v10191_v3 = vld [vmem:[#allocation69_spill] sm:$0xff] }
 0x1c6   : > { %v1421_v26 = vmul.f32 %v1383_v17, %v10186_v31  ;;  %v1120_v57 = vadd.f32 0.2548296, %v1082_v32  ;;  %v1045_v4 = vadd.f32 -0.28449672, %v1007_v47  ;;  %v1457_v2 = vadd.f32 1.0, %v1419_v60 }
 0x1c7   : > { %v1458_v42 = vadd.f32 1.0, %v1420_v39  ;;  %v1422_v44 = vmul.f32 %v1384_v29, %v10187_v38  ;;  %v1385_v41 = vsub.f32 1.0, %v1347_v7  ;;  %1551 = vrot.lane.b32.xlu0 %v7432_v49, %s6454_s23  ;;  %v856_v51 = vmul.f32 1.0614054, %v7099_v5  ;;  %v10194_v38 = vld [vmem:[#allocation81_spill] sm:$0xff] }
 0x1c8   : > { %v1459_v0 = vadd.f32 1.0, %v1421_v26  ;;  %v1158_v37 = vmul.f32 %v7045_v63, %v1120_v57  ;;  %v1083_v59 = vmul.f32 %v7049_v14, %v1045_v4  ;;  %v7442_v16 = vmul.f32 %v1457_v2, %v10188_v58  ;;  %v10193_v26 = vld [vmem:[#allocation74_spill] sm:$0xff] }
 0x1c9   : > { %v7445_v25 = vmul.f32 %v1458_v42, %v10189_v55  ;;  %v1460_v62 = vadd.f32 1.0, %v1422_v44  ;;  %v1423_v9 = vmul.f32 %v1385_v41, %v10190_v43  ;;  %v894_v63 = vadd.f32 -1.4531521, %v856_v51 }
 0x1ca   : > { %v7449_v17 = vmul.f32 %v1459_v0, %v10191_v3  ;;  %v1348_v32 = vmul.f32 %v7054_v10, %v1158_v37  ;;  %v1121_v47 = vadd.f32 0.2548296, %v1083_v59  ;;  %1646 = vrot.lane.b32.xlu1 %v7442_v16, %s6454_s23  ;;  %v857_v39 = vmul.f32 1.0614054, %v7110_v28 }
 0x1cb   : > { %v7455_v60 = vmul.f32 %v1460_v62, %v10192_v52  ;;  %v1461_v18 = vadd.f32 1.0, %v1423_v9  ;;  %v858_v29 = vmul.f32 1.0614054, %v7162_v23  ;;  %1553 = vrot.lane.b32.xlu0 %v7445_v25, %s6454_s23  ;;  %v932_v10 = vmul.f32 %v7099_v5, %v894_v63  ;;  %v10195_v63 = vld [vmem:[#allocation77_spill] sm:$0xff] }
 0x1cc   : > { %v1386_v7 = vsub.f32 1.0, %v1348_v32  ;;  %v1159_v61 = vmul.f32 %v7049_v14, %v1121_v47  ;;  %v859_v31 = vmul.f32 1.0614054, %v7185_v34  ;;  %v895_v4 = vadd.f32 -1.4531521, %v857_v39 }
 0x1cd   : > { %v7465_v57 = vmul.f32 %v1461_v18, %v10193_v26  ;;  %v896_v2 = vadd.f32 -1.4531521, %v858_v29  ;;  %v860_v42 = vmul.f32 1.0614054, %v7230_v19  ;;  %v970_v0 = vadd.f32 1.4214138, %v932_v10 }
 0x1ce   : > { %v1424_v44 = vmul.f32 %v1386_v7, %v10194_v38  ;;  %v1349_v41 = vmul.f32 %v7061_v33, %v1159_v61  ;;  %v897_v37 = vadd.f32 -1.4531521, %v859_v31  ;;  %1648 = vrot.lane.b32.xlu1 %v7449_v17, %s6454_s23  ;;  %v933_v14 = vmul.f32 %v7110_v28, %v895_v4 }
 0x1cf   : > { %v934_v59 = vmul.f32 %v7162_v23, %v896_v2  ;;  %v898_v51 = vadd.f32 -1.4531521, %v860_v42  ;;  %v861_v58 = vmul.f32 1.0614054, %v7244_v54  ;;  %1555 = vrot.lane.b32.xlu0 %v7455_v60, %s6454_s23  ;;  %v1008_v43 = vmul.f32 %v7099_v5, %v970_v0  ;;  %v10196_v0 = vld [vmem:[#allocation79_spill] sm:$0xff] }
 0x1d0   : > { %v1462_v55 = vadd.f32 1.0, %v1424_v44  ;;  %v1387_v62 = vsub.f32 1.0, %v1349_v41  ;;  %v935_v33 = vmul.f32 %v7185_v34, %v897_v37  ;;  %v971_v9 = vadd.f32 1.4214138, %v933_v14 }
 0x1d1   : > { %v972_v3 = vadd.f32 1.4214138, %v934_v59  ;;  %v936_v32 = vmul.f32 %v7230_v19, %v898_v51  ;;  %v899_v47 = vadd.f32 -1.4531521, %v861_v58  ;;  %v1046_v39 = vadd.f32 -0.28449672, %v1008_v43 }
 0x1d2   : > { %v7481_v52 = vmul.f32 %v1462_v55, %v10195_v63  ;;  %v1425_v18 = vmul.f32 %v1387_v62, %v7004_v12  ;;  %v973_v29 = vadd.f32 1.4214138, %v935_v33  ;;  %1650 = vrot.lane.b32.xlu1 %v7465_v57, %s6454_s23  ;;  %v1009_v7 = vmul.f32 %v7110_v28, %v971_v9 }
 0x1d3   : > { %v1010_v61 = vmul.f32 %v7162_v23, %v972_v3  ;;  %v974_v10 = vadd.f32 1.4214138, %v936_v32  ;;  %v937_v31 = vmul.f32 %v7244_v54, %v899_v47  ;;  %v1084_v4 = vmul.f32 %v7099_v5, %v1046_v39 }
 0x1d4   : > { %1557 = vrot.lane.b32.xlu0 %v7481_v52, %s6454_s23  ;;  %v1463_v26 = vadd.f32 1.0, %v1425_v18  ;;  %v1011_v12 = vmul.f32 %v7185_v34, %v973_v29  ;;  %v862_v2 = vmul.f32 1.0614054, %v7267_v50  ;;  %v1047_v42 = vadd.f32 -0.28449672, %v1009_v7 }
 0x1d5   : > { %v1048_v38 = vadd.f32 -0.28449672, %v1010_v61  ;;  %v1012_v44 = vmul.f32 %v7230_v19, %v974_v10  ;;  %v975_v41 = vadd.f32 1.4214138, %v937_v31  ;;  %v1122_v14 = vadd.f32 0.2548296, %v1084_v4 }
 0x1d6   : > { %v7496_v37 = vmul.f32 %v1463_v26, %v10196_v0  ;;  %v1049_v59 = vadd.f32 -0.28449672, %v1011_v12  ;;  %v900_v51 = vadd.f32 -1.4531521, %v862_v2  ;;  %v1085_v58 = vmul.f32 %v7110_v28, %v1047_v42 }
 0x1d7   : > { %v1086_v55 = vmul.f32 %v7162_v23, %v1048_v38  ;;  %v1050_v62 = vadd.f32 -0.28449672, %v1012_v44  ;;  %v1013_v43 = vmul.f32 %v7244_v54, %v975_v41  ;;  %v1160_v33 = vmul.f32 %v7099_v5, %v1122_v14  ;;  %v7515_v44 = vpop.permute.xlu0 %1531 }
 0x1d8   : > { %1652 = vrot.lane.b32.xlu1 %v7496_v37, %s6454_s23  ;;  %v1087_v9 = vmul.f32 %v7185_v34, %v1049_v59  ;;  %v938_v3 = vmul.f32 %v7267_v50, %v900_v51  ;;  %v863_v32 = vmul.f32 1.0614054, %v7277_v27  ;;  %v1123_v47 = vadd.f32 0.2548296, %v1085_v58 }
 0x1d9   : > { %v1124_v63 = vadd.f32 0.2548296, %v1086_v55  ;;  %v1088_v18 = vmul.f32 %v7230_v19, %v1050_v62  ;;  %v1051_v39 = vadd.f32 -0.28449672, %v1013_v43  ;;  %v1350_v29 = vmul.f32 %v7102_v35, %v1160_v33 }
 0x1da   : > { %v1125_v7 = vadd.f32 0.2548296, %v1087_v9  ;;  %v976_v61 = vadd.f32 1.4214138, %v938_v3  ;;  %v901_v10 = vadd.f32 -1.4531521, %v863_v32  ;;  %v1161_v31 = vmul.f32 %v7110_v28, %v1123_v47 }
 0x1db   : > { %v1162_v5 = vmul.f32 %v7162_v23, %v1124_v63  ;;  %v1126_v26 = vadd.f32 0.2548296, %v1088_v18  ;;  %v1089_v4 = vmul.f32 %v7244_v54, %v1051_v39  ;;  %v1388_v12 = vsub.f32 1.0, %v1350_v29  ;;  %v1534_v18 = vpop.permute.xlu0 %1533 }
 0x1dc   : > { %v1163_v2 = vmul.f32 %v7185_v34, %v1125_v7  ;;  %v1014_v42 = vmul.f32 %v7267_v50, %v976_v61  ;;  %v939_v38 = vmul.f32 %v7277_v27, %v901_v10  ;;  %v1351_v35 = vmul.f32 %v7138_v46, %v1161_v31  ;;  %v1627_v34 = vpop.permute.xlu1 %1626  ;;  %v10198_v7 = vld [vmem:[#allocation33_spill] sm:$0xff] }
 0x1dd   : > { %v1352_v41 = vmul.f32 %v7172_v21, %v1162_v5  ;;  %v1164_v28 = vmul.f32 %v7230_v19, %v1126_v26  ;;  %v1127_v0 = vadd.f32 0.2548296, %v1089_v4  ;;  %v1426_v23 = vmul.f32 %v1388_v12, %v7041_v13  ;;  %v10200_v26 = vld [vmem:[#allocation86_spill] sm:$0xff]  ;;  %v10201_v12 = vld [vmem:[#allocation88_spill] sm:$0xff] }
 0x1de   : > { %v1353_v14 = vmul.f32 %v7194_v45, %v1163_v2  ;;  %v1052_v59 = vadd.f32 -0.28449672, %v1014_v42  ;;  %v977_v51 = vadd.f32 1.4214138, %v939_v38  ;;  %v1389_v58 = vsub.f32 1.0, %v1351_v35  ;;  %v10202_v38 = vld [vmem:[#allocation12_spill] sm:$0xff] }
 0x1df   : > { %v1390_v55 = vsub.f32 1.0, %v1352_v41  ;;  %v1354_v62 = vmul.f32 %v7239_v24, %v1164_v28  ;;  %v1165_v43 = vmul.f32 %v7244_v54, %v1127_v0  ;;  %v1464_v33 = vadd.f32 1.0, %v1426_v23  ;;  %v10197_v54 = vld [vmem:[#allocation30_spill] sm:$0xff]  ;;  %v10203_v41 = vld [vmem:[#allocation89_spill] sm:$0xff]  ;;  %v10204_v0 = vld [vmem:[#allocation16_spill] sm:$0xff] }
 0x1e0   : > { %v1391_v46 = vsub.f32 1.0, %v1353_v14  ;;  %v1090_v21 = vmul.f32 %v7267_v50, %v1052_v59  ;;  %v1015_v19 = vmul.f32 %v7277_v27, %v977_v51  ;;  %v1427_v9 = vmul.f32 %v1389_v58, %v7069_v36  ;;  %v1629_v5 = vpop.permute.xlu1 %1628  ;;  %v10205_v59 = vld [vmem:[#allocation9_spill] sm:$0xff] }
 0x1e1   : > { %v1428_v13 = vmul.f32 %v1390_v55, %v7118_v20  ;;  %v1392_v45 = vsub.f32 1.0, %v1354_v62  ;;  %v1355_v3 = vmul.f32 %v7249_v15, %v1165_v43  ;;  %v7531_v24 = vmul.f32 %v1464_v33, %v7020_v1  ;;  %v10199_v1 = vld [vmem:[#allocation17_spill] sm:$0xff]  ;;  %v10206_v55 = vld [vmem:[#allocation39_spill] sm:$0xff] }
 0x1e2   : > { %v1429_v32 = vmul.f32 %v1391_v46, %v10197_v54  ;;  %v1128_v47 = vadd.f32 0.2548296, %v1090_v21  ;;  %v1053_v63 = vadd.f32 -0.28449672, %v1015_v19  ;;  %v1465_v39 = vadd.f32 1.0, %v1427_v9  ;;  %v10207_v43 = vld [vmem:[#allocation83_spill] sm:$0xff] }
 0x1e3   : > { %v1466_v29 = vadd.f32 1.0, %v1428_v13  ;;  %v1430_v36 = vmul.f32 %v1392_v45, %v10198_v7  ;;  %v1393_v61 = vsub.f32 1.0, %v1355_v3  ;;  %1559 = vrot.lane.b32.xlu0 %v7531_v24, %s6454_s23  ;;  %v864_v31 = vmul.f32 1.0614054, %v10199_v1  ;;  %v10208_v9 = vld [vmem:[#allocation84_spill] sm:$0xff]  ;;  %v10209_v3 = vld [vmem:[#allocation14_spill] sm:$0xff] }
 0x1e4   : > { %v1467_v20 = vadd.f32 1.0, %v1429_v32  ;;  %v1166_v15 = vmul.f32 %v7267_v50, %v1128_v47  ;;  %v1091_v10 = vmul.f32 %v7277_v27, %v1053_v63  ;;  %v7541_v4 = vmul.f32 %v1465_v39, %v10200_v26  ;;  %v1536_v45 = vpop.permute.xlu0 %1535  ;;  %v10210_v47 = vld [vmem:[#allocation85_spill] sm:$0xff]  ;;  %v10211_v39 = vld [vmem:[#allocation87_spill] sm:$0xff] }
 0x1e5   : > { %v7544_v2 = vmul.f32 %v1466_v29, %v10201_v12  ;;  %v1468_v42 = vadd.f32 1.0, %v1430_v36  ;;  %v1431_v35 = vmul.f32 %v1393_v61, %v10202_v38  ;;  %v902_v14 = vadd.f32 -1.4531521, %v864_v31  ;;  %v10213_v36 = vld [vmem:[#allocation47_spill] sm:$0xff]  ;;  %v10214_v31 = vld [vmem:[#allocation48_spill] sm:$0xff] }
 0x1e6   : > { %v7548_v28 = vmul.f32 %v1467_v20, %v10203_v41  ;;  %v1356_v23 = vmul.f32 %v10204_v0, %v1166_v15  ;;  %v1129_v50 = vadd.f32 0.2548296, %v1091_v10  ;;  %1654 = vrot.lane.b32.xlu1 %v7541_v4, %s6454_s23  ;;  %v865_v62 = vmul.f32 1.0614054, %v10206_v55  ;;  %v10215_v12 = vld [vmem:[#allocation11_spill] sm:$0xff] }
 0x1e7   : > { %v7554_v51 = vmul.f32 %v1468_v42, %v10205_v59  ;;  %v1469_v58 = vadd.f32 1.0, %v1431_v35  ;;  %v1588_v33 = vmax.f32 %v10207_v43, %v7515_v44  ;;  %1561 = vrot.lane.b32.xlu0 %v7544_v2, %s6454_s23  ;;  %v940_v19 = vmul.f32 %v10199_v1, %v902_v14  ;;  %v10212_v44 = vld [vmem:[#allocation57_spill] sm:$0xff]  ;;  %v10218_v59 = vld [vmem:[#allocation34_spill] sm:$0xff] }
 0x1e8   : > { %v1394_v46 = vsub.f32 1.0, %v1356_v23  ;;  %v1167_v21 = vmul.f32 %v7277_v27, %v1129_v50  ;;  %v1683_v13 = vmax.f32 %v10208_v9, %v1627_v34  ;;  %v903_v32 = vadd.f32 -1.4531521, %v865_v62 }
 0x1e9   : > { %v7565_v54 = vmul.f32 %v1469_v58, %v10209_v3  ;;  %v1589_v63 = vmax.f32 %v10210_v47, %v1534_v18  ;;  %v1684_v29 = vmax.f32 %v10211_v39, %v1629_v5  ;;  %v978_v20 = vadd.f32 1.4214138, %v940_v19  ;;  %v1631_v27 = vpop.permute.xlu1 %1630  ;;  %v10216_v18 = vld [vmem:[#allocation10_spill] sm:$0xff]  ;;  %v10220_v39 = vld [vmem:[#allocation24_spill] sm:$0xff] }
 0x1ea   : > { %v1432_v7 = vmul.f32 %v1394_v46, %v10212_v44  ;;  %v1357_v61 = vmul.f32 %v10213_v36, %v1167_v21  ;;  %v1702_v15 = vmax.f32 %v1588_v33, %v1683_v13  ;;  %1656 = vrot.lane.b32.xlu1 %v7548_v28, %s6454_s23  ;;  %v941_v34 = vmul.f32 %v10206_v55, %v903_v32  ;;  %v10219_v46 = vld [vmem:[#allocation23_spill] sm:$0xff]  ;;  %v2008_v44 = vld [vmem:[%s9977_s3] sm:$0xff]  ;;  %v10221_v36 = vld [vmem:[#allocation32_spill] sm:$0xff] }
 0x1eb   : > { %v1703_v10 = vmax.f32 %v1589_v63, %v1684_v29  ;;  %v1590_v26 = vmax.f32 %v10214_v31, %v1536_v45  ;;  %v1685_v42 = vmax.f32 %v10215_v12, %v1631_v27  ;;  %v558_v38 = vmul.f32 0.5, %v10216_v18  ;;  %1563 = vrot.lane.b32.xlu0 %v7554_v51, %s6454_s23  ;;  %v10224_v18 = vld [vmem:[#allocation40_spill] sm:$0xff] }
 0x1ec   : > { %v1470_v5 = vadd.f32 1.0, %v1432_v7  ;;  %v1395_v35 = vsub.f32 1.0, %v1357_v61  ;;  %v1016_v41 = vmul.f32 %v10199_v1, %v978_v20  ;;  %1722 = vst.msk [vmem:[#allocation2] sm:$0xff] %vm1721_vm4, %v1702_v15  ;;  %v10217_v0 = vmov -1.0   ;;  %v2009_v7 = vld [vmem:[%s9977_s3 + $0x8] sm:$0xff]  ;;  %v10222_v61 = vld [vmem:[#allocation55_spill] sm:$0xff] }
 0x1ed   : > { %v673_v23 = vsel %vm635_vm5, 1.0, %v10217_v0  ;;  %v979_v50 = vadd.f32 1.4214138, %v941_v34  ;;  %1723 = vst.msk [vmem:[#allocation2 + $0x8] sm:$0xff] %vm1721_vm4, %v1703_v10  ;;  %v1704_v14 = vmax.f32 %v1590_v26, %v1685_v42  ;;  %6289 = vpow2.f32 %v10218_v59 }
 0x1ee   : > { %v7586_v58 = vmul.f32 %v1470_v5, %v558_v38  ;;  %v1433_v62 = vmul.f32 %v1395_v35, %v673_v23  ;;  %v1054_v43 = vadd.f32 -0.28449672, %v1016_v41  ;;  %1658 = vrot.lane.b32.xlu1 %v7565_v54, %s6454_s23  ;;  %v559_v22 = vmul.f32 0.5, %v10219_v46  ;;  %v2011_v35 = vld [vmem:[%s9977_s3 + $0x18] sm:$0xff] }
 0x1ef   : > { %v1017_v33 = vmul.f32 %v10206_v55, %v979_v50  ;;  %1724 = vst.msk [vmem:[#allocation2 + $0x10] sm:$0xff] %vm1721_vm4, %v1704_v14  ;;  %vm636_vm6 = vcmp.ge.f32.partialorder %v10221_v36, 0.0  ;;  %v5640_v27 = vpack.c.bf16 %v2009_v7, %v2008_v44  ;;  %v10013_v31 = vmov 0.0|0.0   ;;  %v2012_v50 = vld [vmem:[%s9977_s3 + $0x20] sm:$0xff]  ;;  %v2013_v14 = vld [vmem:[%s9977_s3 + $0x28] sm:$0xff] }
 0x1f0   : > { %1565 = vrot.lane.b32.xlu0 %v7586_v58, %s6454_s23  ;;  %v1471_v21 = vadd.f32 1.0, %v1433_v62  ;;  %v1092_v19 = vmul.f32 %v10199_v1, %v1054_v43  ;;  %5639 = vmatprep.subr.bf16.mxu1 %v10013_v31  ;;  %v674_v42 = vsel %vm636_vm6, 1.0, %v10217_v0  ;;  %vm637_vm7 = vcmp.ge.f32.partialorder %v10224_v18, 0.0  ;;  %v10225_v62 = vld [vmem:[#allocation35_spill] sm:$0xff]  ;;  %v2017_v18 = vld [vmem:[%s9977_s3 + $0x48] sm:$0xff] }
 0x1f1   : > { %v1055_v9 = vadd.f32 -0.28449672, %v1017_v33  ;;  %5641 = vmatpush1.bf16.msra.mxu1 %v5640_v27  ;;  %v560_v43 = vmul.f32 0.5, %v10225_v62  ;;  %v675_v33 = vsel %vm637_vm7, 1.0, %v10217_v0  ;;  %vm1740_vm8 = vcmask 520192  }
 0x1f2   : > { %v7596_v13 = vmul.f32 %v1471_v21, %v559_v22  ;;  %v1130_v45 = vadd.f32 0.2548296, %v1092_v19  ;;  %v1538_v32 = vpop.permute.xlu0 %1537  ;;  %5642 = vmatprep.subr.bf16.mxu1 %v10013_v31  ;;  %v5646_v21 = vpack.c.bf16 %v2013_v14, %v2012_v50  ;;  %v2020_v14 = vld [vmem:[%s9977_s3 + $0x60] sm:$0xff]  ;;  %vm3143_vm9 = vcmask 588800  }
 0x1f3   : > { %v1093_v3 = vmul.f32 %v10206_v55, %v1055_v9  ;;  %v1591_v29 = vmax.f32 %v10220_v39, %v1538_v32 }
 0x1f4   : > { %1660 = vrot.lane.b32.xlu1 %v7596_v13, %s6454_s23  ;;  %v1168_v47 = vmul.f32 %v10199_v1, %v1130_v45  ;;  %v10223_v1 = vld [vmem:[#allocation15_spill] sm:$0xff]  ;;  %v1761_v22 = vld [vmem:[#allocation2 + $0x1] sm:$0xff] }
 0x1f5   : > { %v1131_v63 = vadd.f32 0.2548296, %v1093_v3  ;;  %v1633_v15 = vpop.permute.xlu1 %1632  ;;  %v1799_v9 = vld [vmem:[#allocation2 + $0x3] sm:$0xff]  ;;  %v2014_v45 = vld [vmem:[%s9977_s3 + $0x30] sm:$0xff]  ;;  %v2015_v3 = vld [vmem:[%s9977_s3 + $0x38] sm:$0xff] }
 0x1f6   : > { %v1358_v20 = vmul.f32 %v10222_v61, %v1168_v47  ;;  %v1686_v10 = vmax.f32 %v10223_v1, %v1633_v15  ;;  %v10226_v47 = vld [vmem:[#allocation13_spill] sm:$0xff]  ;;  %v1762_v44 = vld [vmem:[#allocation2 + $0x9] sm:$0xff]  ;;  %v5649_v36 = vpack.c.bf16 %v2015_v3, %v2014_v45 }
 0x1f7   : > { %v1169_v34 = vmul.f32 %v10206_v55, %v1131_v63  ;;  %v6290_v26 = vpop.eup %6289  ;;  %v2010_v55 = vld [vmem:[%s9977_s3 + $0x10] sm:$0xff]  ;;  %v561_v63 = vmul.f32 0.5, %v10226_v47  ;;  %v2025_v47 = vld [vmem:[%s9977_s3 + $0x88] sm:$0xff] }
 0x1f8   : > { %v1396_v12 = vsub.f32 1.0, %v1358_v20  ;;  %v1705_v5 = vmax.f32 %v1591_v29, %v1686_v10  ;;  %v5643_v23 = vpack.c.bf16 %v2011_v35, %v2010_v55  ;;  %v6014_v29 = vpack.i.bf16 %v1761_v22, %v1799_v9  ;;  %v1800_v7 = vld [vmem:[#allocation2 + $0xb] sm:$0xff] }
 0x1f9   : > { %v1359_v38 = vmul.f32 %v6290_v26, %v1169_v34  ;;  %v6019_v34 = vpack.i.bf16 %v1762_v44, %v1800_v7  ;;  %v10227_v1 = vld [vmem:[#allocation59_spill] sm:$0xff] }
 0x1fa   : > { %v1434_v41 = vmul.f32 %v1396_v12, %v674_v42  ;;  %1725 = vst.msk [vmem:[#allocation2 + $0x18] sm:$0xff] %vm1721_vm4, %v1705_v5  ;;  %5644 = vmatpush1.bf16.msra.mxu1 %v5643_v23  ;;  %v2016_v42 = vld [vmem:[%s9977_s3 + $0x40] sm:$0xff]  ;;  %v10228_v5 = vld [vmem:[#allocation18_spill] sm:$0xff] }
 0x1fb   : > { %v1397_v59 = vsub.f32 1.0, %v1359_v38  ;;  %5645 = vmatprep.subr.bf16.mxu1 %v10013_v31  ;;  %v2018_v38 = vld [vmem:[%s9977_s3 + $0x50] sm:$0xff]  ;;  %v5652_v35 = vpack.c.bf16 %v2017_v18, %v2016_v42 }
 0x1fc   : > { %v1472_v46 = vadd.f32 1.0, %v1434_v41  ;;  %v2019_v41 = vld [vmem:[%s9977_s3 + $0x58] sm:$0xff] }
 0x1fd   : > { %v1435_v19 = vmul.f32 %v1397_v59, %v675_v33  ;;  %v5655_v50 = vpack.c.bf16 %v2019_v41, %v2018_v38  ;;  %v2021_v59 = vld [vmem:[%s9977_s3 + $0x68] sm:$0xff]  ;;  %v2023_v33 = vld [vmem:[%s9977_s3 + $0x78] sm:$0xff] }
 0x1fe   : > { %v7639_v32 = vmul.f32 %v1472_v46, %v560_v43  ;;  %5647 = vmatpush1.bf16.msra.mxu1 %v5646_v21  ;;  %v1540_v20 = vpop.permute.xlu0 %1539  ;;  %v5658_v62 = vpack.c.bf16 %v2021_v59, %v2020_v14  ;;  %v2022_v43 = vld [vmem:[%s9977_s3 + $0x70] sm:$0xff]  ;;  %v2024_v21 = vld [vmem:[%s9977_s3 + $0x80] sm:$0xff] }
 0x1ff   : > { %v1473_v39 = vadd.f32 1.0, %v1435_v19  ;;  %5648 = vmatprep.subr.bf16.mxu1 %v10013_v31  ;;  %v1592_v10 = vmax.f32 %v10227_v1, %v1540_v20  ;;  %v5661_v22 = vpack.c.bf16 %v2023_v33, %v2022_v43  ;;  %v10229_v19 = vld [vmem:[#allocation19_spill] sm:$0xff]  ;;  %v5664_v7 = vpack.c.bf16 %v2025_v47, %v2024_v21  ;;  %v2029_v1 = vld [vmem:[%s9977_s3 + $0xa8] sm:$0xff] }
 0x200   : > { %1567 = vrot.lane.b32.xlu0 %v7639_v32, %s6454_s23  ;;  %v2026_v20 = vld [vmem:[%s9977_s3 + $0x90] sm:$0xff]  ;;  %v2037_v47 = vld [vmem:[%s9977_s3 + $0xe8] sm:$0xff] }
 0x201   : > { %v7644_v61 = vmul.f32 %v1473_v39, %v561_v63  ;;  %v1763_v15 = vld [vmem:[#allocation2 + $0x11] sm:$0xff] }
 0x202   : > { %v1801_v27 = vld [vmem:[#allocation2 + $0x13] sm:$0xff]  ;;  %5650 = vmatpush1.bf16.msra.mxu1 %v5649_v36 }
 0x203   : > { %1662 = vrot.lane.b32.xlu1 %v7644_v61, %s6454_s23  ;;  %v6024_v26 = vpack.i.bf16 %v1763_v15, %v1801_v27  ;;  %5651 = vmatprep.subr.bf16.mxu1 %v10013_v31  ;;  %v2027_v15 = vld [vmem:[%s9977_s3 + $0x98] sm:$0xff] }
 0x204   : > { %6015 = vrot.lane.b32.xlu0 %v6014_v29, %s6454_s23  ;;  %v1635_v12 = vpop.permute.xlu1 %1634  ;;  %v10230_v29 = vld [vmem:[#allocation50_spill] sm:$0xff]  ;;  %v5667_v27 = vpack.c.bf16 %v2027_v15, %v2026_v20  ;;  %v2039_v20 = vld [vmem:[%s9977_s3 + $0xf8] sm:$0xff] }
 0x205   : > { %v1687_v55 = vmax.f32 %v10228_v5, %v1635_v12  ;;  %v2031_v12 = vld [vmem:[%s9977_s3 + $0xb8] sm:$0xff] }
 0x206   : > { %5653 = vmatpush1.bf16.msra.mxu1 %v5652_v35 }
 0x207   : > { %6020 = vrot.lane.b32.xlu1 %v6019_v34, %s6454_s23  ;;  %v1706_v23 = vmax.f32 %v1592_v10, %v1687_v55  ;;  %5654 = vmatprep.subr.bf16.mxu1 %v10013_v31  ;;  %v2028_v34 = vld [vmem:[%s9977_s3 + $0xa0] sm:$0xff] }
 0x208   : > { %6025 = vrot.lane.b32.xlu0 %v6024_v26, %s6454_s23  ;;  %v5670_v10 = vpack.c.bf16 %v2029_v1, %v2028_v34  ;;  %v2030_v26 = vld [vmem:[%s9977_s3 + $0xb0] sm:$0xff] }
 0x209   : > { %1726 = vst.msk [vmem:[#allocation2 + $0x20] sm:$0xff] %vm1721_vm4, %v1706_v23  ;;  %v5673_v35 = vpack.c.bf16 %v2031_v12, %v2030_v26  ;;  %v2032_v23 = vld [vmem:[%s9977_s3 + $0xc0] sm:$0xff] }
 0x20a   : > { %5656 = vmatpush1.bf16.msra.mxu1 %v5655_v50  ;;  %v2033_v50 = vld [vmem:[%s9977_s3 + $0xc8] sm:$0xff] }
 0x20b   : > { %5657 = vmatprep.subr.bf16.mxu1 %v10013_v31  ;;  %v5676_v43 = vpack.c.bf16 %v2033_v50, %v2032_v23 }
 0x20d   : > { %v1542_v46 = vpop.permute.xlu0 %1541 }
 0x20e   : > { %5659 = vmatpush1.bf16.msra.mxu1 %v5658_v62  ;;  %v1593_v9 = vmax.f32 %v10229_v19, %v1542_v46  ;;  %v2034_v46 = vld [vmem:[%s9977_s3 + $0xd0] sm:$0xff] }
 0x20f   : > { %5660 = vmatprep.subr.bf16.mxu1 %v10013_v31 }
 0x210   : > { %v1764_v45 = vld [vmem:[#allocation2 + $0x19] sm:$0xff] }
 0x211   : > { %v1802_v3 = vld [vmem:[#allocation2 + $0x1b] sm:$0xff] }
 0x212   : > { %v1637_v63 = vpop.permute.xlu1 %1636  ;;  %v6029_v39 = vpack.i.bf16 %v1764_v45, %v1802_v3  ;;  %5662 = vmatpush1.bf16.msra.mxu1 %v5661_v22  ;;  %v2035_v22 = vld [vmem:[%s9977_s3 + $0xd8] sm:$0xff]  ;;  %v2036_v3 = vld [vmem:[%s9977_s3 + $0xe0] sm:$0xff] }
 0x213   : > { %v1688_v44 = vmax.f32 %v10230_v29, %v1637_v63  ;;  %5663 = vmatprep.subr.bf16.mxu1 %v10013_v31  ;;  %v2038_v29 = vld [vmem:[%s9977_s3 + $0xf0] sm:$0xff] }
 0x214   : > { %6030 = vrot.lane.b32.xlu1 %v6029_v39, %s6454_s23  ;;  %v5685_v34 = vpack.c.bf16 %v2039_v20, %v2038_v29 }
 0x215   : > { %v1707_v36 = vmax.f32 %v1593_v9, %v1688_v44  ;;  %v5679_v9 = vpack.c.bf16 %v2035_v22, %v2034_v46 }
 0x216   : > { %5665 = vmatpush1.bf16.msra.mxu1 %v5664_v7 }
 0x217   : > { %1727 = vst.msk [vmem:[#allocation2 + $0x28] sm:$0xff] %vm1721_vm4, %v1707_v36  ;;  %5666 = vmatprep.subr.bf16.mxu1 %v10013_v31 }
 0x21a   : > { %5668 = vmatpush1.bf16.msra.mxu1 %v5667_v27 }
 0x21b   : > { %5669 = vmatprep.subr.bf16.mxu1 %v10013_v31 }
 0x21d   : > { %v1544_v42 = vpop.permute.xlu0 %1543 }
 0x21e   : > { %v1765_v18 = vld [vmem:[#allocation2 + $0x21] sm:$0xff]  ;;  %v1594_v55 = vmax.f32 %v7336_v6, %v1544_v42  ;;  %5671 = vmatpush1.bf16.msra.mxu1 %v5670_v10 }
 0x21f   : > { %v1803_v38 = vld [vmem:[#allocation2 + $0x23] sm:$0xff]  ;;  %5672 = vmatprep.subr.bf16.mxu1 %v10013_v31 }
 0x220   : > { %v6034_v5 = vpack.i.bf16 %v1765_v18, %v1803_v38  ;;  %v1639_v41 = vpop.permute.xlu1 %1638 }
 0x221   : > { %v1689_v14 = vmax.f32 %v7346_v30, %v1639_v41  ;;  %v1546_v59 = vpop.permute.xlu0 %1545 }
 0x222   : > { %6035 = vrot.lane.b32.xlu0 %v6034_v5, %s6454_s23  ;;  %v1595_v6 = vmax.f32 %v7349_v53, %v1546_v59  ;;  %5674 = vmatpush1.bf16.msra.mxu1 %v5673_v35 }
 0x223   : > { %v1708_v62 = vmax.f32 %v1594_v55, %v1689_v14  ;;  %5675 = vmatprep.subr.bf16.mxu1 %v10013_v31 }
 0x224   : > { %v1641_v33 = vpop.permute.xlu1 %1640 }
 0x225   : > { %1728 = vst.msk [vmem:[#allocation2 + $0x30] sm:$0xff] %vm1721_vm4, %v1708_v62  ;;  %v1690_v30 = vmax.f32 %v7353_v8, %v1641_v33  ;;  %v1548_v21 = vpop.permute.xlu0 %1547 }
 0x226   : > { %v1596_v53 = vmax.f32 %v7359_v40, %v1548_v21  ;;  %5677 = vmatpush1.bf16.msra.mxu1 %v5676_v43  ;;  %v5682_v40 = vpack.c.bf16 %v2037_v47, %v2036_v3 }
 0x227   : > { %v1709_v19 = vmax.f32 %v1595_v6, %v1690_v30  ;;  %5678 = vmatprep.subr.bf16.mxu1 %v10013_v31 }
 0x228   : > { %v1643_v45 = vpop.permute.xlu1 %1642 }
 0x229   : > { %1729 = vst.msk [vmem:[#allocation2 + $0x38] sm:$0xff] %vm1721_vm4, %v1709_v19  ;;  %v1691_v8 = vmax.f32 %v7369_v11, %v1643_v45 }
 0x22a   : > { %v1550_v63 = vpop.permute.xlu0 %1549  ;;  %5680 = vmatpush1.bf16.msra.mxu1 %v5679_v9 }
 0x22b   : > { %v1710_v39 = vmax.f32 %v1596_v53, %v1691_v8  ;;  %v1597_v44 = vmax.f32 %v7385_v56, %v1550_v63  ;;  %5681 = vmatprep.subr.bf16.mxu1 %v10013_v31 }
 0x22c   : > { %v1766_v7 = vld [vmem:[#allocation2 + $0x29] sm:$0xff] }
 0x22d   : > { %v1804_v36 = vld [vmem:[#allocation2 + $0x2b] sm:$0xff]  ;;  %1730 = vst.msk [vmem:[#allocation2 + $0x40] sm:$0xff] %vm1721_vm4, %v1710_v39 }
 0x22e   : > { %v1645_v11 = vpop.permute.xlu1 %1644  ;;  %v6039_v15 = vpack.i.bf16 %v1766_v7, %v1804_v36  ;;  %5683 = vmatpush1.bf16.msra.mxu1 %v5682_v40 }
 0x22f   : > { %v1692_v27 = vmax.f32 %v7400_v48, %v1645_v11  ;;  %5684 = vmatprep.subr.bf16.mxu1 %v10013_v31 }
 0x230   : > { %6040 = vrot.lane.b32.xlu1 %v6039_v15, %s6454_s23  ;;  %v1767_v56 = vld [vmem:[#allocation2 + $0x31] sm:$0xff] }
 0x231   : > { %v1711_v1 = vmax.f32 %v1597_v44, %v1692_v27  ;;  %v1805_v10 = vld [vmem:[#allocation2 + $0x33] sm:$0xff] }
 0x232   : > { %v6044_v26 = vpack.i.bf16 %v1767_v56, %v1805_v10  ;;  %5686 = vmatpush1.bf16.msra.mxu1 %v5685_v34 }
 0x233   : > { %1731 = vst.msk [vmem:[#allocation2 + $0x48] sm:$0xff] %vm1721_vm4, %v1711_v1  ;;  %5751 = vmatprep.subr.bf16.mxu1 %v10013_v31 }
 0x234   : > { %6045 = vrot.lane.b32.xlu0 %v6044_v26, %s6454_s23  ;;  %v1768_v12 = vld [vmem:[#allocation2 + $0x39] sm:$0xff] }
 0x235   : > { %v1806_v42 = vld [vmem:[#allocation2 + $0x3b] sm:$0xff] }
 0x236   : > { %v6049_v48 = vpack.i.bf16 %v1768_v12, %v1806_v42 }
 0x238   : > { %6050 = vrot.lane.b32.xlu1 %v6049_v48, %s6454_s23 }
 0x239   : > { %v1552_v18 = vpop.permute.xlu0 %1551 }
 0x23a   : > { %v1769_v38 = vld [vmem:[#allocation2 + $0x41] sm:$0xff]  ;;  %v1598_v35 = vmax.f32 %v7432_v49, %v1552_v18 }
 0x23b   : > { %v1807_v5 = vld [vmem:[#allocation2 + $0x43] sm:$0xff] }
 0x23c   : > { %v6054_v55 = vpack.i.bf16 %v1769_v38, %v1807_v5  ;;  %v1647_v41 = vpop.permute.xlu1 %1646 }
 0x23d   : > { %v1693_v23 = vmax.f32 %v7442_v16, %v1647_v41  ;;  %v1554_v50 = vpop.permute.xlu0 %1553 }
 0x23e   : > { %6055 = vrot.lane.b32.xlu0 %v6054_v55, %s6454_s23  ;;  %v1599_v59 = vmax.f32 %v7445_v25, %v1554_v50 }
 0x23f   : > { %v1712_v14 = vmax.f32 %v1598_v35, %v1693_v23 }
 0x240   : > { %v1649_v62 = vpop.permute.xlu1 %1648 }
 0x241   : > { %1732 = vst.msk [vmem:[#allocation2 + $0x50] sm:$0xff] %vm1721_vm4, %v1712_v14  ;;  %v1694_v6 = vmax.f32 %v7449_v17, %v1649_v62  ;;  %v1556_v43 = vpop.permute.xlu0 %1555  ;;  %v3117_v62 = vld [vmem:[%s9978_s4] sm:$0xff] }
 0x242   : > { %v1600_v46 = vmax.f32 %v7455_v60, %v1556_v43 }
 0x243   : > { %v1713_v33 = vmax.f32 %v1599_v59, %v1694_v6  ;;  %v3118_v6 = vld [vmem:[%s9978_s4 + $0x8] sm:$0xff] }
 0x244   : > { %v1651_v22 = vpop.permute.xlu1 %1650 }
 0x245   : > { %1733 = vst.msk [vmem:[#allocation2 + $0x58] sm:$0xff] %vm1721_vm4, %v1713_v33  ;;  %v1695_v49 = vmax.f32 %v7465_v57, %v1651_v22 }
 0x246   : > { %v1558_v30 = vpop.permute.xlu0 %1557 }
 0x247   : > { %v1714_v16 = vmax.f32 %v1600_v46, %v1695_v49  ;;  %v1601_v21 = vmax.f32 %v7481_v52, %v1558_v30  ;;  %v1780_v30 = vld [vmem:[#allocation2 + $0x2] sm:$0xff] }
 0x248   : > { %v1770_v19 = vld [vmem:[#allocation2 + $0x49] sm:$0xff] }
 0x249   : > { %v1808_v25 = vld [vmem:[#allocation2 + $0x4b] sm:$0xff]  ;;  %1734 = vst.msk [vmem:[#allocation2 + $0x60] sm:$0xff] %vm1721_vm4, %v1714_v16  ;;  %v5752_v16 = vpack.c.bf16 %v3118_v6, %v3117_v62  ;;  %v1784_v62 = vld [vmem:[#allocation2 + $0x22] sm:$0xff] }
 0x24a   : > { %v1653_v53 = vpop.permute.xlu1 %1652  ;;  %v6059_v9 = vpack.i.bf16 %v1770_v19, %v1808_v25  ;;  %v1746_v6 = vld [vmem:[#allocation2 + $0x20] sm:$0xff] }
 0x24b   : > { %v1696_v17 = vmax.f32 %v7496_v37, %v1653_v53  ;;  %v3119_v53 = vld [vmem:[%s9978_s4 + $0x10] sm:$0xff] }
 0x24c   : > { %6060 = vrot.lane.b32.xlu1 %v6059_v9, %s6454_s23  ;;  %v1771_v45 = vld [vmem:[#allocation2 + $0x51] sm:$0xff] }
 0x24d   : > { %v1715_v60 = vmax.f32 %v1601_v21, %v1696_v17  ;;  %v1809_v3 = vld [vmem:[#allocation2 + $0x53] sm:$0xff] }
 0x24e   : > { %v6064_v47 = vpack.i.bf16 %v1771_v45, %v1809_v3  ;;  %v1781_v3 = vld [vmem:[#allocation2 + $0xa] sm:$0xff] }
 0x24f   : > { %1735 = vst.msk [vmem:[#allocation2 + $0x68] sm:$0xff] %vm1721_vm4, %v1715_v60 }
 0x250   : > { %6065 = vrot.lane.b32.xlu0 %v6064_v47, %s6454_s23  ;;  %v1772_v57 = vld [vmem:[#allocation2 + $0x59] sm:$0xff]  ;;  %v1743_v47 = vld [vmem:[#allocation2 + $0x8] sm:$0xff] }
 0x251   : > { %v1810_v52 = vld [vmem:[#allocation2 + $0x5b] sm:$0xff] }
 0x252   : > { %v6069_v8 = vpack.i.bf16 %v1772_v57, %v1810_v52 }
 0x254   : > { %6070 = vrot.lane.b32.xlu1 %v6069_v8, %s6454_s23 }
 0x255   : > { %v1560_v63 = vpop.permute.xlu0 %1559 }
 0x256   : > { %v1773_v39 = vld [vmem:[#allocation2 + $0x61] sm:$0xff]  ;;  %v1602_v37 = vmax.f32 %v7531_v24, %v1560_v63 }
 0x257   : > { %v1811_v40 = vld [vmem:[#allocation2 + $0x63] sm:$0xff] }
 0x258   : > { %v6074_v29 = vpack.i.bf16 %v1773_v39, %v1811_v40  ;;  %v1655_v44 = vpop.permute.xlu1 %1654  ;;  %v1782_v39 = vld [vmem:[#allocation2 + $0x12] sm:$0xff] }
 0x259   : > { %v1697_v7 = vmax.f32 %v7541_v4, %v1655_v44  ;;  %v1562_v36 = vpop.permute.xlu0 %1561  ;;  %v1744_v44 = vld [vmem:[#allocation2 + $0x10] sm:$0xff] }
 0x25a   : > { %6075 = vrot.lane.b32.xlu0 %v6074_v29, %s6454_s23  ;;  %v1603_v11 = vmax.f32 %v7544_v2, %v1562_v36  ;;  %v3121_v29 = vld [vmem:[%s9978_s4 + $0x20] sm:$0xff] }
 0x25b   : > { %v1716_v20 = vmax.f32 %v1602_v37, %v1697_v7  ;;  %v3122_v37 = vld [vmem:[%s9978_s4 + $0x28] sm:$0xff] }
 0x25c   : > { %v1657_v15 = vpop.permute.xlu1 %1656  ;;  %v5758_v36 = vpack.c.bf16 %v3122_v37, %v3121_v29  ;;  %v1786_v29 = vld [vmem:[#allocation2 + $0x32] sm:$0xff] }
 0x25d   : > { %1736 = vst.msk [vmem:[#allocation2 + $0x70] sm:$0xff] %vm1721_vm4, %v1716_v20  ;;  %v1698_v27 = vmax.f32 %v7548_v28, %v1657_v15  ;;  %v1564_v34 = vpop.permute.xlu0 %1563  ;;  %v3123_v20 = vld [vmem:[%s9978_s4 + $0x30] sm:$0xff] }
 0x25e   : > { %v1604_v56 = vmax.f32 %v7554_v51, %v1564_v34  ;;  %v1748_v37 = vld [vmem:[#allocation2 + $0x30] sm:$0xff] }
 0x25f   : > { %v1717_v1 = vmax.f32 %v1603_v11, %v1698_v27  ;;  %v3124_v11 = vld [vmem:[%s9978_s4 + $0x38] sm:$0xff] }
 0x260   : > { %v1659_v10 = vpop.permute.xlu1 %1658 }
 0x261   : > { %1737 = vst.msk [vmem:[#allocation2 + $0x78] sm:$0xff] %vm1721_vm4, %v1717_v1  ;;  %v1699_v24 = vmax.f32 %v7565_v54, %v1659_v10 }
 0x262   : > { %v1566_v26 = vpop.permute.xlu0 %1565 }
 0x263   : > { %v1718_v4 = vmax.f32 %v1604_v56, %v1699_v24  ;;  %v1605_v12 = vmax.f32 %v7586_v58, %v1566_v26  ;;  %v5761_v24 = vpack.c.bf16 %v3124_v11, %v3123_v20  ;;  %v3125_v26 = vld [vmem:[%s9978_s4 + $0x40] sm:$0xff]  ;;  %v10231_v20 = vmov 0.0  }
 0x264   : > { %v1774_v42 = vld [vmem:[#allocation2 + $0x69] sm:$0xff]  ;;  %v3141_v11 = vld [vmem:[%s9978_s4 + $0xc0] sm:$0xff] }
 0x265   : > { %v1812_v2 = vld [vmem:[#allocation2 + $0x6b] sm:$0xff]  ;;  %1738 = vst.msk [vmem:[#allocation2 + $0x80] sm:$0xff] %vm1721_vm4, %v1718_v4 }
 0x266   : > { %v1661_v48 = vpop.permute.xlu1 %1660  ;;  %v6079_v18 = vpack.i.bf16 %v1774_v42, %v1812_v2  ;;  %v3126_v4 = vld [vmem:[%s9978_s4 + $0x48] sm:$0xff] }
 0x267   : > { %v1700_v28 = vmax.f32 %v7596_v13, %v1661_v48  ;;  %v1783_v48 = vld [vmem:[#allocation2 + $0x1a] sm:$0xff] }
 0x268   : > { %6080 = vrot.lane.b32.xlu1 %v6079_v18, %s6454_s23  ;;  %v1775_v38 = vld [vmem:[#allocation2 + $0x71] sm:$0xff] }
 0x269   : > { %v1719_v51 = vmax.f32 %v1605_v12, %v1700_v28  ;;  %v1813_v5 = vld [vmem:[#allocation2 + $0x73] sm:$0xff]  ;;  %v5764_v28 = vpack.c.bf16 %v3126_v4, %v3125_v26 }
 0x26a   : > { %v6084_v55 = vpack.i.bf16 %v1775_v38, %v1813_v5  ;;  %v1745_v18 = vld [vmem:[#allocation2 + $0x18] sm:$0xff]  ;;  %v3127_v5 = vld [vmem:[%s9978_s4 + $0x50] sm:$0xff] }
 0x26b   : > { %1739 = vst.msk [vmem:[#allocation2 + $0x88] sm:$0xff] %vm1721_vm4, %v1719_v51 }
 0x26c   : > { %6085 = vrot.lane.b32.xlu0 %v6084_v55, %s6454_s23  ;;  %v1776_v54 = vld [vmem:[#allocation2 + $0x79] sm:$0xff] }
 0x26d   : > { %v1814_v58 = vld [vmem:[#allocation2 + $0x7b] sm:$0xff] }
 0x26e   : > { %v6089_v35 = vpack.i.bf16 %v1776_v54, %v1814_v58  ;;  %v3128_v55 = vld [vmem:[%s9978_s4 + $0x58] sm:$0xff]  ;;  %v3129_v58 = vld [vmem:[%s9978_s4 + $0x60] sm:$0xff] }
 0x26f   : > { %v5767_v54 = vpack.c.bf16 %v3128_v55, %v3127_v5  ;;  %v1751_v5 = vld [vmem:[#allocation2 + $0x48] sm:$0xff] }
 0x270   : > { %6090 = vrot.lane.b32.xlu1 %v6089_v35, %s6454_s23  ;;  %v3130_v35 = vld [vmem:[%s9978_s4 + $0x68] sm:$0xff] }
 0x272   : > { %v1568_v41 = vpop.permute.xlu0 %1567  ;;  %v1777_v23 = vld [vmem:[#allocation2 + $0x81] sm:$0xff] }
 0x273   : > { %v1815_v50 = vld [vmem:[#allocation2 + $0x83] sm:$0xff]  ;;  %v1606_v13 = vmax.f32 %v7639_v32, %v1568_v41  ;;  %v5770_v41 = vpack.c.bf16 %v3130_v35, %v3129_v58 }
 0x274   : > { %v6094_v14 = vpack.i.bf16 %v1777_v23, %v1815_v50  ;;  %v1742_v32 = vld [vmem:[#allocation2] sm:$0xff]  ;;  %v3131_v23 = vld [vmem:[%s9978_s4 + $0x70] sm:$0xff]  ;;  %v3132_v50 = vld [vmem:[%s9978_s4 + $0x78] sm:$0xff] }
 0x275   : > { %v1663_v59 = vpop.permute.xlu1 %1662 }
 0x276   : > { %6095 = vrot.lane.b32.xlu0 %v6094_v14, %s6454_s23  ;;  %v1701_v43 = vmax.f32 %v7644_v61, %v1663_v59  ;;  %v6016_v33 = vpop.permute.xlu0 %6015  ;;  %v3120_v61 = vld [vmem:[%s9978_s4 + $0x18] sm:$0xff] }
 0x277   : > { %v6018_v46 = vunpack.i.h.bf16 %v6016_v33  ;;  %v6017_v22 = vunpack.i.l.bf16 %v6016_v33  ;;  %v5755_v63 = vpack.c.bf16 %v3120_v61, %v3119_v53 }
 0x278   : > { %v1720_v49 = vmax.f32 %v1606_v13, %v1701_v43  ;;  %v5773_v43 = vpack.c.bf16 %v3132_v50, %v3131_v23  ;;  %v1790_v23 = vld [vmem:[#allocation2 + $0x52] sm:$0xff] }
 0x279   : > { %v6021_v21 = vpop.permute.xlu1 %6020  ;;  %v1989_v19 = vsel %vm1721_vm4, %v1780_v30, %v6017_v22  ;;  %v1970_v25 = vsel %vm1721_vm4, %v1742_v32, %v6018_v46  ;;  %v3133_v22 = vld [vmem:[%s9978_s4 + $0x80] sm:$0xff]  ;;  %v3135_v32 = vld [vmem:[%s9978_s4 + $0x90] sm:$0xff] }
 0x27a   : > { %1741 = vst.msk [vmem:[#allocation2 + $0x90] sm:$0x1f] %vm1740_vm8, %v1720_v49  ;;  %v6023_v9 = vunpack.i.h.bf16 %v6021_v21  ;;  %v6022_v17 = vunpack.i.l.bf16 %v6021_v21  ;;  %2105 = vmatprep.mubr.f32.mxu1 %v1989_v19  ;;  %v6026_v60 = vpop.permute.xlu0 %6025  ;;  %v3134_v49 = vld [vmem:[%s9978_s4 + $0x88] sm:$0xff]  ;;  %v3137_v19 = vld [vmem:[%s9978_s4 + $0xa0] sm:$0xff]  ;;  %v1752_v50 = vld [vmem:[#allocation2 + $0x50] sm:$0xff] }
 0x27b   : > { %2106 = vmatmul.mubr.f32.vlgmr.msra.gmra.mrb[0].mxu1 %v1970_v25  ;;  %v6027_v45 = vunpack.i.l.bf16 %v6026_v60  ;;  %v6028_v57 = vunpack.i.h.bf16 %v6026_v60  ;;  %v5776_v30 = vpack.c.bf16 %v3134_v49, %v3133_v22  ;;  %v3138_v25 = vld [vmem:[%s9978_s4 + $0xa8] sm:$0xff] }
 0x27c   : > { %5753 = vmatpush1.bf16.msra.mxu1 %v5752_v16  ;;  %v1990_v52 = vsel %vm1721_vm4, %v1781_v3, %v6022_v17  ;;  %v1971_v8 = vsel %vm1721_vm4, %v1743_v47, %v6023_v9  ;;  %v3136_v16 = vld [vmem:[%s9978_s4 + $0x98] sm:$0xff]  ;;  %v5782_v53 = vpack.c.bf16 %v3138_v25, %v3137_v19  ;;  %v3139_v9 = vld [vmem:[%s9978_s4 + $0xb0] sm:$0xff]  ;;  %v1747_v47 = vld [vmem:[#allocation2 + $0x28] sm:$0xff] }
 0x27d   : > { %2110 = vmatprep.mubr.f32.mxu1 %v1990_v52  ;;  %5754 = vmatprep.subr.bf16.mxu1 %v10013_v31  ;;  %v1991_v40 = vsel %vm1721_vm4, %v1782_v39, %v6027_v45  ;;  %v1972_v7 = vsel %vm1721_vm4, %v1744_v44, %v6028_v57  ;;  %v5779_v21 = vpack.c.bf16 %v3136_v16, %v3135_v32  ;;  %v3140_v17 = vld [vmem:[%s9978_s4 + $0xb8] sm:$0xff]  ;;  %v1785_v3 = vld [vmem:[#allocation2 + $0x2a] sm:$0xff]  ;;  %v1792_v16 = vld [vmem:[#allocation2 + $0x62] sm:$0xff] }
 0x27f   : > { %2111 = vmatmul.mubr.f32.gmra.mrb[2].mxu1 %v1971_v8  ;;  %v5785_v8 = vpack.c.bf16 %v3140_v17, %v3139_v9  ;;  %v1793_v17 = vld [vmem:[#allocation2 + $0x6a] sm:$0xff] }
 0x280   : > { %5756 = vmatpush1.bf16.msra.mxu1 %v5755_v63  ;;  %2115 = vmatprep.mubr.f32.mxu1 %v1991_v40 }
 0x281   : > { %v1779_v15 = vld [vmem:[#allocation2 + $0x91] sm:$0x3]  ;;  %v1817_v27 = vld [vmem:[#allocation2 + $0x93] sm:$0x3]  ;;  %v1778_v34 = vld [vmem:[#allocation2 + $0x89] sm:$0xff]  ;;  %5757 = vmatprep.subr.bf16.mxu1 %v10013_v31 }
 0x282   : > { %v6104_v1 = vpack.i.bf16 %v1779_v15, %v1817_v27  ;;  %v1816_v56 = vld [vmem:[#allocation2 + $0x8b] sm:$0xff] }
 0x283   : > { %v6099_v10 = vpack.i.bf16 %v1778_v34, %v1816_v56  ;;  %2116 = vmatmul.mubr.f32.gmra.mrb[4].mxu1 %v1972_v7  ;;  %v1787_v34 = vld [vmem:[#allocation2 + $0x3a] sm:$0xff] }
 0x284   : > { %6105 = vrot.lane.b32.xlu0 %v6104_v1, %s6454_s23  ;;  %5759 = vmatpush1.bf16.msra.mxu1 %v5758_v36  ;;  %v1749_v1 = vld [vmem:[#allocation2 + $0x38] sm:$0xff] }
 0x285   : > { %6100 = vrot.lane.b32.xlu1 %v6099_v10, %s6454_s23  ;;  %5760 = vmatprep.subr.bf16.mxu1 %v10013_v31 }
 0x286   : > { %v6031_v12 = vpop.permute.xlu1 %6030 }
 0x287   : > { %v6033_v42 = vunpack.i.h.bf16 %v6031_v12  ;;  %v6032_v2 = vunpack.i.l.bf16 %v6031_v12  ;;  %v1788_v12 = vld [vmem:[#allocation2 + $0x42] sm:$0xff] }
 0x288   : > { %5762 = vmatpush1.bf16.msra.mxu1 %v5761_v24 }
 0x289   : > { %v1992_v51 = vsel %vm1721_vm4, %v1783_v48, %v6032_v2  ;;  %v1973_v38 = vsel %vm1721_vm4, %v1745_v18, %v6033_v42  ;;  %5763 = vmatprep.subr.bf16.mxu1 %v10013_v31  ;;  %v1750_v42 = vld [vmem:[#allocation2 + $0x40] sm:$0xff] }
 0x28a   : > { %2120 = vmatprep.mubr.f32.mxu1 %v1992_v51 }
 0x28b   : > { %2121 = vmatmul.mubr.f32.gmra.mrb[6].mxu1 %v1973_v38  ;;  %v1789_v38 = vld [vmem:[#allocation2 + $0x4a] sm:$0xff] }
 0x28c   : > { %5765 = vmatpush1.bf16.msra.mxu1 %v5764_v28 }
 0x28d   : > { %5766 = vmatprep.subr.bf16.mxu1 %v10013_v31 }
 0x290   : > { %5768 = vmatpush1.bf16.msra.mxu1 %v5767_v54 }
 0x291   : > { %5769 = vmatprep.subr.bf16.mxu1 %v10013_v31 }
 0x294   : > { %v6036_v14 = vpop.permute.xlu0 %6035  ;;  %5771 = vmatpush1.bf16.msra.mxu1 %v5770_v41 }
 0x295   : > { %v6038_v13 = vunpack.i.h.bf16 %v6036_v14  ;;  %v6037_v59 = vunpack.i.l.bf16 %v6036_v14  ;;  %5772 = vmatprep.subr.bf16.mxu1 %v10013_v31 }
 0x297   : > { %v1993_v33 = vsel %vm1721_vm4, %v1784_v62, %v6037_v59  ;;  %v1974_v46 = vsel %vm1721_vm4, %v1746_v6, %v6038_v13 }
 0x298   : > { %2125 = vmatprep.mubr.f32.mxu1 %v1993_v33  ;;  %5774 = vmatpush1.bf16.msra.mxu1 %v5773_v43  ;;  %v1791_v43 = vld [vmem:[#allocation2 + $0x5a] sm:$0xff] }
 0x299   : > { %2126 = vmatmul.mubr.f32.gmra.mrb[8].mxu1 %v1974_v46  ;;  %5775 = vmatprep.subr.bf16.mxu1 %v10013_v31  ;;  %v1753_v33 = vld [vmem:[#allocation2 + $0x58] sm:$0xff] }
 0x29c   : > { %5777 = vmatpush1.bf16.msra.mxu1 %v5776_v30 }
 0x29d   : > { %5778 = vmatprep.subr.bf16.mxu1 %v10013_v31 }
 0x2a0   : > { %5780 = vmatpush1.bf16.msra.mxu1 %v5779_v21  ;;  %v1754_v21 = vld [vmem:[#allocation2 + $0x60] sm:$0xff] }
 0x2a1   : > { %5781 = vmatprep.subr.bf16.mxu1 %v10013_v31 }
 0x2a2   : > { %v6041_v61 = vpop.permute.xlu1 %6040 }
 0x2a3   : > { %v6043_v60 = vunpack.i.h.bf16 %v6041_v61  ;;  %v6042_v45 = vunpack.i.l.bf16 %v6041_v61 }
 0x2a4   : > { %5783 = vmatpush1.bf16.msra.mxu1 %v5782_v53 }
 0x2a5   : > { %v1994_v57 = vsel %vm1721_vm4, %v1785_v3, %v6042_v45  ;;  %v1975_v52 = vsel %vm1721_vm4, %v1747_v47, %v6043_v60  ;;  %5784 = vmatprep.subr.bf16.mxu1 %v10013_v31  ;;  %v1755_v60 = vld [vmem:[#allocation2 + $0x68] sm:$0xff] }
 0x2a6   : > { %v6046_v63 = vpop.permute.xlu0 %6045  ;;  %2130 = vmatprep.mubr.f32.mxu1 %v1994_v57 }
 0x2a7   : > { %v6048_v39 = vunpack.i.h.bf16 %v6046_v63  ;;  %v6047_v40 = vunpack.i.l.bf16 %v6046_v63  ;;  %2131 = vmatmul.mubr.f32.gmra.mrb[10].mxu1 %v1975_v52  ;;  %v1756_v63 = vld [vmem:[#allocation2 + $0x70] sm:$0xff] }
 0x2a8   : > { %5786 = vmatpush1.bf16.msra.mxu1 %v5785_v8  ;;  %v1794_v8 = vld [vmem:[#allocation2 + $0x72] sm:$0xff] }
 0x2a9   : > { %v1995_v44 = vsel %vm1721_vm4, %v1786_v29, %v6047_v40  ;;  %v1976_v7 = vsel %vm1721_vm4, %v1748_v37, %v6048_v39  ;;  %3216 = vmatprep.subr.mxu1 %v10231_v20 }
 0x2aa   : > { %v6051_v36 = vpop.permute.xlu1 %6050  ;;  %2135 = vmatprep.mubr.f32.mxu1 %v1995_v44 }
 0x2ab   : > { %v6053_v15 = vunpack.i.h.bf16 %v6051_v36  ;;  %v6052_v27 = vunpack.i.l.bf16 %v6051_v36  ;;  %2136 = vmatmul.mubr.f32.gmra.mrb[12].mxu1 %v1976_v7  ;;  %v1795_v7 = vld [vmem:[#allocation2 + $0x7a] sm:$0xff] }
 0x2ac   : > { %3217 = vmatpush1.msra.mxu1 %v3141_v11  ;;  %v1757_v36 = vld [vmem:[#allocation2 + $0x78] sm:$0xff] }
 0x2ad   : > { %v1996_v56 = vsel %vm1721_vm4, %v1787_v34, %v6052_v27  ;;  %v1977_v10 = vsel %vm1721_vm4, %v1749_v1, %v6053_v15 }
 0x2ae   : > { %2140 = vmatprep.mubr.f32.mxu1 %v1996_v56  ;;  %v1796_v56 = vld [vmem:[#allocation2 + $0x82] sm:$0xff] }
 0x2af   : > { %2141 = vmatmul.mubr.f32.gmra.mrb[14].mxu1 %v1977_v10  ;;  %v1758_v10 = vld [vmem:[#allocation2 + $0x80] sm:$0xff] }
 0x2b0   : > { %v6056_v24 = vpop.permute.xlu0 %6055 }
 0x2b1   : > { %v6058_v26 = vunpack.i.h.bf16 %v6056_v24  ;;  %v6057_v4 = vunpack.i.l.bf16 %v6056_v24 }
 0x2b3   : > { %v1997_v2 = vsel %vm1721_vm4, %v1788_v12, %v6057_v4  ;;  %v1978_v48 = vsel %vm1721_vm4, %v1750_v42, %v6058_v26 }
 0x2b4   : > { %2145 = vmatprep.mubr.f32.mxu1 %v1997_v2 }
 0x2b5   : > { %2146 = vmatmul.mubr.f32.gmra.mrb[16].mxu1 %v1978_v48 }
 0x2be   : > { %v6061_v18 = vpop.permute.xlu1 %6060 }
 0x2bf   : > { %v6063_v28 = vunpack.i.h.bf16 %v6061_v18  ;;  %v6062_v51 = vunpack.i.l.bf16 %v6061_v18  ;;  %v1797_v18 = vld [vmem:[#allocation2 + $0x8a] sm:$0xff] }
 0x2c1   : > { %v1998_v55 = vsel %vm1721_vm4, %v1789_v38, %v6062_v51  ;;  %v1979_v54 = vsel %vm1721_vm4, %v1751_v5, %v6063_v28  ;;  %v1759_v28 = vld [vmem:[#allocation2 + $0x88] sm:$0xff] }
 0x2c2   : > { %v6066_v58 = vpop.permute.xlu0 %6065  ;;  %2150 = vmatprep.mubr.f32.mxu1 %v1998_v55  ;;  %v1798_v55 = vld [vmem:[#allocation2 + $0x92] sm:$0x3] }
 0x2c3   : > { %v6068_v35 = vunpack.i.h.bf16 %v6066_v58  ;;  %v6067_v41 = vunpack.i.l.bf16 %v6066_v58  ;;  %2151 = vmatmul.mubr.f32.gmra.mrb[18].mxu1 %v1979_v54  ;;  %v1760_v58 = vld [vmem:[#allocation2 + $0x90] sm:$0x3] }
 0x2c5   : > { %v1999_v14 = vsel %vm1721_vm4, %v1790_v23, %v6067_v41  ;;  %v1980_v13 = vsel %vm1721_vm4, %v1752_v50, %v6068_v35  ;;  %v3102_v35 = vld [vmem:[%s7924_s6 + $0x8] sm:$0xff]  ;;  %v3101_v23 = vld [vmem:[%s7924_s6] sm:$0xff]  ;;  %v3104_v50 = vld [vmem:[%s7924_s6 + $0x18] sm:$0xff] }
 0x2c6   : > { %v6071_v59 = vpop.permute.xlu1 %6070  ;;  %2155 = vmatprep.mubr.f32.mxu1 %v1999_v14  ;;  %v3103_v14 = vld [vmem:[%s7924_s6 + $0x10] sm:$0xff] }
 0x2c7   : > { %v6073_v62 = vunpack.i.h.bf16 %v6071_v59  ;;  %v6072_v6 = vunpack.i.l.bf16 %v6071_v59  ;;  %2156 = vmatmul.mubr.f32.gmra.mrb[20].mxu1 %v1980_v13  ;;  %v3106_v13 = vld [vmem:[%s7924_s6 + $0x28] sm:$0xff]  ;;  %v3105_v59 = vld [vmem:[%s7924_s6 + $0x20] sm:$0xff] }
 0x2c9   : > { %v2000_v46 = vsel %vm1721_vm4, %v1791_v43, %v6072_v6  ;;  %v1981_v22 = vsel %vm1721_vm4, %v1753_v33, %v6073_v62  ;;  %v3108_v62 = vld [vmem:[%s7924_s6 + $0x38] sm:$0xff]  ;;  %v3107_v6 = vld [vmem:[%s7924_s6 + $0x30] sm:$0xff]  ;;  %v3110_v43 = vld [vmem:[%s7924_s6 + $0x48] sm:$0xff] }
 0x2ca   : > { %2160 = vmatprep.mubr.f32.mxu1 %v2000_v46  ;;  %v3109_v33 = vld [vmem:[%s7924_s6 + $0x40] sm:$0xff]  ;;  %v3112_v46 = vld [vmem:[%s7924_s6 + $0x58] sm:$0xff] }
 0x2cb   : > { %2161 = vmatmul.mubr.f32.gmra.mrb[22].mxu1 %v1981_v22  ;;  %v3111_v22 = vld [vmem:[%s7924_s6 + $0x50] sm:$0xff] }
 0x2cc   : > { %v6076_v49 = vpop.permute.xlu0 %6075 }
 0x2cd   : > { %v6078_v30 = vunpack.i.h.bf16 %v6076_v49  ;;  %v6077_v32 = vunpack.i.l.bf16 %v6076_v49  ;;  %v3114_v49 = vld [vmem:[%s7924_s6 + $0x68] sm:$0xff] }
 0x2cf   : > { %v2001_v19 = vsel %vm1721_vm4, %v1792_v16, %v6077_v32  ;;  %v1982_v25 = vsel %vm1721_vm4, %v1754_v21, %v6078_v30  ;;  %v3113_v30 = vld [vmem:[%s7924_s6 + $0x60] sm:$0xff]  ;;  %v3116_v32 = vld [vmem:[%s7924_s6 + $0x78] sm:$0x1]  ;;  %v3115_v16 = vld [vmem:[%s7924_s6 + $0x70] sm:$0x1] }
 0x2d0   : > { %2165 = vmatprep.mubr.f32.mxu1 %v2001_v19  ;;  %v7955_v21 = vld [vmem:[%s9976_s2 + $0x60] ss:$0 sm:$0xff] }
 0x2d1   : > { %2166 = vmatmul.mubr.f32.gmra.mrb[24].mxu1 %v1982_v25 }
 0x2da   : > { %v6081_v53 = vpop.permute.xlu1 %6080 }
 0x2db   : > { %v6083_v61 = vunpack.i.h.bf16 %v6081_v53  ;;  %v6082_v9 = vunpack.i.l.bf16 %v6081_v53 }
 0x2dd   : > { %v2002_v45 = vsel %vm1721_vm4, %v1793_v17, %v6082_v9  ;;  %v1983_v3 = vsel %vm1721_vm4, %v1755_v60, %v6083_v61  ;;  %v2814_v61 = vld [vmem:[%s9977_s3 + $0x180] sm:$0xff]  ;;  %v2815_v9 = vld [vmem:[%s9977_s3 + $0x188] sm:$0xff] }
 0x2de   : > { %v6086_v47 = vpop.permute.xlu0 %6085  ;;  %2170 = vmatprep.mubr.f32.mxu1 %v2002_v45  ;;  %v5687_v60 = vpack.c.bf16 %v2815_v9, %v2814_v61  ;;  %v2798_v45 = vld [vmem:[%s9977_s3 + $0x100] sm:$0xff] }
 0x2df   : > { %v6088_v57 = vunpack.i.h.bf16 %v6086_v47  ;;  %v6087_v52 = vunpack.i.l.bf16 %v6086_v47  ;;  %2171 = vmatmul.mubr.f32.gmra.mrb[26].mxu1 %v1983_v3  ;;  %v2799_v3 = vld [vmem:[%s9977_s3 + $0x108] sm:$0xff] }
 0x2e0   : > { %5688 = vmatprep.subr.bf16.mxu0 %v5687_v60 }
 0x2e1   : > { %v2003_v39 = vsel %vm1721_vm4, %v1794_v8, %v6087_v52  ;;  %v1984_v40 = vsel %vm1721_vm4, %v1756_v63, %v6088_v57  ;;  %v5689_v57 = vpack.c.bf16 %v2799_v3, %v2798_v45  ;;  %v2822_v3 = vld [vmem:[%s9977_s3 + $0x1c0] sm:$0xff] }
 0x2e2   : > { %v6091_v29 = vpop.permute.xlu1 %6090  ;;  %2175 = vmatprep.mubr.f32.mxu1 %v2003_v39 }
 0x2e3   : > { %v6093_v37 = vunpack.i.h.bf16 %v6091_v29  ;;  %v6092_v44 = vunpack.i.l.bf16 %v6091_v29  ;;  %2176 = vmatmul.mubr.f32.gmra.mrb[28].mxu1 %v1984_v40  ;;  %5690 = vmatpush3.bf16.msra.mxu0 %v5689_v57 }
 0x2e5   : > { %v2004_v11 = vsel %vm1721_vm4, %v1795_v7, %v6092_v44  ;;  %v1985_v15 = vsel %vm1721_vm4, %v1757_v36, %v6093_v37 }
 0x2e6   : > { %2180 = vmatprep.mubr.f32.mxu1 %v2004_v11  ;;  %v2816_v11 = vld [vmem:[%s9977_s3 + $0x190] sm:$0xff] }
 0x2e7   : > { %2181 = vmatmul.mubr.f32.gmra.mrb[30].mxu1 %v1985_v15  ;;  %v2817_v15 = vld [vmem:[%s9977_s3 + $0x198] sm:$0xff] }
 0x2e8   : > { %v6096_v27 = vpop.permute.xlu0 %6095 }
 0x2e9   : > { %v6098_v34 = vunpack.i.h.bf16 %v6096_v27  ;;  %v6097_v1 = vunpack.i.l.bf16 %v6096_v27 }
 0x2eb   : > { %v2005_v24 = vsel %vm1721_vm4, %v1796_v56, %v6097_v1  ;;  %v1986_v26 = vsel %vm1721_vm4, %v1758_v10, %v6098_v34  ;;  %v2800_v34 = vld [vmem:[%s9977_s3 + $0x110] sm:$0xff]  ;;  %v5691_v56 = vpack.c.bf16 %v2817_v15, %v2816_v11  ;;  %v2801_v10 = vld [vmem:[%s9977_s3 + $0x118] sm:$0xff] }
 0x2ec   : > { %2185 = vmatprep.mubr.f32.mxu1 %v2005_v24 }
 0x2ed   : > { %2186 = vmatmul.mubr.f32.gmra.mrb[32].mxu1 %v1986_v26  ;;  %v5693_v26 = vpack.c.bf16 %v2801_v10, %v2800_v34  ;;  %5692 = vmatprep.subr.bf16.mxu0 %v5691_v56 }
 0x2ef   : > { %5694 = vmatpush3.bf16.msra.mxu0 %v5693_v26 }
 0x2f6   : > { %v6106_v4 = vpop.permute.xlu0 %6105 }
 0x2f7   : > { %v6101_v12 = vpop.permute.xlu1 %6100  ;;  %v6107_v48 = vunpack.i.l.bf16 %v6106_v4  ;;  %v6108_v5 = vunpack.i.h.bf16 %v6106_v4 }
 0x2f8   : > { %v6103_v42 = vunpack.i.h.bf16 %v6101_v12  ;;  %v6102_v2 = vunpack.i.l.bf16 %v6101_v12 }
 0x2f9   : > { %v2007_v54 = vsel %vm1721_vm4, %v1798_v55, %v6107_v48  ;;  %v1988_v41 = vsel %vm1721_vm4, %v1760_v58, %v6108_v5 }
 0x2fa   : > { %v2006_v51 = vsel %vm1721_vm4, %v1797_v18, %v6102_v2  ;;  %v1987_v38 = vsel %vm1721_vm4, %v1759_v28, %v6103_v42  ;;  %v2818_v28 = vld [vmem:[%s9977_s3 + $0x1a0] sm:$0xff] }
 0x2fb   : > { %2190 = vmatprep.mubr.f32.mxu1 %v2006_v51  ;;  %v2819_v51 = vld [vmem:[%s9977_s3 + $0x1a8] sm:$0xff] }
 0x2fc   : > { %2191 = vmatmul.mubr.f32.gmra.mrb[34].mxu1 %v1987_v38  ;;  %v2802_v38 = vld [vmem:[%s9977_s3 + $0x120] sm:$0xff]  ;;  %v5695_v55 = vpack.c.bf16 %v2819_v51, %v2818_v28 }
 0x2fd   : > { %2195 = vmatprep.mubr.f32.mxu1 %v2007_v54  ;;  %v2803_v54 = vld [vmem:[%s9977_s3 + $0x128] sm:$0xff] }
 0x2fe   : > { %5696 = vmatprep.subr.bf16.mxu0 %v5695_v55 }
 0x300   : > { %2196 = vmatmul.mubr.f32.gmra.mrb[36].mxu1 %v1988_v41 }
 0x301   : > { %5089 = vmatprep.mubr.msk.f32.mxu1 %vm3143_vm9, %v3102_v35  ;;  %v5697_v35 = vpack.c.bf16 %v2803_v54, %v2802_v38 }
 0x303   : > { %5698 = vmatpush3.bf16.msra.mxu0 %v5697_v35 }
 0x304   : > { %3233 = vmatmul.mubr.f32.vlgmr.msra.gmra.mrb[38].mxu1 %v3101_v23 }
 0x305   : > { %5090 = vmatprep.mubr.msk.f32.mxu1 %vm3143_vm9, %v3104_v50 }
 0x308   : > { %3238 = vmatmul.mubr.f32.gmra.mrb[40].mxu1 %v3103_v14 }
 0x309   : > { %5091 = vmatprep.mubr.msk.f32.mxu1 %vm3143_vm9, %v3106_v13 }
 0x30c   : > { %3243 = vmatmul.mubr.f32.gmra.mrb[42].mxu1 %v3105_v59 }
 0x30d   : > { %5092 = vmatprep.mubr.msk.f32.mxu1 %vm3143_vm9, %v3108_v62 }
 0x310   : > { %3248 = vmatmul.mubr.f32.gmra.mrb[44].mxu1 %v3107_v6 }
 0x311   : > { %5093 = vmatprep.mubr.msk.f32.mxu1 %vm3143_vm9, %v3110_v43  ;;  %v2820_v43 = vld [vmem:[%s9977_s3 + $0x1b0] sm:$0xff] }
 0x314   : > { %3253 = vmatmul.mubr.f32.gmra.mrb[46].mxu1 %v3109_v33  ;;  %v2821_v33 = vld [vmem:[%s9977_s3 + $0x1b8] sm:$0xff] }
 0x315   : > { %5094 = vmatprep.mubr.msk.f32.mxu1 %vm3143_vm9, %v3112_v46 }
 0x318   : > { %3258 = vmatmul.mubr.f32.gmra.mrb[48].mxu1 %v3111_v22 }
 0x319   : > { %5095 = vmatprep.mubr.msk.f32.mxu1 %vm3143_vm9, %v3114_v49 }
 0x31c   : > { %3263 = vmatmul.mubr.f32.gmra.mrb[50].mxu1 %v3113_v30 }
 0x31d   : > { %5096 = vmatprep.mubr.msk.f32.mxu1 %vm3143_vm9, %v3116_v32  ;;  %v5699_v32 = vpack.c.bf16 %v2821_v33, %v2820_v43 }
 0x31f   : > { %5700 = vmatprep.subr.bf16.mxu0 %v5699_v32 }
 0x320   : > { %3268 = vmatmul.mubr.f32.gmra.mrb[52].mxu1 %v3115_v16  ;;  %v2804_v16 = vld [vmem:[%s9977_s3 + $0x130] sm:$0xff] }
 0x34e   : > { %v2107_v19 = vpop.f32.mrb[0].mxu1 }
 0x34f   : > { %v7958_v25 = vadd.f32 %v2107_v19, %v7955_v21  ;;  %v2109_v53 = vpop.f32.mrb[1].mxu1  ;;  %v2805_v19 = vld [vmem:[%s9977_s3 + $0x138] sm:$0xff] }
 0x350   : > { %v5701_v9 = vpack.c.bf16 %v2805_v19, %v2804_v16 }
 0x351   : > { %v7967_v17 = vmul.f32 0.70710677, %v7958_v25 }
 0x352   : > { %v2112_v47 = vpop.f32.mrb[2].mxu1  ;;  %5702 = vmatpush3.bf16.msra.mxu0 %v5701_v9 }
 0x353   : > { %v2277_v52 = vand.u32 2147483647, %v7967_v17  ;;  %v7977_v8 = vadd.f32 %v2112_v47, %v7955_v21  ;;  %v2114_v63 = vpop.f32.mrb[3].mxu1  ;;  %v2823_v47 = vld [vmem:[%s9977_s3 + $0x1c8] sm:$0xff]  ;;  %vm2239_vm10 = vcmp.ge.f32.partialorder %v7967_v17, 0.0  ;;  %v2810_v17 = vld [vmem:[%s9977_s3 + $0x160] sm:$0xff] }
 0x355   : > { %v2296_v39 = vmul.f32 0.3275911, %v2277_v52  ;;  %v7980_v40 = vmul.f32 0.70710677, %v7977_v8  ;;  %v2524_v12 = vsub.f32 0.0, %v2277_v52 }
 0x356   : > { %v2117_v29 = vpop.f32.mrb[4].mxu1 }
 0x357   : > { %v2315_v37 = vadd.f32 1.0, %v2296_v39  ;;  %v2278_v44 = vand.u32 2147483647, %v7980_v40  ;;  %v2119_v7 = vpop.f32.mrb[5].mxu1  ;;  %v7984_v36 = vadd.f32 %v2117_v29, %v7955_v21  ;;  %v2543_v41 = vmul.f32 %v2524_v12, %v2277_v52  ;;  %v2806_v29 = vld [vmem:[%s9977_s3 + $0x140] sm:$0xff] }
 0x358   : > { %v5703_v39 = vpack.c.bf16 %v2823_v47, %v2822_v3  ;;  %v2258_v47 = vsel %vm2239_vm10, 1.0, %v10217_v0  ;;  %vm2240_vm11 = vcmp.ge.f32.partialorder %v7980_v40, 0.0 }
 0x359   : > { %6291 = vrcp.f32 %v2315_v37  ;;  %v2297_v27 = vmul.f32 0.3275911, %v2278_v44  ;;  %v7996_v1 = vmul.f32 0.70710677, %v7984_v36  ;;  %v2525_v50 = vsub.f32 0.0, %v2278_v44  ;;  %v2807_v37 = vld [vmem:[%s9977_s3 + $0x148] sm:$0xff] }
 0x35a   : > { %v2562_v6 = vmul.f32 1.442695, %v2543_v41  ;;  %v5705_v34 = vpack.c.bf16 %v2807_v37, %v2806_v29  ;;  %5704 = vmatprep.subr.bf16.mxu0 %v5703_v39 }
 0x35b   : > { %v2316_v24 = vadd.f32 1.0, %v2297_v27  ;;  %v2279_v4 = vand.u32 2147483647, %v7996_v1  ;;  %v2544_v22 = vmul.f32 %v2525_v50, %v2278_v44  ;;  %vm2241_vm12 = vcmp.ge.f32.partialorder %v7996_v1, 0.0 }
 0x35c   : > { %5706 = vmatpush3.bf16.msra.mxu0 %v5705_v34 }
 0x35d   : > { %6293 = vrcp.f32 %v2316_v24  ;;  %v2298_v42 = vmul.f32 0.3275911, %v2279_v4  ;;  %v2526_v49 = vsub.f32 0.0, %v2279_v4  ;;  %v2564_v57 = vmul.f32 1.442695, %v2544_v22  ;;  %v2808_v22 = vld [vmem:[%s9977_s3 + $0x150] sm:$0xff] }
 0x35e   : > { %v2122_v2 = vpop.f32.mrb[6].mxu1 }
 0x35f   : > { %v8003_v48 = vadd.f32 %v2122_v2, %v7955_v21  ;;  %v2124_v18 = vpop.f32.mrb[7].mxu1  ;;  %v2317_v5 = vadd.f32 1.0, %v2298_v42  ;;  %v2545_v52 = vmul.f32 %v2526_v49, %v2279_v4  ;;  %v2809_v49 = vld [vmem:[%s9977_s3 + $0x158] sm:$0xff] }
 0x360   : > { %v5709_v19 = vpack.c.bf16 %v2809_v49, %v2808_v22  ;;  %v2813_v22 = vld [vmem:[%s9977_s3 + $0x178] sm:$0xff] }
 0x361   : > { %v8018_v58 = vmul.f32 0.70710677, %v8003_v48  ;;  %6295 = vrcp.f32 %v2317_v5  ;;  %v2566_v18 = vmul.f32 1.442695, %v2545_v52  ;;  %v2826_v52 = vld [vmem:[%s9977_s3 + $0x1e0] sm:$0xff] }
 0x363   : > { %v6292_v23 = vpop.eup %6291  ;;  %v2280_v14 = vand.u32 2147483647, %v8018_v58  ;;  %vm2242_vm13 = vcmp.ge.f32.partialorder %v8018_v58, 0.0 }
 0x364   : > { %v2353_v13 = vmul.f32 1.0614054, %v6292_v23 }
 0x365   : > { %v2299_v59 = vmul.f32 0.3275911, %v2280_v14  ;;  %v2527_v4 = vsub.f32 0.0, %v2280_v14 }
 0x366   : > { %v2372_v62 = vadd.f32 -1.4531521, %v2353_v13 }
 0x367   : > { %v8027_v46 = vpop.eup %6293  ;;  %v2318_v30 = vadd.f32 1.0, %v2299_v59  ;;  %v2546_v35 = vmul.f32 %v2527_v4, %v2280_v14 }
 0x368   : > { %v2391_v53 = vmul.f32 %v6292_v23, %v2372_v62  ;;  %v2354_v61 = vmul.f32 1.0614054, %v8027_v46  ;;  %v2824_v62 = vld [vmem:[%s9977_s3 + $0x1d0] sm:$0xff] }
 0x369   : > { %6297 = vrcp.f32 %v2318_v30 }
 0x36a   : > { %v2410_v60 = vadd.f32 1.4214138, %v2391_v53  ;;  %v2373_v45 = vadd.f32 -1.4531521, %v2354_v61  ;;  %6299 = vpow2.f32 %v2562_v6  ;;  %v2825_v6 = vld [vmem:[%s9977_s3 + $0x1d8] sm:$0xff] }
 0x36b   : > { %v8048_v44 = vpop.eup %6295  ;;  %6301 = vpow2.f32 %v2564_v57  ;;  %v2568_v61 = vmul.f32 1.442695, %v2546_v35 }
 0x36c   : > { %v2127_v63 = vpop.f32.mrb[8].mxu1  ;;  %v2429_v7 = vmul.f32 %v6292_v23, %v2410_v60  ;;  %v2392_v11 = vmul.f32 %v8027_v46, %v2373_v45  ;;  %v2355_v56 = vmul.f32 1.0614054, %v8048_v44  ;;  %6303 = vpow2.f32 %v2566_v18 }
 0x36d   : > { %v8052_v15 = vadd.f32 %v2127_v63, %v7955_v21  ;;  %v2129_v27 = vpop.f32.mrb[9].mxu1 }
 0x36e   : > { %v2448_v10 = vadd.f32 -0.28449672, %v2429_v7  ;;  %v2411_v24 = vadd.f32 1.4214138, %v2392_v11  ;;  %v2374_v26 = vadd.f32 -1.4531521, %v2355_v56 }
 0x36f   : > { %v8056_v12 = vmul.f32 0.70710677, %v8052_v15  ;;  %v2811_v11 = vld [vmem:[%s9977_s3 + $0x168] sm:$0xff] }
 0x370   : > { %v2467_v42 = vmul.f32 %v6292_v23, %v2448_v10  ;;  %v2430_v2 = vmul.f32 %v8027_v46, %v2411_v24  ;;  %v2393_v28 = vmul.f32 %v8048_v44, %v2374_v26  ;;  %v5713_v10 = vpack.c.bf16 %v2811_v11, %v2810_v17 }
 0x371   : > { %v8061_v51 = vand.u32 2147483647, %v8056_v12  ;;  %v2201_v24 = vmul.f32 0.5, %v7958_v25  ;;  %vm2243_vm14 = vcmp.ge.f32.partialorder %v8056_v12, 0.0 }
 0x372   : > { %v2486_v38 = vadd.f32 0.2548296, %v2467_v42  ;;  %v2449_v5 = vadd.f32 -0.28449672, %v2430_v2  ;;  %v2412_v54 = vadd.f32 1.4214138, %v2393_v28 }
 0x373   : > { %v8063_v55 = vpop.eup %6297  ;;  %v2300_v41 = vmul.f32 0.3275911, %v8061_v51  ;;  %v2259_v2 = vsel %vm2240_vm11, 1.0, %v10217_v0  ;;  %v2528_v28 = vsub.f32 0.0, %v8061_v51 }
 0x374   : > { %v2505_v50 = vmul.f32 %v6292_v23, %v2486_v38  ;;  %v2468_v13 = vmul.f32 %v8027_v46, %v2449_v5  ;;  %v2356_v59 = vmul.f32 1.0614054, %v8063_v55  ;;  %v6300_v43 = vpop.eup %6299  ;;  %v2431_v14 = vmul.f32 %v8048_v44, %v2412_v54 }
 0x375   : > { %v2319_v33 = vadd.f32 1.0, %v2300_v41  ;;  %v5707_v23 = vpack.c.bf16 %v2825_v6, %v2824_v62  ;;  %v6302_v3 = vpop.eup %6301  ;;  %v2829_v62 = vld [vmem:[%s9977_s3 + $0x1f8] sm:$0xff]  ;;  %v2202_v6 = vmul.f32 0.5, %v7977_v8  ;;  %v2547_v8 = vmul.f32 %v2528_v28, %v8061_v51 }
 0x376   : > { %v2600_v30 = vmul.f32 %v6300_v43, %v2505_v50  ;;  %v2487_v32 = vadd.f32 0.2548296, %v2468_v13  ;;  %v2375_v16 = vadd.f32 -1.4531521, %v2356_v59  ;;  %v2450_v53 = vadd.f32 -0.28449672, %v2431_v14  ;;  %v6304_v5 = vpop.eup %6303 }
 0x377   : > { %6305 = vrcp.f32 %v2319_v33  ;;  %5708 = vmatprep.subr.bf16.mxu0 %v5707_v23  ;;  %v2828_v59 = vld [vmem:[%s9977_s3 + $0x1f0] sm:$0xff] }
 0x378   : > { %v2619_v9 = vsub.f32 1.0, %v2600_v30  ;;  %v2506_v60 = vmul.f32 %v8027_v46, %v2487_v32  ;;  %v2394_v45 = vmul.f32 %v8063_v55, %v2375_v16  ;;  %5710 = vmatpush3.bf16.msra.mxu0 %v5709_v19  ;;  %v2469_v57 = vmul.f32 %v8048_v44, %v2450_v53  ;;  %v2827_v46 = vld [vmem:[%s9977_s3 + $0x1e8] sm:$0xff]  ;;  %v2812_v23 = vld [vmem:[%s9977_s3 + $0x170] sm:$0xff] }
 0x379   : > { %v5711_v7 = vpack.c.bf16 %v2827_v46, %v2826_v52  ;;  %6307 = vpow2.f32 %v2568_v61  ;;  %v5715_v33 = vpack.c.bf16 %v2829_v62, %v2828_v59  ;;  %v2260_v30 = vsel %vm2241_vm12, 1.0, %v10217_v0 }
 0x37a   : > { %v2638_v63 = vmul.f32 %v2619_v9, %v2258_v47  ;;  %v2601_v39 = vmul.f32 %v6302_v3, %v2506_v60  ;;  %v2413_v29 = vadd.f32 1.4214138, %v2394_v45  ;;  %v2132_v37 = vpop.f32.mrb[10].mxu1  ;;  %v2488_v27 = vadd.f32 0.2548296, %v2469_v57 }
 0x37b   : > { %v8102_v34 = vadd.f32 %v2132_v37, %v7955_v21  ;;  %v2134_v56 = vpop.f32.mrb[11].mxu1  ;;  %5712 = vmatprep.subr.bf16.mxu0 %v5711_v7  ;;  %v5717_v47 = vpack.c.bf16 %v2813_v22, %v2812_v23 }
 0x37c   : > { %v2657_v26 = vadd.f32 1.0, %v2638_v63  ;;  %v2620_v4 = vsub.f32 1.0, %v2601_v39  ;;  %v2432_v42 = vmul.f32 %v8063_v55, %v2413_v29  ;;  %v2507_v18 = vmul.f32 %v8048_v44, %v2488_v27  ;;  %5714 = vmatpush3.bf16.msra.mxu0 %v5713_v10 }
 0x37d   : > { %v8112_v38 = vmul.f32 0.70710677, %v8102_v34  ;;  %5716 = vmatprep.subr.bf16.mxu0 %v5715_v33  ;;  %v2203_v63 = vmul.f32 0.5, %v7984_v36  ;;  %v2570_v29 = vmul.f32 1.442695, %v2547_v8  ;;  %v2261_v36 = vsel %vm2242_vm13, 1.0, %v10217_v0 }
 0x37e   : > { %v2676_v54 = vmul.f32 %v2657_v26, %v2201_v24  ;;  %v2639_v25 = vmul.f32 %v2620_v4, %v2259_v2  ;;  %v2451_v35 = vadd.f32 -0.28449672, %v2432_v42  ;;  %v2137_v41 = vpop.f32.mrb[12].mxu1  ;;  %v2602_v50 = vmul.f32 %v6304_v5, %v2507_v18 }
 0x37f   : > { %v8116_v13 = vand.u32 2147483647, %v8112_v38  ;;  %v8119_v40 = vadd.f32 %v2137_v41, %v7955_v21  ;;  %v2139_v44 = vpop.f32.mrb[13].mxu1  ;;  %vm2244_vm15 = vcmp.ge.f32.partialorder %v8112_v38, 0.0 }
 0x380   : > { %2695 = vst [vmem:[#allocation3] sm:$0xff] %v2676_v54  ;;  %v2658_v43 = vadd.f32 1.0, %v2639_v25  ;;  %v2470_v14 = vmul.f32 %v8063_v55, %v2451_v35  ;;  %v2621_v32 = vsub.f32 1.0, %v2602_v50  ;;  %5718 = vmatpush3.bf16.msra.mxu0 %v5717_v47  ;;  %v2204_v54 = vmul.f32 0.5, %v8003_v48 }
 0x381   : > { %v8135_v49 = vpop.eup %6305  ;;  %v2301_v16 = vmul.f32 0.3275911, %v8116_v13  ;;  %v8144_v9 = vmul.f32 0.70710677, %v8119_v40  ;;  %v2529_v18 = vsub.f32 0.0, %v8116_v13 }
 0x382   : > { %v2677_v19 = vmul.f32 %v2658_v43, %v2202_v6  ;;  %v2489_v53 = vadd.f32 0.2548296, %v2470_v14  ;;  %v2357_v61 = vmul.f32 1.0614054, %v8135_v49  ;;  %v2640_v60 = vmul.f32 %v2621_v32, %v2260_v30  ;;  %v2142_v3 = vpop.f32.mrb[14].mxu1 }
 0x383   : > { %v2320_v45 = vadd.f32 1.0, %v2301_v16  ;;  %v2283_v51 = vand.u32 2147483647, %v8144_v9  ;;  %v2144_v52 = vpop.f32.mrb[15].mxu1  ;;  %v6308_v46 = vpop.eup %6307  ;;  %v2548_v6 = vmul.f32 %v2529_v18, %v8116_v13  ;;  %vm2245_vm0 = vcmp.ge.f32.partialorder %v8144_v9, 0.0 }
 0x384   : > { %2696 = vst [vmem:[#allocation3 + $0x8] sm:$0xff] %v2677_v19  ;;  %v2508_v1 = vmul.f32 %v8063_v55, %v2489_v53  ;;  %v2376_v57 = vadd.f32 -1.4531521, %v2357_v61  ;;  %v2659_v39 = vadd.f32 1.0, %v2640_v60  ;;  %v8152_v55 = vadd.f32 %v2142_v3, %v7955_v21 }
 0x385   : > { %6309 = vrcp.f32 %v2320_v45  ;;  %v2302_v17 = vmul.f32 0.3275911, %v2283_v51  ;;  %v2530_v23 = vsub.f32 0.0, %v2283_v51  ;;  %v2572_v16 = vmul.f32 1.442695, %v2548_v6  ;;  %v2846_v45 = vld [vmem:[%s9977_s3 + $0x280] sm:$0xff] }
 0x386   : > { %v2603_v37 = vmul.f32 %v6308_v46, %v2508_v1  ;;  %v2395_v7 = vmul.f32 %v8135_v49, %v2376_v57  ;;  %v2678_v11 = vmul.f32 %v2659_v39, %v2203_v63  ;;  %6311 = vpow2.f32 %v2570_v29 }
 0x387   : > { %v2321_v24 = vadd.f32 1.0, %v2302_v17  ;;  %v8156_v4 = vmul.f32 0.70710677, %v8152_v55  ;;  %v2549_v60 = vmul.f32 %v2530_v23, %v2283_v51  ;;  %v2205_v3 = vmul.f32 0.5, %v8052_v15 }
 0x388   : > { %v2147_v27 = vpop.f32.mrb[16].mxu1  ;;  %v2622_v56 = vsub.f32 1.0, %v2603_v37  ;;  %v2414_v10 = vadd.f32 1.4214138, %v2395_v7  ;;  %2697 = vst [vmem:[#allocation3 + $0x10] sm:$0xff] %v2678_v11  ;;  %v2262_v63 = vsel %vm2243_vm14, 1.0, %v10217_v0 }
 0x389   : > { %v2149_v26 = vpop.f32.mrb[17].mxu1  ;;  %v8159_v58 = vadd.f32 %v2147_v27, %v7955_v21  ;;  %6313 = vrcp.f32 %v2321_v24  ;;  %v2284_v28 = vand.u32 2147483647, %v8156_v4  ;;  %v8196_v15 = vmul.f32 0.5, %v8102_v34 }
 0x38a   : > { %v2641_v42 = vmul.f32 %v2622_v56, %v2261_v36  ;;  %v2433_v2 = vmul.f32 %v8135_v49, %v2414_v10  ;;  %v2574_v27 = vmul.f32 1.442695, %v2549_v60  ;;  %vm2246_vm1 = vcmp.ge.f32.partialorder %v8156_v4, 0.0 }
 0x38b   : > { %v8165_v5 = vmul.f32 0.70710677, %v8159_v58  ;;  %v2303_v41 = vmul.f32 0.3275911, %v2284_v28  ;;  %v2531_v51 = vsub.f32 0.0, %v2284_v28 }
 0x38c   : > { %v2660_v25 = vadd.f32 1.0, %v2641_v42  ;;  %v2452_v35 = vadd.f32 -0.28449672, %v2433_v2 }
 0x38d   : > { %v8169_v50 = vand.u32 2147483647, %v8165_v5  ;;  %v2322_v43 = vadd.f32 1.0, %v2303_v41  ;;  %vm2247_vm2 = vcmp.ge.f32.partialorder %v8165_v5, 0.0  ;;  %v8301_v5 = vld [vmem:[%s9977_s3 + $0x298] sm:$0xff] }
 0x38e   : > { %v2679_v44 = vmul.f32 %v2660_v25, %v2204_v54  ;;  %v2471_v59 = vmul.f32 %v8135_v49, %v2452_v35  ;;  %v2550_v54 = vmul.f32 %v2531_v51, %v2284_v28  ;;  %v2266_v4 = vsel %vm2247_vm2, 1.0, %v10217_v0 }
 0x38f   : > { %v8172_v62 = vpop.eup %6309  ;;  %v2304_v14 = vmul.f32 0.3275911, %v8169_v50  ;;  %6315 = vrcp.f32 %v2322_v43  ;;  %v2532_v56 = vsub.f32 0.0, %v8169_v50 }
 0x390   : > { %2698 = vst [vmem:[#allocation3 + $0x18] sm:$0xff] %v2679_v44  ;;  %v2490_v33 = vadd.f32 0.2548296, %v2471_v59  ;;  %v2358_v48 = vmul.f32 1.0614054, %v8172_v62  ;;  %v6312_v8 = vpop.eup %6311 }
 0x391   : > { %v2323_v22 = vadd.f32 1.0, %v2304_v14  ;;  %v2551_v14 = vmul.f32 %v2532_v56, %v8169_v50  ;;  %v2263_v50 = vsel %vm2244_vm15, 1.0, %v10217_v0  ;;  %v2264_v56 = vsel %vm2245_vm0, 1.0, %v10217_v0 }
 0x392   : > { %v2509_v30 = vmul.f32 %v8135_v49, %v2490_v33  ;;  %v2377_v32 = vadd.f32 -1.4531521, %v2358_v48  ;;  %v2847_v49 = vld [vmem:[%s9977_s3 + $0x288] sm:$0xff] }
 0x393   : > { %v8178_v19 = vpop.eup %6313  ;;  %6317 = vrcp.f32 %v2323_v22  ;;  %v5719_v57 = vpack.c.bf16 %v2847_v49, %v2846_v45 }
 0x394   : > { %v2604_v13 = vmul.f32 %v6312_v8, %v2509_v30  ;;  %v2396_v53 = vmul.f32 %v8172_v62, %v2377_v32  ;;  %v2359_v61 = vmul.f32 1.0614054, %v8178_v19  ;;  %6319 = vpow2.f32 %v2572_v16 }
 0x395   : > { %5720 = vmatprep.subr.bf16.mxu0 %v5719_v57  ;;  %6321 = vpow2.f32 %v2574_v27  ;;  %v2576_v8 = vmul.f32 1.442695, %v2550_v54 }
 0x396   : > { %v2623_v47 = vsub.f32 1.0, %v2604_v13  ;;  %v2415_v1 = vadd.f32 1.4214138, %v2396_v53  ;;  %v2152_v12 = vpop.f32.mrb[18].mxu1  ;;  %v2378_v17 = vadd.f32 -1.4531521, %v2359_v61 }
 0x397   : > { %v2714_v52 = vld [vmem:[#allocation3] ss:$4 sm:$0xff]  ;;  %v2724_v46 = vld [vmem:[#allocation3 + $0x1] ss:$4 sm:$0xff]  ;;  %v8192_v39 = vadd.f32 %v2152_v12, %v7955_v21  ;;  %v2154_v11 = vpop.f32.mrb[19].mxu1 }
 0x398   : > { %v2733_v29 = vmax.f32 %v2714_v52, %v2724_v46  ;;  %v2642_v37 = vmul.f32 %v2623_v47, %v2262_v63  ;;  %v2434_v7 = vmul.f32 %v8172_v62, %v2415_v1  ;;  %v2739_v24 = vld [vmem:[#allocation3 + $0x2] ss:$4 sm:$0xff]  ;;  %v2397_v42 = vmul.f32 %v8178_v19, %v2378_v17  ;;  %v2754_v33 = vld [vmem:[#allocation3 + $0x3] ss:$4 sm:$0xff] }
 0x399   : > { %v8200_v10 = vmul.f32 0.70710677, %v8192_v39  ;;  %v8203_v18 = vpop.eup %6315  ;;  %v2578_v12 = vmul.f32 1.442695, %v2551_v14 }
 0x39a   : > { %v2661_v26 = vadd.f32 1.0, %v2642_v37  ;;  %v2453_v36 = vadd.f32 -0.28449672, %v2434_v7  ;;  %v2157_v2 = vpop.f32.mrb[20].mxu1  ;;  %v2748_v41 = vmax.f32 %v2733_v29, %v2739_v24  ;;  %v2416_v6 = vadd.f32 1.4214138, %v2397_v42 }
 0x39b   : > { %v8206_v25 = vand.u32 2147483647, %v8200_v10  ;;  %v8209_v34 = vadd.f32 %v2157_v2, %v7955_v21  ;;  %v2159_v35 = vpop.f32.mrb[21].mxu1  ;;  %v2360_v43 = vmul.f32 1.0614054, %v8203_v18  ;;  %vm2248_vm3 = vcmp.ge.f32.partialorder %v8200_v10, 0.0 }
 0x39c   : > { %v2680_v44 = vmul.f32 %v2661_v26, %v2205_v3  ;;  %v2472_v59 = vmul.f32 %v8172_v62, %v2453_v36  ;;  %v2435_v22 = vmul.f32 %v8178_v19, %v2416_v6  ;;  %v2763_v61 = vmax.f32 %v2748_v41, %v2754_v33 }
 0x39d   : > { %v2305_v28 = vmul.f32 0.3275911, %v8206_v25  ;;  %v8216_v48 = vpop.eup %6317  ;;  %v2379_v30 = vadd.f32 -1.4531521, %v2360_v43  ;;  %v8220_v32 = vmul.f32 0.70710677, %v8209_v34 }
 0x39e   : > { %2699 = vst [vmem:[#allocation3 + $0x20] sm:$0xff] %v2680_v44  ;;  %v2491_v23 = vadd.f32 0.2548296, %v2472_v59  ;;  %v2361_v16 = vmul.f32 1.0614054, %v8216_v48  ;;  %v2162_v53 = vpop.f32.mrb[22].mxu1  ;;  %v6320_v47 = vpop.eup %6319 }
 0x39f   : > { %v2324_v13 = vadd.f32 1.0, %v2305_v28  ;;  %v2454_v45 = vadd.f32 -0.28449672, %v2435_v22  ;;  %v2398_v49 = vmul.f32 %v8203_v18, %v2379_v30  ;;  %v2164_v3 = vpop.f32.mrb[23].mxu1  ;;  %2770 = vst [vmem:[#allocation4 + $0x1] sm:$0xff] %v2763_v61  ;;  %v8238_v51 = vadd.f32 %v2162_v53, %v7955_v21  ;;  %v6322_v54 = vpop.eup %6321  ;;  %v8266_v28 = vld [vmem:[%s9977_s3 + $0x200] sm:$0xff] }
 0x3a0   : > { %v2510_v60 = vmul.f32 %v8172_v62, %v2491_v23  ;;  %v2380_v1 = vadd.f32 -1.4531521, %v2361_v16  ;;  %v8231_v38 = vand.u32 2147483647, %v8220_v32  ;;  %v8234_v62 = vmul.f32 0.5, %v8119_v40 }
 0x3a1   : > { %6323 = vrcp.f32 %v2324_v13  ;;  %v2473_v52 = vmul.f32 %v8178_v19, %v2454_v45  ;;  %v2417_v46 = vadd.f32 1.4214138, %v2398_v49  ;;  %v8246_v24 = vmul.f32 0.70710677, %v8238_v51 }
 0x3a2   : > { %v2605_v57 = vmul.f32 %v6320_v47, %v2510_v60  ;;  %6325 = vpow2.f32 %v2576_v8  ;;  %v2399_v63 = vmul.f32 %v8216_v48, %v2380_v1  ;;  %v2306_v11 = vmul.f32 0.3275911, %v8231_v38 }
 0x3a3   : > { %v2492_v7 = vadd.f32 0.2548296, %v2473_v52  ;;  %v2436_v17 = vmul.f32 %v8203_v18, %v2417_v46  ;;  %6327 = vpow2.f32 %v2578_v12  ;;  %v2533_v41 = vsub.f32 0.0, %v8206_v25 }
 0x3a4   : > { %v2167_v29 = vpop.f32.mrb[24].mxu1  ;;  %v2624_v37 = vsub.f32 1.0, %v2605_v57  ;;  %v2418_v40 = vadd.f32 1.4214138, %v2399_v63  ;;  %v2325_v2 = vadd.f32 1.0, %v2306_v11  ;;  %v8257_v43 = vmul.f32 0.5, %v8152_v55 }
 0x3a5   : > { %v2169_v27 = vpop.f32.mrb[25].mxu1  ;;  %v2511_v36 = vmul.f32 %v8178_v19, %v2492_v7  ;;  %v2455_v42 = vadd.f32 -0.28449672, %v2436_v17  ;;  %v8253_v9 = vand.u32 2147483647, %v8246_v24  ;;  %v8260_v19 = vmul.f32 0.5, %v8159_v58 }
 0x3a6   : > { %v2643_v26 = vmul.f32 %v2624_v37, %v2263_v50  ;;  %v2437_v35 = vmul.f32 %v8216_v48, %v2418_v40  ;;  %6329 = vrcp.f32 %v2325_v2  ;;  %v8273_v55 = vld [vmem:[%s9977_s3 + $0x208] sm:$0xff]  ;;  %v2265_v8 = vsel %vm2246_vm1, 1.0, %v10217_v0 }
 0x3a7   : > { %v2606_v59 = vmul.f32 %v6322_v54, %v2511_v36  ;;  %v2474_v6 = vmul.f32 %v8203_v18, %v2455_v42  ;;  %v2307_v30 = vmul.f32 0.3275911, %v8253_v9  ;;  %v2552_v13 = vmul.f32 %v2533_v41, %v8206_v25 }
 0x3a8   : > { %v2662_v44 = vadd.f32 1.0, %v2643_v26  ;;  %v2456_v14 = vadd.f32 -0.28449672, %v2437_v35  ;;  %v2534_v3 = vsub.f32 0.0, %v8231_v38  ;;  %v5721_v25 = vpack.c.bf16 %v8273_v55, %v8266_v28  ;;  %v3686_v55 = vld [vmem:[%s9977_s3 + $0x400] sm:$0xff] }
 0x3a9   : > { %v2625_v23 = vsub.f32 1.0, %v2606_v59  ;;  %v2493_v22 = vadd.f32 0.2548296, %v2474_v6  ;;  %v2326_v60 = vadd.f32 1.0, %v2307_v30  ;;  %v2580_v46 = vmul.f32 1.442695, %v2552_v13 }
 0x3aa   : > { %v2681_v33 = vmul.f32 %v2662_v44, %v8196_v15  ;;  %v2475_v16 = vmul.f32 %v8216_v48, %v2456_v14  ;;  %v8283_v15 = vadd.f32 %v2167_v29, %v7955_v21  ;;  %v8310_v7 = vmul.f32 0.5, %v8192_v39 }
 0x3ab   : > { %v8275_v58 = vpop.eup %6323  ;;  %v2644_v53 = vmul.f32 %v2625_v23, %v2264_v56  ;;  %v2512_v61 = vmul.f32 %v8203_v18, %v2493_v22  ;;  %6331 = vrcp.f32 %v2326_v60  ;;  %v8296_v18 = vld [vmem:[%s9977_s3 + $0x290] sm:$0xff]  ;;  %v2553_v27 = vmul.f32 %v2534_v3, %v8231_v38 }
 0x3ac   : > { %2700 = vst [vmem:[#allocation3 + $0x28] sm:$0xff] %v2681_v33  ;;  %v2362_v50 = vmul.f32 1.0614054, %v8275_v58  ;;  %v6326_v45 = vpop.eup %6325  ;;  %v2494_v49 = vadd.f32 0.2548296, %v2475_v16  ;;  %v5723_v10 = vpack.c.bf16 %v8301_v5, %v8296_v18  ;;  %vm2249_vm5 = vcmp.ge.f32.partialorder %v8220_v32, 0.0 }
 0x3ad   : > { %v2663_v47 = vadd.f32 1.0, %v2644_v53  ;;  %v2607_v1 = vmul.f32 %v6326_v45, %v2512_v61  ;;  %v6328_v57 = vpop.eup %6327  ;;  %v8306_v63 = vmul.f32 0.70710677, %v8283_v15  ;;  %6333 = vpow2.f32 %v2580_v46 }
 0x3ae   : > { %v2381_v12 = vadd.f32 -1.4531521, %v2362_v50  ;;  %v2513_v52 = vmul.f32 %v8216_v48, %v2494_v49  ;;  %v2535_v35 = vsub.f32 0.0, %v8253_v9  ;;  %v2582_v14 = vmul.f32 1.442695, %v2553_v27 }
 0x3af   : > { %v2682_v29 = vmul.f32 %v2663_v47, %v8234_v62  ;;  %v2626_v37 = vsub.f32 1.0, %v2607_v1  ;;  %v8315_v56 = vand.u32 2147483647, %v8306_v63  ;;  %v8322_v62 = vsel %vm2248_vm3, 1.0, %v10217_v0 }
 0x3b0   : > { %v2400_v17 = vmul.f32 %v8275_v58, %v2381_v12  ;;  %v2608_v11 = vmul.f32 %v6328_v57, %v2513_v52  ;;  %v8319_v48 = vpop.eup %6329  ;;  %v8334_v30 = vmul.f32 0.5, %v8209_v34  ;;  %v8342_v53 = vsel %vm2249_vm5, 1.0, %v10217_v0  ;;  %v8353_v34 = vld [vmem:[%s9977_s3 + $0x218] sm:$0xff]  ;;  %v8374_v52 = vld [vmem:[%s9977_s3 + $0x2a0] sm:$0xff] }
 0x3b1   : > { %2701 = vst [vmem:[#allocation3 + $0x30] sm:$0xff] %v2682_v29  ;;  %v2645_v40 = vmul.f32 %v2626_v37, %v2265_v8  ;;  %v2363_v38 = vmul.f32 1.0614054, %v8319_v48  ;;  %v2308_v42 = vmul.f32 0.3275911, %v8315_v56  ;;  %v2554_v45 = vmul.f32 %v2535_v35, %v8253_v9 }
 0x3b2   : > { %v2419_v39 = vadd.f32 1.4214138, %v2400_v17  ;;  %v2172_v26 = vpop.f32.mrb[26].mxu1  ;;  %v2627_v36 = vsub.f32 1.0, %v2608_v11  ;;  %vm2250_vm6 = vcmp.ge.f32.partialorder %v8246_v24, 0.0  ;;  %v8383_v46 = vmul.f32 0.5, %v8238_v51 }
 0x3b3   : > { %v2664_v2 = vadd.f32 1.0, %v2645_v40  ;;  %v8330_v41 = vadd.f32 %v2172_v26, %v7955_v21  ;;  %v2174_v44 = vpop.f32.mrb[27].mxu1  ;;  %v2382_v6 = vadd.f32 -1.4531521, %v2363_v38  ;;  %v2327_v33 = vadd.f32 1.0, %v2308_v42 }
 0x3b4   : > { %v2438_v54 = vmul.f32 %v8275_v58, %v2419_v39  ;;  %v2646_v59 = vmul.f32 %v2627_v36, %v2266_v4  ;;  %v8390_v27 = vsel %vm2250_vm6, 1.0, %v10217_v0  ;;  %v2584_v40 = vmul.f32 1.442695, %v2554_v45  ;;  %v8395_v36 = vld [vmem:[%s9977_s3 + $0x220] sm:$0xff] }
 0x3b5   : > { %v2683_v23 = vmul.f32 %v2664_v2, %v8257_v43  ;;  %v8337_v8 = vmul.f32 0.70710677, %v8330_v41  ;;  %v2401_v61 = vmul.f32 %v8319_v48, %v2382_v6  ;;  %6335 = vrcp.f32 %v2327_v33  ;;  %v8348_v43 = vld [vmem:[%s9977_s3 + $0x210] sm:$0xff]  ;;  %v8355_v60 = vpop.eup %6331 }
 0x3b6   : > { %v2457_v22 = vadd.f32 -0.28449672, %v2438_v54  ;;  %v2177_v16 = vpop.f32.mrb[28].mxu1  ;;  %v2665_v13 = vadd.f32 1.0, %v2646_v59  ;;  %v2364_v1 = vmul.f32 1.0614054, %v8355_v60  ;;  %6337 = vpow2.f32 %v2582_v14 }
 0x3b7   : > { %v2179_v50 = vpop.f32.mrb[29].mxu1  ;;  %2702 = vst [vmem:[#allocation3 + $0x38] sm:$0xff] %v2683_v23  ;;  %v8360_v4 = vand.u32 2147483647, %v8337_v8  ;;  %v8363_v49 = vadd.f32 %v2177_v16, %v7955_v21  ;;  %v2420_v47 = vadd.f32 1.4214138, %v2401_v61  ;;  %v6334_v51 = vpop.eup %6333 }
 0x3b8   : > { %v2476_v32 = vmul.f32 %v8275_v58, %v2457_v22  ;;  %v2684_v3 = vmul.f32 %v2665_v13, %v8260_v19  ;;  %v8379_v19 = vld [vmem:[%s9977_s3 + $0x2a8] sm:$0xff]  ;;  %v2383_v29 = vadd.f32 -1.4531521, %v2364_v1  ;;  %v2536_v2 = vsub.f32 0.0, %v8315_v56  ;;  %v8416_v6 = vld [vmem:[%s9977_s3 + $0x2b0] sm:$0xff]  ;;  %v8421_v14 = vld [vmem:[%s9977_s3 + $0x2b8] sm:$0xff] }
 0x3b9   : > { %v2309_v57 = vmul.f32 0.3275911, %v8360_v4  ;;  %v2439_v24 = vmul.f32 %v8319_v48, %v2420_v47  ;;  %v8386_v37 = vmul.f32 0.70710677, %v8363_v49  ;;  %v8408_v44 = vmul.f32 0.5, %v8283_v15  ;;  %v8431_v22 = vld [vmem:[%s9977_s3 + $0x230] sm:$0xff] }
 0x3ba   : > { %v2495_v12 = vadd.f32 0.2548296, %v2476_v32  ;;  %2703 = vst [vmem:[#allocation3 + $0x40] sm:$0xff] %v2684_v3  ;;  %v2182_v17 = vpop.f32.mrb[30].mxu1  ;;  %v2402_v42 = vmul.f32 %v8355_v60, %v2383_v29  ;;  %vm2251_vm7 = vcmp.ge.f32.partialorder %v8306_v63, 0.0  ;;  %v2537_v15 = vsub.f32 0.0, %v8360_v4 }
 0x3bb   : > { %v2328_v39 = vadd.f32 1.0, %v2309_v57  ;;  %v2184_v26 = vpop.f32.mrb[31].mxu1  ;;  %v2458_v38 = vadd.f32 -0.28449672, %v2439_v24  ;;  %v8400_v54 = vand.u32 2147483647, %v8386_v37  ;;  %v8411_v59 = vadd.f32 %v2182_v17, %v7955_v21 }
 0x3bc   : > { %v2514_v11 = vmul.f32 %v8275_v58, %v2495_v12  ;;  %v8405_v58 = vld [vmem:[%s9977_s3 + $0x228] sm:$0xff]  ;;  %v8436_v16 = vld [vmem:[%s9977_s3 + $0x238] sm:$0xff]  ;;  %v2421_v50 = vadd.f32 1.4214138, %v2402_v42  ;;  %v2555_v12 = vmul.f32 %v2536_v2, %v8315_v56  ;;  %vm2252_vm8 = vcmp.ge.f32.partialorder %v8337_v8, 0.0 }
 0x3bd   : > { %6339 = vrcp.f32 %v2328_v39  ;;  %v2477_v33 = vmul.f32 %v8319_v48, %v2458_v38  ;;  %v2310_v57 = vmul.f32 0.3275911, %v8400_v54  ;;  %v2538_v31 = vsub.f32 0.0, %v8400_v54 }
 0x3be   : > { %v2609_v35 = vmul.f32 %v6334_v51, %v2514_v11  ;;  %v2716_v13 = vld [vmem:[#allocation3 + $0x20] ss:$4 sm:$0xff]  ;;  %6341 = vpow2.f32 %v2584_v40  ;;  %v2726_v47 = vld [vmem:[#allocation3 + $0x21] ss:$4 sm:$0xff]  ;;  %v2440_v17 = vmul.f32 %v8355_v60, %v2421_v50  ;;  %v8450_v40 = vmul.f32 0.70710677, %v8411_v59 }
 0x3bf   : > { %v8440_v3 = vpop.eup %6335  ;;  %v2496_v1 = vadd.f32 0.2548296, %v2477_v33  ;;  %v2329_v51 = vadd.f32 1.0, %v2310_v57  ;;  %v2734_v2 = vmax.f32 %v2716_v13, %v2726_v47  ;;  %v2586_v50 = vmul.f32 1.442695, %v2555_v12 }
 0x3c0   : > { %v2628_v61 = vsub.f32 1.0, %v2609_v35  ;;  %v2187_v32 = vpop.f32.mrb[32].mxu1  ;;  %v2365_v11 = vmul.f32 1.0614054, %v8440_v3  ;;  %v6338_v42 = vpop.eup %6337  ;;  %v2459_v33 = vadd.f32 -0.28449672, %v2440_v17 }
 0x3c1   : > { %v2189_v39 = vpop.f32.mrb[33].mxu1  ;;  %v2515_v26 = vmul.f32 %v8319_v48, %v2496_v1  ;;  %v8454_v56 = vadd.f32 %v2187_v32, %v7955_v21  ;;  %v8466_v48 = vld [vmem:[%s9977_s3 + $0x2c8] sm:$0xff]  ;;  %v2556_v32 = vmul.f32 %v2537_v15, %v8360_v4  ;;  %6343 = vrcp.f32 %v2329_v51 }
 0x3c2   : > { %v2647_v29 = vmul.f32 %v2628_v61, %v8322_v62  ;;  %v8461_v62 = vld [vmem:[%s9977_s3 + $0x2c0] sm:$0xff]  ;;  %v2384_v61 = vadd.f32 -1.4531521, %v2365_v11  ;;  %v2478_v57 = vmul.f32 %v8355_v60, %v2459_v33  ;;  %v8473_v13 = vand.u32 2147483647, %v8450_v40 }
 0x3c3   : > { %v2610_v21 = vmul.f32 %v6338_v42, %v2515_v26  ;;  %v2741_v47 = vld [vmem:[#allocation3 + $0x22] ss:$4 sm:$0xff]  ;;  %v8478_v17 = vsel %vm2251_vm7, 1.0, %v10217_v0  ;;  %v8481_v12 = vmul.f32 0.70710677, %v8454_v56  ;;  %6345 = vpow2.f32 %v2586_v50 }
 0x3c4   : > { %v2666_v35 = vadd.f32 1.0, %v2647_v29  ;;  %v2403_v39 = vmul.f32 %v8440_v3, %v2384_v61  ;;  %v2497_v15 = vadd.f32 0.2548296, %v2478_v57  ;;  %v2311_v26 = vmul.f32 0.3275911, %v8473_v13 }
 0x3c5   : > { %v2629_v29 = vsub.f32 1.0, %v2610_v21  ;;  %v2749_v51 = vmax.f32 %v2734_v2, %v2741_v47  ;;  %v8495_v2 = vand.u32 2147483647, %v8481_v12  ;;  %vm2253_vm9 = vcmp.ge.f32.partialorder %v8386_v37, 0.0  ;;  %v3702_v37 = vld [vmem:[%s9977_s3 + $0x480] sm:$0xff] }
 0x3c6   : > { %v2685_v1 = vmul.f32 %v2666_v35, %v8310_v7  ;;  %v2422_v11 = vadd.f32 1.4214138, %v2403_v39  ;;  %v2588_v35 = vmul.f32 1.442695, %v2556_v32  ;;  %v2516_v61 = vmul.f32 %v8355_v60, %v2497_v15 }
 0x3c7   : > { %v8485_v4 = vpop.eup %6339  ;;  %v2648_v42 = vmul.f32 %v2629_v29, %v8342_v53  ;;  %v2330_v7 = vadd.f32 1.0, %v2311_v26  ;;  %v8499_v60 = vmul.f32 0.5, %v8330_v41  ;;  %v2312_v15 = vmul.f32 0.3275911, %v8495_v2 }
 0x3c8   : > { %2704 = vst [vmem:[#allocation3 + $0x48] sm:$0xff] %v2685_v1  ;;  %v2366_v63 = vmul.f32 1.0614054, %v8485_v4  ;;  %v6342_v33 = vpop.eup %6341  ;;  %v2441_v21 = vmul.f32 %v8440_v3, %v2422_v11  ;;  %v2756_v1 = vld [vmem:[#allocation3 + $0x23] ss:$4 sm:$0xff]  ;;  %v8505_v26 = vsel %vm2252_vm8, 1.0, %v10217_v0 }
 0x3c9   : > { %v2667_v57 = vadd.f32 1.0, %v2648_v42  ;;  %v2611_v53 = vmul.f32 %v6342_v33, %v2516_v61  ;;  %6347 = vrcp.f32 %v2330_v7  ;;  %v2764_v32 = vmax.f32 %v2749_v51, %v2756_v1  ;;  %v8524_v1 = vld [vmem:[%s9977_s3 + $0x248] sm:$0xff] }
 0x3ca   : > { %v2385_v39 = vadd.f32 -1.4531521, %v2366_v63  ;;  %v2460_v50 = vadd.f32 -0.28449672, %v2441_v21  ;;  %v2557_v42 = vmul.f32 %v2538_v31, %v8400_v54  ;;  %v8516_v51 = vmul.f32 0.5, %v8363_v49 }
 0x3cb   : > { %v2686_v47 = vmul.f32 %v2667_v57, %v8334_v30  ;;  %v2630_v11 = vsub.f32 1.0, %v2611_v53  ;;  %2771 = vst [vmem:[#allocation4 + $0x9] sm:$0xff] %v2764_v32  ;;  %v8511_v30 = vld [vmem:[%s9977_s3 + $0x240] sm:$0xff]  ;;  %v8513_v41 = vpop.eup %6343  ;;  %v2331_v63 = vadd.f32 1.0, %v2312_v15  ;;  %6349 = vpow2.f32 %v2588_v35  ;;  %v8536_v35 = vld [vmem:[%s9977_s3 + $0x2d0] sm:$0xff]  ;;  %v8541_v53 = vld [vmem:[%s9977_s3 + $0x2d8] sm:$0xff] }
 0x3cc   : > { %v2404_v29 = vmul.f32 %v8485_v4, %v2385_v39  ;;  %v2479_v8 = vmul.f32 %v8440_v3, %v2460_v50  ;;  %v2367_v54 = vmul.f32 1.0614054, %v8513_v41  ;;  %v2539_v49 = vsub.f32 0.0, %v8473_v13  ;;  %v6443_v39 = vld [vmem:[%s9976_s2 + $0x60] ss:$0 sm:$0xff]  ;;  %v8546_v50 = vld [vmem:[%s9977_s3 + $0x250] sm:$0xff] }
 0x3cd   : > { %2705 = vst [vmem:[#allocation3 + $0x50] sm:$0xff] %v2686_v47  ;;  %v2649_v61 = vmul.f32 %v2630_v11, %v8390_v27  ;;  %6351 = vrcp.f32 %v2331_v63  ;;  %v2590_v15 = vmul.f32 1.442695, %v2557_v42  ;;  %v8552_v11 = vld [vmem:[%s9977_s3 + $0x258] sm:$0xff]  ;;  %v8557_v63 = vsel %vm2253_vm9, 1.0, %v10217_v0 }
 0x3ce   : > { %v2423_v7 = vadd.f32 1.4214138, %v2404_v29  ;;  %v2498_v31 = vadd.f32 0.2548296, %v2479_v8  ;;  %v2386_v29 = vadd.f32 -1.4531521, %v2367_v54  ;;  %v6346_v8 = vpop.eup %6345  ;;  %v2558_v24 = vmul.f32 %v2539_v49, %v8473_v13 }
 0x3cf   : > { %v2192_v33 = vpop.f32.mrb[34].mxu1  ;;  %v2668_v32 = vadd.f32 1.0, %v2649_v61  ;;  %6353 = vpow2.f32 %v2590_v15  ;;  %vm2254_vm10 = vcmp.ge.f32.partialorder %v8450_v40, 0.0  ;;  %v8602_v15 = vld [vmem:[%s9976_s2 + $0x80] ss:$0 sm:$0xff]  ;;  %vm2255_vm11 = vcmp.ge.f32.partialorder %v8481_v12, 0.0 }
 0x3d0   : > { %v2194_v21 = vpop.f32.mrb[35].mxu1  ;;  %v2442_v57 = vmul.f32 %v8485_v4, %v2423_v7  ;;  %v8531_v27 = vadd.f32 %v6443_v39, %v2192_v33  ;;  %v2517_v47 = vmul.f32 %v8440_v3, %v2498_v31  ;;  %v2405_v54 = vmul.f32 %v8513_v41, %v2386_v29  ;;  %v8650_v40 = vld [vmem:[%s9977_s3 + $0x260] sm:$0xff] }
 0x3d1   : > { %v2687_v42 = vmul.f32 %v2668_v32, %v8383_v46  ;;  %v8581_v32 = vld [vmem:[%s9977_s3 + $0x2e0] sm:$0xff]  ;;  %v10234_v12 = vpack.c.bf16 %v8405_v58, %v8395_v36  ;;  %vm3488_vm6 = vcmask 516096   ;;  %vm3545_vm7 = vcmask 521216  }
 0x3d2   : > { %v2461_v7 = vadd.f32 -0.28449672, %v2442_v57  ;;  %v8560_v33 = vmul.f32 0.70710677, %v8531_v27  ;;  %v2612_v31 = vmul.f32 %v6346_v8, %v2517_v47  ;;  %v2781_v3 = vld [vmem:[#allocation4 + $0x1] ss:$2 sm:$0xff] }
 0x3d3   : > { %v2197_v61 = vpop.f32.mrb[36].mxu1  ;;  %v3703_v47 = vld [vmem:[%s9977_s3 + $0x488] sm:$0xff]  ;;  %v8586_v29 = vpop.eup %6347  ;;  %2706 = vst [vmem:[#allocation3 + $0x58] sm:$0xff] %v2687_v42  ;;  %v2424_v49 = vadd.f32 1.4214138, %v2405_v54  ;;  %2927 = vmatprep.mubr.f32.mxu0 %v2781_v3 }
 0x3d4   : > { %v2199_v21 = vpop.f32.mrb[37].mxu1  ;;  %v2480_v38 = vmul.f32 %v8485_v4, %v2461_v7  ;;  %v8574_v45 = vand.u32 2147483647, %v8560_v33  ;;  %v2631_v13 = vsub.f32 1.0, %v2612_v31  ;;  %v2198_v8 = vadd.f32 %v6443_v39, %v2197_v61  ;;  %v2775_v7 = vld [vmem:[#allocation4] ss:$2 sm:$0xff] }
 0x3d5   : > { %v8591_v21 = vld [vmem:[%s9977_s3 + $0x2e8] sm:$0xff]  ;;  %v2368_v57 = vmul.f32 1.0614054, %v8586_v29  ;;  %2928 = vmatmul.mubr.f32.vlgmr.msra.gmra.mrb[38].mxu0 %v2775_v7  ;;  %v5819_v9 = vpack.c.bf16 %v3703_v47, %v3702_v37  ;;  %v2443_v31 = vmul.f32 %v8513_v41, %v2424_v49  ;;  %v2540_v39 = vsub.f32 0.0, %v8495_v2  ;;  %v6350_v47 = vpop.eup %6349 }
 0x3d6   : > { %v2499_v46 = vadd.f32 0.2548296, %v2480_v38  ;;  %v2313_v23 = vmul.f32 0.3275911, %v8574_v45  ;;  %v2650_v42 = vmul.f32 %v2631_v13, %v8478_v17  ;;  %5722 = vmatpush3.bf16.msra.mxu0 %v5721_v25  ;;  %v2592_v17 = vmul.f32 1.442695, %v2558_v24 }
 0x3d7   : > { %v3234_v38 = vpop.f32.mrb[38].mxu1  ;;  %v2387_v3 = vadd.f32 -1.4531521, %v2368_v57  ;;  %5724 = vmatprep.subr.bf16.mxu0 %v5723_v10  ;;  %5820 = vmatprep.subr.bf16.mxu1 %v5819_v9  ;;  %v2462_v49 = vadd.f32 -0.28449672, %v2443_v31  ;;  %v5743_v28 = vpack.c.bf16 %v8591_v21, %v8581_v32  ;;  %v3687_v25 = vld [vmem:[%s9977_s3 + $0x408] sm:$0xff] }
 0x3d8   : > { %v2518_v61 = vmul.f32 %v8485_v4, %v2499_v46  ;;  %v2332_v54 = vadd.f32 1.0, %v2313_v23  ;;  %v3236_v37 = vpop.f32.mrb[39].mxu1  ;;  %v2669_v13 = vadd.f32 1.0, %v2650_v42  ;;  %v8620_v23 = vpop.eup %6351  ;;  %v2238_v10 = vmul.f32 0.70710677, %v2198_v8  ;;  %v8800_v32 = vld [vmem:[%s9977_s3 + $0x308] sm:$0xff] }
 0x3d9   : > { %v2406_v5 = vmul.f32 %v8586_v29, %v2387_v3  ;;  %v2481_v4 = vmul.f32 %v8513_v41, %v2462_v49  ;;  %v2369_v57 = vmul.f32 1.0614054, %v8620_v23  ;;  %v2559_v46 = vmul.f32 %v2540_v39, %v8495_v2  ;;  %v8670_v49 = vld [vmem:[%s9977_s3 + $0x268] sm:$0xff] }
 0x3da   : > { %v2613_v18 = vmul.f32 %v6350_v47, %v2518_v61  ;;  %6355 = vrcp.f32 %v2332_v54  ;;  %v2688_v24 = vmul.f32 %v2669_v13, %v8408_v44  ;;  %v10232_v42 = vpack.c.bf16 %v8353_v34, %v8348_v43  ;;  %v6354_v54 = vpop.eup %6353 }
 0x3db   : > { %v3239_v9 = vpop.f32.mrb[40].mxu1  ;;  %v8631_v31 = vmul.f32 0.5, %v8411_v59  ;;  %v8636_v8 = vsel %vm2254_vm10, 1.0, %v10217_v0  ;;  %v8639_v44 = vadd.f32 %v3234_v38, %v8602_v15  ;;  %v10233_v61 = vpack.c.bf16 %v8379_v19, %v8374_v52 }
 0x3dc   : > { %v3241_v7 = vpop.f32.mrb[41].mxu1  ;;  %5726 = vmatpush3.bf16.msra.mxu0 %v10232_v42  ;;  %v5821_v2 = vpack.c.bf16 %v3687_v25, %v3686_v55  ;;  %2707 = vst [vmem:[#allocation3 + $0x60] sm:$0xff] %v2688_v24  ;;  %v2632_v39 = vsub.f32 1.0, %v2613_v18  ;;  %v2500_v43 = vadd.f32 0.2548296, %v2481_v4  ;;  %v8645_v59 = vmul.f32 0.5, %v8454_v56 }
 0x3dd   : > { %5728 = vmatprep.subr.bf16.mxu0 %v10233_v61  ;;  %v2425_v34 = vadd.f32 1.4214138, %v2406_v5  ;;  %6357 = vpow2.f32 %v2592_v17  ;;  %v8655_v38 = vsel %vm2255_vm11, 1.0, %v10217_v0  ;;  %v2388_v52 = vadd.f32 -1.4531521, %v2369_v57  ;;  %v8675_v55 = vld [vmem:[%s9977_s3 + $0x2f0] sm:$0xff] }
 0x3de   : > { %v8657_v19 = vand.u32 2147483647, %v2238_v10  ;;  %5822 = vmatpush3.bf16.msra.mxu1 %v5821_v2  ;;  %v2651_v56 = vmul.f32 %v2632_v39, %v8505_v26  ;;  %v2519_v37 = vmul.f32 %v8513_v41, %v2500_v43  ;;  %v2594_v13 = vmul.f32 1.442695, %v2559_v46  ;;  %v8680_v26 = vld [vmem:[%s9977_s3 + $0x2f8] sm:$0xff]  ;;  %v8708_v43 = vld [vmem:[%s9977_s3 + $0x270] sm:$0xff] }
 0x3df   : > { %v8659_v3 = vpop.f32.mrb[42].mxu1  ;;  %v2444_v47 = vmul.f32 %v8586_v29, %v2425_v34  ;;  %v2407_v41 = vmul.f32 %v8620_v23, %v2388_v52  ;;  %v2541_v36 = vsub.f32 0.0, %v8574_v45  ;;  %v8686_v25 = vmul.f32 0.70710677, %v8639_v44  ;;  %v8713_v34 = vld [vmem:[%s9977_s3 + $0x278] sm:$0xff] }
 0x3e0   : > { %v3246_v17 = vpop.f32.mrb[43].mxu1  ;;  %5730 = vmatpush3.bf16.msra.mxu0 %v10234_v12  ;;  %v2314_v58 = vmul.f32 0.3275911, %v8657_v19  ;;  %v10235_v18 = vpack.c.bf16 %v8421_v14, %v8416_v6  ;;  %v2670_v5 = vadd.f32 1.0, %v2651_v56  ;;  %v2614_v10 = vmul.f32 %v6354_v54, %v2519_v37 }
 0x3e1   : > { %v2463_v24 = vadd.f32 -0.28449672, %v2444_v47  ;;  %v8692_v4 = vadd.f32 %v3239_v9, %v8602_v15  ;;  %v2426_v57 = vadd.f32 1.4214138, %v2407_v41  ;;  %v5745_v42 = vpack.c.bf16 %v8670_v49, %v8650_v40 }
 0x3e2   : > { %5732 = vmatprep.subr.bf16.mxu0 %v10235_v18  ;;  %v2333_v46 = vadd.f32 1.0, %v2314_v58  ;;  %v5747_v61 = vpack.c.bf16 %v8680_v26, %v8675_v55  ;;  %v2689_v2 = vmul.f32 %v2670_v5, %v8499_v60  ;;  %v2633_v6 = vsub.f32 1.0, %v2614_v10 }
 0x3e3   : > { %v8694_v7 = vpop.f32.mrb[44].mxu1  ;;  %v2482_v14 = vmul.f32 %v8586_v29, %v2463_v24  ;;  %6359 = vpow2.f32 %v2594_v13  ;;  %v10236_v9 = vpack.c.bf16 %v8436_v16, %v8431_v22  ;;  %v2445_v52 = vmul.f32 %v8620_v23, %v2426_v57 }
 0x3e4   : > { %v3251_v39 = vpop.f32.mrb[45].mxu1  ;;  %v8715_v60 = vpop.eup %6355  ;;  %v2560_v54 = vmul.f32 %v2541_v36, %v8574_v45  ;;  %6361 = vrcp.f32 %v2333_v46  ;;  %v8720_v22 = vand.u32 2147483647, %v8686_v25  ;;  %v10237_v16 = vpack.c.bf16 %v8466_v48, %v8461_v62  ;;  %2708 = vst [vmem:[#allocation3 + $0x68] sm:$0xff] %v2689_v2 }
 0x3e5   : > { %5734 = vmatpush3.bf16.msra.mxu0 %v10236_v9  ;;  %v2652_v56 = vmul.f32 %v2633_v6, %v8557_v63  ;;  %v2501_v37 = vadd.f32 0.2548296, %v2482_v14  ;;  %v2370_v47 = vmul.f32 1.0614054, %v8715_v60  ;;  %v8728_v13 = vmul.f32 0.70710677, %v8692_v4 }
 0x3e6   : > { %5736 = vmatprep.subr.bf16.mxu0 %v10237_v16  ;;  %v2464_v17 = vadd.f32 -0.28449672, %v2445_v52  ;;  %v8731_v45 = vmul.f32 0.5, %v8531_v27  ;;  %v3313_v12 = vmul.f32 0.3275911, %v8720_v22  ;;  %v5749_v62 = vpack.c.bf16 %v8713_v34, %v8708_v43 }
 0x3e7   : > { %v8734_v41 = vpop.f32.mrb[46].mxu1  ;;  %v2671_v48 = vadd.f32 1.0, %v2652_v56  ;;  %v2520_v63 = vmul.f32 %v8586_v29, %v2501_v37  ;;  %vm2256_vm12 = vcmp.ge.f32.partialorder %v8560_v33, 0.0  ;;  %v2389_v36 = vadd.f32 -1.4531521, %v2370_v47  ;;  %v6358_v27 = vpop.eup %6357  ;;  %v8751_v29 = vld [vmem:[%s9977_s3 + $0x380] sm:$0xff] }
 0x3e8   : > { %v3256_v58 = vpop.f32.mrb[47].mxu1  ;;  %v10238_v18 = vpack.c.bf16 %v8524_v1, %v8511_v30  ;;  %v2483_v5 = vmul.f32 %v8620_v23, %v2464_v17  ;;  %v2596_v10 = vmul.f32 1.442695, %v2560_v54  ;;  %v2542_v24 = vsub.f32 0.0, %v8657_v19  ;;  %v8756_v30 = vld [vmem:[%s9977_s3 + $0x388] sm:$0xff] }
 0x3e9   : > { %v3321_v57 = vadd.f32 1.0, %v3313_v12  ;;  %v10239_v46 = vpack.c.bf16 %v8541_v53, %v8536_v35  ;;  %v2690_v1 = vmul.f32 %v2671_v48, %v8516_v51  ;;  %v2615_v2 = vmul.f32 %v6358_v27, %v2520_v63  ;;  %v8787_v17 = vld [vmem:[#allocation3 + $0x40] ss:$4 sm:$0xff] }
 0x3ea   : > { %5738 = vmatpush3.bf16.msra.mxu0 %v10238_v18  ;;  %v2408_v6 = vmul.f32 %v8715_v60, %v2389_v36  ;;  %v8761_v14 = vand.u32 2147483647, %v8728_v13  ;;  %v2502_v35 = vadd.f32 0.2548296, %v2483_v5  ;;  %v8766_v53 = vsel %vm2256_vm12, 1.0, %v10217_v0 }
 0x3eb   : > { %5740 = vmatprep.subr.bf16.mxu0 %v10239_v46  ;;  %6363 = vrcp.f32 %v3321_v57  ;;  %v8770_v39 = vadd.f32 %v8659_v3, %v8602_v15  ;;  %v8772_v9 = vpop.f32.mrb[48].mxu1  ;;  %2709 = vst [vmem:[#allocation3 + $0x70] sm:$0xff] %v2690_v1  ;;  %v2634_v51 = vsub.f32 1.0, %v2615_v2  ;;  %v10240_v16 = vpack.c.bf16 %v8552_v11, %v8546_v50 }
 0x3ec   : > { %v2427_v52 = vadd.f32 1.4214138, %v2408_v6  ;;  %v3314_v54 = vmul.f32 0.3275911, %v8761_v14  ;;  %v5787_v33 = vpack.c.bf16 %v8756_v30, %v8751_v29  ;;  %v2521_v56 = vmul.f32 %v8620_v23, %v2502_v35  ;;  %v3261_v37 = vpop.f32.mrb[49].mxu1  ;;  %v8795_v23 = vld [vmem:[%s9977_s3 + $0x300] sm:$0xff] }
 0x3ed   : > { %6365 = vpow2.f32 %v2596_v10  ;;  %v8782_v3 = vmul.f32 0.70710677, %v8770_v39  ;;  %v6360_v47 = vpop.eup %6359  ;;  %v2653_v50 = vmul.f32 %v2634_v51, %v8636_v8  ;;  %v2561_v12 = vmul.f32 %v2542_v24, %v8657_v19 }
 0x3ee   : > { %5742 = vmatpush3.bf16.msra.mxu0 %v10240_v16  ;;  %v2446_v11 = vmul.f32 %v8715_v60, %v2427_v52  ;;  %v3322_v48 = vadd.f32 1.0, %v3314_v54  ;;  %v6362_v21 = vpop.eup %6361  ;;  %v2616_v63 = vmul.f32 %v6360_v47, %v2521_v56  ;;  %v3409_v8 = vsub.f32 0.0, %v8720_v22 }
 0x3ef   : > { %5744 = vmatprep.subr.bf16.mxu0 %v5743_v28  ;;  %v8802_v28 = vld [vmem:[#allocation3 + $0x41] ss:$4 sm:$0xff]  ;;  %v8806_v36 = vand.u32 2147483647, %v8782_v3  ;;  %v8810_v19 = vadd.f32 %v8694_v7, %v8602_v15  ;;  %v8812_v58 = vpop.f32.mrb[50].mxu1  ;;  %v2672_v18 = vadd.f32 1.0, %v2653_v50  ;;  %v5789_v7 = vpack.c.bf16 %v8800_v32, %v8795_v23 }
 0x3f0   : > { %v2465_v27 = vadd.f32 -0.28449672, %v2446_v11  ;;  %6367 = vrcp.f32 %v3322_v48  ;;  %v3266_v5 = vpop.f32.mrb[51].mxu1  ;;  %v2635_v10 = vsub.f32 1.0, %v2616_v63  ;;  %v2598_v29 = vmul.f32 1.442695, %v2561_v12 }
 0x3f1   : > { %v3315_v24 = vmul.f32 0.3275911, %v8806_v36  ;;  %v2691_v57 = vmul.f32 %v2672_v18, %v8631_v31  ;;  %v2735_v30 = vmax.f32 %v8787_v17, %v8802_v28  ;;  %v3417_v55 = vmul.f32 %v3409_v8, %v8720_v22  ;;  %v3676_v23 = vld [vmem:[%s9977_s3 + $0x3b0] sm:$0xff]  ;;  %v3677_v32 = vld [vmem:[%s9977_s3 + $0x3b8] sm:$0xff] }
 0x3f2   : > { %5746 = vmatpush3.bf16.msra.mxu0 %v5745_v42  ;;  %v2484_v46 = vmul.f32 %v8715_v60, %v2465_v27  ;;  %v2654_v40 = vmul.f32 %v2635_v10, %v8655_v38  ;;  %v8832_v26 = vmul.f32 0.70710677, %v8810_v19  ;;  %vm3289_vm13 = vcmp.ge.f32.partialorder %v8686_v25, 0.0 }
 0x3f3   : > { %5748 = vmatprep.subr.bf16.mxu0 %v5747_v61  ;;  %v3323_v49 = vadd.f32 1.0, %v3315_v24  ;;  %v8828_v42 = vpop.f32.mrb[52].mxu1  ;;  %2710 = vst [vmem:[#allocation3 + $0x78] sm:$0xff] %v2691_v57  ;;  %v3410_v38 = vsub.f32 0.0, %v8761_v14  ;;  %vm3290_vm14 = vcmp.ge.f32.partialorder %v8728_v13, 0.0  ;;  %v8850_v34 = vadd.f32 %v8734_v41, %v8602_v15 }
 0x3f4   : > { %v2503_v1 = vadd.f32 0.2548296, %v2484_v46  ;;  %v3271_v61 = vpop.f32.mrb[53].mxu1  ;;  %v2673_v2 = vadd.f32 1.0, %v2654_v40  ;;  %v8846_v43 = vand.u32 2147483647, %v8832_v26 }
 0x3f5   : > { %v8837_v31 = vpop.eup %6363  ;;  %6369 = vrcp.f32 %v3323_v49  ;;  %v3425_v54 = vmul.f32 1.442695, %v3417_v55  ;;  %v8856_v16 = vmul.f32 0.5, %v8692_v4  ;;  %v3411_v47 = vsub.f32 0.0, %v8806_v36  ;;  %v2743_v49 = vld [vmem:[#allocation3 + $0x42] ss:$4 sm:$0xff] }
 0x3f6   : > { %5750 = vmatpush3.bf16.msra.mxu0 %v5749_v62  ;;  %v2522_v6 = vmul.f32 %v8715_v60, %v2503_v1  ;;  %6371 = vpow2.f32 %v2598_v29  ;;  %v3337_v22 = vmul.f32 1.0614054, %v8837_v31  ;;  %v2692_v51 = vmul.f32 %v2673_v2, %v8645_v59 }
 0x3f7   : > { %5788 = vmatprep.subr.bf16.mxu0 %v5787_v33  ;;  %v6366_v35 = vpop.eup %6365  ;;  %v8853_v60 = vmul.f32 0.5, %v8639_v44  ;;  %v3418_v59 = vmul.f32 %v3410_v38, %v8761_v14  ;;  %v3316_v33 = vmul.f32 0.3275911, %v8846_v43  ;;  %v8867_v50 = vsel %vm3289_vm13, 1.0, %v10217_v0 }
 0x3f8   : > { %v2617_v62 = vmul.f32 %v6366_v35, %v2522_v6  ;;  %v3345_v52 = vadd.f32 -1.4531521, %v3337_v22  ;;  %2711 = vst [vmem:[#allocation3 + $0x80] sm:$0xff] %v2692_v51  ;;  %v8872_v44 = vsel %vm3290_vm14, 1.0, %v10217_v0  ;;  %v8875_v4 = vmul.f32 0.70710677, %v8850_v34 }
 0x3f9   : > { %v8879_v14 = vadd.f32 %v8772_v9, %v8602_v15  ;;  %6373 = vpow2.f32 %v3425_v54  ;;  %v3427_v48 = vmul.f32 1.442695, %v3418_v59  ;;  %vm3291_vm15 = vcmp.ge.f32.partialorder %v8782_v3, 0.0  ;;  %v8914_v3 = vld [vmem:[%s9977_s3 + $0x390] sm:$0xff]  ;;  %v8923_v35 = vld [vmem:[%s9977_s3 + $0x398] sm:$0xff] }
 0x3fa   : > { %v8860_v56 = vpop.eup %6367  ;;  %v2636_v37 = vsub.f32 1.0, %v2617_v62  ;;  %v3353_v41 = vmul.f32 %v8837_v31, %v3345_v52  ;;  %v3324_v21 = vadd.f32 1.0, %v3316_v33  ;;  %v3419_v8 = vmul.f32 %v3411_v47, %v8806_v36  ;;  %v2720_v54 = vld [vmem:[#allocation3 + $0x60] ss:$4 sm:$0xff] }
 0x3fb   : > { %v3338_v25 = vmul.f32 1.0614054, %v8860_v56  ;;  %v8889_v9 = vand.u32 2147483647, %v8875_v4  ;;  %v8898_v36 = vmul.f32 0.5, %v8770_v39  ;;  %v8903_v29 = vsel %vm3291_vm15, 1.0, %v10217_v0 }
 0x3fc   : > { %v2655_v11 = vmul.f32 %v2636_v37, %v8766_v53  ;;  %v3361_v12 = vadd.f32 1.4214138, %v3353_v41  ;;  %6375 = vrcp.f32 %v3324_v21  ;;  %v8892_v53 = vmul.f32 0.70710677, %v8879_v14  ;;  %v2730_v41 = vld [vmem:[#allocation3 + $0x61] ss:$4 sm:$0xff] }
 0x3fd   : > { %v3346_v27 = vadd.f32 -1.4531521, %v3338_v25  ;;  %v3317_v40 = vmul.f32 0.3275911, %v8889_v9  ;;  %6377 = vpow2.f32 %v3427_v48  ;;  %v3429_v61 = vmul.f32 1.442695, %v3419_v8 }
 0x3fe   : > { %v2674_v13 = vadd.f32 1.0, %v2655_v11  ;;  %v3369_v63 = vmul.f32 %v8837_v31, %v3361_v12  ;;  %v8909_v39 = vadd.f32 %v8812_v58, %v8602_v15  ;;  %v8918_v22 = vand.u32 2147483647, %v8892_v53 }
 0x3ff   : > { %v8886_v18 = vpop.eup %6369  ;;  %v3354_v46 = vmul.f32 %v8860_v56, %v3346_v27  ;;  %v3325_v2 = vadd.f32 1.0, %v3317_v40  ;;  %v3412_v58 = vsub.f32 0.0, %v8846_v43  ;;  %v2750_v62 = vmax.f32 %v2735_v30, %v2743_v49  ;;  %v2758_v30 = vld [vmem:[#allocation3 + $0x43] ss:$4 sm:$0xff] }
 0x400   : > { %v6372_v5 = vpop.eup %6371  ;;  %v2693_v10 = vmul.f32 %v2674_v13, %v8731_v45  ;;  %v3377_v24 = vadd.f32 -0.28449672, %v3369_v63  ;;  %v3339_v57 = vmul.f32 1.0614054, %v8886_v18  ;;  %v3318_v37 = vmul.f32 0.3275911, %v8918_v22 }
 0x401   : > { %v3362_v55 = vadd.f32 1.4214138, %v3354_v46  ;;  %6379 = vrcp.f32 %v3325_v2  ;;  %v8933_v11 = vmul.f32 0.70710677, %v8909_v39  ;;  %v5791_v12 = vpack.c.bf16 %v8923_v35, %v8914_v3 }
 0x402   : > { %2712 = vst [vmem:[#allocation3 + $0x88] sm:$0xff] %v2693_v10  ;;  %v3385_v1 = vmul.f32 %v8837_v31, %v3377_v24  ;;  %v3347_v45 = vadd.f32 -1.4531521, %v3339_v57  ;;  %6381 = vpow2.f32 %v3429_v61  ;;  %v3326_v28 = vadd.f32 1.0, %v3318_v37  ;;  %v2745_v61 = vld [vmem:[#allocation3 + $0x62] ss:$4 sm:$0xff] }
 0x403   : > { %v3370_v51 = vmul.f32 %v8860_v56, %v3362_v55  ;;  %v6374_v52 = vpop.eup %6373  ;;  %v3420_v21 = vmul.f32 %v3412_v58, %v8846_v43  ;;  %v3413_v13 = vsub.f32 0.0, %v8889_v9  ;;  %v2765_v63 = vmax.f32 %v2750_v62, %v2758_v30 }
 0x404   : > { %v3393_v38 = vadd.f32 0.2548296, %v3385_v1  ;;  %v3355_v6 = vmul.f32 %v8886_v18, %v3347_v45  ;;  %v2736_v8 = vmax.f32 %v2720_v54, %v2730_v41  ;;  %6383 = vrcp.f32 %v3326_v28 }
 0x405   : > { %v3378_v47 = vadd.f32 -0.28449672, %v3370_v51  ;;  %v8946_v46 = vadd.f32 %v8828_v42, %v8602_v15  ;;  %2772 = vst [vmem:[#allocation4 + $0x11] sm:$0xff] %v2765_v63  ;;  %v8951_v45 = vmul.f32 0.5, %v8810_v19  ;;  %v3311_v55 = vand.u32 2147483647, %v8933_v11 }
 0x406   : > { %v3401_v59 = vmul.f32 %v8837_v31, %v3393_v38  ;;  %v3363_v33 = vadd.f32 1.4214138, %v3355_v6  ;;  %v8938_v48 = vpop.eup %6375  ;;  %v3431_v6 = vmul.f32 1.442695, %v3420_v21  ;;  %v3421_v15 = vmul.f32 %v3413_v13, %v8889_v9  ;;  %v2760_v21 = vld [vmem:[#allocation3 + $0x63] ss:$4 sm:$0xff] }
 0x407   : > { %v3386_v31 = vmul.f32 %v8860_v56, %v3378_v47  ;;  %v3340_v57 = vmul.f32 1.0614054, %v8938_v48  ;;  %v6378_v40 = vpop.eup %6377  ;;  %v3319_v58 = vmul.f32 0.3275911, %v3311_v55  ;;  %v2751_v62 = vmax.f32 %v2736_v8, %v2745_v61 }
 0x408   : > { %v3441_v25 = vmul.f32 %v6374_v52, %v3401_v59  ;;  %v3371_v17 = vmul.f32 %v8886_v18, %v3363_v33  ;;  %v8960_v59 = vmul.f32 0.70710677, %v8946_v46  ;;  %6385 = vpow2.f32 %v3431_v6  ;;  %v3704_v6 = vld [vmem:[%s9977_s3 + $0x490] sm:$0xff] }
 0x409   : > { %v2722_v27 = vld [vmem:[#allocation3 + $0x80] ss:$4 sm:$0xf]  ;;  %v3394_v24 = vadd.f32 0.2548296, %v3386_v31  ;;  %v3327_v9 = vadd.f32 1.0, %v3319_v58 }
 0x40a   : > { %v3449_v5 = vsub.f32 1.0, %v3441_v25  ;;  %v3379_v10 = vadd.f32 -0.28449672, %v3371_v17  ;;  %v2732_v49 = vld [vmem:[#allocation3 + $0x81] ss:$4 sm:$0xf] }
 0x40b   : > { %v3402_v2 = vmul.f32 %v8860_v56, %v3394_v24  ;;  %v3348_v38 = vadd.f32 -1.4531521, %v3340_v57  ;;  %v8956_v52 = vpop.eup %6379  ;;  %v3414_v17 = vsub.f32 0.0, %v8918_v22  ;;  %v3433_v31 = vmul.f32 1.442695, %v3421_v15  ;;  %v3705_v15 = vld [vmem:[%s9977_s3 + $0x498] sm:$0xff] }
 0x40c   : > { %v3457_v43 = vmul.f32 %v3449_v5, %v8867_v50  ;;  %v3387_v1 = vmul.f32 %v8886_v18, %v3379_v10  ;;  %v2737_v50 = vmax.f32 %v2722_v27, %v2732_v49  ;;  %v3341_v37 = vmul.f32 1.0614054, %v8956_v52  ;;  %v6382_v41 = vpop.eup %6381  ;;  %v2747_v13 = vld [vmem:[#allocation3 + $0x82] ss:$4 sm:$0xf] }
 0x40d   : > { %v3442_v54 = vmul.f32 %v6378_v40, %v3402_v2  ;;  %v3356_v19 = vmul.f32 %v8938_v48, %v3348_v38  ;;  %6387 = vrcp.f32 %v3327_v9  ;;  %v3415_v63 = vsub.f32 0.0, %v3311_v55  ;;  %v2762_v57 = vld [vmem:[#allocation3 + $0x83] ss:$4 sm:$0xf] }
 0x40e   : > { %v3465_v42 = vadd.f32 1.0, %v3457_v43  ;;  %v3395_v51 = vadd.f32 0.2548296, %v3387_v1  ;;  %v3349_v30 = vadd.f32 -1.4531521, %v3341_v37  ;;  %v2766_v10 = vmax.f32 %v2751_v62, %v2760_v21  ;;  %v8973_v40 = vpop.eup %6383  ;;  %v3706_v9 = vld [vmem:[%s9977_s3 + $0x4a0] sm:$0xff] }
 0x40f   : > { %v3450_v47 = vsub.f32 1.0, %v3442_v54  ;;  %v3364_v25 = vadd.f32 1.4214138, %v3356_v19  ;;  %v8970_v8 = vand.u32 2147483647, %v8960_v59  ;;  %v2752_v24 = vmax.f32 %v2737_v50, %v2747_v13  ;;  %v3688_v19 = vld [vmem:[%s9977_s3 + $0x410] sm:$0xff] }
 0x410   : > { %v3473_v33 = vmul.f32 %v3465_v42, %v8853_v60  ;;  %v3403_v56 = vmul.f32 %v8886_v18, %v3395_v51  ;;  %v3357_v5 = vmul.f32 %v8956_v52, %v3349_v30  ;;  %v3422_v1 = vmul.f32 %v3414_v17, %v8918_v22  ;;  %2773 = vst [vmem:[#allocation4 + $0x19] sm:$0xff] %v2766_v10  ;;  %v3691_v30 = vld [vmem:[%s9977_s3 + $0x428] sm:$0xff]  ;;  %v3708_v13 = vld [vmem:[%s9977_s3 + $0x4b0] sm:$0xff] }
 0x411   : > { %v3458_v60 = vmul.f32 %v3450_v47, %v8872_v44  ;;  %v3372_v18 = vmul.f32 %v8938_v48, %v3364_v25  ;;  %v3320_v44 = vmul.f32 0.3275911, %v8970_v8  ;;  %6389 = vpow2.f32 %v3433_v31  ;;  %v9026_v10 = vld [vmem:[%s9977_s3 + $0x430] sm:$0xff] }
 0x412   : > { %3481 = vst.msk [vmem:[#allocation5] sm:$0xff] %vm1721_vm4, %v3473_v33  ;;  %v3443_v28 = vmul.f32 %v6382_v41, %v3403_v56  ;;  %v3365_v2 = vadd.f32 1.4214138, %v3357_v5  ;;  %v3342_v38 = vmul.f32 1.0614054, %v8973_v40  ;;  %v2767_v58 = vmax.f32 %v2752_v24, %v2762_v57  ;;  %v3689_v33 = vld [vmem:[%s9977_s3 + $0x418] sm:$0xff]  ;;  %v6386_v31 = vpop.eup %6385 }
 0x413   : > { %v3466_v49 = vadd.f32 1.0, %v3458_v60  ;;  %v3380_v43 = vadd.f32 -0.28449672, %v3372_v18  ;;  %v3328_v51 = vadd.f32 1.0, %v3320_v44  ;;  %v3423_v54 = vmul.f32 %v3415_v63, %v3311_v55  ;;  %v3707_v55 = vld [vmem:[%s9977_s3 + $0x4a8] sm:$0xff]  ;;  %v3709_v60 = vld [vmem:[%s9977_s3 + $0x4b8] sm:$0xff] }
 0x414   : > { %v3451_v27 = vsub.f32 1.0, %v3443_v28  ;;  %v3373_v62 = vmul.f32 %v8956_v52, %v3365_v2  ;;  %v3350_v50 = vadd.f32 -1.4531521, %v3342_v38  ;;  %v3435_v56 = vmul.f32 1.442695, %v3422_v1  ;;  %v3690_v28 = vld [vmem:[%s9977_s3 + $0x420] sm:$0xff] }
 0x415   : > { %v3474_v42 = vmul.f32 %v3466_v49, %v8856_v16  ;;  %v3388_v22 = vmul.f32 %v8938_v48, %v3380_v43  ;;  %6391 = vrcp.f32 %v3328_v51  ;;  %2774 = vst [vmem:[#allocation4 + $0x21] sm:$0xf] %v2767_v58  ;;  %v5823_v37 = vpack.c.bf16 %v3705_v15, %v3704_v6  ;;  %v9031_v24 = vld [vmem:[%s9977_s3 + $0x438] sm:$0xff]  ;;  %v9039_v15 = vld [vmem:[%s9977_s3 + $0x4c0] sm:$0xff] }
 0x416   : > { %v3459_v61 = vmul.f32 %v3451_v27, %v8903_v29  ;;  %v3381_v47 = vadd.f32 -0.28449672, %v3373_v62  ;;  %v3358_v25 = vmul.f32 %v8973_v40, %v3350_v50  ;;  %v3416_v17 = vsub.f32 0.0, %v8970_v8  ;;  %v9058_v62 = vld [vmem:[%s9977_s3 + $0x448] sm:$0xff] }
 0x417   : > { %3482 = vst.msk [vmem:[#allocation5 + $0x8] sm:$0xff] %vm1721_vm4, %v3474_v42  ;;  %v3396_v16 = vadd.f32 0.2548296, %v3388_v22  ;;  %vm3292_vm0 = vcmp.ge.f32.partialorder %v8832_v26, 0.0  ;;  %vm3293_vm1 = vcmp.ge.f32.partialorder %v8875_v4, 0.0  ;;  %5824 = vmatprep.subr.bf16.mxu1 %v5823_v37  ;;  %v9019_v18 = vpop.eup %6387  ;;  %v5827_v5 = vpack.c.bf16 %v3707_v55, %v3706_v9  ;;  %v3711_v42 = vld [vmem:[%s9977_s3 + $0x4c8] sm:$0xff] }
 0x418   : > { %v3467_v29 = vadd.f32 1.0, %v3459_v61  ;;  %v3389_v63 = vmul.f32 %v8956_v52, %v3381_v47  ;;  %v3366_v27 = vadd.f32 1.4214138, %v3358_v25  ;;  %6393 = vpow2.f32 %v3435_v56  ;;  %v2783_v43 = vld [vmem:[#allocation4 + $0x11] ss:$2 sm:$0xff] }
 0x419   : > { %v3404_v21 = vmul.f32 %v8938_v48, %v3396_v16  ;;  %v3437_v48 = vmul.f32 1.442695, %v3423_v54  ;;  %v3343_v49 = vmul.f32 1.0614054, %v9019_v18  ;;  %v2777_v1 = vld [vmem:[#allocation4 + $0x10] ss:$2 sm:$0xff]  ;;  %v5829_v44 = vpack.c.bf16 %v3691_v30, %v3690_v28  ;;  %2932 = vmatprep.mubr.f32.mxu0 %v2783_v43 }
 0x41a   : > { %v3475_v41 = vmul.f32 %v3467_v29, %v8898_v36  ;;  %v5825_v36 = vpack.c.bf16 %v3689_v33, %v3688_v19  ;;  %v3397_v61 = vadd.f32 0.2548296, %v3389_v63  ;;  %v3374_v2 = vmul.f32 %v8973_v40, %v3366_v27  ;;  %v9047_v22 = vld [vmem:[%s9977_s3 + $0x440] sm:$0xff]  ;;  %2933 = vmatmul.mubr.f32.gmra.mrb[40].mxu0 %v2777_v1  ;;  %v3490_v54 = vld [vmem:[#allocation5] sm:$0xff] }
 0x41b   : > { %v3444_v57 = vmul.f32 %v6386_v31, %v3404_v21  ;;  %v3424_v38 = vmul.f32 %v3416_v17, %v8970_v8  ;;  %v5831_v6 = vpack.c.bf16 %v3709_v60, %v3708_v13  ;;  %v3300_v8 = vsel %vm3292_vm0, 1.0, %v10217_v0  ;;  %v6390_v50 = vpop.eup %6389  ;;  %v9083_v31 = vld [vmem:[%s9977_s3 + $0x310] sm:$0xff] }
 0x41c   : > { %3483 = vst.msk [vmem:[#allocation5 + $0x10] sm:$0xff] %vm1721_vm4, %v3475_v41  ;;  %5826 = vmatpush3.bf16.msra.mxu1 %v5825_v36  ;;  %v9053_v58 = vmul.f32 0.5, %v8850_v34  ;;  %v3351_v29 = vadd.f32 -1.4531521, %v3343_v49  ;;  %v3301_v33 = vsel %vm3293_vm1, 1.0, %v10217_v0  ;;  %v3405_v26 = vmul.f32 %v8956_v52, %v3397_v61  ;;  %v9067_v34 = vld [vmem:[%s9977_s3 + $0x4d0] sm:$0xff] }
 0x41d   : > { %5828 = vmatprep.subr.bf16.mxu1 %v5827_v5  ;;  %v3452_v51 = vsub.f32 1.0, %v3444_v57  ;;  %v3382_v16 = vadd.f32 -0.28449672, %v3374_v2  ;;  %6395 = vpow2.f32 %v3437_v48  ;;  %v2785_v55 = vld [vmem:[#allocation4 + $0x21] ss:$2 sm:$0x3]  ;;  %v5833_v4 = vpack.c.bf16 %v9031_v24, %v9026_v10 }
 0x41e   : > { %v3497_v19 = vld [vmem:[#allocation5 + $0x1] sm:$0xff]  ;;  %v3359_v9 = vmul.f32 %v9019_v18, %v3351_v29  ;;  %v3445_v25 = vmul.f32 %v6390_v50, %v3405_v26  ;;  %v9078_v28 = vmul.f32 1.442695, %v3424_v38  ;;  %2937 = vmatprep.mubr.f32.mxu0 %v2785_v55  ;;  %v2779_v30 = vld [vmem:[#allocation4 + $0x20] ss:$2 sm:$0x3]  ;;  %v5835_v21 = vpack.c.bf16 %v3711_v42, %v9039_v15 }
 0x41f   : > { %v3504_v56 = vmax.f32 %v3490_v54, %v3497_v19  ;;  %v3460_v37 = vmul.f32 %v3452_v51, %v3300_v8  ;;  %v2793_v41 = vld [vmem:[#allocation4 + $0x3] ss:$2 sm:$0xff]  ;;  %v3390_v17 = vmul.f32 %v8973_v40, %v3382_v16  ;;  %v9086_v36 = vpop.eup %6391  ;;  %2938 = vmatmul.mubr.f32.gmra.mrb[42].mxu0 %v2779_v30  ;;  %v5837_v10 = vpack.c.bf16 %v9058_v62, %v9047_v22  ;;  %v3675_v42 = vld [vmem:[%s9977_s3 + $0x3a8] sm:$0xff] }
 0x420   : > { %5830 = vmatpush3.bf16.msra.mxu1 %v5829_v44  ;;  %v9075_v52 = vld [vmem:[%s9977_s3 + $0x4d8] sm:$0xff]  ;;  %v3491_v13 = vld [vmem:[#allocation5 + $0x8] sm:$0xff]  ;;  %v3367_v48 = vadd.f32 1.4214138, %v3359_v9  ;;  %v3453_v49 = vsub.f32 1.0, %v3445_v25  ;;  %3007 = vmatprep.mubr.f32.mxu0 %v2793_v41  ;;  %v3696_v8 = vld [vmem:[%s9977_s3 + $0x450] sm:$0xff]  ;;  %6397 = vpow2.f32 %v9078_v28 }
 0x421   : > { %v3511_v47 = vld [vmem:[#allocation5 + $0x2] sm:$0xff]  ;;  %5832 = vmatprep.subr.bf16.mxu1 %v5831_v6  ;;  %v3468_v27 = vadd.f32 1.0, %v3460_v37  ;;  %v3398_v43 = vadd.f32 0.2548296, %v3390_v17  ;;  %v3344_v1 = vmul.f32 1.0614054, %v9086_v36  ;;  %v5839_v22 = vpack.c.bf16 %v9075_v52, %v9067_v34 }
 0x422   : > { %v3518_v60 = vmax.f32 %v3504_v56, %v3511_v47  ;;  %v9091_v5 = vld [vmem:[%s9977_s3 + $0x318] sm:$0xff]  ;;  %v9099_v61 = vld [vmem:[%s9977_s3 + $0x3a0] sm:$0xff]  ;;  %v3375_v6 = vmul.f32 %v9019_v18, %v3367_v48  ;;  %v3461_v29 = vmul.f32 %v3453_v49, %v3301_v33  ;;  %v3715_v19 = vld [vmem:[%s9977_s3 + $0x4e8] sm:$0xff]  ;;  %v6394_v26 = vpop.eup %6393  ;;  %vm3294_vm2 = vcmp.ge.f32.partialorder %v8892_v53, 0.0 }
 0x423   : > { %v3498_v63 = vld [vmem:[#allocation5 + $0x9] sm:$0xff]  ;;  %v2787_v44 = vld [vmem:[#allocation4 + $0x2] ss:$2 sm:$0xff]  ;;  %v3476_v38 = vmul.f32 %v3468_v27, %v8951_v45  ;;  %v3406_v62 = vmul.f32 %v8973_v40, %v3398_v43  ;;  %v3352_v45 = vadd.f32 -1.4531521, %v3344_v1  ;;  %v5793_v34 = vpack.c.bf16 %v9091_v5, %v9083_v31 }
 0x424   : > { %v3525_v24 = vld [vmem:[#allocation5 + $0x3] sm:$0xff]  ;;  %v3505_v57 = vmax.f32 %v3491_v13, %v3498_v63  ;;  %5834 = vmatpush3.bf16.msra.mxu1 %v5833_v4  ;;  %v3526_v16 = vld [vmem:[#allocation5 + $0xb] sm:$0xff]  ;;  %v3383_v40 = vadd.f32 -0.28449672, %v3375_v6  ;;  %3008 = vmatmul.mubr.f32.vlgmr.msra.gmra.mrb[44].mxu0 %v2787_v44  ;;  %v3469_v56 = vadd.f32 1.0, %v3461_v29  ;;  %v5795_v47 = vpack.c.bf16 %v3675_v42, %v9099_v61  ;;  %v3660_v5 = vld [vmem:[%s9977_s3 + $0x330] sm:$0xff] }
 0x425   : > { %v3512_v2 = vld [vmem:[#allocation5 + $0xa] sm:$0xff]  ;;  %v3532_v15 = vmax.f32 %v3518_v60, %v3525_v24  ;;  %5836 = vmatprep.subr.bf16.mxu1 %v5835_v21  ;;  %v3697_v50 = vld [vmem:[%s9977_s3 + $0x458] sm:$0xff]  ;;  %3484 = vst.msk [vmem:[#allocation5 + $0x18] sm:$0xff] %vm1721_vm4, %v3476_v38  ;;  %v3446_v37 = vmul.f32 %v6394_v26, %v3406_v62  ;;  %v3360_v9 = vmul.f32 %v9086_v36, %v3352_v45  ;;  %v3302_v13 = vsel %vm3294_vm2, 1.0, %v10217_v0  ;;  %v3680_v26 = vld [vmem:[%s9977_s3 + $0x3d0] sm:$0xff] }
 0x426   : > { %v3519_v51 = vmax.f32 %v3505_v57, %v3512_v2  ;;  %v3714_v54 = vld [vmem:[%s9977_s3 + $0x4e0] sm:$0xff]  ;;  %5790 = vmatpush3.bf16.msra.mxu0 %v5789_v7  ;;  %v3659_v4 = vld [vmem:[%s9977_s3 + $0x328] sm:$0xff]  ;;  %v3391_v52 = vmul.f32 %v9019_v18, %v3383_v40  ;;  %v5841_v7 = vpack.c.bf16 %v3697_v50, %v3696_v8  ;;  %v3477_v3 = vmul.f32 %v3469_v56, %v9053_v58  ;;  %v2797_v58 = vld [vmem:[#allocation4 + $0x23] ss:$2 sm:$0x3] }
 0x427   : > { %v2795_v33 = vld [vmem:[#allocation4 + $0x13] ss:$2 sm:$0xff]  ;;  %3539 = vst.msk [vmem:[#allocation6] sm:$0xff] %vm1721_vm4, %v3532_v15  ;;  %5792 = vmatprep.subr.bf16.mxu0 %v5791_v12  ;;  %v6396_v17 = vpop.eup %6395  ;;  %v3454_v35 = vsub.f32 1.0, %v3446_v37  ;;  %v3368_v12 = vadd.f32 1.4214138, %v3360_v9  ;;  %v5843_v31 = vpack.c.bf16 %v3715_v19, %v3714_v54  ;;  %v5799_v24 = vpack.c.bf16 %v3677_v32, %v3676_v23 }
 0x428   : > { %3012 = vmatprep.mubr.f32.mxu0 %v2795_v33  ;;  %v3533_v55 = vmax.f32 %v3519_v51, %v3526_v16  ;;  %v3658_v41 = vld [vmem:[%s9977_s3 + $0x320] sm:$0xff]  ;;  %5838 = vmatpush3.bf16.msra.mxu1 %v5837_v10  ;;  %v3699_v21 = vld [vmem:[%s9977_s3 + $0x468] sm:$0xff]  ;;  %v3399_v60 = vadd.f32 0.2548296, %v3391_v52  ;;  %3485 = vst.msk [vmem:[#allocation5 + $0x20] sm:$0xff] %vm1721_vm4, %v3477_v3  ;;  %v3661_v53 = vld [vmem:[%s9977_s3 + $0x338] sm:$0xff] }
 0x429   : > { %v3698_v25 = vld [vmem:[%s9977_s3 + $0x460] sm:$0xff]  ;;  %5840 = vmatprep.subr.bf16.mxu1 %v5839_v22  ;;  %v3462_v63 = vmul.f32 %v3454_v35, %v3302_v13  ;;  %v3376_v27 = vmul.f32 %v9086_v36, %v3368_v12  ;;  %v5797_v48 = vpack.c.bf16 %v3659_v4, %v3658_v41  ;;  %v2791_v10 = vld [vmem:[#allocation4 + $0x22] ss:$2 sm:$0x3]  ;;  %v3679_v49 = vld [vmem:[%s9977_s3 + $0x3c8] sm:$0xff]  ;;  %v3278_v61 = vmul.f32 0.5, %v8879_v14 }
 0x42a   : > { %v2789_v30 = vld [vmem:[#allocation4 + $0x12] ss:$2 sm:$0xff]  ;;  %3540 = vst.msk [vmem:[#allocation6 + $0x8] sm:$0xff] %vm1721_vm4, %v3533_v55  ;;  %5794 = vmatpush3.bf16.msra.mxu0 %v5793_v34  ;;  %v3407_v28 = vmul.f32 %v9019_v18, %v3399_v60  ;;  %v5845_v43 = vpack.c.bf16 %v3699_v21, %v3698_v25  ;;  %vm3295_vm3 = vcmp.ge.f32.partialorder %v8933_v11, 0.0  ;;  %v5801_v8 = vpack.c.bf16 %v3661_v53, %v3660_v5  ;;  %v3681_v16 = vld [vmem:[%s9977_s3 + $0x3d8] sm:$0xff]  ;;  %v6398_v52 = vpop.eup %6397 }
 0x42b   : > { %3013 = vmatmul.mubr.f32.gmra.mrb[46].mxu0 %v2789_v30  ;;  %5796 = vmatprep.subr.bf16.mxu0 %v5795_v47  ;;  %v3678_v57 = vld [vmem:[%s9977_s3 + $0x3c0] sm:$0xff]  ;;  %v3492_v1 = vld [vmem:[#allocation5 + $0x10] sm:$0xff]  ;;  %v3470_v2 = vadd.f32 1.0, %v3462_v63  ;;  %v3384_v38 = vadd.f32 -0.28449672, %v3376_v27  ;;  %v3303_v54 = vsel %vm3295_vm3, 1.0, %v10217_v0 }
 0x42c   : > { %3017 = vmatprep.mubr.f32.mxu0 %v2797_v58  ;;  %5842 = vmatpush3.bf16.msra.mxu1 %v5841_v7  ;;  %v3499_v44 = vld [vmem:[#allocation5 + $0x11] sm:$0xff]  ;;  %v3447_v6 = vmul.f32 %v6396_v17, %v3407_v28  ;;  %v5803_v62 = vpack.c.bf16 %v3679_v49, %v3678_v57  ;;  %v3662_v14 = vld [vmem:[%s9977_s3 + $0x340] sm:$0xff]  ;;  %v3665_v41 = vld [vmem:[%s9977_s3 + $0x358] sm:$0xff]  ;;  %v3279_v23 = vmul.f32 0.5, %v8909_v39  ;;  %vm3296_vm5 = vcmp.ge.f32.partialorder %v8960_v59, 0.0 }
 0x42d   : > { %5844 = vmatprep.subr.bf16.mxu1 %v5843_v31  ;;  %v3506_v18 = vmax.f32 %v3492_v1, %v3499_v44  ;;  %v3513_v15 = vld [vmem:[#allocation5 + $0x12] sm:$0xff]  ;;  %v3478_v42 = vmul.f32 %v3470_v2, %v3278_v61  ;;  %v3392_v22 = vmul.f32 %v9086_v36, %v3384_v38  ;;  %v3682_v4 = vld [vmem:[%s9977_s3 + $0x3e0] sm:$0xff]  ;;  %v3717_v25 = vld [vmem:[%s9977_s3 + $0x4f8] sm:$0xff]  ;;  %v3304_v53 = vsel %vm3296_vm5, 1.0, %v10217_v0 }
 0x42e   : > { %5798 = vmatpush3.bf16.msra.mxu0 %v5797_v48  ;;  %v3455_v29 = vsub.f32 1.0, %v3447_v6  ;;  %v3663_v45 = vld [vmem:[%s9977_s3 + $0x348] sm:$0xff]  ;;  %v3493_v40 = vld [vmem:[#allocation5 + $0x18] sm:$0xff]  ;;  %v3701_v30 = vld [vmem:[%s9977_s3 + $0x478] sm:$0xff]  ;;  %v3280_v1 = vmul.f32 0.5, %v8946_v46  ;;  %vm6456_vm11 = vmmov 0  }
 0x42f   : > { %3018 = vmatmul.mubr.f32.gmra.mrb[48].mxu0 %v2791_v10  ;;  %v3520_v51 = vmax.f32 %v3506_v18, %v3513_v15  ;;  %5800 = vmatprep.subr.bf16.mxu0 %v5799_v24  ;;  %v3527_v50 = vld [vmem:[#allocation5 + $0x13] sm:$0xff]  ;;  %3486 = vst.msk [vmem:[#allocation5 + $0x28] sm:$0xff] %vm1721_vm4, %v3478_v42  ;;  %v3400_v19 = vadd.f32 0.2548296, %v3392_v22  ;;  %v5805_v55 = vpack.c.bf16 %v3663_v45, %v3662_v14  ;;  %v3528_v31 = vld [vmem:[#allocation5 + $0x1b] sm:$0xff]  ;;  %v3666_v27 = vld [vmem:[%s9977_s3 + $0x360] sm:$0xff] }
 0x430   : > { %5846 = vmatpush3.bf16.msra.mxu1 %v5845_v43  ;;  %v3500_v33 = vld [vmem:[#allocation5 + $0x19] sm:$0xff]  ;;  %v3463_v34 = vmul.f32 %v3455_v29, %v3303_v54  ;;  %v3683_v39 = vld [vmem:[%s9977_s3 + $0x3e8] sm:$0xff]  ;;  %vm4302_vm2 = vcmask 1041408   ;;  %vm4654_vm3 = vcmask 519168  }
 0x431   : > { %v3534_v56 = vmax.f32 %v3520_v51, %v3527_v50  ;;  %v3507_v37 = vmax.f32 %v3493_v40, %v3500_v33  ;;  %v3408_v9 = vmul.f32 %v9086_v36, %v3400_v19  ;;  %v3664_v11 = vld [vmem:[%s9977_s3 + $0x350] sm:$0xff]  ;;  %v5807_v36 = vpack.c.bf16 %v3681_v16, %v3680_v26  ;;  %v3494_v48 = vld [vmem:[#allocation5 + $0x20] sm:$0xff]  ;;  %v3667_v10 = vld [vmem:[%s9977_s3 + $0x368] sm:$0xff] }
 0x432   : > { %5802 = vmatpush3.bf16.msra.mxu0 %v5801_v8  ;;  %v3514_v47 = vld [vmem:[#allocation5 + $0x1a] sm:$0xff]  ;;  %v3471_v32 = vadd.f32 1.0, %v3463_v34  ;;  %v5809_v63 = vpack.c.bf16 %v3665_v41, %v3664_v11  ;;  %v5811_v28 = vpack.c.bf16 %v3683_v39, %v3682_v4  ;;  %v5813_v6 = vpack.c.bf16 %v3667_v10, %v3666_v27 }
 0x433   : > { %3541 = vst.msk [vmem:[#allocation6 + $0x10] sm:$0xff] %vm1721_vm4, %v3534_v56  ;;  %5804 = vmatprep.subr.bf16.mxu0 %v5803_v62  ;;  %v3716_v7 = vld [vmem:[%s9977_s3 + $0x4f0] sm:$0xff]  ;;  %v3521_v17 = vmax.f32 %v3507_v37, %v3514_v47  ;;  %v3448_v3 = vmul.f32 %v6398_v52, %v3408_v9  ;;  %v3685_v59 = vld [vmem:[%s9977_s3 + $0x3f8] sm:$0xff] }
 0x434   : > { %v5847_v35 = vpack.c.bf16 %v3717_v25, %v3716_v7  ;;  %v3700_v12 = vld [vmem:[%s9977_s3 + $0x470] sm:$0xff]  ;;  %v3479_v21 = vmul.f32 %v3471_v32, %v3279_v23  ;;  %v3553_v44 = vld [vmem:[#allocation6 + $0x1] ss:$2 sm:$0xff]  ;;  %v3547_v10 = vld [vmem:[#allocation6] ss:$2 sm:$0xff] }
 0x435   : > { %v5849_v13 = vpack.c.bf16 %v3701_v30, %v3700_v12  ;;  %v3456_v60 = vsub.f32 1.0, %v3448_v3  ;;  %v3535_v58 = vmax.f32 %v3521_v17, %v3528_v31  ;;  %v3684_v49 = vld [vmem:[%s9977_s3 + $0x3f0] sm:$0xff]  ;;  %v3669_v46 = vld [vmem:[%s9977_s3 + $0x378] sm:$0xff] }
 0x436   : > { %5806 = vmatpush3.bf16.msra.mxu0 %v5805_v55  ;;  %5848 = vmatprep.subr.bf16.mxu1 %v5847_v35  ;;  %v3501_v5 = vld [vmem:[#allocation5 + $0x21] sm:$0xff]  ;;  %3487 = vst.msk [vmem:[#allocation5 + $0x30] sm:$0xff] %vm1721_vm4, %v3479_v21  ;;  %v3668_v15 = vld [vmem:[%s9977_s3 + $0x370] sm:$0xff]  ;;  %v5815_v51 = vpack.c.bf16 %v3685_v59, %v3684_v49 }
 0x437   : > { %5808 = vmatprep.subr.bf16.mxu0 %v5807_v36  ;;  %5850 = vmatpush3.bf16.msra.mxu1 %v5849_v13  ;;  %v3508_v24 = vmax.f32 %v3494_v48, %v3501_v5  ;;  %v3464_v57 = vmul.f32 %v3456_v60, %v3304_v53  ;;  %3542 = vst.msk [vmem:[#allocation6 + $0x18] sm:$0xff] %vm1721_vm4, %v3535_v58  ;;  %v3515_v43 = vld [vmem:[#allocation5 + $0x22] sm:$0xff] }
 0x438   : > { %v3529_v42 = vld [vmem:[#allocation5 + $0x23] sm:$0xff]  ;;  %v5817_v26 = vpack.c.bf16 %v3669_v46, %v3668_v15 }
 0x439   : > { %v3522_v61 = vmax.f32 %v3508_v24, %v3515_v43  ;;  %v3472_v2 = vadd.f32 1.0, %v3464_v57  ;;  %v3495_v45 = vld [vmem:[#allocation5 + $0x28] sm:$0xff] }
 0x43a   : > { %v3577_v38 = vld [vmem:[#allocation6 + $0x5] ss:$2 sm:$0xff]  ;;  %5810 = vmatpush3.bf16.msra.mxu0 %v5809_v63  ;;  %v3583_v48 = vld [vmem:[#allocation6 + $0x6] ss:$2 sm:$0xff] }
 0x43b   : > { %v3589_v18 = vld [vmem:[#allocation6 + $0x7] ss:$2 sm:$0xff]  ;;  %5812 = vmatprep.subr.bf16.mxu0 %v5811_v28  ;;  %v3480_v29 = vmul.f32 %v3472_v2, %v3280_v1  ;;  %v3536_v14 = vmax.f32 %v3522_v61, %v3529_v42  ;;  %v3571_v5 = vld [vmem:[#allocation6 + $0x4] ss:$2 sm:$0xff] }
 0x43c   : > { %v6114_v22 = vpack.i.bf16 %v3577_v38, %v3589_v18  ;;  %v3565_v8 = vld [vmem:[#allocation6 + $0x3] ss:$2 sm:$0xff]  ;;  %v3559_v53 = vld [vmem:[#allocation6 + $0x2] ss:$2 sm:$0xff] }
 0x43d   : > { %v6109_v62 = vpack.i.bf16 %v3553_v44, %v3565_v8  ;;  %v3496_v50 = vld [vmem:[#allocation5 + $0x30] sm:$0x3f]  ;;  %3489 = vst.msk [vmem:[#allocation5 + $0x38] sm:$0x1] %vm3488_vm6, %v3480_v29 }
 0x43e   : > { %6115 = vrot.lane.b32.xlu0 %v6114_v22, %s6454_s23  ;;  %v3502_v54 = vld [vmem:[#allocation5 + $0x29] sm:$0xff]  ;;  %v3503_v19 = vld [vmem:[#allocation5 + $0x31] sm:$0x3f]  ;;  %3543 = vst.msk [vmem:[#allocation6 + $0x20] sm:$0xff] %vm1721_vm4, %v3536_v14  ;;  %5814 = vmatpush3.bf16.msra.mxu0 %v5813_v6 }
 0x43f   : > { %6110 = vrot.lane.b32.xlu1 %v6109_v62, %s6454_s23  ;;  %v3509_v16 = vmax.f32 %v3495_v45, %v3502_v54  ;;  %v3510_v40 = vmax.f32 %v3496_v50, %v3503_v19  ;;  %5816 = vmatprep.subr.bf16.mxu0 %v5815_v51  ;;  %v3516_v33 = vld [vmem:[#allocation5 + $0x2a] sm:$0xff]  ;;  %v3517_v34 = vld [vmem:[#allocation5 + $0x32] sm:$0x3f] }
 0x440   : > { %v3530_v9 = vld [vmem:[#allocation5 + $0x2b] sm:$0xff] }
 0x441   : > { %v3523_v56 = vmax.f32 %v3509_v16, %v3516_v33  ;;  %v3524_v37 = vmax.f32 %v3510_v40, %v3517_v34  ;;  %v3555_v47 = vld [vmem:[#allocation6 + $0x11] ss:$2 sm:$0xff]  ;;  %v3549_v42 = vld [vmem:[#allocation6 + $0x10] ss:$2 sm:$0xff] }
 0x442   : > { %5818 = vmatpush3.bf16.msra.mxu0 %v5817_v26 }
 0x443   : > { %v3537_v55 = vmax.f32 %v3523_v56, %v3530_v9 }
 0x444   : > { %v3531_v11 = vld [vmem:[#allocation5 + $0x33] sm:$0x3f] }
 0x445   : > { %v3579_v41 = vld [vmem:[#allocation6 + $0x15] ss:$2 sm:$0xff]  ;;  %3544 = vst.msk [vmem:[#allocation6 + $0x28] sm:$0xff] %vm1721_vm4, %v3537_v55  ;;  %v3538_v32 = vmax.f32 %v3524_v37, %v3531_v11  ;;  %v3585_v38 = vld [vmem:[#allocation6 + $0x16] ss:$2 sm:$0xff] }
 0x446   : > { %v3591_v4 = vld [vmem:[#allocation6 + $0x17] ss:$2 sm:$0xff]  ;;  %v3573_v18 = vld [vmem:[#allocation6 + $0x14] ss:$2 sm:$0xff] }
 0x447   : > { %v6124_v52 = vpack.i.bf16 %v3579_v41, %v3591_v4  ;;  %v3567_v23 = vld [vmem:[#allocation6 + $0x13] ss:$2 sm:$0xff]  ;;  %3546 = vst.msk [vmem:[#allocation6 + $0x30] sm:$0x3f] %vm3545_vm7, %v3538_v32  ;;  %v3561_v15 = vld [vmem:[#allocation6 + $0x12] ss:$2 sm:$0xff] }
 0x448   : > { %v6119_v36 = vpack.i.bf16 %v3555_v47, %v3567_v23 }
 0x449   : > { %6125 = vrot.lane.b32.xlu0 %v6124_v52, %s6454_s23  ;;  %v2862_v52 = vld [vmem:[%s9976_s2 + $0x70] ss:$0 sm:$0xff] }
 0x44a   : > { %6120 = vrot.lane.b32.xlu1 %v6119_v36, %s6454_s23 }
 0x44c   : > { %v3557_v7 = vld [vmem:[#allocation6 + $0x21] ss:$2 sm:$0xff]  ;;  %v3551_v54 = vld [vmem:[#allocation6 + $0x20] ss:$2 sm:$0xff] }
 0x44e   : > { %v3581_v25 = vld [vmem:[#allocation6 + $0x25] ss:$2 sm:$0xff]  ;;  %v3563_v19 = vld [vmem:[#allocation6 + $0x22] ss:$2 sm:$0xff] }
 0x44f   : > { %v3593_v17 = vld [vmem:[#allocation6 + $0x27] ss:$2 sm:$0xff]  ;;  %v3587_v26 = vld [vmem:[#allocation6 + $0x26] ss:$2 sm:$0xff] }
 0x450   : > { %v3569_v3 = vld [vmem:[#allocation6 + $0x23] ss:$2 sm:$0xff]  ;;  %v6134_v39 = vpack.i.bf16 %v3581_v25, %v3593_v17  ;;  %v3575_v16 = vld [vmem:[#allocation6 + $0x24] ss:$2 sm:$0xff] }
 0x451   : > { %v6129_v35 = vpack.i.bf16 %v3557_v7, %v3569_v3 }
 0x452   : > { %6135 = vrot.lane.b32.xlu0 %v6134_v39, %s6454_s23 }
 0x453   : > { %6130 = vrot.lane.b32.xlu1 %v6129_v35, %s6454_s23 }
 0x4a8   : > { %v5149_v12 = vpop.f32.mrb[38].mxu0 }
 0x4a9   : > { %v5150_v30 = vpop.f32.mrb[39].mxu0 }
 0x4aa   : > { %v9253_v31 = vadd.f32 %v5150_v30, %v5149_v12 }
 0x4ac   : > { %v2930_v32 = vadd.f32 %v9253_v31, %v2862_v52  ;;  %v4013_v31 = vld [vmem:[%s9977_s3 + $0x588] sm:$0xff] }
 0x4b0   : > { %v6116_v21 = vpop.permute.xlu0 %6115 }
 0x4b1   : > { %v6118_v13 = vunpack.i.h.bf16 %v6116_v21  ;;  %v6117_v60 = vunpack.i.l.bf16 %v6116_v21  ;;  %v6111_v58 = vpop.permute.xlu1 %6110 }
 0x4b2   : > { %v6113_v63 = vunpack.i.h.bf16 %v6111_v58  ;;  %v6112_v27 = vunpack.i.l.bf16 %v6111_v58  ;;  %v4012_v58 = vld [vmem:[%s9977_s3 + $0x580] sm:$0xff] }
 0x4b3   : > { %v3651_v28 = vsel %vm1721_vm4, %v3583_v48, %v6117_v60  ;;  %v3648_v24 = vsel %vm1721_vm4, %v3571_v5, %v6118_v13  ;;  %v4045_v48 = vld [vmem:[%s9977_s3 + $0x688] sm:$0xff]  ;;  %v3996_v5 = vld [vmem:[%s9977_s3 + $0x500] sm:$0xff] }
 0x4b4   : > { %v3645_v57 = vsel %vm1721_vm4, %v3559_v53, %v6112_v27  ;;  %3863 = vmatprep.mubr.f32.mxu1 %v3651_v28  ;;  %v3642_v49 = vsel %vm1721_vm4, %v3547_v10, %v6113_v63  ;;  %v4044_v63 = vld [vmem:[%s9977_s3 + $0x680] sm:$0xff]  ;;  %v5851_v27 = vpack.c.bf16 %v4013_v31, %v4012_v58  ;;  %v3997_v53 = vld [vmem:[%s9977_s3 + $0x508] sm:$0xff]  ;;  %v4022_v31 = vld [vmem:[%s9977_s3 + $0x5d0] sm:$0xff] }
 0x4b5   : > { %3783 = vmatprep.mubr.f32.mxu0 %v3645_v57  ;;  %3864 = vmatmul.mubr.f32.vlgmr.msra.gmra.mrb[54].mxu1 %v3648_v24  ;;  %v5883_v28 = vpack.c.bf16 %v4045_v48, %v4044_v63  ;;  %v5853_v10 = vpack.c.bf16 %v3997_v53, %v3996_v5  ;;  %v4028_v24 = vld [vmem:[%s9977_s3 + $0x600] sm:$0xff]  ;;  %v4029_v57 = vld [vmem:[%s9977_s3 + $0x608] sm:$0xff]  ;;  %v4023_v63 = vld [vmem:[%s9977_s3 + $0x5d8] sm:$0xff] }
 0x4b6   : > { %3784 = vmatmul.mubr.f32.vlgmr.msra.gmra.mrb[50].mxu0 %v3642_v49  ;;  %5852 = vmatprep.subr.bf16.mxu0 %v5851_v27  ;;  %v5885_v49 = vpack.c.bf16 %v4029_v57, %v4028_v24  ;;  %v4054_v27 = vld [vmem:[%s9977_s3 + $0x6d0] sm:$0xff]  ;;  %v5871_v48 = vpack.c.bf16 %v4023_v63, %v4022_v31  ;;  %v4055_v5 = vld [vmem:[%s9977_s3 + $0x6d8] sm:$0xff] }
 0x4b7   : > { %5884 = vmatprep.subr.bf16.mxu1 %v5883_v28  ;;  %5854 = vmatpush3.bf16.msra.mxu0 %v5853_v10  ;;  %v4006_v53 = vld [vmem:[%s9977_s3 + $0x550] sm:$0xff]  ;;  %v4007_v28 = vld [vmem:[%s9977_s3 + $0x558] sm:$0xff]  ;;  %v5903_v10 = vpack.c.bf16 %v4055_v5, %v4054_v27 }
 0x4b8   : > { %5886 = vmatpush3.bf16.msra.mxu1 %v5885_v49  ;;  %v5873_v24 = vpack.c.bf16 %v4007_v28, %v4006_v53  ;;  %v4038_v57 = vld [vmem:[%s9977_s3 + $0x650] sm:$0xff]  ;;  %v4039_v49 = vld [vmem:[%s9977_s3 + $0x658] sm:$0xff] }
 0x4bb   : > { %v6126_v59 = vpop.permute.xlu0 %6125 }
 0x4bc   : > { %v6128_v43 = vunpack.i.h.bf16 %v6126_v59  ;;  %v6127_v1 = vunpack.i.l.bf16 %v6126_v59  ;;  %v6121_v44 = vpop.permute.xlu1 %6120  ;;  %v4014_v59 = vld [vmem:[%s9977_s3 + $0x590] sm:$0xff] }
 0x4bd   : > { %v6123_v61 = vunpack.i.h.bf16 %v6121_v44  ;;  %v6122_v2 = vunpack.i.l.bf16 %v6121_v44 }
 0x4be   : > { %v3652_v6 = vsel %vm1721_vm4, %v3585_v38, %v6127_v1  ;;  %v3649_v22 = vsel %vm1721_vm4, %v3573_v18, %v6128_v43  ;;  %v4015_v43 = vld [vmem:[%s9977_s3 + $0x598] sm:$0xff]  ;;  %v4046_v1 = vld [vmem:[%s9977_s3 + $0x690] sm:$0xff] }
 0x4bf   : > { %3868 = vmatprep.mubr.f32.mxu1 %v3652_v6  ;;  %v3646_v8 = vsel %vm1721_vm4, %v3561_v15, %v6122_v2  ;;  %v3643_v51 = vsel %vm1721_vm4, %v3549_v42, %v6123_v61  ;;  %v5855_v44 = vpack.c.bf16 %v4015_v43, %v4014_v59  ;;  %v4047_v61 = vld [vmem:[%s9977_s3 + $0x698] sm:$0xff]  ;;  %v3998_v2 = vld [vmem:[%s9977_s3 + $0x510] sm:$0xff]  ;;  %v4024_v59 = vld [vmem:[%s9977_s3 + $0x5e0] sm:$0xff]  ;;  %v5905_v43 = vpack.c.bf16 %v4039_v49, %v4038_v57 }
 0x4c0   : > { %3788 = vmatprep.mubr.f32.mxu0 %v3646_v8  ;;  %3869 = vmatmul.mubr.f32.gmra.mrb[56].mxu1 %v3649_v22  ;;  %v3999_v38 = vld [vmem:[%s9977_s3 + $0x518] sm:$0xff]  ;;  %v5887_v18 = vpack.c.bf16 %v4047_v61, %v4046_v1  ;;  %v4030_v15 = vld [vmem:[%s9977_s3 + $0x610] sm:$0xff]  ;;  %v4016_v8 = vld [vmem:[%s9977_s3 + $0x5a0] sm:$0xff] }
 0x4c1   : > { %3789 = vmatmul.mubr.f32.gmra.mrb[52].mxu0 %v3643_v51  ;;  %v5857_v6 = vpack.c.bf16 %v3999_v38, %v3998_v2  ;;  %v4031_v42 = vld [vmem:[%s9977_s3 + $0x618] sm:$0xff]  ;;  %5856 = vmatprep.subr.bf16.mxu0 %v5855_v44  ;;  %v4017_v51 = vld [vmem:[%s9977_s3 + $0x5a8] sm:$0xff]  ;;  %v4056_v44 = vld [vmem:[%s9977_s3 + $0x6e0] sm:$0xff] }
 0x4c2   : > { %v5889_v22 = vpack.c.bf16 %v4031_v42, %v4030_v15  ;;  %5888 = vmatprep.subr.bf16.mxu1 %v5887_v18  ;;  %v4025_v1 = vld [vmem:[%s9977_s3 + $0x5e8] sm:$0xff]  ;;  %v4008_v18 = vld [vmem:[%s9977_s3 + $0x560] sm:$0xff] }
 0x4c3   : > { %5858 = vmatpush3.bf16.msra.mxu0 %v5857_v6  ;;  %v4057_v61 = vld [vmem:[%s9977_s3 + $0x6e8] sm:$0xff]  ;;  %v5875_v2 = vpack.c.bf16 %v4025_v1, %v4024_v59  ;;  %v4040_v15 = vld [vmem:[%s9977_s3 + $0x660] sm:$0xff] }
 0x4c4   : > { %v6136_v46 = vpop.permute.xlu0 %6135  ;;  %5890 = vmatpush3.bf16.msra.mxu1 %v5889_v22  ;;  %v5907_v38 = vpack.c.bf16 %v4057_v61, %v4056_v44  ;;  %v4009_v6 = vld [vmem:[%s9977_s3 + $0x568] sm:$0xff] }
 0x4c5   : > { %v6131_v29 = vpop.permute.xlu1 %6130  ;;  %v6138_v62 = vunpack.i.h.bf16 %v6136_v46  ;;  %v6137_v14 = vunpack.i.l.bf16 %v6136_v46  ;;  %v4048_v46 = vld [vmem:[%s9977_s3 + $0x6a0] sm:$0xff]  ;;  %v5877_v42 = vpack.c.bf16 %v4009_v6, %v4008_v18  ;;  %v4041_v22 = vld [vmem:[%s9977_s3 + $0x668] sm:$0xff] }
 0x4c6   : > { %v6133_v45 = vunpack.i.h.bf16 %v6131_v29  ;;  %v6132_v50 = vunpack.i.l.bf16 %v6131_v29  ;;  %v5859_v29 = vpack.c.bf16 %v4017_v51, %v4016_v8  ;;  %v4026_v8 = vld [vmem:[%s9977_s3 + $0x5f0] sm:$0xff]  ;;  %v4027_v51 = vld [vmem:[%s9977_s3 + $0x5f8] sm:$0xff] }
 0x4c7   : > { %v3653_v33 = vsel %vm1721_vm4, %v3587_v26, %v6137_v14  ;;  %v3650_v56 = vsel %vm1721_vm4, %v3575_v16, %v6138_v62  ;;  %v4049_v62 = vld [vmem:[%s9977_s3 + $0x6a8] sm:$0xff]  ;;  %v4000_v14 = vld [vmem:[%s9977_s3 + $0x520] sm:$0xff] }
 0x4c8   : > { %v3647_v40 = vsel %vm1721_vm4, %v3563_v19, %v6132_v50  ;;  %v3644_v34 = vsel %vm1721_vm4, %v3551_v54, %v6133_v45  ;;  %3873 = vmatprep.mubr.f32.mxu1 %v3653_v33  ;;  %v4001_v45 = vld [vmem:[%s9977_s3 + $0x528] sm:$0xff]  ;;  %v5891_v50 = vpack.c.bf16 %v4049_v62, %v4048_v46  ;;  %v4032_v19 = vld [vmem:[%s9977_s3 + $0x620] sm:$0xff]  ;;  %5860 = vmatprep.subr.bf16.mxu0 %v5859_v29  ;;  %v4019_v33 = vld [vmem:[%s9977_s3 + $0x5b8] sm:$0xff] }
 0x4c9   : > { %3793 = vmatprep.mubr.f32.mxu0 %v3647_v40  ;;  %3874 = vmatmul.mubr.f32.gmra.mrb[58].mxu1 %v3650_v56  ;;  %v5861_v54 = vpack.c.bf16 %v4001_v45, %v4000_v14  ;;  %v4033_v26 = vld [vmem:[%s9977_s3 + $0x628] sm:$0xff]  ;;  %v4018_v40 = vld [vmem:[%s9977_s3 + $0x5b0] sm:$0xff]  ;;  %v5909_v46 = vpack.c.bf16 %v4041_v22, %v4040_v15  ;;  %v5879_v29 = vpack.c.bf16 %v4027_v51, %v4026_v8  ;;  %v4059_v14 = vld [vmem:[%s9977_s3 + $0x6f8] sm:$0xff] }
 0x4ca   : > { %3794 = vmatmul.mubr.f32.gmra.mrb[54].mxu0 %v3644_v34  ;;  %v5893_v16 = vpack.c.bf16 %v4033_v26, %v4032_v19  ;;  %5892 = vmatprep.subr.bf16.mxu1 %v5891_v50  ;;  %v4050_v34 = vld [vmem:[%s9977_s3 + $0x6b0] sm:$0xff]  ;;  %v5863_v56 = vpack.c.bf16 %v4019_v33, %v4018_v40  ;;  %v4043_v26 = vld [vmem:[%s9977_s3 + $0x678] sm:$0xff]  ;;  %v10241_v33 = vmov 0.0|0.0  }
 0x4cb   : > { %5862 = vmatpush3.bf16.msra.mxu0 %v5861_v54  ;;  %v4058_v62 = vld [vmem:[%s9977_s3 + $0x6f0] sm:$0xff]  ;;  %v4011_v54 = vld [vmem:[%s9977_s3 + $0x578] sm:$0xff] }
 0x4cc   : > { %5894 = vmatpush3.bf16.msra.mxu1 %v5893_v16  ;;  %5864 = vmatprep.subr.bf16.mxu0 %v5863_v56  ;;  %v4010_v45 = vld [vmem:[%s9977_s3 + $0x570] sm:$0xff]  ;;  %v5911_v50 = vpack.c.bf16 %v4059_v14, %v4058_v62 }
 0x4cd   : > { %v4042_v19 = vld [vmem:[%s9977_s3 + $0x670] sm:$0xff]  ;;  %v5881_v16 = vpack.c.bf16 %v4011_v54, %v4010_v45 }
 0x4ce   : > { %v5913_v40 = vpack.c.bf16 %v4043_v26, %v4042_v19 }
 0x4ed   : > { %v5152_v37 = vpop.f32.mrb[40].mxu0 }
 0x4ee   : > { %v5153_v9 = vpop.f32.mrb[41].mxu0 }
 0x4ef   : > { %v5154_v55 = vadd.f32 %v5153_v9, %v5152_v37  ;;  %v4051_v37 = vld [vmem:[%s9977_s3 + $0x6b8] sm:$0xff]  ;;  %v4002_v9 = vld [vmem:[%s9977_s3 + $0x530] sm:$0xff] }
 0x4f1   : > { %v2935_v3 = vadd.f32 %v5154_v55, %v2862_v52  ;;  %v4003_v55 = vld [vmem:[%s9977_s3 + $0x538] sm:$0xff] }
 0x4f2   : > { %v5155_v11 = vpop.f32.mrb[42].mxu0 }
 0x4f3   : > { %v5156_v41 = vpop.f32.mrb[43].mxu0 }
 0x4f4   : > { %v5157_v4 = vadd.f32 %v5156_v41, %v5155_v11  ;;  %v5895_v11 = vpack.c.bf16 %v4051_v37, %v4050_v34  ;;  %v5865_v41 = vpack.c.bf16 %v4003_v55, %v4002_v9  ;;  %v3718_v9 = vld [vmem:[%s9976_s2 + $0x90] ss:$0 sm:$0xff] }
 0x4f6   : > { %v2940_v21 = vadd.f32 %v5157_v4, %v2862_v52  ;;  %v4034_v4 = vld [vmem:[%s9977_s3 + $0x630] sm:$0xff]  ;;  %v4035_v52 = vld [vmem:[%s9977_s3 + $0x638] sm:$0xff]  ;;  %5896 = vmatprep.subr.bf16.mxu1 %v5895_v11  ;;  %5866 = vmatpush3.bf16.msra.mxu0 %v5865_v41 }
 0x4f7   : > { %v5190_v47 = vpop.f32.mrb[44].mxu0 }
 0x4f8   : > { %v5191_v23 = vpop.f32.mrb[45].mxu0 }
 0x4f9   : > { %v5192_v36 = vadd.f32 %v5191_v23, %v5190_v47  ;;  %v5897_v47 = vpack.c.bf16 %v4035_v52, %v4034_v4  ;;  %v4020_v23 = vld [vmem:[%s9977_s3 + $0x5c0] sm:$0xff] }
 0x4fb   : > { %v9271_v7 = vadd.f32 %v5192_v36, %v2930_v32  ;;  %v4021_v32 = vld [vmem:[%s9977_s3 + $0x5c8] sm:$0xff]  ;;  %v4052_v36 = vld [vmem:[%s9977_s3 + $0x6c0] sm:$0xff]  ;;  %5898 = vmatpush3.bf16.msra.mxu1 %v5897_v47 }
 0x4fe   : > { %v5193_v25 = vpop.f32.mrb[46].mxu0 }
 0x4ff   : > { %v5194_v17 = vpop.f32.mrb[47].mxu0 }
 0x500   : > { %v5195_v39 = vadd.f32 %v5194_v17, %v5193_v25  ;;  %v5867_v25 = vpack.c.bf16 %v4021_v32, %v4020_v23  ;;  %v4053_v17 = vld [vmem:[%s9977_s3 + $0x6c8] sm:$0xff] }
 0x502   : > { %v9273_v35 = vadd.f32 %v5195_v39, %v2935_v3  ;;  %v5196_v12 = vpop.f32.mrb[48].mxu0  ;;  %v4004_v3 = vld [vmem:[%s9977_s3 + $0x540] sm:$0xff]  ;;  %v4005_v39 = vld [vmem:[%s9977_s3 + $0x548] sm:$0xff]  ;;  %5868 = vmatprep.subr.bf16.mxu0 %v5867_v25 }
 0x503   : > { %v5197_v30 = vpop.f32.mrb[49].mxu0 }
 0x504   : > { %v5198_v13 = vadd.f32 %v5197_v30, %v5196_v12  ;;  %v5899_v12 = vpack.c.bf16 %v4053_v17, %v4052_v36  ;;  %v5869_v30 = vpack.c.bf16 %v4005_v39, %v4004_v3 }
 0x506   : > { %v9275_v60 = vadd.f32 %v5198_v13, %v2940_v21  ;;  %v4036_v21 = vld [vmem:[%s9977_s3 + $0x640] sm:$0xff]  ;;  %v4037_v13 = vld [vmem:[%s9977_s3 + $0x648] sm:$0xff]  ;;  %5900 = vmatprep.subr.bf16.mxu1 %v5899_v12  ;;  %5870 = vmatpush3.bf16.msra.mxu0 %v5869_v30 }
 0x507   : > { %v5901_v58 = vpack.c.bf16 %v4037_v13, %v4036_v21  ;;  %5872 = vmatprep.subr.bf16.mxu0 %v5871_v48 }
 0x509   : > { %5902 = vmatpush3.bf16.msra.mxu1 %v5901_v58 }
 0x50a   : > { %5904 = vmatprep.subr.bf16.mxu1 %v5903_v10  ;;  %5874 = vmatpush3.bf16.msra.mxu0 %v5873_v24 }
 0x50b   : > { %5876 = vmatprep.subr.bf16.mxu0 %v5875_v2 }
 0x50d   : > { %5906 = vmatpush3.bf16.msra.mxu1 %v5905_v43 }
 0x50e   : > { %5908 = vmatprep.subr.bf16.mxu1 %v5907_v38  ;;  %5878 = vmatpush3.bf16.msra.mxu0 %v5877_v42 }
 0x50f   : > { %5880 = vmatprep.subr.bf16.mxu0 %v5879_v29 }
 0x511   : > { %5910 = vmatpush3.bf16.msra.mxu1 %v5909_v46 }
 0x512   : > { %5912 = vmatprep.subr.bf16.mxu1 %v5911_v50  ;;  %5882 = vmatpush3.bf16.msra.mxu0 %v5881_v16 }
 0x513   : > { %5915 = vmatprep.subr.bf16.mxu0 %v10241_v33 }
 0x515   : > { %5914 = vmatpush3.bf16.msra.mxu1 %v5913_v40 }
 0x516   : > { %5939 = vmatprep.subr.bf16.mxu1 %v10241_v33 }
 0x588   : > { %v5272_v34 = vpop.f32.mrb[54].mxu1 }
 0x589   : > { %v5231_v56 = vpop.f32.mrb[50].mxu0  ;;  %v5273_v37 = vpop.f32.mrb[55].mxu1 }
 0x58a   : > { %v5232_v55 = vpop.f32.mrb[51].mxu0  ;;  %v5274_v11 = vadd.f32 %v5273_v37, %v5272_v34 }
 0x58b   : > { %v5233_v41 = vadd.f32 %v5232_v55, %v5231_v56  ;;  %v9494_v55 = vmul.f32 0.70710677, %v9271_v7 }
 0x58d   : > { %v3786_v4 = vadd.f32 %v5233_v41, %v3718_v9  ;;  %vm3029_vm12 = vcmp.ge.f32.partialorder %v9494_v55, 0.0 }
 0x58f   : > { %v9474_v52 = vadd.f32 %v5274_v11, %v3786_v4 }
 0x591   : > { %v9477_v47 = vmul.f32 0.70710677, %v9474_v52 }
 0x593   : > { %v3891_v23 = vand.u32 2147483647, %v9477_v47  ;;  %v5275_v32 = vpop.f32.mrb[56].mxu1  ;;  %vm3885_vm8 = vcmp.ge.f32.partialorder %v9477_v47, 0.0 }
 0x594   : > { %v5234_v36 = vpop.f32.mrb[52].mxu0  ;;  %v5276_v25 = vpop.f32.mrb[57].mxu1 }
 0x595   : > { %v3894_v17 = vmul.f32 0.3275911, %v3891_v23  ;;  %v5235_v3 = vpop.f32.mrb[53].mxu0  ;;  %v5277_v39 = vadd.f32 %v5276_v25, %v5275_v32  ;;  %v3930_v53 = vsub.f32 0.0, %v3891_v23  ;;  %v3888_v32 = vsel %vm3885_vm8, 1.0, %v10217_v0 }
 0x596   : > { %v5236_v12 = vadd.f32 %v5235_v3, %v5234_v36  ;;  %v9498_v3 = vand.u32 2147483647, %v9494_v55  ;;  %v3032_v55 = vsel %vm3029_vm12, 1.0, %v10217_v0 }
 0x597   : > { %v3897_v30 = vadd.f32 1.0, %v3894_v17  ;;  %v3933_v43 = vmul.f32 %v3930_v53, %v3891_v23 }
 0x598   : > { %v3791_v21 = vadd.f32 %v5236_v12, %v3718_v9  ;;  %v9501_v12 = vmul.f32 0.70710677, %v9273_v35 }
 0x599   : > { %6399 = vrcp.f32 %v3897_v30  ;;  %v3936_v38 = vmul.f32 1.442695, %v3933_v43  ;;  %v3879_v30 = vmul.f32 0.5, %v9474_v52 }
 0x59a   : > { %v9480_v13 = vadd.f32 %v5277_v39, %v3791_v21  ;;  %vm3030_vm13 = vcmp.ge.f32.partialorder %v9501_v12, 0.0 }
 0x59c   : > { %v9483_v58 = vmul.f32 0.70710677, %v9480_v13  ;;  %v5278_v63 = vpop.f32.mrb[58].mxu1 }
 0x59d   : > { %v5237_v31 = vpop.f32.mrb[54].mxu0  ;;  %v5279_v5 = vpop.f32.mrb[59].mxu1 }
 0x59e   : > { %v3892_v27 = vand.u32 2147483647, %v9483_v58  ;;  %v5238_v48 = vpop.f32.mrb[55].mxu0  ;;  %v5280_v10 = vadd.f32 %v5279_v5, %v5278_v63  ;;  %vm3886_vm9 = vcmp.ge.f32.partialorder %v9483_v58, 0.0 }
 0x59f   : > { %v5239_v28 = vadd.f32 %v5238_v48, %v5237_v31 }
 0x5a0   : > { %v3895_v24 = vmul.f32 0.3275911, %v3892_v27  ;;  %v3931_v22 = vsub.f32 0.0, %v3892_v27 }
 0x5a1   : > { %v3796_v57 = vadd.f32 %v5239_v28, %v3718_v9  ;;  %v3038_v28 = vmul.f32 0.3275911, %v9498_v3 }
 0x5a2   : > { %v3898_v49 = vadd.f32 1.0, %v3895_v24  ;;  %v3934_v62 = vmul.f32 %v3931_v22, %v3892_v27 }
 0x5a3   : > { %v6400_v59 = vpop.eup %6399  ;;  %v9486_v1 = vadd.f32 %v5280_v10, %v3796_v57  ;;  %v9506_v10 = vand.u32 2147483647, %v9501_v12 }
 0x5a4   : > { %v3903_v44 = vmul.f32 1.0614054, %v6400_v59  ;;  %6401 = vrcp.f32 %v3898_v49  ;;  %v3938_v19 = vmul.f32 1.442695, %v3934_v62 }
 0x5a5   : > { %v9489_v61 = vmul.f32 0.70710677, %v9486_v1  ;;  %6403 = vpow2.f32 %v3936_v38  ;;  %v3039_v43 = vmul.f32 0.3275911, %v9506_v10 }
 0x5a6   : > { %v3906_v2 = vadd.f32 -1.4531521, %v3903_v44  ;;  %v3889_v44 = vsel %vm3886_vm9, 1.0, %v10217_v0 }
 0x5a7   : > { %v3893_v18 = vand.u32 2147483647, %v9489_v61  ;;  %vm3887_vm10 = vcmp.ge.f32.partialorder %v9489_v61, 0.0 }
 0x5a8   : > { %v3909_v6 = vmul.f32 %v6400_v59, %v3906_v2 }
 0x5a9   : > { %v3896_v15 = vmul.f32 0.3275911, %v3893_v18  ;;  %v3932_v16 = vsub.f32 0.0, %v3893_v18 }
 0x5aa   : > { %v3912_v42 = vadd.f32 1.4214138, %v3909_v6  ;;  %v3880_v6 = vmul.f32 0.5, %v9480_v13 }
 0x5ab   : > { %v3899_v8 = vadd.f32 1.0, %v3896_v15  ;;  %v3935_v41 = vmul.f32 %v3932_v16, %v3893_v18 }
 0x5ac   : > { %v3915_v51 = vmul.f32 %v6400_v59, %v3912_v42  ;;  %v3042_v42 = vadd.f32 1.0, %v3039_v43  ;;  %v3075_v43 = vsub.f32 0.0, %v9506_v10 }
 0x5ad   : > { %6405 = vrcp.f32 %v3899_v8  ;;  %v3940_v47 = vmul.f32 1.442695, %v3935_v41 }
 0x5ae   : > { %v6402_v46 = vpop.eup %6401  ;;  %v3918_v29 = vadd.f32 -0.28449672, %v3915_v51  ;;  %6407 = vpow2.f32 %v3938_v19 }
 0x5af   : > { %v3904_v14 = vmul.f32 1.0614054, %v6402_v46  ;;  %v6404_v34 = vpop.eup %6403  ;;  %6409 = vpow2.f32 %v3940_v47 }
 0x5b0   : > { %v3921_v45 = vmul.f32 %v6400_v59, %v3918_v29  ;;  %v3890_v29 = vsel %vm3887_vm10, 1.0, %v10217_v0 }
 0x5b1   : > { %v3907_v50 = vadd.f32 -1.4531521, %v3904_v14  ;;  %v3881_v14 = vmul.f32 0.5, %v9486_v1 }
 0x5b2   : > { %v3924_v54 = vadd.f32 0.2548296, %v3921_v45 }
 0x5b3   : > { %v3910_v26 = vmul.f32 %v6402_v46, %v3907_v50 }
 0x5b4   : > { %v3927_v40 = vmul.f32 %v6400_v59, %v3924_v54  ;;  %v3041_v59 = vadd.f32 1.0, %v3038_v28 }
 0x5b5   : > { %v3913_v56 = vadd.f32 1.4214138, %v3910_v26 }
 0x5b6   : > { %v3942_v37 = vmul.f32 %v6404_v34, %v3927_v40  ;;  %6411 = vrcp.f32 %v3041_v59 }
 0x5b7   : > { %v6406_v9 = vpop.eup %6405  ;;  %v3916_v11 = vmul.f32 %v6402_v46, %v3913_v56  ;;  %6413 = vrcp.f32 %v3042_v42 }
 0x5b8   : > { %v3945_v4 = vsub.f32 1.0, %v3942_v37  ;;  %v3905_v23 = vmul.f32 1.0614054, %v6406_v9  ;;  %v6408_v53 = vpop.eup %6407 }
 0x5b9   : > { %v3919_v36 = vadd.f32 -0.28449672, %v3916_v11  ;;  %v6410_v8 = vpop.eup %6409 }
 0x5ba   : > { %v3948_v25 = vmul.f32 %v3945_v4, %v3888_v32  ;;  %v3908_v17 = vadd.f32 -1.4531521, %v3905_v23 }
 0x5bb   : > { %v3922_v39 = vmul.f32 %v6402_v46, %v3919_v36 }
 0x5bc   : > { %v3951_v21 = vadd.f32 1.0, %v3948_v25  ;;  %v3911_v31 = vmul.f32 %v6406_v9, %v3908_v17 }
 0x5bd   : > { %v3925_v63 = vadd.f32 0.2548296, %v3922_v39 }
 0x5be   : > { %v3954_v27 = vmul.f32 %v3951_v21, %v3879_v30  ;;  %v3914_v48 = vadd.f32 1.4214138, %v3911_v31 }
 0x5bf   : > { %v3928_v5 = vmul.f32 %v6402_v46, %v3925_v63 }
 0x5c0   : > { %3957 = vst [vmem:[#allocation7] sm:$0xff] %v3954_v27  ;;  %v3917_v24 = vmul.f32 %v6406_v9, %v3914_v48  ;;  %v9515_v50 = vpop.eup %6411 }
 0x5c1   : > { %v3943_v57 = vmul.f32 %v6408_v53, %v3928_v5  ;;  %v3047_v16 = vmul.f32 1.0614054, %v9515_v50  ;;  %v9518_v40 = vpop.eup %6413  ;;  %v3074_v5 = vsub.f32 0.0, %v9498_v3  ;;  %v4312_v53 = vld [vmem:[%s9978_s4 + $0x188] sm:$0xff] }
 0x5c2   : > { %v3920_v49 = vadd.f32 -0.28449672, %v3917_v24  ;;  %v4313_v24 = vld [vmem:[%s9978_s4 + $0x190] sm:$0xff] }
 0x5c3   : > { %v3946_v52 = vsub.f32 1.0, %v3943_v57  ;;  %v3050_v37 = vadd.f32 -1.4531521, %v3047_v16  ;;  %v4419_v57 = vld [vmem:[%s9978_s4 + $0xc8] sm:$0xff]  ;;  %v3077_v59 = vmul.f32 %v3074_v5, %v9498_v3  ;;  %v4422_v3 = vld [vmem:[%s9978_s4 + $0xe0] sm:$0xff] }
 0x5c4   : > { %v3923_v2 = vmul.f32 %v6406_v9, %v3920_v49  ;;  %v4420_v49 = vld [vmem:[%s9978_s4 + $0xd0] sm:$0xff] }
 0x5c5   : > { %v3949_v38 = vmul.f32 %v3946_v52, %v3889_v44  ;;  %v3053_v32 = vmul.f32 %v9515_v50, %v3050_v37  ;;  %v4314_v44 = vld [vmem:[%s9978_s4 + $0x198] sm:$0xff] }
 0x5c6   : > { %v3926_v18 = vadd.f32 0.2548296, %v3923_v2  ;;  %v5916_v2 = vpack.c.bf16 %v4313_v24, %v4312_v53 }
 0x5c7   : > { %v3952_v15 = vadd.f32 1.0, %v3949_v38  ;;  %v5940_v38 = vpack.c.bf16 %v4420_v49, %v4419_v57  ;;  %v4323_v57 = vld [vmem:[%s9978_s4 + $0x1e0] sm:$0xff]  ;;  %v4429_v49 = vld [vmem:[%s9978_s4 + $0x118] sm:$0xff] }
 0x5c8   : > { %v3929_v22 = vmul.f32 %v6406_v9, %v3926_v18  ;;  %v3048_v9 = vmul.f32 1.0614054, %v9518_v40  ;;  %v4315_v18 = vld [vmem:[%s9978_s4 + $0x1a0] sm:$0xff] }
 0x5c9   : > { %v3955_v51 = vmul.f32 %v3952_v15, %v3880_v6  ;;  %v4421_v6 = vld [vmem:[%s9978_s4 + $0xd8] sm:$0xff] }
 0x5ca   : > { %v3944_v58 = vmul.f32 %v6410_v8, %v3929_v22  ;;  %v3051_v17 = vadd.f32 -1.4531521, %v3048_v9 }
 0x5cb   : > { %3958 = vst [vmem:[#allocation7 + $0x8] sm:$0xff] %v3955_v51 }
 0x5cc   : > { %v3947_v46 = vsub.f32 1.0, %v3944_v58  ;;  %v3054_v48 = vmul.f32 %v9518_v40, %v3051_v17  ;;  %v3080_v58 = vmul.f32 1.442695, %v3077_v59 }
 0x5ce   : > { %v3950_v62 = vmul.f32 %v3947_v46, %v3890_v29  ;;  %v3057_v52 = vadd.f32 1.4214138, %v3054_v48  ;;  %v3078_v46 = vmul.f32 %v3075_v43, %v9506_v10  ;;  %v4317_v10 = vld [vmem:[%s9978_s4 + $0x1b0] sm:$0xff]  ;;  %6415 = vpow2.f32 %v3080_v58  ;;  %v4327_v58 = vld [vmem:[%s9978_s4 + $0x200] sm:$0xff] }
 0x5d0   : > { %v3953_v45 = vadd.f32 1.0, %v3950_v62 }
 0x5d2   : > { %v3963_v13 = vld [vmem:[#allocation7 + $0x1] sm:$0xff]  ;;  %v3956_v54 = vmul.f32 %v3953_v45, %v3881_v14  ;;  %v5919_v14 = vpack.c.bf16 %v4315_v18, %v4314_v44  ;;  %v5943_v45 = vpack.c.bf16 %v4422_v3, %v4421_v6  ;;  %v4431_v6 = vld [vmem:[%s9978_s4 + $0x128] sm:$0xff] }
 0x5d3   : > { %v3966_v19 = vmax.f32 %v3954_v27, %v3963_v13  ;;  %v3969_v26 = vld [vmem:[#allocation7 + $0x2] sm:$0xff]  ;;  %v3056_v27 = vadd.f32 1.4214138, %v3053_v32  ;;  %v4316_v13 = vld [vmem:[%s9978_s4 + $0x1a8] sm:$0xff]  ;;  %v4426_v32 = vld [vmem:[%s9978_s4 + $0x100] sm:$0xff] }
 0x5d4   : > { %3959 = vst [vmem:[#allocation7 + $0x10] sm:$0xff] %v3956_v54  ;;  %v3975_v34 = vld [vmem:[#allocation7 + $0x3] sm:$0xff]  ;;  %v5922_v9 = vpack.c.bf16 %v4317_v10, %v4316_v13  ;;  %v3023_v10 = vmul.f32 0.5, %v9271_v7  ;;  %v4436_v7 = vld [vmem:[%s9978_s4 + $0x148] sm:$0xff] }
 0x5d5   : > { %v3972_v61 = vmax.f32 %v3966_v19, %v3969_v26  ;;  %v3059_v28 = vmul.f32 %v9515_v50, %v3056_v27  ;;  %v4423_v19 = vld [vmem:[%s9978_s4 + $0xe8] sm:$0xff]  ;;  %v4424_v26 = vld [vmem:[%s9978_s4 + $0xf0] sm:$0xff] }
 0x5d6   : > { %v4428_v27 = vld [vmem:[%s9978_s4 + $0x110] sm:$0xff] }
 0x5d7   : > { %v3978_v56 = vmax.f32 %v3972_v61, %v3975_v34  ;;  %v3062_v15 = vadd.f32 -0.28449672, %v3059_v28  ;;  %v3082_v61 = vmul.f32 1.442695, %v3078_v46  ;;  %v4322_v28 = vld [vmem:[%s9978_s4 + $0x1d8] sm:$0xff]  ;;  %v4432_v3 = vld [vmem:[%s9978_s4 + $0x130] sm:$0xff] }
 0x5d8   : > { %v5931_v44 = vpack.c.bf16 %v4323_v57, %v4322_v28  ;;  %v4433_v46 = vld [vmem:[%s9978_s4 + $0x138] sm:$0xff] }
 0x5d9   : > { %3981 = vst [vmem:[#allocation8] sm:$0xff] %v3978_v56  ;;  %v3065_v54 = vmul.f32 %v9515_v50, %v3062_v15  ;;  %6417 = vpow2.f32 %v3082_v61 }
 0x5db   : > { %v3962_v1 = vld [vmem:[#allocation7 + $0x10] sm:$0x1f] }
 0x5dc   : > { %v3964_v11 = vld [vmem:[#allocation7 + $0x9] sm:$0xff]  ;;  %v3965_v41 = vld [vmem:[#allocation7 + $0x11] sm:$0x1f] }
 0x5dd   : > { %v3967_v4 = vmax.f32 %v3955_v51, %v3964_v11  ;;  %v3968_v23 = vmax.f32 %v3962_v1, %v3965_v41  ;;  %v3970_v36 = vld [vmem:[#allocation7 + $0xa] sm:$0xff]  ;;  %v3971_v25 = vld [vmem:[#allocation7 + $0x12] sm:$0x1f]  ;;  %v3060_v51 = vmul.f32 %v9518_v40, %v3057_v52  ;;  %v5946_v1 = vpack.c.bf16 %v4424_v26, %v4423_v19 }
 0x5de   : > { %v3976_v30 = vld [vmem:[#allocation7 + $0xb] sm:$0xff]  ;;  %v3977_v21 = vld [vmem:[#allocation7 + $0x13] sm:$0x1f]  ;;  %v3068_v41 = vadd.f32 0.2548296, %v3065_v54 }
 0x5df   : > { %v3973_v39 = vmax.f32 %v3967_v4, %v3970_v36  ;;  %v3974_v47 = vmax.f32 %v3968_v23, %v3971_v25  ;;  %v3063_v16 = vadd.f32 -0.28449672, %v3060_v51  ;;  %v4318_v11 = vld [vmem:[%s9978_s4 + $0x1b8] sm:$0xff]  ;;  %v4319_v4 = vld [vmem:[%s9978_s4 + $0x1c0] sm:$0xff] }
 0x5e0   : > { %v4425_v23 = vld [vmem:[%s9978_s4 + $0xf8] sm:$0xff]  ;;  %v4430_v52 = vld [vmem:[%s9978_s4 + $0x120] sm:$0xff] }
 0x5e1   : > { %v3979_v31 = vmax.f32 %v3973_v39, %v3976_v30  ;;  %v3980_v63 = vmax.f32 %v3974_v47, %v3977_v21  ;;  %v3066_v36 = vmul.f32 %v9518_v40, %v3063_v16  ;;  %v5925_v39 = vpack.c.bf16 %v4319_v4, %v4318_v11  ;;  %v4320_v30 = vld [vmem:[%s9978_s4 + $0x1c8] sm:$0xff]  ;;  %v4441_v11 = vld [vmem:[%s9978_s4 + $0x170] sm:$0xff]  ;;  %v4442_v4 = vld [vmem:[%s9978_s4 + $0x178] sm:$0xff] }
 0x5e2   : > { %v5949_v47 = vpack.c.bf16 %v4426_v32, %v4425_v23  ;;  %v3071_v21 = vmul.f32 %v9515_v50, %v3068_v41  ;;  %v6416_v50 = vpop.eup %6415  ;;  %v3024_v16 = vmul.f32 0.5, %v9273_v35  ;;  %v4437_v35 = vld [vmem:[%s9978_s4 + $0x150] sm:$0xff]  ;;  %v4443_v23 = vld [vmem:[%s9978_s4 + $0x180] sm:$0xff] }
 0x5e3   : > { %3982 = vst [vmem:[#allocation8 + $0x8] sm:$0xff] %v3979_v31  ;;  %3983 = vst [vmem:[#allocation8 + $0x10] sm:$0x1f] %v3980_v63  ;;  %v4427_v63 = vld [vmem:[%s9978_s4 + $0x108] sm:$0xff]  ;;  %v3069_v48 = vadd.f32 0.2548296, %v3066_v36  ;;  %v6418_v43 = vpop.eup %6417  ;;  %v5973_v32 = vpack.c.bf16 %v4443_v23, %v4442_v4 }
 0x5e4   : > { %v5952_v53 = vpack.c.bf16 %v4428_v27, %v4427_v63  ;;  %v3086_v24 = vmul.f32 %v6416_v50, %v3071_v21  ;;  %v9692_v36 = vmul.f32 0.70710677, %v9275_v60 }
 0x5e5   : > { %v3072_v59 = vmul.f32 %v9518_v40, %v3069_v48  ;;  %v4325_v40 = vld [vmem:[%s9978_s4 + $0x1f0] sm:$0xff] }
 0x5e6   : > { %v3089_v18 = vsub.f32 1.0, %v3086_v24  ;;  %vm3031_vm14 = vcmp.ge.f32.partialorder %v9692_v36, 0.0 }
 0x5e7   : > { %v3087_v15 = vmul.f32 %v6418_v43, %v3072_v59 }
 0x5e8   : > { %v3092_v51 = vmul.f32 %v3089_v18, %v3032_v55 }
 0x5ea   : > { %v3987_v42 = vld [vmem:[#allocation8 + $0x1] sm:$0xff]  ;;  %v3988_v29 = vld [vmem:[#allocation8 + $0x9] sm:$0xff]  ;;  %v3995_v37 = vld [vmem:[#allocation8 + $0x13] sm:$0x3]  ;;  %v3095_v13 = vadd.f32 1.0, %v3092_v51 }
 0x5eb   : > { %v3993_v22 = vld [vmem:[#allocation8 + $0x3] sm:$0xff]  ;;  %4125 = vmatprep.mubr.f32.mxu0 %v3987_v42  ;;  %v3994_v62 = vld [vmem:[#allocation8 + $0xb] sm:$0xff] }
 0x5ec   : > { %v3990_v8 = vld [vmem:[#allocation8 + $0x2] sm:$0xff]  ;;  %4205 = vmatprep.mubr.f32.mxu1 %v3993_v22  ;;  %4126 = vmatmul.mubr.f32.vlgmr.msra.gmra.mrb[56].mxu0 %v3978_v56  ;;  %v3991_v34 = vld [vmem:[#allocation8 + $0xa] sm:$0xff]  ;;  %v3992_v17 = vld [vmem:[#allocation8 + $0x12] sm:$0x3]  ;;  %v5958_v22 = vpack.c.bf16 %v4432_v3, %v4431_v6  ;;  %v3098_v19 = vmul.f32 %v3095_v13, %v3023_v10 }
 0x5ed   : > { %4206 = vmatmul.mubr.f32.vlgmr.msra.gmra.mrb[60].mxu1 %v3990_v8  ;;  %5917 = vmatpush3.bf16.msra.mxu0 %v5916_v2  ;;  %v3989_v56 = vld [vmem:[#allocation8 + $0x11] sm:$0x3]  ;;  %v5955_v2 = vpack.c.bf16 %v4430_v52, %v4429_v49 }
 0x5ee   : > { %5941 = vmatpush3.bf16.msra.mxu1 %v5940_v38  ;;  %4130 = vmatprep.mubr.f32.mxu0 %v3988_v29  ;;  %v3986_v25 = vld [vmem:[#allocation8 + $0x10] sm:$0x3]  ;;  %v4324_v38 = vld [vmem:[%s9978_s4 + $0x1e8] sm:$0xff]  ;;  %v4434_v29 = vld [vmem:[%s9978_s4 + $0x140] sm:$0xff] }
 0x5ef   : > { %4210 = vmatprep.mubr.f32.mxu1 %v3994_v62  ;;  %5918 = vmatprep.subr.bf16.mxu0 %v10241_v33  ;;  %v5934_v42 = vpack.c.bf16 %v4325_v40, %v4324_v38  ;;  %v4326_v8 = vld [vmem:[%s9978_s4 + $0x1f8] sm:$0xff]  ;;  %v3090_v62 = vsub.f32 1.0, %v3087_v15 }
 0x5f0   : > { %5942 = vmatprep.subr.bf16.mxu1 %v10241_v33  ;;  %4131 = vmatmul.mubr.f32.gmra.mrb[58].mxu0 %v3979_v31  ;;  %v4321_v31 = vld [vmem:[%s9978_s4 + $0x1d0] sm:$0xff]  ;;  %v5937_v12 = vpack.c.bf16 %v4327_v58, %v4326_v8 }
 0x5f1   : > { %4211 = vmatmul.mubr.f32.gmra.mrb[62].mxu1 %v3991_v34  ;;  %5920 = vmatpush3.bf16.msra.mxu0 %v5919_v14  ;;  %v5928_v5 = vpack.c.bf16 %v4321_v31, %v4320_v30  ;;  %v5961_v14 = vpack.c.bf16 %v4434_v29, %v4433_v46  ;;  %v5964_v34 = vpack.c.bf16 %v4437_v35, %v4436_v7  ;;  %v4060_v31 = vld [vmem:[%s9976_s2 + $0xa0] ss:$0 sm:$0xff] }
 0x5f2   : > { %5944 = vmatpush3.bf16.msra.mxu1 %v5943_v45  ;;  %4135 = vmatprep.mubr.f32.mxu0 %v3989_v56  ;;  %v3033_v45 = vsel %vm3030_vm13, 1.0, %v10217_v0  ;;  %v4438_v56 = vld [vmem:[%s9978_s4 + $0x158] sm:$0xff] }
 0x5f3   : > { %4215 = vmatprep.mubr.f32.mxu1 %v3995_v37  ;;  %5921 = vmatprep.subr.bf16.mxu0 %v10241_v33  ;;  %v3093_v54 = vmul.f32 %v3090_v62, %v3033_v45  ;;  %v4439_v37 = vld [vmem:[%s9978_s4 + $0x160] sm:$0xff] }
 0x5f4   : > { %5945 = vmatprep.subr.bf16.mxu1 %v10241_v33  ;;  %4136 = vmatmul.mubr.f32.gmra.mrb[60].mxu0 %v3986_v25  ;;  %v3037_v25 = vand.u32 2147483647, %v9692_v36 }
 0x5f5   : > { %4216 = vmatmul.mubr.f32.gmra.mrb[64].mxu1 %v3992_v17  ;;  %5923 = vmatpush3.bf16.msra.mxu0 %v5922_v9  ;;  %v3096_v26 = vadd.f32 1.0, %v3093_v54  ;;  %v5967_v9 = vpack.c.bf16 %v4439_v37, %v4438_v56 }
 0x5f6   : > { %5947 = vmatpush3.bf16.msra.mxu1 %v5946_v1  ;;  %5924 = vmatprep.subr.bf16.mxu0 %v10241_v33  ;;  %v4440_v1 = vld [vmem:[%s9978_s4 + $0x168] sm:$0xff]  ;;  %v3040_v17 = vmul.f32 0.3275911, %v3037_v25  ;;  %v3076_v45 = vsub.f32 0.0, %v3037_v25 }
 0x5f7   : > { %5948 = vmatprep.subr.bf16.mxu1 %v10241_v33  ;;  %5476 = vmatprep.mubr.msk.f32.mxu0 %vm6456_vm11, %v10231_v20  ;;  %v3099_v61 = vmul.f32 %v3096_v26, %v3024_v16  ;;  %v5970_v41 = vpack.c.bf16 %v4441_v11, %v4440_v1 }
 0x5f8   : > { %5523 = vmatprep.mubr.msk.f32.mxu1 %vm6456_vm11, %v10231_v20  ;;  %v3079_v16 = vmul.f32 %v3076_v45, %v3037_v25 }
 0x5f9   : > { %5926 = vmatpush3.bf16.msra.mxu0 %v5925_v39  ;;  %v3043_v39 = vadd.f32 1.0, %v3040_v17 }
 0x5fa   : > { %5950 = vmatpush3.bf16.msra.mxu1 %v5949_v47  ;;  %5927 = vmatprep.subr.bf16.mxu0 %v10241_v33  ;;  %v3084_v56 = vmul.f32 1.442695, %v3079_v16 }
 0x5fb   : > { %5951 = vmatprep.subr.bf16.mxu1 %v10241_v33  ;;  %6419 = vrcp.f32 %v3043_v39 }
 0x5fd   : > { %5929 = vmatpush3.bf16.msra.mxu0 %v5928_v5 }
 0x5fe   : > { %5953 = vmatpush3.bf16.msra.mxu1 %v5952_v53  ;;  %5930 = vmatprep.subr.bf16.mxu0 %v10241_v33 }
 0x5ff   : > { %5954 = vmatprep.subr.bf16.mxu1 %v10241_v33 }
 0x601   : > { %5932 = vmatpush3.bf16.msra.mxu0 %v5931_v44 }
 0x602   : > { %5956 = vmatpush3.bf16.msra.mxu1 %v5955_v2  ;;  %5933 = vmatprep.subr.bf16.mxu0 %v10241_v33 }
 0x603   : > { %5957 = vmatprep.subr.bf16.mxu1 %v10241_v33 }
 0x605   : > { %5935 = vmatpush3.bf16.msra.mxu0 %v5934_v42  ;;  %v9695_v47 = vpop.eup %6419 }
 0x606   : > { %5959 = vmatpush3.bf16.msra.mxu1 %v5958_v22  ;;  %5936 = vmatprep.subr.bf16.mxu0 %v10241_v33  ;;  %v3049_v5 = vmul.f32 1.0614054, %v9695_v47 }
 0x607   : > { %5960 = vmatprep.subr.bf16.mxu1 %v10241_v33 }
 0x608   : > { %v3052_v44 = vadd.f32 -1.4531521, %v3049_v5 }
 0x609   : > { %5938 = vmatpush3.bf16.msra.mxu0 %v5937_v12 }
 0x60a   : > { %5962 = vmatpush3.bf16.msra.mxu1 %v5961_v14  ;;  %5963 = vmatprep.subr.bf16.mxu0 %v10241_v33  ;;  %v3055_v22 = vmul.f32 %v9695_v47, %v3052_v44 }
 0x60b   : > { %5987 = vmatprep.subr.bf16.mxu1 %v10241_v33 }
 0x60c   : > { %5477 = vmatmul.mubr.f32.vlgmr.msra.gmra.mrb[62].mxu0 %v3098_v19  ;;  %v3058_v12 = vadd.f32 1.4214138, %v3055_v22 }
 0x60d   : > { %5524 = vmatmul.mubr.f32.vlgmr.msra.gmra.mrb[66].mxu1 %v3098_v19  ;;  %5479 = vmatprep.mubr.msk.f32.mxu0 %vm6456_vm11, %v10231_v20 }
 0x60e   : > { %5526 = vmatprep.mubr.msk.f32.mxu1 %vm6456_vm11, %v10231_v20  ;;  %5965 = vmatpush3.bf16.msra.mxu0 %v5964_v34  ;;  %v3061_v19 = vmul.f32 %v9695_v47, %v3058_v12 }
 0x60f   : > { %5966 = vmatprep.subr.bf16.mxu0 %v10241_v33 }
 0x610   : > { %5480 = vmatmul.mubr.f32.gmra.mrb[64].mxu0 %v3099_v61  ;;  %v3064_v35 = vadd.f32 -0.28449672, %v3061_v19 }
 0x611   : > { %5527 = vmatmul.mubr.f32.gmra.mrb[68].mxu1 %v3099_v61  ;;  %5482 = vmatprep.mubr.msk.f32.mxu0 %vm6456_vm11, %v10231_v20 }
 0x612   : > { %5529 = vmatprep.mubr.msk.f32.mxu1 %vm6456_vm11, %v10231_v20  ;;  %5968 = vmatpush3.bf16.msra.mxu0 %v5967_v9  ;;  %v3067_v11 = vmul.f32 %v9695_v47, %v3064_v35 }
 0x613   : > { %5969 = vmatprep.subr.bf16.mxu0 %v10241_v33 }
 0x614   : > { %v3070_v39 = vadd.f32 0.2548296, %v3067_v11 }
 0x616   : > { %5971 = vmatpush3.bf16.msra.mxu0 %v5970_v41 }
 0x617   : > { %5972 = vmatprep.subr.bf16.mxu0 %v10241_v33 }
 0x61a   : > { %5974 = vmatpush3.bf16.msra.mxu0 %v5973_v32 }
 0x61b   : > { %5975 = vmatprep.subr.bf16.mxu0 %v10241_v33 }
 0x6bf   : > { %v5313_v30 = vpop.f32.mrb[56].mxu0 }
 0x6c0   : > { %v5354_v21 = vpop.f32.mrb[60].mxu1  ;;  %v5314_v63 = vpop.f32.mrb[57].mxu0 }
 0x6c1   : > { %v5355_v27 = vpop.f32.mrb[61].mxu1  ;;  %v5315_v48 = vadd.f32 %v5314_v63, %v5313_v30 }
 0x6c2   : > { %v5356_v50 = vadd.f32 %v5355_v27, %v5354_v21 }
 0x6c3   : > { %v4128_v53 = vadd.f32 %v5315_v48, %v4060_v31  ;;  %v5316_v28 = vpop.f32.mrb[58].mxu0 }
 0x6c4   : > { %v5357_v24 = vpop.f32.mrb[62].mxu1  ;;  %v5317_v57 = vpop.f32.mrb[59].mxu0 }
 0x6c5   : > { %v5358_v49 = vpop.f32.mrb[63].mxu1  ;;  %v9701_v52 = vadd.f32 %v5356_v50, %v4128_v53  ;;  %v5318_v59 = vadd.f32 %v5317_v57, %v5316_v28 }
 0x6c6   : > { %v5359_v43 = vadd.f32 %v5358_v49, %v5357_v24  ;;  %v3073_v24 = vmul.f32 %v9695_v47, %v3070_v39 }
 0x6c7   : > { %v9704_v2 = vmul.f32 0.70710677, %v9701_v52  ;;  %v4133_v38 = vadd.f32 %v5318_v59, %v4060_v31  ;;  %v5319_v18 = vpop.f32.mrb[60].mxu0 }
 0x6c8   : > { %v5360_v40 = vpop.f32.mrb[64].mxu1  ;;  %v5320_v6 = vpop.f32.mrb[61].mxu0 }
 0x6c9   : > { %v5361_v3 = vpop.f32.mrb[65].mxu1  ;;  %v4233_v15 = vand.u32 2147483647, %v9704_v2  ;;  %v9707_v55 = vadd.f32 %v5359_v43, %v4133_v38  ;;  %v5321_v42 = vadd.f32 %v5320_v6, %v5319_v18  ;;  %vm4227_vm15 = vcmp.ge.f32.partialorder %v9704_v2, 0.0 }
 0x6ca   : > { %v5362_v8 = vadd.f32 %v5361_v3, %v5360_v40  ;;  %v4230_v36 = vsel %vm4227_vm15, 1.0, %v10217_v0 }
 0x6cb   : > { %v4236_v51 = vmul.f32 0.3275911, %v4233_v15  ;;  %v9711_v58 = vmul.f32 0.70710677, %v9707_v55  ;;  %v4138_v46 = vadd.f32 %v5321_v42, %v4060_v31  ;;  %v4272_v7 = vsub.f32 0.0, %v4233_v15 }
 0x6cd   : > { %v4239_v29 = vadd.f32 1.0, %v4236_v51  ;;  %v4234_v62 = vand.u32 2147483647, %v9711_v58  ;;  %v9714_v14 = vadd.f32 %v5362_v8, %v4138_v46  ;;  %v4275_v9 = vmul.f32 %v4272_v7, %v4233_v15 }
 0x6ce   : > { %v3034_v7 = vsel %vm3031_vm14, 1.0, %v10217_v0  ;;  %vm4228_vm0 = vcmp.ge.f32.partialorder %v9711_v58, 0.0  ;;  %v4222_v58 = vmul.f32 0.5, %v9707_v55 }
 0x6cf   : > { %6421 = vrcp.f32 %v4239_v29  ;;  %v4237_v13 = vmul.f32 0.3275911, %v4234_v62  ;;  %v9717_v54 = vmul.f32 0.70710677, %v9714_v14  ;;  %v4273_v1 = vsub.f32 0.0, %v4234_v62 }
 0x6d0   : > { %v4278_v32 = vmul.f32 1.442695, %v4275_v9  ;;  %v4223_v55 = vmul.f32 0.5, %v9714_v14 }
 0x6d1   : > { %v4240_v10 = vadd.f32 1.0, %v4237_v13  ;;  %v4235_v26 = vand.u32 2147483647, %v9717_v54  ;;  %v4276_v17 = vmul.f32 %v4273_v1, %v4234_v62  ;;  %vm4229_vm1 = vcmp.ge.f32.partialorder %v9717_v54, 0.0 }
 0x6d3   : > { %6423 = vrcp.f32 %v4240_v10  ;;  %v4238_v61 = vmul.f32 0.3275911, %v4235_v26  ;;  %v4274_v21 = vsub.f32 0.0, %v4235_v26  ;;  %v4280_v53 = vmul.f32 1.442695, %v4276_v17 }
 0x6d5   : > { %v4241_v34 = vadd.f32 1.0, %v4238_v61  ;;  %v4277_v59 = vmul.f32 %v4274_v21, %v4235_v26 }
 0x6d7   : > { %6425 = vrcp.f32 %v4241_v34  ;;  %v4282_v46 = vmul.f32 1.442695, %v4277_v59 }
 0x6d8   : > { %6427 = vpow2.f32 %v3084_v56 }
 0x6d9   : > { %v6422_v37 = vpop.eup %6421  ;;  %6429 = vpow2.f32 %v4278_v32  ;;  %v4221_v32 = vmul.f32 0.5, %v9701_v52 }
 0x6da   : > { %v4245_v41 = vmul.f32 1.0614054, %v6422_v37  ;;  %6431 = vpow2.f32 %v4280_v53 }
 0x6db   : > { %6433 = vpow2.f32 %v4282_v46 }
 0x6dc   : > { %v4248_v4 = vadd.f32 -1.4531521, %v4245_v41 }
 0x6dd   : > { %v6424_v23 = vpop.eup %6423 }
 0x6de   : > { %v4251_v25 = vmul.f32 %v6422_v37, %v4248_v4  ;;  %v4246_v30 = vmul.f32 1.0614054, %v6424_v23 }
 0x6df   : > { %v9722_v31 = vpop.f32.mrb[62].mxu0 }
 0x6e0   : > { %v9724_v63 = vpop.f32.mrb[66].mxu1  ;;  %v4254_v27 = vadd.f32 1.4214138, %v4251_v25  ;;  %v4249_v48 = vadd.f32 -1.4531521, %v4246_v30  ;;  %v5478_v50 = vpop.f32.mrb[63].mxu0 }
 0x6e1   : > { %v5525_v5 = vpop.f32.mrb[67].mxu1  ;;  %v6426_v28 = vpop.eup %6425  ;;  %v4231_v25 = vsel %vm4228_vm0, 1.0, %v10217_v0 }
 0x6e2   : > { %v4257_v57 = vmul.f32 %v6422_v37, %v4254_v27  ;;  %v4252_v49 = vmul.f32 %v6424_v23, %v4249_v48  ;;  %v4247_v43 = vmul.f32 1.0614054, %v6426_v28  ;;  %v6428_v15 = vpop.eup %6427 }
 0x6e3   : > { %v9727_v44 = vpop.f32.mrb[64].mxu0  ;;  %v3088_v22 = vmul.f32 %v6428_v15, %v3073_v24  ;;  %v6430_v19 = vpop.eup %6429 }
 0x6e4   : > { %v9729_v38 = vpop.f32.mrb[68].mxu1  ;;  %v4260_v18 = vadd.f32 -0.28449672, %v4257_v57  ;;  %v4255_v40 = vadd.f32 1.4214138, %v4252_v49  ;;  %v5481_v6 = vpop.f32.mrb[65].mxu0 }
 0x6e5   : > { %v5528_v3 = vpop.f32.mrb[69].mxu1  ;;  %v4250_v42 = vadd.f32 -1.4531521, %v4247_v43  ;;  %v3091_v45 = vsub.f32 1.0, %v3088_v22  ;;  %v6432_v1 = vpop.eup %6431  ;;  %v4232_v49 = vsel %vm4229_vm1, 1.0, %v10217_v0 }
 0x6e6   : > { %v4263_v8 = vmul.f32 %v6422_v37, %v4260_v18  ;;  %v4258_v51 = vmul.f32 %v6424_v23, %v4255_v40  ;;  %v6434_v21 = vpop.eup %6433  ;;  %v4435_v0 = vld [vmem:[%s9976_s2 + $0xb0] ss:$0 sm:$0xff] }
 0x6e7   : > { %v4253_v47 = vmul.f32 %v6426_v28, %v4250_v42  ;;  %v3094_v34 = vmul.f32 %v3091_v45, %v3034_v7  ;;  %v4514_v6 = vadd.f32 %v9724_v63, %v4435_v0  ;;  %v4519_v15 = vadd.f32 %v9729_v38, %v4435_v0 }
 0x6e8   : > { %v4266_v29 = vadd.f32 0.2548296, %v4263_v8  ;;  %v4261_v62 = vadd.f32 -0.28449672, %v4258_v51 }
 0x6e9   : > { %v4256_v12 = vadd.f32 1.4214138, %v4253_v47  ;;  %v3097_v39 = vadd.f32 1.0, %v3094_v34  ;;  %v4537_v3 = vmax.f32 %v4514_v6, 0.0  ;;  %v4538_v42 = vmax.f32 %v4519_v15, 0.0  ;;  %v4700_v6 = vld [vmem:[%s9978_s4 + $0x228] sm:$0xff] }
 0x6ea   : > { %v4269_v13 = vmul.f32 %v6422_v37, %v4266_v29  ;;  %v4264_v10 = vmul.f32 %v6424_v23, %v4261_v62 }
 0x6eb   : > { %v4259_v26 = vmul.f32 %v6426_v28, %v4256_v12 }
 0x6ec   : > { %v4284_v16 = vmul.f32 %v6430_v19, %v4269_v13  ;;  %v4267_v61 = vadd.f32 0.2548296, %v4264_v10 }
 0x6ed   : > { %v4262_v35 = vadd.f32 -0.28449672, %v4259_v26 }
 0x6ee   : > { %v4287_v56 = vsub.f32 1.0, %v4284_v16  ;;  %v4270_v9 = vmul.f32 %v6424_v23, %v4267_v61  ;;  %v3025_v23 = vmul.f32 0.5, %v9275_v60 }
 0x6ef   : > { %v4265_v11 = vmul.f32 %v6426_v28, %v4262_v35 }
 0x6f0   : > { %v4290_v41 = vmul.f32 %v4287_v56, %v4230_v36  ;;  %v4285_v37 = vmul.f32 %v6432_v1, %v4270_v9  ;;  %v3100_v53 = vmul.f32 %v3097_v39, %v3025_v23  ;;  %v4444_v1 = vld [vmem:[%s9976_s2 + $0xc0] ss:$0 sm:$0xff] }
 0x6f1   : > { %v4268_v4 = vadd.f32 0.2548296, %v4265_v11 }
 0x6f2   : > { %v4293_v2 = vadd.f32 1.0, %v4290_v41  ;;  %v4288_v17 = vsub.f32 1.0, %v4285_v37 }
 0x6f3   : > { %v4271_v30 = vmul.f32 %v6426_v28, %v4268_v4 }
 0x6f4   : > { %v4296_v27 = vmul.f32 %v4293_v2, %v4221_v32  ;;  %v4291_v48 = vmul.f32 %v4288_v17, %v4231_v25 }
 0x6f5   : > { %v4286_v50 = vmul.f32 %v6434_v21, %v4271_v30 }
 0x6f6   : > { %v4294_v5 = vadd.f32 1.0, %v4291_v48  ;;  %v4303_v52 = vrot.slane %v4296_v27, 6 }
 0x6f7   : > { %v4289_v24 = vsub.f32 1.0, %v4286_v50 }
 0x6f8   : > { %v4297_v57 = vmul.f32 %v4294_v5, %v4222_v58  ;;  %v4311_v28 = vsel %vm4302_vm2, %v3100_v53, %v4303_v52 }
 0x6f9   : > { %v4292_v59 = vmul.f32 %v4289_v24, %v4232_v49  ;;  %5483 = vmatmul.mubr.f32.gmra.mrb[66].mxu0 %v4311_v28  ;;  %5530 = vmatmul.mubr.f32.gmra.mrb[70].mxu1 %v4311_v28 }
 0x6fa   : > { %5485 = vmatprep.mubr.msk.f32.mxu0 %vm6456_vm11, %v10231_v20  ;;  %5532 = vmatprep.mubr.msk.f32.mxu1 %vm6456_vm11, %v10231_v20  ;;  %v4304_v60 = vrot.slane %v4297_v57, 6 }
 0x6fb   : > { %v4295_v54 = vadd.f32 1.0, %v4292_v59 }
 0x6fc   : > { %v4305_v43 = vsel %vm4302_vm2, %v4303_v52, %v4304_v60 }
 0x6fd   : > { %v4298_v18 = vmul.f32 %v4295_v54, %v4223_v55  ;;  %5486 = vmatmul.mubr.f32.gmra.mrb[68].mxu0 %v4305_v43  ;;  %5533 = vmatmul.mubr.f32.gmra.mrb[72].mxu1 %v4305_v43  ;;  %v4445_v55 = vld [vmem:[%s9978_s4 + $0x208] sm:$0xf] }
 0x6fe   : > { %5488 = vmatprep.mubr.msk.f32.mxu0 %vm6456_vm11, %v10231_v20  ;;  %5535 = vmatprep.mubr.msk.f32.mxu1 %vm6456_vm11, %v10231_v20 }
 0x6ff   : > { %v4306_v40 = vrot.slane %v4298_v18, 6 }
 0x701   : > { %v4307_v14 = vsel %vm4302_vm2, %v4304_v60, %v4306_v40  ;;  %v4699_v40 = vld [vmem:[%s9978_s4 + $0x220] sm:$0xff] }
 0x702   : > { %5489 = vmatmul.mubr.f32.gmra.mrb[70].mxu0 %v4307_v14  ;;  %5536 = vmatmul.mubr.f32.gmra.mrb[74].mxu1 %v4307_v14 }
 0x703   : > { %5554 = vmatprep.mubr.msk.f32.mxu0 %vm6456_vm11, %v10231_v20  ;;  %5616 = vmatprep.mubr.msk.f32.mxu1 %vm6456_vm11, %v10231_v20 }
 0x706   : > { %5555 = vmatmul.mubr.msk.f32.vlgmr.msra.gmra.mrb[72].mxu0 %vm1721_vm4, %v4537_v3  ;;  %v4701_v3 = vld [vmem:[%s9978_s4 + $0x230] sm:$0xff] }
 0x707   : > { %5557 = vmatprep.mubr.msk.f32.mxu0 %vm6456_vm11, %v10231_v20  ;;  %v5979_v15 = vpack.c.bf16 %v4701_v3, %v4700_v6 }
 0x70a   : > { %5558 = vmatmul.mubr.msk.f32.gmra.mrb[74].mxu0 %vm1721_vm4, %v4538_v42  ;;  %v4702_v42 = vld [vmem:[%s9978_s4 + $0x238] sm:$0xff] }
 0x70b   : > { %5560 = vmatprep.mubr.msk.f32.mxu0 %vm6456_vm11, %v10231_v20 }
 0x7cc   : > { %v9769_v63 = vpop.f32.mrb[66].mxu0  ;;  %v4523_v22 = vpop.f32.mrb[70].mxu1 }
 0x7cd   : > { %v4524_v8 = vadd.f32 %v4523_v22, %v4435_v0  ;;  %v5484_v51 = vpop.f32.mrb[67].mxu0  ;;  %v5531_v46 = vpop.f32.mrb[71].mxu1  ;;  %v4703_v22 = vld [vmem:[%s9978_s4 + $0x240] sm:$0xff] }
 0x7ce   : > { %v4704_v51 = vld [vmem:[%s9978_s4 + $0x248] sm:$0xff]  ;;  %v4705_v46 = vld [vmem:[%s9978_s4 + $0x250] sm:$0xff] }
 0x7cf   : > { %v4539_v47 = vmax.f32 %v4524_v8, 0.0  ;;  %v5982_v8 = vpack.c.bf16 %v4703_v22, %v4702_v42 }
 0x7d0   : > { %v9771_v29 = vpop.f32.mrb[68].mxu0  ;;  %v4528_v38 = vpop.f32.mrb[72].mxu1 }
 0x7d1   : > { %v4529_v62 = vadd.f32 %v4528_v38, %v4435_v0  ;;  %v5487_v12 = vpop.f32.mrb[69].mxu0  ;;  %v5534_v45 = vpop.f32.mrb[73].mxu1  ;;  %5561 = vmatmul.mubr.msk.f32.gmra.mrb[76].mxu0 %vm1721_vm4, %v4539_v47  ;;  %v5985_v47 = vpack.c.bf16 %v4705_v46, %v4704_v51  ;;  %v4707_v38 = vld [vmem:[%s9978_s4 + $0x258] sm:$0xff] }
 0x7d2   : > { %5563 = vmatprep.mubr.msk.f32.mxu0 %vm6456_vm11, %v10231_v20  ;;  %v4709_v12 = vld [vmem:[%s9978_s4 + $0x268] sm:$0xff] }
 0x7d3   : > { %v4540_v13 = vmax.f32 %v4529_v62, 0.0  ;;  %v4708_v62 = vld [vmem:[%s9978_s4 + $0x260] sm:$0xff] }
 0x7d4   : > { %v5988_v45 = vpack.c.bf16 %v4708_v62, %v4707_v38 }
 0x7d5   : > { %v9776_v10 = vpop.f32.mrb[70].mxu0  ;;  %v4533_v19 = vpop.f32.mrb[74].mxu1  ;;  %5564 = vmatmul.mubr.msk.f32.gmra.mrb[78].mxu0 %vm1721_vm4, %v4540_v13  ;;  %v4710_v13 = vld [vmem:[%s9978_s4 + $0x270] sm:$0xff] }
 0x7d6   : > { %v4534_v26 = vadd.f32 %v4533_v19, %v4435_v0  ;;  %v5490_v16 = vpop.f32.mrb[71].mxu0  ;;  %v5537_v61 = vpop.f32.mrb[75].mxu1  ;;  %5566 = vmatprep.mubr.msk.f32.mxu0 %vm6456_vm11, %v10231_v20  ;;  %v4698_v0 = vld [vmem:[%s9978_s4 + $0x218] sm:$0xff]  ;;  %5989 = vmatpush3.bf16.msra.mxu1 %v5988_v45  ;;  %v5991_v19 = vpack.c.bf16 %v4710_v13, %v4709_v12 }
 0x7d7   : > { %v5976_v14 = vpack.c.bf16 %v4699_v40, %v4698_v0  ;;  %5990 = vmatprep.subr.bf16.mxu1 %v10241_v33  ;;  %v4712_v16 = vld [vmem:[%s9978_s4 + $0x280] sm:$0xff] }
 0x7d8   : > { %v4541_v7 = vmax.f32 %v4534_v26, 0.0  ;;  %v4711_v26 = vld [vmem:[%s9978_s4 + $0x278] sm:$0xff] }
 0x7d9   : > { %v4623_v35 = vpop.f32.mrb[72].mxu0  ;;  %5977 = vmatpush3.bf16.msra.mxu0 %v5976_v14  ;;  %v5994_v61 = vpack.c.bf16 %v4712_v16, %v4711_v26 }
 0x7da   : > { %v5556_v34 = vpop.f32.mrb[73].mxu0  ;;  %5567 = vmatmul.mubr.msk.f32.gmra.mrb[80].mxu0 %vm1721_vm4, %v4541_v7  ;;  %v9789_v37 = vadd.f32 %v4623_v35, %v4444_v1  ;;  %5978 = vmatprep.subr.bf16.mxu0 %v10241_v33  ;;  %v4446_v7 = vld [vmem:[%s9978_s4 + $0x210] sm:$0xf] }
 0x7db   : > { %5585 = vmatprep.mubr.msk.f32.mxu0 %vm6456_vm11, %v10231_v20  ;;  %5992 = vmatpush3.bf16.msra.mxu1 %v5991_v19 }
 0x7dc   : > { %v4647_v25 = vsel %vm1721_vm4, %v9789_v37, 0.0  ;;  %5993 = vmatprep.subr.bf16.mxu1 %v10241_v33 }
 0x7dd   : > { %v4628_v56 = vpop.f32.mrb[74].mxu0  ;;  %5980 = vmatpush3.bf16.msra.mxu0 %v5979_v15 }
 0x7de   : > { %v5559_v9 = vpop.f32.mrb[75].mxu0  ;;  %v9787_v36 = vadd.f32 %v4628_v56, %v4444_v1  ;;  %5981 = vmatprep.subr.bf16.mxu0 %v10241_v33 }
 0x7df   : > { %5995 = vmatpush3.bf16.msra.mxu1 %v5994_v61 }
 0x7e0   : > { %v4648_v32 = vsel %vm1721_vm4, %v9787_v36, 0.0  ;;  %5996 = vmatprep.subr.bf16.mxu1 %v10241_v33 }
 0x7e1   : > { %v4649_v21 = vadd.f32 %v4648_v32, %v4647_v25  ;;  %5983 = vmatpush3.bf16.msra.mxu0 %v5982_v8 }
 0x7e2   : > { %5984 = vmatprep.subr.bf16.mxu0 %v10241_v33  ;;  %v4328_v33 = vld [vmem:[%s9976_s2 + $0xd0] ss:$0 sm:$0xff] }
 0x7e5   : > { %5986 = vmatpush3.bf16.msra.mxu0 %v5985_v47 }
 0x8a4   : > { %v4633_v11 = vpop.f32.mrb[76].mxu0 }
 0x8a5   : > { %v5562_v41 = vpop.f32.mrb[77].mxu0  ;;  %v9791_v4 = vadd.f32 %v4633_v11, %v4444_v1 }
 0x8a7   : > { %v4650_v30 = vsel %vm1721_vm4, %v9791_v4, 0.0 }
 0x8a8   : > { %v4638_v2 = vpop.f32.mrb[78].mxu0  ;;  %v4651_v27 = vadd.f32 %v4650_v30, %v4649_v21 }
 0x8a9   : > { %v9795_v17 = vadd.f32 %v4638_v2, %v4444_v1  ;;  %v5565_v39 = vpop.f32.mrb[79].mxu0 }
 0x8ab   : > { %v4652_v23 = vsel %vm1721_vm4, %v9795_v17, 0.0 }
 0x8ac   : > { %v4653_v5 = vadd.f32 %v4652_v23, %v4651_v27  ;;  %v4396_v27 = vadd.f32 %v9722_v31, %v4328_v33 }
 0x8ad   : > { %v4643_v48 = vpop.f32.mrb[80].mxu0 }
 0x8ae   : > { %v9803_v50 = vadd.f32 %v4643_v48, %v4444_v1  ;;  %v5568_v58 = vpop.f32.mrb[81].mxu0 }
 0x8b0   : > { %v4655_v53 = vsel %vm4654_vm3, %v9803_v50, 0.0 }
 0x8b1   : > { %v4656_v52 = vadd.f32 %v4655_v53, %v4653_v5  ;;  %v4401_v5 = vadd.f32 %v9727_v44, %v4328_v33 }
 0x8b3   : > { %v4657_v24 = vrot.slane %v4656_v52, 4 }
 0x8b5   : > { %v4658_v57 = vadd.f32 %v4657_v24, %v4656_v52 }
 0x8b7   : > { %v4659_v49 = vrot.slane %v4658_v57, 2 }
 0x8b9   : > { %v4660_v28 = vadd.f32 %v4659_v49, %v4658_v57  ;;  %v4406_v49 = vadd.f32 %v9769_v63, %v4328_v33 }
 0x8bb   : > { %v4661_v59 = vrot.slane %v4660_v28, 1 }
 0x8bd   : > { %v4662_v60 = vadd.f32 %v4661_v59, %v4660_v28  ;;  %v4416_v59 = vadd.f32 %v9776_v10, %v4328_v33 }
 0x8bf   : > { %v4663_v54 = vmul.f32 0.027777778, %v4662_v60  ;;  %v4714_v60 = vld [vmem:[%s9978_s4 + $0x290] sm:$0xff] }
 0x8c1   : > { %v4664_v43 = vmul.f32 %v4663_v54, %v4445_v55  ;;  %v4706_v54 = vld [vmem:[%s9976_s2 + $0xe0] ss:$0 sm:$0xff] }
 0x8c3   : > { %v4665_v18 = vsel %vm4654_vm3, %v4664_v43, 0.0 }
 0x8c4   : > { %4666 = vadd.xlane.f32.xlu1 %v4665_v18 }
 0x951   : > { %v4667_v35 = vpop.xlane.xlu1 %4666 }
 0x952   : > { %v4668_v34 = vmax.f32 %v4667_v35, 0.0  ;;  %v4715_v35 = vld [vmem:[%s9976_s2 + $0xf0] ss:$0 sm:$0xff] }
 0x954   : > { %v4669_v56 = vmul.f32 %v4668_v34, %v4446_v7 }
 0x956   : > { %v4670_v9 = vsel %vm4654_vm3, %v4669_v56, 0.0 }
 0x957   : > { %v4671_v1 = vrot.slane %v4670_v9, 4 }
 0x959   : > { %v4672_v11 = vadd.f32 %v4671_v1, %v4670_v9 }
 0x95b   : > { %v4673_v41 = vrot.slane %v4672_v11, 2 }
 0x95d   : > { %v4674_v32 = vadd.f32 %v4673_v41, %v4672_v11 }
 0x95f   : > { %v4675_v2 = vrot.slane %v4674_v32, 1 }
 0x961   : > { %v4676_v39 = vadd.f32 %v4675_v2, %v4674_v32 }
 0x963   : > { %v5102_v25 = vmul.f32 -1.442695, %v4676_v39 }
 0x965   : > { %6435 = vpow2.f32 %v5102_v25 }
 0x96f   : > { %v6436_v30 = vpop.eup %6435 }
 0x970   : > { %v4680_v21 = vadd.f32 1.0, %v6436_v30 }
 0x972   : > { %6437 = vrcp.f32 %v4680_v21 }
 0x97c   : > { %v6438_v23 = vpop.eup %6437 }
 0x97d   : > { %v4683_v48 = vmul.f32 %v6438_v23, %v9789_v37  ;;  %v4684_v58 = vmul.f32 %v6438_v23, %v9787_v36  ;;  %v4685_v57 = vmul.f32 %v6438_v23, %v9791_v4  ;;  %v4686_v36 = vmul.f32 %v6438_v23, %v9795_v17 }
 0x97e   : > { %v4411_v37 = vadd.f32 %v9771_v29, %v4328_v33  ;;  %v4687_v28 = vmul.f32 %v6438_v23, %v9803_v50  ;;  %v4713_v50 = vld [vmem:[%s9978_s4 + $0x288] sm:$0xff] }
 0x97f   : > { %v9870_v53 = vadd.f32 %v4683_v48, %v4396_v27  ;;  %v9873_v24 = vadd.f32 %v4684_v58, %v4401_v5  ;;  %v9883_v44 = vadd.f32 %v4685_v57, %v4406_v49  ;;  %v5997_v55 = vpack.c.bf16 %v4714_v60, %v4713_v50  ;;  %v4716_v60 = vld [vmem:[%s9978_s4 + $0x298] sm:$0xf] }
 0x980   : > { %v9893_v4 = vadd.f32 %v4686_v36, %v4411_v37  ;;  %v9903_v17 = vadd.f32 %v4687_v28, %v4416_v59 }
 0x981   : > { %v4693_v52 = vmax.f32 %v9870_v53, 0.0  ;;  %v4694_v31 = vmax.f32 %v9873_v24, 0.0  ;;  %v4695_v63 = vmax.f32 %v9883_v44, 0.0  ;;  %5998 = vmatpush3.bf16.msra.mxu1 %v5997_v55 }
 0x982   : > { %v4696_v29 = vmax.f32 %v9893_v4, 0.0  ;;  %v4697_v10 = vmax.f32 %v9903_v17, 0.0 }
 0x983   : > { %5586 = vmatmul.mubr.msk.f32.vlgmr.msra.gmra.mrb[82].mxu0 %vm1721_vm4, %v4693_v52 }
 0x984   : > { %5588 = vmatprep.mubr.msk.f32.mxu0 %vm6456_vm11, %v10231_v20 }
 0x987   : > { %5589 = vmatmul.mubr.msk.f32.gmra.mrb[84].mxu0 %vm1721_vm4, %v4694_v31 }
 0x988   : > { %5591 = vmatprep.mubr.msk.f32.mxu0 %vm6456_vm11, %v10231_v20 }
 0x98b   : > { %5592 = vmatmul.mubr.msk.f32.gmra.mrb[86].mxu0 %vm1721_vm4, %v4695_v63 }
 0x98c   : > { %5594 = vmatprep.mubr.msk.f32.mxu0 %vm6456_vm11, %v10231_v20 }
 0x98f   : > { %5595 = vmatmul.mubr.msk.f32.gmra.mrb[88].mxu0 %vm1721_vm4, %v4696_v29 }
 0x990   : > { %5597 = vmatprep.mubr.msk.f32.mxu0 %vm6456_vm11, %v10231_v20 }
 0x993   : > { %5598 = vmatmul.mubr.msk.f32.gmra.mrb[90].mxu0 %vm1721_vm4, %v4697_v10 }
 0xa56   : > { %v4799_v43 = vpop.f32.mrb[82].mxu0 }
 0xa57   : > { %v4800_v18 = vadd.f32 %v4799_v43, %v4706_v54  ;;  %v5587_v0 = vpop.f32.mrb[83].mxu0 }
 0xa59   : > { %v4823_v40 = vmax.f32 %v4800_v18, 0.0  ;;  %v4717_v18 = vld [vmem:[%s9978_s4 + $0x2a0] sm:$0xf] }
 0xa5a   : > { %v4804_v6 = vpop.f32.mrb[84].mxu0 }
 0xa5b   : > { %v4805_v14 = vadd.f32 %v4804_v6, %v4706_v54  ;;  %v5590_v3 = vpop.f32.mrb[85].mxu0  ;;  %5617 = vmatmul.mubr.msk.f32.vlgmr.msra.gmra.mrb[76].mxu1 %vm1721_vm4, %v4823_v40 }
 0xa5c   : > { %5619 = vmatprep.mubr.msk.f32.mxu1 %vm6456_vm11, %v10231_v20 }
 0xa5d   : > { %v4824_v15 = vmax.f32 %v4805_v14, 0.0 }
 0xa5e   : > { %v4809_v42 = vpop.f32.mrb[86].mxu0 }
 0xa5f   : > { %v4810_v22 = vadd.f32 %v4809_v42, %v4706_v54  ;;  %v5593_v8 = vpop.f32.mrb[87].mxu0  ;;  %5620 = vmatmul.mubr.msk.f32.gmra.mrb[78].mxu1 %vm1721_vm4, %v4824_v15 }
 0xa60   : > { %5622 = vmatprep.mubr.msk.f32.mxu1 %vm6456_vm11, %v10231_v20 }
 0xa61   : > { %v4825_v51 = vmax.f32 %v4810_v22, 0.0 }
 0xa62   : > { %v4814_v46 = vpop.f32.mrb[88].mxu0 }
 0xa63   : > { %v4815_v47 = vadd.f32 %v4814_v46, %v4706_v54  ;;  %v5596_v38 = vpop.f32.mrb[89].mxu0  ;;  %5623 = vmatmul.mubr.msk.f32.gmra.mrb[80].mxu1 %vm1721_vm4, %v4825_v51 }
 0xa64   : > { %5625 = vmatprep.mubr.msk.f32.mxu1 %vm6456_vm11, %v10231_v20 }
 0xa65   : > { %v4826_v62 = vmax.f32 %v4815_v47, 0.0 }
 0xa66   : > { %v4819_v12 = vpop.f32.mrb[90].mxu0 }
 0xa67   : > { %v4820_v45 = vadd.f32 %v4819_v12, %v4706_v54  ;;  %v5599_v13 = vpop.f32.mrb[91].mxu0  ;;  %5626 = vmatmul.mubr.msk.f32.gmra.mrb[82].mxu1 %vm1721_vm4, %v4826_v62 }
 0xa68   : > { %5628 = vmatprep.mubr.msk.f32.mxu1 %vm6456_vm11, %v10231_v20 }
 0xa69   : > { %v4827_v19 = vmax.f32 %v4820_v45, 0.0 }
 0xa6b   : > { %5629 = vmatmul.mubr.msk.f32.gmra.mrb[84].mxu1 %vm1721_vm4, %v4827_v19 }
 0xb2e   : > { %v4909_v26 = vpop.f32.mrb[76].mxu1 }
 0xb2f   : > { %v5618_v16 = vpop.f32.mrb[77].mxu1  ;;  %v4910_v9 = vadd.f32 %v4909_v26, %v4715_v35 }
 0xb31   : > { %v4933_v20 = vsel %vm1721_vm4, %v4910_v9, 0.0 }
 0xb32   : > { %v4914_v61 = vpop.f32.mrb[78].mxu1 }
 0xb33   : > { %v5621_v7 = vpop.f32.mrb[79].mxu1  ;;  %v4915_v34 = vadd.f32 %v4914_v61, %v4715_v35 }
 0xb35   : > { %v4934_v41 = vsel %vm1721_vm4, %v4915_v34, 0.0 }
 0xb36   : > { %v4919_v56 = vpop.f32.mrb[80].mxu1  ;;  %v4935_v30 = vadd.f32 %v4934_v41, %v4933_v20 }
 0xb37   : > { %v4920_v1 = vadd.f32 %v4919_v56, %v4715_v35  ;;  %v5624_v11 = vpop.f32.mrb[81].mxu1 }
 0xb39   : > { %v4936_v2 = vsel %vm1721_vm4, %v4920_v1, 0.0 }
 0xb3a   : > { %v4924_v32 = vpop.f32.mrb[82].mxu1  ;;  %v4937_v33 = vadd.f32 %v4936_v2, %v4935_v30 }
 0xb3b   : > { %v4925_v39 = vadd.f32 %v4924_v32, %v4715_v35  ;;  %v5627_v25 = vpop.f32.mrb[83].mxu1 }
 0xb3d   : > { %v4938_v21 = vsel %vm1721_vm4, %v4925_v39, 0.0 }
 0xb3e   : > { %v4929_v23 = vpop.f32.mrb[84].mxu1  ;;  %v4939_v58 = vadd.f32 %v4938_v21, %v4937_v33 }
 0xb3f   : > { %v4930_v27 = vadd.f32 %v4929_v23, %v4715_v35  ;;  %v5630_v48 = vpop.f32.mrb[85].mxu1 }
 0xb41   : > { %v4940_v5 = vsel %vm4654_vm3, %v4930_v27, 0.0 }
 0xb42   : > { %v4941_v57 = vadd.f32 %v4940_v5, %v4939_v58 }
 0xb44   : > { %v4942_v49 = vrot.slane %v4941_v57, 4 }
 0xb46   : > { %v4943_v36 = vadd.f32 %v4942_v49, %v4941_v57 }
 0xb48   : > { %v4944_v37 = vrot.slane %v4943_v36, 2 }
 0xb4a   : > { %v4945_v28 = vadd.f32 %v4944_v37, %v4943_v36 }
 0xb4c   : > { %v4946_v59 = vrot.slane %v4945_v28, 1 }
 0xb4e   : > { %v4947_v50 = vadd.f32 %v4946_v59, %v4945_v28 }
 0xb50   : > { %v4948_v55 = vmul.f32 0.027777778, %v4947_v50 }
 0xb52   : > { %v4949_v54 = vmul.f32 %v4948_v55, %v4716_v60 }
 0xb54   : > { %v4950_v43 = vsel %vm4654_vm3, %v4949_v54, 0.0 }
 0xb55   : > { %4951 = vadd.xlane.f32.xlu0 %v4950_v43 }
 0xbe2   : > { %v4952_v0 = vpop.xlane.xlu0 %4951 }
 0xbe3   : > { %v4953_v40 = vmax.f32 %v4952_v0, 0.0 }
 0xbe5   : > { %v4954_v6 = vmul.f32 %v4953_v40, %v4717_v18 }
 0xbe7   : > { %v4955_v14 = vsel %vm4654_vm3, %v4954_v6, 0.0 }
 0xbe8   : > { %v4956_v3 = vrot.slane %v4955_v14, 4 }
 0xbea   : > { %v4957_v15 = vadd.f32 %v4956_v3, %v4955_v14 }
 0xbec   : > { %v4958_v42 = vrot.slane %v4957_v15, 2 }
 0xbee   : > { %v4959_v22 = vadd.f32 %v4958_v42, %v4957_v15 }
 0xbf0   : > { %v4960_v8 = vrot.slane %v4959_v22, 1 }
 0xbf2   : > { %v4961_v51 = vadd.f32 %v4960_v8, %v4959_v22 }
 0xbf4   : > { %v5113_v46 = vmul.f32 -1.442695, %v4961_v51 }
 0xbf6   : > { %6439 = vpow2.f32 %v5113_v46 }
 0xc00   : > { %v6440_v47 = vpop.eup %6439 }
 0xc01   : > { %v4965_v38 = vadd.f32 1.0, %v6440_v47 }
 0xc03   : > { %6441 = vrcp.f32 %v4965_v38 }
 0xc0d   : > { %v6442_v62 = vpop.eup %6441 }
 0xc0e   : > { %v4968_v12 = vmul.f32 %v6442_v62, %v4910_v9  ;;  %v4969_v45 = vmul.f32 %v6442_v62, %v4915_v34  ;;  %v4970_v13 = vmul.f32 %v6442_v62, %v4920_v1  ;;  %v4971_v19 = vmul.f32 %v6442_v62, %v4925_v39 }
 0xc0f   : > { %v4972_v26 = vmul.f32 %v6442_v62, %v4930_v27 }
 0xc10   : > { %v4973_v16 = vadd.f32 %v4968_v12, %v4693_v52  ;;  %v4974_v61 = vadd.f32 %v4969_v45, %v4694_v31  ;;  %v4975_v7 = vadd.f32 %v4970_v13, %v4695_v63  ;;  %v4976_v35 = vadd.f32 %v4971_v19, %v4696_v29 }
 0xc11   : > { %v4977_v56 = vadd.f32 %v4972_v26, %v4697_v10 }
 0xc12   : > { %v4978_v34 = vmax.f32 %v4973_v16, 0.0  ;;  %v4979_v9 = vmax.f32 %v4974_v61, 0.0  ;;  %v4980_v53 = vmax.f32 %v4975_v7, 0.0  ;;  %v4981_v52 = vmax.f32 %v4976_v35, 0.0 }
 0xc13   : > { %v4982_v1 = vmax.f32 %v4977_v56, 0.0 }
 0xc14   : > { %v4983_v24 = vsel %vm1721_vm4, %v4978_v34, 0.0  ;;  %v4984_v31 = vsel %vm1721_vm4, %v4979_v9, 0.0  ;;  %v4985_v44 = vsel %vm1721_vm4, %v4980_v53, 0.0  ;;  %v4986_v63 = vsel %vm1721_vm4, %v4981_v52, 0.0 }
 0xc15   : > { %v4987_v4 = vsel %vm1721_vm4, %v4982_v1, 0.0  ;;  %4988 = vst [vmem:[%s244_s17] sm:$0xff] %v4983_v24  ;;  %4989 = vst [vmem:[%s244_s17 + $0x8] sm:$0xff] %v4984_v31 }
 0xc16   : > { %4990 = vst [vmem:[%s244_s17 + $0x10] sm:$0xff] %v4985_v44  ;;  %4991 = vst [vmem:[%s244_s17 + $0x18] sm:$0xff] %v4986_v63 }
 0xc17   : > { %4992 = vst [vmem:[%s244_s17 + $0x20] sm:$0xf] %v4987_v4 }
 0xc18 PF: > { %s15_s18 = sadd.s32 1, %s6450_s18  }
 0xc19   : > { %p12_p4 = scmp.ge.s32.totalorder %s15_s18, 4  }
 0xc1b   :  { %14 = sbr.rel (!%p12_p4) target bundleno = 1 (0x1), region = 127 }

</bundles_post_ra>
